<compile_context>
chip_gen: v7x
topology: tpu7x:2x2x1
jax: 0.10.0
libtpu: 0.0.40
codegen_flags: <defaults>
</compile_context>

<pallas_src>
import functools

import numpy as np
import jax
import jax.numpy as jnp
from jax import lax
from jax.experimental import pallas as pl
from jax.experimental.pallas import tpu as pltpu

N_MSE_STEPS = 80          # the module's fixed 80-step scale search
CAND_GROUP = 4            # candidate chains evaluated per chunk load (VALU fill)
assert N_MSE_STEPS % CAND_GROUP == 0

TM_SSE = 512              # pass-2 tile rows (compute-bound -> modest tile)
TM_MEM = 2048             # pass-1/3 tile rows (memory-bound -> 1 MiB tiles)
FASTPATH_MAX_ELEMS = 512 * 1024      # <= 2 MiB f32 -> fused single-launch path
_VMEM_LIMIT = 32 * 1024 * 1024       # explicit budget; fits v5e/v6e/v7x


def _round_up(a, b):
    return (a + b - 1) // b * b


# --------------------------- pass 1: global min / max ------------------------
def _minmax_kernel(x_ref, mm_ref):
    t = pl.program_id(0)
    x = x_ref[...]
    tile_min = jnp.min(x)
    tile_max = jnp.max(x)

    @pl.when(t == 0)
    def _():
        mm_ref[0] = tile_min
        mm_ref[1] = tile_max

    @pl.when(t != 0)
    def _():
        mm_ref[0] = jnp.minimum(mm_ref[0], tile_min)
        mm_ref[1] = jnp.maximum(mm_ref[1], tile_max)


# ------------------ pass 2: per-tile partial SSE, all candidates -------------
def _sse_partial_kernel(tab_ref, x_ref, part_ref):
    """tab_ref : SMEM (4, 80) rows = scale, 1/scale, clip_lo(-off), clip_hi
       x_ref   : VMEM (TM_SSE, 128) tile
       part_ref: VMEM (1, 80, 128) partial SSE of this tile (sublane-reduced)."""
    tm = x_ref.shape[0]
    nchunks = tm // 8

    for g in range(N_MSE_STEPS // CAND_GROUP):
        # Per-candidate constants splatted once per group (outside chunk loop).
        consts = []
        for j in range(CAND_GROUP):
            c = g * CAND_GROUP + j
            consts.append(
                (jnp.full((8, 128), tab_ref[0, c], jnp.float32),
                 jnp.full((8, 128), tab_ref[1, c], jnp.float32),
                 jnp.full((8, 128), tab_ref[2, c], jnp.float32),
                 jnp.full((8, 128), tab_ref[3, c], jnp.float32)))

        def chunk_body(k, accs):
            s = pl.multiple_of(k * 8, 8)
            xr = x_ref[pl.ds(s, 8), :]                 # one chunk feeds 4 chains
            out = []
            for j in range(CAND_GROUP):
                scale_v, inv_v, lo_v, hi_v = consts[j]
                r = jnp.round(xr * inv_v)
                # offset folded into the clip bounds (exact: offset is integer)
                q = jnp.minimum(jnp.maximum(r, lo_v), hi_v)
                e = q * scale_v - xr
                out.append(accs[j] + e * e)
            return tuple(out)

        zero = jnp.zeros((8, 128), jnp.float32)
        accs = lax.fori_loop(0, nchunks, chunk_body, (zero,) * CAND_GROUP,
                             unroll=min(4, nchunks))

        for j in range(CAND_GROUP):
            c = g * CAND_GROUP + j
            part_ref[0, c:c + 1, :] = jnp.sum(accs[j], axis=0, keepdims=True)


# -------------------------- pass 3: quant-dequant ----------------------------
def _qdq_kernel(q_ref, x_ref, o_ref):
    """q_ref: SMEM (4,) = scale, 1/scale, clip_lo(-offset), clip_hi."""
    x = x_ref[...]
    r = jnp.round(x * q_ref[1])
    o_ref[...] = jnp.minimum(jnp.maximum(r, q_ref[2]), q_ref[3]) * q_ref[0]


# ---------------- fused small-tensor kernel (single launch) ------------------
def _make_fast_kernel(levels, rows, total):
    n_pad = rows * 128 - total
    nchunks = rows // 8
    unroll = min(4, nchunks)
    pad_f = np.float32(n_pad)

    def kernel(x_ref, x0_ref, o_ref, calib_ref):
        # ---- min / max (pad value == x[0], so it cannot perturb them) ------
        def mm_body(k, carry):
            mn, mx = carry
            s = pl.multiple_of(k * 8, 8)
            xr = x_ref[pl.ds(s, 8), :]
            return jnp.minimum(mn, jnp.min(xr)), jnp.maximum(mx, jnp.max(xr))

        x_min, x_max = lax.fori_loop(
            0, nchunks, mm_body,
            (jnp.float32(jnp.inf), jnp.float32(-jnp.inf)), unroll=unroll)
        max_range = x_max - x_min
        x0 = x0_ref[0]

        # ---- 80-candidate search (SSE compared; same argmin as MSE) --------
        best = (jnp.float32(jnp.inf), jnp.float32(1.0),
                jnp.float32(1.0), jnp.float32(0.0))   # sse, scale, 1/scale, off
        for g in range(N_MSE_STEPS // CAND_GROUP):
            scal, consts = [], []
            for j in range(CAND_GROUP):
                c = g * CAND_GROUP + j
                step = np.float32(0.01) * np.float32(c)
                scale = (max_range - step) / levels
                inv = 1.0 / scale
                offset = jnp.round(-x_min / scale)
                lo = -offset
                hi = levels - offset
                scal.append((scale, inv, lo, hi, offset))
                consts.append((jnp.full((8, 128), scale, jnp.float32),
                               jnp.full((8, 128), inv, jnp.float32),
                               jnp.full((8, 128), lo, jnp.float32),
                               jnp.full((8, 128), hi, jnp.float32)))

            def chunk_body(k, accs):
                s = pl.multiple_of(k * 8, 8)
                xr = x_ref[pl.ds(s, 8), :]
                out = []
                for j in range(CAND_GROUP):
                    scale_v, inv_v, lo_v, hi_v = consts[j]
                    r = jnp.round(xr * inv_v)
                    q = jnp.minimum(jnp.maximum(r, lo_v), hi_v)
                    e = q * scale_v - xr
                    out.append(accs[j] + e * e)
                return tuple(out)

            zero = jnp.zeros((8, 128), jnp.float32)
            accs = lax.fori_loop(0, nchunks, chunk_body, (zero,) * CAND_GROUP,
                                 unroll=unroll)

            for j in range(CAND_GROUP):
                scale, inv, lo, hi, offset = scal[j]
                sse = jnp.sum(accs[j])
                if n_pad:
                    # exact removal of the padded x[0]-copies' contribution
                    r0 = jnp.round(x0 * inv)
                    q0 = jnp.minimum(jnp.maximum(r0, lo), hi)
                    e0 = q0 * scale - x0
                    sse = sse - pad_f * (e0 * e0)
                better = sse < best[0]     # strict '<' -> NaN candidates skipped
                best = (jnp.where(better, sse, best[0]),
                        jnp.where(better, scale, best[1]),
                        jnp.where(better, inv, best[2]),
                        jnp.where(better, offset, best[3]))

        _, b_scale, b_inv, b_off = best
        calib_ref[0] = b_scale
        calib_ref[1] = b_off

        # ---- quant-dequant write-back ---------------------------------------
        scale_v = jnp.full((8, 128), b_scale, jnp.float32)
        inv_v = jnp.full((8, 128), b_inv, jnp.float32)
        lo_v = jnp.full((8, 128), -b_off, jnp.float32)
        hi_v = jnp.full((8, 128), levels - b_off, jnp.float32)

        def qdq_body(k, carry):
            s = pl.multiple_of(k * 8, 8)
            xr = x_ref[pl.ds(s, 8), :]
            r = jnp.round(xr * inv_v)
            o_ref[pl.ds(s, 8), :] = jnp.minimum(jnp.maximum(r, lo_v), hi_v) * scale_v
            return carry

        lax.fori_loop(0, nchunks, qdq_body, 0, unroll=unroll)

    return kernel


# ------------------------------- wrapper --------------------------------------
@functools.partial(jax.jit, static_argnames=("bw", "quantize"))
def quantizers_forward(x, bw=8, quantize=True):
    """Forward of Quantizers(bw, 'mse', act_q=True) on a fresh module with
    set_quantize(quantize).  Returns (x_out, scale, offset)."""
    orig_shape = x.shape
    levels = float(2 ** bw - 1)
    xf = x.astype(jnp.float32).reshape(-1)
    total = xf.shape[0]

    use_fast = total <= FASTPATH_MAX_ELEMS

    # Pad the flattened data to tile granularity with x[0] (never perturbs
    # min/max); the padded elements' SSE is subtracted exactly before argmin.
    row_mult = 8 if use_fast else TM_SSE
    rows = _round_up(_round_up(total, 128) // 128, row_mult)
    n_pad = rows * 128 - total
    if n_pad:
        xf = jnp.concatenate([xf, jnp.full((n_pad,), xf[0], jnp.float32)])
    x2d = xf.reshape(rows, 128)

    if use_fast:
        # Single fused launch: min/max + 80-candidate search + qdq.
        out2d, calib = pl.pallas_call(
            _make_fast_kernel(levels, rows, total),
            out_shape=(jax.ShapeDtypeStruct((rows, 128), jnp.float32),
                       jax.ShapeDtypeStruct((2,), jnp.float32)),
            grid=(1,),
            in_specs=[pl.BlockSpec((rows, 128), lambda i: (0, 0)),
                      pl.BlockSpec(memory_space=pltpu.MemorySpace.SMEM)],
            out_specs=[pl.BlockSpec((rows, 128), lambda i: (0, 0)),
                       pl.BlockSpec(memory_space=pltpu.MemorySpace.SMEM)],
        )(x2d, xf[:1])
        scale, offset = calib[0], calib[1]
        if not quantize:
            return x, scale, offset
        out = out2d.reshape(-1)[:total].reshape(orig_shape)
        return out, scale, offset

    # ------------------------- tiled 3-pass path ------------------------------
    tm_mem = TM_MEM
    while rows % tm_mem:          # rows is a multiple of TM_SSE, so terminates
        tm_mem //= 2

    # pass 1: global min / max (sequential running reduce into SMEM).
    mm = pl.pallas_call(
        _minmax_kernel,
        out_shape=jax.ShapeDtypeStruct((2,), jnp.float32),
        grid=(rows // tm_mem,),
        in_specs=[pl.BlockSpec((tm_mem, 128), lambda i: (i, 0))],
        out_specs=pl.BlockSpec(memory_space=pltpu.MemorySpace.SMEM),
        compiler_params=pltpu.CompilerParams(
            dimension_semantics=("arbitrary",),
            vmem_limit_bytes=_VMEM_LIMIT),
    )(x2d)
    x_min, x_max = mm[0], mm[1]
    max_range = x_max - x_min

    # 80 candidate (scale, 1/scale, clip_lo, clip_hi) computed once in XLA.
    idx = jnp.arange(N_MSE_STEPS, dtype=jnp.float32)
    scales = (max_range - 0.01 * idx) / levels
    invs = 1.0 / scales
    offsets = jnp.round(-x_min / scales)
    los = -offsets
    his = levels - offsets
    table = jnp.stack([scales, invs, los, his])           # (4, 80) -> SMEM

    # pass 2: per-tile partial SSE ("parallel" -> megacore-shardable on v7x).
    n_sse_tiles = rows // TM_SSE
    part = pl.pallas_call(
        _sse_partial_kernel,
        out_shape=jax.ShapeDtypeStruct((n_sse_tiles, N_MSE_STEPS, 128),
                                       jnp.float32),
        grid=(n_sse_tiles,),
        in_specs=[pl.BlockSpec(memory_space=pltpu.MemorySpace.SMEM),
                  pl.BlockSpec((TM_SSE, 128), lambda i: (i, 0))],
        out_specs=pl.BlockSpec((1, N_MSE_STEPS, 128), lambda i: (i, 0, 0)),
        compiler_params=pltpu.CompilerParams(
            dimension_semantics=("parallel",)),
    )(table, x2d)

    # Vectorized finalize (tiny): sum partials, correct padding, argmin.
    sse = jnp.sum(part, axis=(0, 2))                       # (80,)
    if n_pad:
        x0 = xf[0]
        e0 = jnp.clip(jnp.round(x0 * invs), los, his) * scales - x0
        sse = sse - jnp.float32(n_pad) * (e0 * e0)
    sse = jnp.where(jnp.isnan(sse), jnp.inf, sse)          # NaN candidates skipped
    best = jnp.argmin(sse)                                 # first-win on ties
    valid = sse[best] < jnp.inf
    scale = jnp.where(valid, scales[best], jnp.float32(1.0))
    offset = jnp.where(valid, offsets[best], jnp.float32(0.0))
    inv = jnp.where(valid, invs[best], jnp.float32(1.0))

    if not quantize:
        # Module semantics: calibration still runs, raw input is returned.
        return x, scale, offset

    # pass 3: quant-dequant write-back (independent tiles -> "parallel").
    qparams = jnp.stack([scale, inv, -offset, levels - offset])   # (4,)
    out2d = pl.pallas_call(
        _qdq_kernel,
        out_shape=jax.ShapeDtypeStruct((rows, 128), jnp.float32),
        grid=(rows // tm_mem,),
        in_specs=[pl.BlockSpec(memory_space=pltpu.MemorySpace.SMEM),
                  pl.BlockSpec((tm_mem, 128), lambda i: (i, 0))],
        out_specs=pl.BlockSpec((tm_mem, 128), lambda i: (i, 0)),
        compiler_params=pltpu.CompilerParams(
            dimension_semantics=("parallel",),
            vmem_limit_bytes=_VMEM_LIMIT),
    )(qparams, x2d)

    out = out2d.reshape(-1)[:total].reshape(orig_shape)
    return out, scale, offset


# ------------------------------ pure-JAX reference ---------------------------
def _reference(x, bw=8):
    """Pure-JAX reference of the module forward.  Uses the same
    reciprocal-multiply formulation as the kernel (~1 ulp from torch's true
    divide, which only matters at exact round-to-half boundaries)."""
    xf = x.astype(jnp.float32)
    levels = float(2 ** bw - 1)
    x_min, x_max = jnp.min(xf), jnp.max(xf)
    max_range = x_max - x_min

    def qdq(v, scale, offset):
        x_int = jnp.round(v * (1.0 / scale)) + offset
        x_q = jnp.clip(x_int, 0.0, levels)
        return (x_q - offset) * scale

    best = (jnp.float32(jnp.inf), jnp.float32(1.0), jnp.float32(0.0))
    for i in range(N_MSE_STEPS):
        scale = (max_range - 0.01 * jnp.float32(i)) / levels
        offset = jnp.round(-x_min / scale)
        sse = jnp.sum((qdq(xf, scale, offset) - xf) ** 2)
        better = sse < best[0]
        best = (jnp.where(better, sse, best[0]),
                jnp.where(better, scale, best[1]),
                jnp.where(better, offset, best[2]))
    return qdq(xf, best[1], best[2])


if __name__ == "__main__":
    key = jax.random.PRNGKey(0)
    k1, k2, k3 = jax.random.split(key, 3)

    # 1) Small NCHW activation (the module's typical input): fused fast path.
    x1 = jax.random.normal(k1, (2, 4, 16, 16), dtype=jnp.float32) * 3.0 + 0.5
    y1, s1, o1 = quantizers_forward(x1, bw=8, quantize=True)
    y1 = jax.block_until_ready(y1)
    assert y1.shape == x1.shape and y1.dtype == jnp.float32
    assert jnp.allclose(y1, _reference(x1, bw=8), atol=1e-5, rtol=1e-5)

    # 2) Ragged small shape: exercises padding + exact SSE correction.
    x2 = jax.random.normal(k2, (3, 5, 7, 11), dtype=jnp.float32) * 1.7 - 0.3
    y2, _, _ = quantizers_forward(x2, bw=8, quantize=True)
    y2 = jax.block_until_ready(y2)
    assert jnp.allclose(y2, _reference(x2, bw=8), atol=1e-5, rtol=1e-5)

    # 3) Larger ragged tensor: exercises the tiled 3-pass path.
    x3 = jax.random.normal(k3, (6, 10, 100, 100), dtype=jnp.float32) * 2.0 + 1.0
    y3, _, _ = quantizers_forward(x3, bw=8, quantize=True)
    y3 = jax.block_until_ready(y3)
    assert jnp.allclose(y3, _reference(x3, bw=8), atol=1e-5, rtol=1e-5)

    print("KERNEL_OK")
</pallas_src>

<mosaic_0001>
module attributes {stable_mosaic.version = 11 : i64} {
  func.func @kernel(%arg0: i32, %arg1: memref<16x128xf32, #tpu.memory_space<vmem>>, %arg2: memref<1xf32, #tpu.memory_space<smem>>, %arg3: memref<16x128xf32, #tpu.memory_space<vmem>>, %arg4: memref<2xf32, #tpu.memory_space<smem>>) attributes {dimension_semantics = [#tpu.dimension_semantics<arbitrary>], iteration_bounds = array<i64: 1>, scalar_prefetch = 0 : i64, scratch_operands = 0 : i64, tpu.core_type = #tpu.core_type<tc>, window_params = [{pipeline_mode = #tpu.pipeline_mode<synchronous>, transform_indices = @transform_0, window_bounds = array<i64: 16, 128>}, {transform_indices = @transform_1, window_bounds = array<i64: 1>}, {pipeline_mode = #tpu.pipeline_mode<synchronous>, transform_indices = @transform_2, window_bounds = array<i64: 16, 128>}, {transform_indices = @transform_3, window_bounds = array<i64: 2>}]} {
    %cst = arith.constant 0x7F800000 : f32
    %cst_0 = arith.constant 0xFF800000 : f32
    %c0_i32 = arith.constant 0 : i32
    %c8_i32 = arith.constant 8 : i32
    %0 = arith.muli %c0_i32, %c8_i32 : i32
    %1 = tpu.assume_multiple %0, 8 : i32
    %2 = arith.index_cast %1 : i32 to index
    %c0 = arith.constant 0 : index
    %3 = vector.load %arg1[%2, %c0] : memref<16x128xf32, #tpu.memory_space<vmem>>, vector<8x128xf32>
    %4 = vector.shape_cast %3 : vector<8x128xf32> to vector<1x8x128xf32>
    %cst_1 = arith.constant dense<0x7F800000> : vector<1xf32>
    %5 = vector.multi_reduction <minimumf>, %4, %cst_1 [1, 2] : vector<1x8x128xf32> to vector<1xf32>
    %6 = vector.shape_cast %5 : vector<1xf32> to vector<1x1x1xf32>
    %7 = vector.extract %6[0, 0, 0] : f32 from vector<1x1x1xf32>
    %8 = arith.minimumf %cst, %7 : f32
    %9 = vector.shape_cast %3 : vector<8x128xf32> to vector<1x8x128xf32>
    %cst_2 = arith.constant dense<0xFF800000> : vector<1xf32>
    %10 = vector.multi_reduction <maximumf>, %9, %cst_2 [1, 2] : vector<1x8x128xf32> to vector<1xf32>
    %11 = vector.shape_cast %10 : vector<1xf32> to vector<1x1x1xf32>
    %12 = vector.extract %11[0, 0, 0] : f32 from vector<1x1x1xf32>
    %13 = arith.maximumf %cst_0, %12 : f32
    %c1_i32 = arith.constant 1 : i32
    %c8_i32_3 = arith.constant 8 : i32
    %14 = arith.muli %c1_i32, %c8_i32_3 : i32
    %15 = tpu.assume_multiple %14, 8 : i32
    %16 = arith.index_cast %15 : i32 to index
    %c0_4 = arith.constant 0 : index
    %17 = vector.load %arg1[%16, %c0_4] : memref<16x128xf32, #tpu.memory_space<vmem>>, vector<8x128xf32>
    %18 = vector.shape_cast %17 : vector<8x128xf32> to vector<1x8x128xf32>
    %cst_5 = arith.constant dense<0x7F800000> : vector<1xf32>
    %19 = vector.multi_reduction <minimumf>, %18, %cst_5 [1, 2] : vector<1x8x128xf32> to vector<1xf32>
    %20 = vector.shape_cast %19 : vector<1xf32> to vector<1x1x1xf32>
    %21 = vector.extract %20[0, 0, 0] : f32 from vector<1x1x1xf32>
    %22 = arith.minimumf %8, %21 : f32
    %23 = vector.shape_cast %17 : vector<8x128xf32> to vector<1x8x128xf32>
    %cst_6 = arith.constant dense<0xFF800000> : vector<1xf32>
    %24 = vector.multi_reduction <maximumf>, %23, %cst_6 [1, 2] : vector<1x8x128xf32> to vector<1xf32>
    %25 = vector.shape_cast %24 : vector<1xf32> to vector<1x1x1xf32>
    %26 = vector.extract %25[0, 0, 0] : f32 from vector<1x1x1xf32>
    %27 = arith.maximumf %13, %26 : f32
    %c2_i32 = arith.constant 2 : i32
    %28 = arith.subf %27, %22 : f32
    %cst_7 = arith.constant 0.000000e+00 : f32
    %29 = arith.subf %28, %cst_7 : f32
    %cst_8 = arith.constant 2.550000e+02 : f32
    %30 = arith.divf %29, %cst_8 : f32
    %cst_9 = arith.constant 1.000000e+00 : f32
    %31 = arith.divf %cst_9, %30 : f32
    %cst_10 = arith.constant 0.000000e+00 : f32
    %32 = arith.subf %cst_10, %22 : f32
    %33 = arith.divf %32, %30 : f32
    %34 = math.roundeven %33 : f32
    %cst_11 = arith.constant 0.000000e+00 : f32
    %35 = arith.subf %cst_11, %34 : f32
    %cst_12 = arith.constant 2.550000e+02 : f32
    %36 = arith.subf %cst_12, %34 : f32
    %37 = vector.broadcast %30 : f32 to vector<8x128xf32>
    %38 = vector.broadcast %31 : f32 to vector<8x128xf32>
    %39 = vector.broadcast %35 : f32 to vector<8x128xf32>
    %40 = vector.broadcast %36 : f32 to vector<8x128xf32>
    %cst_13 = arith.constant 0.00999999977 : f32
    %41 = arith.subf %28, %cst_13 : f32
    %cst_14 = arith.constant 2.550000e+02 : f32
    %42 = arith.divf %41, %cst_14 : f32
    %cst_15 = arith.constant 1.000000e+00 : f32
    %43 = arith.divf %cst_15, %42 : f32
    %cst_16 = arith.constant 0.000000e+00 : f32
    %44 = arith.subf %cst_16, %22 : f32
    %45 = arith.divf %44, %42 : f32
    %46 = math.roundeven %45 : f32
    %cst_17 = arith.constant 0.000000e+00 : f32
    %47 = arith.subf %cst_17, %46 : f32
    %cst_18 = arith.constant 2.550000e+02 : f32
    %48 = arith.subf %cst_18, %46 : f32
    %49 = vector.broadcast %42 : f32 to vector<8x128xf32>
    %50 = vector.broadcast %43 : f32 to vector<8x128xf32>
    %51 = vector.broadcast %47 : f32 to vector<8x128xf32>
    %52 = vector.broadcast %48 : f32 to vector<8x128xf32>
    %cst_19 = arith.constant 2.000000e-02 : f32
    %53 = arith.subf %28, %cst_19 : f32
    %cst_20 = arith.constant 2.550000e+02 : f32
    %54 = arith.divf %53, %cst_20 : f32
    %cst_21 = arith.constant 1.000000e+00 : f32
    %55 = arith.divf %cst_21, %54 : f32
    %cst_22 = arith.constant 0.000000e+00 : f32
    %56 = arith.subf %cst_22, %22 : f32
    %57 = arith.divf %56, %54 : f32
    %58 = math.roundeven %57 : f32
    %cst_23 = arith.constant 0.000000e+00 : f32
    %59 = arith.subf %cst_23, %58 : f32
    %cst_24 = arith.constant 2.550000e+02 : f32
    %60 = arith.subf %cst_24, %58 : f32
    %61 = vector.broadcast %54 : f32 to vector<8x128xf32>
    %62 = vector.broadcast %55 : f32 to vector<8x128xf32>
    %63 = vector.broadcast %59 : f32 to vector<8x128xf32>
    %64 = vector.broadcast %60 : f32 to vector<8x128xf32>
    %cst_25 = arith.constant 3.000000e-02 : f32
    %65 = arith.subf %28, %cst_25 : f32
    %cst_26 = arith.constant 2.550000e+02 : f32
    %66 = arith.divf %65, %cst_26 : f32
    %cst_27 = arith.constant 1.000000e+00 : f32
    %67 = arith.divf %cst_27, %66 : f32
    %cst_28 = arith.constant 0.000000e+00 : f32
    %68 = arith.subf %cst_28, %22 : f32
    %69 = arith.divf %68, %66 : f32
    %70 = math.roundeven %69 : f32
    %cst_29 = arith.constant 0.000000e+00 : f32
    %71 = arith.subf %cst_29, %70 : f32
    %cst_30 = arith.constant 2.550000e+02 : f32
    %72 = arith.subf %cst_30, %70 : f32
    %73 = vector.broadcast %66 : f32 to vector<8x128xf32>
    %74 = vector.broadcast %67 : f32 to vector<8x128xf32>
    %75 = vector.broadcast %71 : f32 to vector<8x128xf32>
    %76 = vector.broadcast %72 : f32 to vector<8x128xf32>
    %cst_31 = arith.constant 0.000000e+00 : f32
    %77 = vector.broadcast %cst_31 : f32 to vector<8x128xf32>
    %c0_i32_32 = arith.constant 0 : i32
    %c8_i32_33 = arith.constant 8 : i32
    %78 = arith.muli %c0_i32_32, %c8_i32_33 : i32
    %79 = tpu.assume_multiple %78, 8 : i32
    %80 = arith.index_cast %79 : i32 to index
    %c0_34 = arith.constant 0 : index
    %81 = vector.load %arg1[%80, %c0_34] : memref<16x128xf32, #tpu.memory_space<vmem>>, vector<8x128xf32>
    %82 = arith.mulf %81, %38 : vector<8x128xf32>
    %83 = math.roundeven %82 : vector<8x128xf32>
    %84 = arith.maximumf %83, %39 : vector<8x128xf32>
    %85 = arith.minimumf %84, %40 : vector<8x128xf32>
    %86 = arith.mulf %85, %37 : vector<8x128xf32>
    %87 = arith.subf %86, %81 : vector<8x128xf32>
    %88 = arith.mulf %87, %87 : vector<8x128xf32>
    %89 = arith.addf %77, %88 : vector<8x128xf32>
    %90 = arith.mulf %81, %50 : vector<8x128xf32>
    %91 = math.roundeven %90 : vector<8x128xf32>
    %92 = arith.maximumf %91, %51 : vector<8x128xf32>
    %93 = arith.minimumf %92, %52 : vector<8x128xf32>
    %94 = arith.mulf %93, %49 : vector<8x128xf32>
    %95 = arith.subf %94, %81 : vector<8x128xf32>
    %96 = arith.mulf %95, %95 : vector<8x128xf32>
    %97 = arith.addf %77, %96 : vector<8x128xf32>
    %98 = arith.mulf %81, %62 : vector<8x128xf32>
    %99 = math.roundeven %98 : vector<8x128xf32>
    %100 = arith.maximumf %99, %63 : vector<8x128xf32>
    %101 = arith.minimumf %100, %64 : vector<8x128xf32>
    %102 = arith.mulf %101, %61 : vector<8x128xf32>
    %103 = arith.subf %102, %81 : vector<8x128xf32>
    %104 = arith.mulf %103, %103 : vector<8x128xf32>
    %105 = arith.addf %77, %104 : vector<8x128xf32>
    %106 = arith.mulf %81, %74 : vector<8x128xf32>
    %107 = math.roundeven %106 : vector<8x128xf32>
    %108 = arith.maximumf %107, %75 : vector<8x128xf32>
    %109 = arith.minimumf %108, %76 : vector<8x128xf32>
    %110 = arith.mulf %109, %73 : vector<8x128xf32>
    %111 = arith.subf %110, %81 : vector<8x128xf32>
    %112 = arith.mulf %111, %111 : vector<8x128xf32>
    %113 = arith.addf %77, %112 : vector<8x128xf32>
    %c1_i32_35 = arith.constant 1 : i32
    %c8_i32_36 = arith.constant 8 : i32
    %114 = arith.muli %c1_i32_35, %c8_i32_36 : i32
    %115 = tpu.assume_multiple %114, 8 : i32
    %116 = arith.index_cast %115 : i32 to index
    %c0_37 = arith.constant 0 : index
    %117 = vector.load %arg1[%116, %c0_37] : memref<16x128xf32, #tpu.memory_space<vmem>>, vector<8x128xf32>
    %118 = arith.mulf %117, %38 : vector<8x128xf32>
    %119 = math.roundeven %118 : vector<8x128xf32>
    %120 = arith.maximumf %119, %39 : vector<8x128xf32>
    %121 = arith.minimumf %120, %40 : vector<8x128xf32>
    %122 = arith.mulf %121, %37 : vector<8x128xf32>
    %123 = arith.subf %122, %117 : vector<8x128xf32>
    %124 = arith.mulf %123, %123 : vector<8x128xf32>
    %125 = arith.addf %89, %124 : vector<8x128xf32>
    %126 = arith.mulf %117, %50 : vector<8x128xf32>
    %127 = math.roundeven %126 : vector<8x128xf32>
    %128 = arith.maximumf %127, %51 : vector<8x128xf32>
    %129 = arith.minimumf %128, %52 : vector<8x128xf32>
    %130 = arith.mulf %129, %49 : vector<8x128xf32>
    %131 = arith.subf %130, %117 : vector<8x128xf32>
    %132 = arith.mulf %131, %131 : vector<8x128xf32>
    %133 = arith.addf %97, %132 : vector<8x128xf32>
    %134 = arith.mulf %117, %62 : vector<8x128xf32>
    %135 = math.roundeven %134 : vector<8x128xf32>
    %136 = arith.maximumf %135, %63 : vector<8x128xf32>
    %137 = arith.minimumf %136, %64 : vector<8x128xf32>
    %138 = arith.mulf %137, %61 : vector<8x128xf32>
    %139 = arith.subf %138, %117 : vector<8x128xf32>
    %140 = arith.mulf %139, %139 : vector<8x128xf32>
    %141 = arith.addf %105, %140 : vector<8x128xf32>
    %142 = arith.mulf %117, %74 : vector<8x128xf32>
    %143 = math.roundeven %142 : vector<8x128xf32>
    %144 = arith.maximumf %143, %75 : vector<8x128xf32>
    %145 = arith.minimumf %144, %76 : vector<8x128xf32>
    %146 = arith.mulf %145, %73 : vector<8x128xf32>
    %147 = arith.subf %146, %117 : vector<8x128xf32>
    %148 = arith.mulf %147, %147 : vector<8x128xf32>
    %149 = arith.addf %113, %148 : vector<8x128xf32>
    %c2_i32_38 = arith.constant 2 : i32
    %150 = vector.shape_cast %125 : vector<8x128xf32> to vector<1x8x128xf32>
    %cst_39 = arith.constant dense<0.000000e+00> : vector<1xf32>
    %151 = vector.multi_reduction <add>, %150, %cst_39 [1, 2] : vector<1x8x128xf32> to vector<1xf32>
    %152 = vector.shape_cast %151 : vector<1xf32> to vector<1x1x1xf32>
    %153 = vector.extract %152[0, 0, 0] : f32 from vector<1x1x1xf32>
    %cst_40 = arith.constant 0x7F800000 : f32
    %154 = arith.cmpf olt, %153, %cst_40 : f32
    %cst_41 = arith.constant 0x7F800000 : f32
    %155 = arith.select %154, %153, %cst_41 : f32
    %cst_42 = arith.constant 1.000000e+00 : f32
    %156 = arith.select %154, %30, %cst_42 : f32
    %cst_43 = arith.constant 1.000000e+00 : f32
    %157 = arith.select %154, %31, %cst_43 : f32
    %cst_44 = arith.constant 0.000000e+00 : f32
    %158 = arith.select %154, %34, %cst_44 : f32
    %159 = vector.shape_cast %133 : vector<8x128xf32> to vector<1x8x128xf32>
    %cst_45 = arith.constant dense<0.000000e+00> : vector<1xf32>
    %160 = vector.multi_reduction <add>, %159, %cst_45 [1, 2] : vector<1x8x128xf32> to vector<1xf32>
    %161 = vector.shape_cast %160 : vector<1xf32> to vector<1x1x1xf32>
    %162 = vector.extract %161[0, 0, 0] : f32 from vector<1x1x1xf32>
    %163 = arith.cmpf olt, %162, %155 : f32
    %164 = arith.select %163, %162, %155 : f32
    %165 = arith.select %163, %42, %156 : f32
    %166 = arith.select %163, %43, %157 : f32
    %167 = arith.select %163, %46, %158 : f32
    %168 = vector.shape_cast %141 : vector<8x128xf32> to vector<1x8x128xf32>
    %cst_46 = arith.constant dense<0.000000e+00> : vector<1xf32>
    %169 = vector.multi_reduction <add>, %168, %cst_46 [1, 2] : vector<1x8x128xf32> to vector<1xf32>
    %170 = vector.shape_cast %169 : vector<1xf32> to vector<1x1x1xf32>
    %171 = vector.extract %170[0, 0, 0] : f32 from vector<1x1x1xf32>
    %172 = arith.cmpf olt, %171, %164 : f32
    %173 = arith.select %172, %171, %164 : f32
    %174 = arith.select %172, %54, %165 : f32
    %175 = arith.select %172, %55, %166 : f32
    %176 = arith.select %172, %58, %167 : f32
    %177 = vector.shape_cast %149 : vector<8x128xf32> to vector<1x8x128xf32>
    %cst_47 = arith.constant dense<0.000000e+00> : vector<1xf32>
    %178 = vector.multi_reduction <add>, %177, %cst_47 [1, 2] : vector<1x8x128xf32> to vector<1xf32>
    %179 = vector.shape_cast %178 : vector<1xf32> to vector<1x1x1xf32>
    %180 = vector.extract %179[0, 0, 0] : f32 from vector<1x1x1xf32>
    %181 = arith.cmpf olt, %180, %173 : f32
    %182 = arith.select %181, %180, %173 : f32
    %183 = arith.select %181, %66, %174 : f32
    %184 = arith.select %181, %67, %175 : f32
    %185 = arith.select %181, %70, %176 : f32
    %cst_48 = arith.constant 4.000000e-02 : f32
    %186 = arith.subf %28, %cst_48 : f32
    %cst_49 = arith.constant 2.550000e+02 : f32
    %187 = arith.divf %186, %cst_49 : f32
    %cst_50 = arith.constant 1.000000e+00 : f32
    %188 = arith.divf %cst_50, %187 : f32
    %cst_51 = arith.constant 0.000000e+00 : f32
    %189 = arith.subf %cst_51, %22 : f32
    %190 = arith.divf %189, %187 : f32
    %191 = math.roundeven %190 : f32
    %cst_52 = arith.constant 0.000000e+00 : f32
    %192 = arith.subf %cst_52, %191 : f32
    %cst_53 = arith.constant 2.550000e+02 : f32
    %193 = arith.subf %cst_53, %191 : f32
    %194 = vector.broadcast %187 : f32 to vector<8x128xf32>
    %195 = vector.broadcast %188 : f32 to vector<8x128xf32>
    %196 = vector.broadcast %192 : f32 to vector<8x128xf32>
    %197 = vector.broadcast %193 : f32 to vector<8x128xf32>
    %cst_54 = arith.constant 0.049999997 : f32
    %198 = arith.subf %28, %cst_54 : f32
    %cst_55 = arith.constant 2.550000e+02 : f32
    %199 = arith.divf %198, %cst_55 : f32
    %cst_56 = arith.constant 1.000000e+00 : f32
    %200 = arith.divf %cst_56, %199 : f32
    %cst_57 = arith.constant 0.000000e+00 : f32
    %201 = arith.subf %cst_57, %22 : f32
    %202 = arith.divf %201, %199 : f32
    %203 = math.roundeven %202 : f32
    %cst_58 = arith.constant 0.000000e+00 : f32
    %204 = arith.subf %cst_58, %203 : f32
    %cst_59 = arith.constant 2.550000e+02 : f32
    %205 = arith.subf %cst_59, %203 : f32
    %206 = vector.broadcast %199 : f32 to vector<8x128xf32>
    %207 = vector.broadcast %200 : f32 to vector<8x128xf32>
    %208 = vector.broadcast %204 : f32 to vector<8x128xf32>
    %209 = vector.broadcast %205 : f32 to vector<8x128xf32>
    %cst_60 = arith.constant 6.000000e-02 : f32
    %210 = arith.subf %28, %cst_60 : f32
    %cst_61 = arith.constant 2.550000e+02 : f32
    %211 = arith.divf %210, %cst_61 : f32
    %cst_62 = arith.constant 1.000000e+00 : f32
    %212 = arith.divf %cst_62, %211 : f32
    %cst_63 = arith.constant 0.000000e+00 : f32
    %213 = arith.subf %cst_63, %22 : f32
    %214 = arith.divf %213, %211 : f32
    %215 = math.roundeven %214 : f32
    %cst_64 = arith.constant 0.000000e+00 : f32
    %216 = arith.subf %cst_64, %215 : f32
    %cst_65 = arith.constant 2.550000e+02 : f32
    %217 = arith.subf %cst_65, %215 : f32
    %218 = vector.broadcast %211 : f32 to vector<8x128xf32>
    %219 = vector.broadcast %212 : f32 to vector<8x128xf32>
    %220 = vector.broadcast %216 : f32 to vector<8x128xf32>
    %221 = vector.broadcast %217 : f32 to vector<8x128xf32>
    %cst_66 = arith.constant 7.000000e-02 : f32
    %222 = arith.subf %28, %cst_66 : f32
    %cst_67 = arith.constant 2.550000e+02 : f32
    %223 = arith.divf %222, %cst_67 : f32
    %cst_68 = arith.constant 1.000000e+00 : f32
    %224 = arith.divf %cst_68, %223 : f32
    %cst_69 = arith.constant 0.000000e+00 : f32
    %225 = arith.subf %cst_69, %22 : f32
    %226 = arith.divf %225, %223 : f32
    %227 = math.roundeven %226 : f32
    %cst_70 = arith.constant 0.000000e+00 : f32
    %228 = arith.subf %cst_70, %227 : f32
    %cst_71 = arith.constant 2.550000e+02 : f32
    %229 = arith.subf %cst_71, %227 : f32
    %230 = vector.broadcast %223 : f32 to vector<8x128xf32>
    %231 = vector.broadcast %224 : f32 to vector<8x128xf32>
    %232 = vector.broadcast %228 : f32 to vector<8x128xf32>
    %233 = vector.broadcast %229 : f32 to vector<8x128xf32>
    %cst_72 = arith.constant 0.000000e+00 : f32
    %234 = vector.broadcast %cst_72 : f32 to vector<8x128xf32>
    %c0_i32_73 = arith.constant 0 : i32
    %c8_i32_74 = arith.constant 8 : i32
    %235 = arith.muli %c0_i32_73, %c8_i32_74 : i32
    %236 = tpu.assume_multiple %235, 8 : i32
    %237 = arith.index_cast %236 : i32 to index
    %c0_75 = arith.constant 0 : index
    %238 = vector.load %arg1[%237, %c0_75] : memref<16x128xf32, #tpu.memory_space<vmem>>, vector<8x128xf32>
    %239 = arith.mulf %238, %195 : vector<8x128xf32>
    %240 = math.roundeven %239 : vector<8x128xf32>
    %241 = arith.maximumf %240, %196 : vector<8x128xf32>
    %242 = arith.minimumf %241, %197 : vector<8x128xf32>
    %243 = arith.mulf %242, %194 : vector<8x128xf32>
    %244 = arith.subf %243, %238 : vector<8x128xf32>
    %245 = arith.mulf %244, %244 : vector<8x128xf32>
    %246 = arith.addf %234, %245 : vector<8x128xf32>
    %247 = arith.mulf %238, %207 : vector<8x128xf32>
    %248 = math.roundeven %247 : vector<8x128xf32>
    %249 = arith.maximumf %248, %208 : vector<8x128xf32>
    %250 = arith.minimumf %249, %209 : vector<8x128xf32>
    %251 = arith.mulf %250, %206 : vector<8x128xf32>
    %252 = arith.subf %251, %238 : vector<8x128xf32>
    %253 = arith.mulf %252, %252 : vector<8x128xf32>
    %254 = arith.addf %234, %253 : vector<8x128xf32>
    %255 = arith.mulf %238, %219 : vector<8x128xf32>
    %256 = math.roundeven %255 : vector<8x128xf32>
    %257 = arith.maximumf %256, %220 : vector<8x128xf32>
    %258 = arith.minimumf %257, %221 : vector<8x128xf32>
    %259 = arith.mulf %258, %218 : vector<8x128xf32>
    %260 = arith.subf %259, %238 : vector<8x128xf32>
    %261 = arith.mulf %260, %260 : vector<8x128xf32>
    %262 = arith.addf %234, %261 : vector<8x128xf32>
    %263 = arith.mulf %238, %231 : vector<8x128xf32>
    %264 = math.roundeven %263 : vector<8x128xf32>
    %265 = arith.maximumf %264, %232 : vector<8x128xf32>
    %266 = arith.minimumf %265, %233 : vector<8x128xf32>
    %267 = arith.mulf %266, %230 : vector<8x128xf32>
    %268 = arith.subf %267, %238 : vector<8x128xf32>
    %269 = arith.mulf %268, %268 : vector<8x128xf32>
    %270 = arith.addf %234, %269 : vector<8x128xf32>
    %c1_i32_76 = arith.constant 1 : i32
    %c8_i32_77 = arith.constant 8 : i32
    %271 = arith.muli %c1_i32_76, %c8_i32_77 : i32
    %272 = tpu.assume_multiple %271, 8 : i32
    %273 = arith.index_cast %272 : i32 to index
    %c0_78 = arith.constant 0 : index
    %274 = vector.load %arg1[%273, %c0_78] : memref<16x128xf32, #tpu.memory_space<vmem>>, vector<8x128xf32>
    %275 = arith.mulf %274, %195 : vector<8x128xf32>
    %276 = math.roundeven %275 : vector<8x128xf32>
    %277 = arith.maximumf %276, %196 : vector<8x128xf32>
    %278 = arith.minimumf %277, %197 : vector<8x128xf32>
    %279 = arith.mulf %278, %194 : vector<8x128xf32>
    %280 = arith.subf %279, %274 : vector<8x128xf32>
    %281 = arith.mulf %280, %280 : vector<8x128xf32>
    %282 = arith.addf %246, %281 : vector<8x128xf32>
    %283 = arith.mulf %274, %207 : vector<8x128xf32>
    %284 = math.roundeven %283 : vector<8x128xf32>
    %285 = arith.maximumf %284, %208 : vector<8x128xf32>
    %286 = arith.minimumf %285, %209 : vector<8x128xf32>
    %287 = arith.mulf %286, %206 : vector<8x128xf32>
    %288 = arith.subf %287, %274 : vector<8x128xf32>
    %289 = arith.mulf %288, %288 : vector<8x128xf32>
    %290 = arith.addf %254, %289 : vector<8x128xf32>
    %291 = arith.mulf %274, %219 : vector<8x128xf32>
    %292 = math.roundeven %291 : vector<8x128xf32>
    %293 = arith.maximumf %292, %220 : vector<8x128xf32>
    %294 = arith.minimumf %293, %221 : vector<8x128xf32>
    %295 = arith.mulf %294, %218 : vector<8x128xf32>
    %296 = arith.subf %295, %274 : vector<8x128xf32>
    %297 = arith.mulf %296, %296 : vector<8x128xf32>
    %298 = arith.addf %262, %297 : vector<8x128xf32>
    %299 = arith.mulf %274, %231 : vector<8x128xf32>
    %300 = math.roundeven %299 : vector<8x128xf32>
    %301 = arith.maximumf %300, %232 : vector<8x128xf32>
    %302 = arith.minimumf %301, %233 : vector<8x128xf32>
    %303 = arith.mulf %302, %230 : vector<8x128xf32>
    %304 = arith.subf %303, %274 : vector<8x128xf32>
    %305 = arith.mulf %304, %304 : vector<8x128xf32>
    %306 = arith.addf %270, %305 : vector<8x128xf32>
    %c2_i32_79 = arith.constant 2 : i32
    %307 = vector.shape_cast %282 : vector<8x128xf32> to vector<1x8x128xf32>
    %cst_80 = arith.constant dense<0.000000e+00> : vector<1xf32>
    %308 = vector.multi_reduction <add>, %307, %cst_80 [1, 2] : vector<1x8x128xf32> to vector<1xf32>
    %309 = vector.shape_cast %308 : vector<1xf32> to vector<1x1x1xf32>
    %310 = vector.extract %309[0, 0, 0] : f32 from vector<1x1x1xf32>
    %311 = arith.cmpf olt, %310, %182 : f32
    %312 = arith.select %311, %310, %182 : f32
    %313 = arith.select %311, %187, %183 : f32
    %314 = arith.select %311, %188, %184 : f32
    %315 = arith.select %311, %191, %185 : f32
    %316 = vector.shape_cast %290 : vector<8x128xf32> to vector<1x8x128xf32>
    %cst_81 = arith.constant dense<0.000000e+00> : vector<1xf32>
    %317 = vector.multi_reduction <add>, %316, %cst_81 [1, 2] : vector<1x8x128xf32> to vector<1xf32>
    %318 = vector.shape_cast %317 : vector<1xf32> to vector<1x1x1xf32>
    %319 = vector.extract %318[0, 0, 0] : f32 from vector<1x1x1xf32>
    %320 = arith.cmpf olt, %319, %312 : f32
    %321 = arith.select %320, %319, %312 : f32
    %322 = arith.select %320, %199, %313 : f32
    %323 = arith.select %320, %200, %314 : f32
    %324 = arith.select %320, %203, %315 : f32
    %325 = vector.shape_cast %298 : vector<8x128xf32> to vector<1x8x128xf32>
    %cst_82 = arith.constant dense<0.000000e+00> : vector<1xf32>
    %326 = vector.multi_reduction <add>, %325, %cst_82 [1, 2] : vector<1x8x128xf32> to vector<1xf32>
    %327 = vector.shape_cast %326 : vector<1xf32> to vector<1x1x1xf32>
    %328 = vector.extract %327[0, 0, 0] : f32 from vector<1x1x1xf32>
    %329 = arith.cmpf olt, %328, %321 : f32
    %330 = arith.select %329, %328, %321 : f32
    %331 = arith.select %329, %211, %322 : f32
    %332 = arith.select %329, %212, %323 : f32
    %333 = arith.select %329, %215, %324 : f32
    %334 = vector.shape_cast %306 : vector<8x128xf32> to vector<1x8x128xf32>
    %cst_83 = arith.constant dense<0.000000e+00> : vector<1xf32>
    %335 = vector.multi_reduction <add>, %334, %cst_83 [1, 2] : vector<1x8x128xf32> to vector<1xf32>
    %336 = vector.shape_cast %335 : vector<1xf32> to vector<1x1x1xf32>
    %337 = vector.extract %336[0, 0, 0] : f32 from vector<1x1x1xf32>
    %338 = arith.cmpf olt, %337, %330 : f32
    %339 = arith.select %338, %337, %330 : f32
    %340 = arith.select %338, %223, %331 : f32
    %341 = arith.select %338, %224, %332 : f32
    %342 = arith.select %338, %227, %333 : f32
    %cst_84 = arith.constant 8.000000e-02 : f32
    %343 = arith.subf %28, %cst_84 : f32
    %cst_85 = arith.constant 2.550000e+02 : f32
    %344 = arith.divf %343, %cst_85 : f32
    %cst_86 = arith.constant 1.000000e+00 : f32
    %345 = arith.divf %cst_86, %344 : f32
    %cst_87 = arith.constant 0.000000e+00 : f32
    %346 = arith.subf %cst_87, %22 : f32
    %347 = arith.divf %346, %344 : f32
    %348 = math.roundeven %347 : f32
    %cst_88 = arith.constant 0.000000e+00 : f32
    %349 = arith.subf %cst_88, %348 : f32
    %cst_89 = arith.constant 2.550000e+02 : f32
    %350 = arith.subf %cst_89, %348 : f32
    %351 = vector.broadcast %344 : f32 to vector<8x128xf32>
    %352 = vector.broadcast %345 : f32 to vector<8x128xf32>
    %353 = vector.broadcast %349 : f32 to vector<8x128xf32>
    %354 = vector.broadcast %350 : f32 to vector<8x128xf32>
    %cst_90 = arith.constant 0.0899999961 : f32
    %355 = arith.subf %28, %cst_90 : f32
    %cst_91 = arith.constant 2.550000e+02 : f32
    %356 = arith.divf %355, %cst_91 : f32
    %cst_92 = arith.constant 1.000000e+00 : f32
    %357 = arith.divf %cst_92, %356 : f32
    %cst_93 = arith.constant 0.000000e+00 : f32
    %358 = arith.subf %cst_93, %22 : f32
    %359 = arith.divf %358, %356 : f32
    %360 = math.roundeven %359 : f32
    %cst_94 = arith.constant 0.000000e+00 : f32
    %361 = arith.subf %cst_94, %360 : f32
    %cst_95 = arith.constant 2.550000e+02 : f32
    %362 = arith.subf %cst_95, %360 : f32
    %363 = vector.broadcast %356 : f32 to vector<8x128xf32>
    %364 = vector.broadcast %357 : f32 to vector<8x128xf32>
    %365 = vector.broadcast %361 : f32 to vector<8x128xf32>
    %366 = vector.broadcast %362 : f32 to vector<8x128xf32>
    %cst_96 = arith.constant 0.099999994 : f32
    %367 = arith.subf %28, %cst_96 : f32
    %cst_97 = arith.constant 2.550000e+02 : f32
    %368 = arith.divf %367, %cst_97 : f32
    %cst_98 = arith.constant 1.000000e+00 : f32
    %369 = arith.divf %cst_98, %368 : f32
    %cst_99 = arith.constant 0.000000e+00 : f32
    %370 = arith.subf %cst_99, %22 : f32
    %371 = arith.divf %370, %368 : f32
    %372 = math.roundeven %371 : f32
    %cst_100 = arith.constant 0.000000e+00 : f32
    %373 = arith.subf %cst_100, %372 : f32
    %cst_101 = arith.constant 2.550000e+02 : f32
    %374 = arith.subf %cst_101, %372 : f32
    %375 = vector.broadcast %368 : f32 to vector<8x128xf32>
    %376 = vector.broadcast %369 : f32 to vector<8x128xf32>
    %377 = vector.broadcast %373 : f32 to vector<8x128xf32>
    %378 = vector.broadcast %374 : f32 to vector<8x128xf32>
    %cst_102 = arith.constant 1.100000e-01 : f32
    %379 = arith.subf %28, %cst_102 : f32
    %cst_103 = arith.constant 2.550000e+02 : f32
    %380 = arith.divf %379, %cst_103 : f32
    %cst_104 = arith.constant 1.000000e+00 : f32
    %381 = arith.divf %cst_104, %380 : f32
    %cst_105 = arith.constant 0.000000e+00 : f32
    %382 = arith.subf %cst_105, %22 : f32
    %383 = arith.divf %382, %380 : f32
    %384 = math.roundeven %383 : f32
    %cst_106 = arith.constant 0.000000e+00 : f32
    %385 = arith.subf %cst_106, %384 : f32
    %cst_107 = arith.constant 2.550000e+02 : f32
    %386 = arith.subf %cst_107, %384 : f32
    %387 = vector.broadcast %380 : f32 to vector<8x128xf32>
    %388 = vector.broadcast %381 : f32 to vector<8x128xf32>
    %389 = vector.broadcast %385 : f32 to vector<8x128xf32>
    %390 = vector.broadcast %386 : f32 to vector<8x128xf32>
    %cst_108 = arith.constant 0.000000e+00 : f32
    %391 = vector.broadcast %cst_108 : f32 to vector<8x128xf32>
    %c0_i32_109 = arith.constant 0 : i32
    %c8_i32_110 = arith.constant 8 : i32
    %392 = arith.muli %c0_i32_109, %c8_i32_110 : i32
    %393 = tpu.assume_multiple %392, 8 : i32
    %394 = arith.index_cast %393 : i32 to index
    %c0_111 = arith.constant 0 : index
    %395 = vector.load %arg1[%394, %c0_111] : memref<16x128xf32, #tpu.memory_space<vmem>>, vector<8x128xf32>
    %396 = arith.mulf %395, %352 : vector<8x128xf32>
    %397 = math.roundeven %396 : vector<8x128xf32>
    %398 = arith.maximumf %397, %353 : vector<8x128xf32>
    %399 = arith.minimumf %398, %354 : vector<8x128xf32>
    %400 = arith.mulf %399, %351 : vector<8x128xf32>
    %401 = arith.subf %400, %395 : vector<8x128xf32>
    %402 = arith.mulf %401, %401 : vector<8x128xf32>
    %403 = arith.addf %391, %402 : vector<8x128xf32>
    %404 = arith.mulf %395, %364 : vector<8x128xf32>
    %405 = math.roundeven %404 : vector<8x128xf32>
    %406 = arith.maximumf %405, %365 : vector<8x128xf32>
    %407 = arith.minimumf %406, %366 : vector<8x128xf32>
    %408 = arith.mulf %407, %363 : vector<8x128xf32>
    %409 = arith.subf %408, %395 : vector<8x128xf32>
    %410 = arith.mulf %409, %409 : vector<8x128xf32>
    %411 = arith.addf %391, %410 : vector<8x128xf32>
    %412 = arith.mulf %395, %376 : vector<8x128xf32>
    %413 = math.roundeven %412 : vector<8x128xf32>
    %414 = arith.maximumf %413, %377 : vector<8x128xf32>
    %415 = arith.minimumf %414, %378 : vector<8x128xf32>
    %416 = arith.mulf %415, %375 : vector<8x128xf32>
    %417 = arith.subf %416, %395 : vector<8x128xf32>
    %418 = arith.mulf %417, %417 : vector<8x128xf32>
    %419 = arith.addf %391, %418 : vector<8x128xf32>
    %420 = arith.mulf %395, %388 : vector<8x128xf32>
    %421 = math.roundeven %420 : vector<8x128xf32>
    %422 = arith.maximumf %421, %389 : vector<8x128xf32>
    %423 = arith.minimumf %422, %390 : vector<8x128xf32>
    %424 = arith.mulf %423, %387 : vector<8x128xf32>
    %425 = arith.subf %424, %395 : vector<8x128xf32>
    %426 = arith.mulf %425, %425 : vector<8x128xf32>
    %427 = arith.addf %391, %426 : vector<8x128xf32>
    %c1_i32_112 = arith.constant 1 : i32
    %c8_i32_113 = arith.constant 8 : i32
    %428 = arith.muli %c1_i32_112, %c8_i32_113 : i32
    %429 = tpu.assume_multiple %428, 8 : i32
    %430 = arith.index_cast %429 : i32 to index
    %c0_114 = arith.constant 0 : index
    %431 = vector.load %arg1[%430, %c0_114] : memref<16x128xf32, #tpu.memory_space<vmem>>, vector<8x128xf32>
    %432 = arith.mulf %431, %352 : vector<8x128xf32>
    %433 = math.roundeven %432 : vector<8x128xf32>
    %434 = arith.maximumf %433, %353 : vector<8x128xf32>
    %435 = arith.minimumf %434, %354 : vector<8x128xf32>
    %436 = arith.mulf %435, %351 : vector<8x128xf32>
    %437 = arith.subf %436, %431 : vector<8x128xf32>
    %438 = arith.mulf %437, %437 : vector<8x128xf32>
    %439 = arith.addf %403, %438 : vector<8x128xf32>
    %440 = arith.mulf %431, %364 : vector<8x128xf32>
    %441 = math.roundeven %440 : vector<8x128xf32>
    %442 = arith.maximumf %441, %365 : vector<8x128xf32>
    %443 = arith.minimumf %442, %366 : vector<8x128xf32>
    %444 = arith.mulf %443, %363 : vector<8x128xf32>
    %445 = arith.subf %444, %431 : vector<8x128xf32>
    %446 = arith.mulf %445, %445 : vector<8x128xf32>
    %447 = arith.addf %411, %446 : vector<8x128xf32>
    %448 = arith.mulf %431, %376 : vector<8x128xf32>
    %449 = math.roundeven %448 : vector<8x128xf32>
    %450 = arith.maximumf %449, %377 : vector<8x128xf32>
    %451 = arith.minimumf %450, %378 : vector<8x128xf32>
    %452 = arith.mulf %451, %375 : vector<8x128xf32>
    %453 = arith.subf %452, %431 : vector<8x128xf32>
    %454 = arith.mulf %453, %453 : vector<8x128xf32>
    %455 = arith.addf %419, %454 : vector<8x128xf32>
    %456 = arith.mulf %431, %388 : vector<8x128xf32>
    %457 = math.roundeven %456 : vector<8x128xf32>
    %458 = arith.maximumf %457, %389 : vector<8x128xf32>
    %459 = arith.minimumf %458, %390 : vector<8x128xf32>
    %460 = arith.mulf %459, %387 : vector<8x128xf32>
    %461 = arith.subf %460, %431 : vector<8x128xf32>
    %462 = arith.mulf %461, %461 : vector<8x128xf32>
    %463 = arith.addf %427, %462 : vector<8x128xf32>
    %c2_i32_115 = arith.constant 2 : i32
    %464 = vector.shape_cast %439 : vector<8x128xf32> to vector<1x8x128xf32>
    %cst_116 = arith.constant dense<0.000000e+00> : vector<1xf32>
    %465 = vector.multi_reduction <add>, %464, %cst_116 [1, 2] : vector<1x8x128xf32> to vector<1xf32>
    %466 = vector.shape_cast %465 : vector<1xf32> to vector<1x1x1xf32>
    %467 = vector.extract %466[0, 0, 0] : f32 from vector<1x1x1xf32>
    %468 = arith.cmpf olt, %467, %339 : f32
    %469 = arith.select %468, %467, %339 : f32
    %470 = arith.select %468, %344, %340 : f32
    %471 = arith.select %468, %345, %341 : f32
    %472 = arith.select %468, %348, %342 : f32
    %473 = vector.shape_cast %447 : vector<8x128xf32> to vector<1x8x128xf32>
    %cst_117 = arith.constant dense<0.000000e+00> : vector<1xf32>
    %474 = vector.multi_reduction <add>, %473, %cst_117 [1, 2] : vector<1x8x128xf32> to vector<1xf32>
    %475 = vector.shape_cast %474 : vector<1xf32> to vector<1x1x1xf32>
    %476 = vector.extract %475[0, 0, 0] : f32 from vector<1x1x1xf32>
    %477 = arith.cmpf olt, %476, %469 : f32
    %478 = arith.select %477, %476, %469 : f32
    %479 = arith.select %477, %356, %470 : f32
    %480 = arith.select %477, %357, %471 : f32
    %481 = arith.select %477, %360, %472 : f32
    %482 = vector.shape_cast %455 : vector<8x128xf32> to vector<1x8x128xf32>
    %cst_118 = arith.constant dense<0.000000e+00> : vector<1xf32>
    %483 = vector.multi_reduction <add>, %482, %cst_118 [1, 2] : vector<1x8x128xf32> to vector<1xf32>
    %484 = vector.shape_cast %483 : vector<1xf32> to vector<1x1x1xf32>
    %485 = vector.extract %484[0, 0, 0] : f32 from vector<1x1x1xf32>
    %486 = arith.cmpf olt, %485, %478 : f32
    %487 = arith.select %486, %485, %478 : f32
    %488 = arith.select %486, %368, %479 : f32
    %489 = arith.select %486, %369, %480 : f32
    %490 = arith.select %486, %372, %481 : f32
    %491 = vector.shape_cast %463 : vector<8x128xf32> to vector<1x8x128xf32>
    %cst_119 = arith.constant dense<0.000000e+00> : vector<1xf32>
    %492 = vector.multi_reduction <add>, %491, %cst_119 [1, 2] : vector<1x8x128xf32> to vector<1xf32>
    %493 = vector.shape_cast %492 : vector<1xf32> to vector<1x1x1xf32>
    %494 = vector.extract %493[0, 0, 0] : f32 from vector<1x1x1xf32>
    %495 = arith.cmpf olt, %494, %487 : f32
    %496 = arith.select %495, %494, %487 : f32
    %497 = arith.select %495, %380, %488 : f32
    %498 = arith.select %495, %381, %489 : f32
    %499 = arith.select %495, %384, %490 : f32
    %cst_120 = arith.constant 1.200000e-01 : f32
    %500 = arith.subf %28, %cst_120 : f32
    %cst_121 = arith.constant 2.550000e+02 : f32
    %501 = arith.divf %500, %cst_121 : f32
    %cst_122 = arith.constant 1.000000e+00 : f32
    %502 = arith.divf %cst_122, %501 : f32
    %cst_123 = arith.constant 0.000000e+00 : f32
    %503 = arith.subf %cst_123, %22 : f32
    %504 = arith.divf %503, %501 : f32
    %505 = math.roundeven %504 : f32
    %cst_124 = arith.constant 0.000000e+00 : f32
    %506 = arith.subf %cst_124, %505 : f32
    %cst_125 = arith.constant 2.550000e+02 : f32
    %507 = arith.subf %cst_125, %505 : f32
    %508 = vector.broadcast %501 : f32 to vector<8x128xf32>
    %509 = vector.broadcast %502 : f32 to vector<8x128xf32>
    %510 = vector.broadcast %506 : f32 to vector<8x128xf32>
    %511 = vector.broadcast %507 : f32 to vector<8x128xf32>
    %cst_126 = arith.constant 1.300000e-01 : f32
    %512 = arith.subf %28, %cst_126 : f32
    %cst_127 = arith.constant 2.550000e+02 : f32
    %513 = arith.divf %512, %cst_127 : f32
    %cst_128 = arith.constant 1.000000e+00 : f32
    %514 = arith.divf %cst_128, %513 : f32
    %cst_129 = arith.constant 0.000000e+00 : f32
    %515 = arith.subf %cst_129, %22 : f32
    %516 = arith.divf %515, %513 : f32
    %517 = math.roundeven %516 : f32
    %cst_130 = arith.constant 0.000000e+00 : f32
    %518 = arith.subf %cst_130, %517 : f32
    %cst_131 = arith.constant 2.550000e+02 : f32
    %519 = arith.subf %cst_131, %517 : f32
    %520 = vector.broadcast %513 : f32 to vector<8x128xf32>
    %521 = vector.broadcast %514 : f32 to vector<8x128xf32>
    %522 = vector.broadcast %518 : f32 to vector<8x128xf32>
    %523 = vector.broadcast %519 : f32 to vector<8x128xf32>
    %cst_132 = arith.constant 1.400000e-01 : f32
    %524 = arith.subf %28, %cst_132 : f32
    %cst_133 = arith.constant 2.550000e+02 : f32
    %525 = arith.divf %524, %cst_133 : f32
    %cst_134 = arith.constant 1.000000e+00 : f32
    %526 = arith.divf %cst_134, %525 : f32
    %cst_135 = arith.constant 0.000000e+00 : f32
    %527 = arith.subf %cst_135, %22 : f32
    %528 = arith.divf %527, %525 : f32
    %529 = math.roundeven %528 : f32
    %cst_136 = arith.constant 0.000000e+00 : f32
    %530 = arith.subf %cst_136, %529 : f32
    %cst_137 = arith.constant 2.550000e+02 : f32
    %531 = arith.subf %cst_137, %529 : f32
    %532 = vector.broadcast %525 : f32 to vector<8x128xf32>
    %533 = vector.broadcast %526 : f32 to vector<8x128xf32>
    %534 = vector.broadcast %530 : f32 to vector<8x128xf32>
    %535 = vector.broadcast %531 : f32 to vector<8x128xf32>
    %cst_138 = arith.constant 0.149999991 : f32
    %536 = arith.subf %28, %cst_138 : f32
    %cst_139 = arith.constant 2.550000e+02 : f32
    %537 = arith.divf %536, %cst_139 : f32
    %cst_140 = arith.constant 1.000000e+00 : f32
    %538 = arith.divf %cst_140, %537 : f32
    %cst_141 = arith.constant 0.000000e+00 : f32
    %539 = arith.subf %cst_141, %22 : f32
    %540 = arith.divf %539, %537 : f32
    %541 = math.roundeven %540 : f32
    %cst_142 = arith.constant 0.000000e+00 : f32
    %542 = arith.subf %cst_142, %541 : f32
    %cst_143 = arith.constant 2.550000e+02 : f32
    %543 = arith.subf %cst_143, %541 : f32
    %544 = vector.broadcast %537 : f32 to vector<8x128xf32>
    %545 = vector.broadcast %538 : f32 to vector<8x128xf32>
    %546 = vector.broadcast %542 : f32 to vector<8x128xf32>
    %547 = vector.broadcast %543 : f32 to vector<8x128xf32>
    %cst_144 = arith.constant 0.000000e+00 : f32
    %548 = vector.broadcast %cst_144 : f32 to vector<8x128xf32>
    %c0_i32_145 = arith.constant 0 : i32
    %c8_i32_146 = arith.constant 8 : i32
    %549 = arith.muli %c0_i32_145, %c8_i32_146 : i32
    %550 = tpu.assume_multiple %549, 8 : i32
    %551 = arith.index_cast %550 : i32 to index
    %c0_147 = arith.constant 0 : index
    %552 = vector.load %arg1[%551, %c0_147] : memref<16x128xf32, #tpu.memory_space<vmem>>, vector<8x128xf32>
    %553 = arith.mulf %552, %509 : vector<8x128xf32>
    %554 = math.roundeven %553 : vector<8x128xf32>
    %555 = arith.maximumf %554, %510 : vector<8x128xf32>
    %556 = arith.minimumf %555, %511 : vector<8x128xf32>
    %557 = arith.mulf %556, %508 : vector<8x128xf32>
    %558 = arith.subf %557, %552 : vector<8x128xf32>
    %559 = arith.mulf %558, %558 : vector<8x128xf32>
    %560 = arith.addf %548, %559 : vector<8x128xf32>
    %561 = arith.mulf %552, %521 : vector<8x128xf32>
    %562 = math.roundeven %561 : vector<8x128xf32>
    %563 = arith.maximumf %562, %522 : vector<8x128xf32>
    %564 = arith.minimumf %563, %523 : vector<8x128xf32>
    %565 = arith.mulf %564, %520 : vector<8x128xf32>
    %566 = arith.subf %565, %552 : vector<8x128xf32>
    %567 = arith.mulf %566, %566 : vector<8x128xf32>
    %568 = arith.addf %548, %567 : vector<8x128xf32>
    %569 = arith.mulf %552, %533 : vector<8x128xf32>
    %570 = math.roundeven %569 : vector<8x128xf32>
    %571 = arith.maximumf %570, %534 : vector<8x128xf32>
    %572 = arith.minimumf %571, %535 : vector<8x128xf32>
    %573 = arith.mulf %572, %532 : vector<8x128xf32>
    %574 = arith.subf %573, %552 : vector<8x128xf32>
    %575 = arith.mulf %574, %574 : vector<8x128xf32>
    %576 = arith.addf %548, %575 : vector<8x128xf32>
    %577 = arith.mulf %552, %545 : vector<8x128xf32>
    %578 = math.roundeven %577 : vector<8x128xf32>
    %579 = arith.maximumf %578, %546 : vector<8x128xf32>
    %580 = arith.minimumf %579, %547 : vector<8x128xf32>
    %581 = arith.mulf %580, %544 : vector<8x128xf32>
    %582 = arith.subf %581, %552 : vector<8x128xf32>
    %583 = arith.mulf %582, %582 : vector<8x128xf32>
    %584 = arith.addf %548, %583 : vector<8x128xf32>
    %c1_i32_148 = arith.constant 1 : i32
    %c8_i32_149 = arith.constant 8 : i32
    %585 = arith.muli %c1_i32_148, %c8_i32_149 : i32
    %586 = tpu.assume_multiple %585, 8 : i32
    %587 = arith.index_cast %586 : i32 to index
    %c0_150 = arith.constant 0 : index
    %588 = vector.load %arg1[%587, %c0_150] : memref<16x128xf32, #tpu.memory_space<vmem>>, vector<8x128xf32>
    %589 = arith.mulf %588, %509 : vector<8x128xf32>
    %590 = math.roundeven %589 : vector<8x128xf32>
    %591 = arith.maximumf %590, %510 : vector<8x128xf32>
    %592 = arith.minimumf %591, %511 : vector<8x128xf32>
    %593 = arith.mulf %592, %508 : vector<8x128xf32>
    %594 = arith.subf %593, %588 : vector<8x128xf32>
    %595 = arith.mulf %594, %594 : vector<8x128xf32>
    %596 = arith.addf %560, %595 : vector<8x128xf32>
    %597 = arith.mulf %588, %521 : vector<8x128xf32>
    %598 = math.roundeven %597 : vector<8x128xf32>
    %599 = arith.maximumf %598, %522 : vector<8x128xf32>
    %600 = arith.minimumf %599, %523 : vector<8x128xf32>
    %601 = arith.mulf %600, %520 : vector<8x128xf32>
    %602 = arith.subf %601, %588 : vector<8x128xf32>
    %603 = arith.mulf %602, %602 : vector<8x128xf32>
    %604 = arith.addf %568, %603 : vector<8x128xf32>
    %605 = arith.mulf %588, %533 : vector<8x128xf32>
    %606 = math.roundeven %605 : vector<8x128xf32>
    %607 = arith.maximumf %606, %534 : vector<8x128xf32>
    %608 = arith.minimumf %607, %535 : vector<8x128xf32>
    %609 = arith.mulf %608, %532 : vector<8x128xf32>
    %610 = arith.subf %609, %588 : vector<8x128xf32>
    %611 = arith.mulf %610, %610 : vector<8x128xf32>
    %612 = arith.addf %576, %611 : vector<8x128xf32>
    %613 = arith.mulf %588, %545 : vector<8x128xf32>
    %614 = math.roundeven %613 : vector<8x128xf32>
    %615 = arith.maximumf %614, %546 : vector<8x128xf32>
    %616 = arith.minimumf %615, %547 : vector<8x128xf32>
    %617 = arith.mulf %616, %544 : vector<8x128xf32>
    %618 = arith.subf %617, %588 : vector<8x128xf32>
    %619 = arith.mulf %618, %618 : vector<8x128xf32>
    %620 = arith.addf %584, %619 : vector<8x128xf32>
    %c2_i32_151 = arith.constant 2 : i32
    %621 = vector.shape_cast %596 : vector<8x128xf32> to vector<1x8x128xf32>
    %cst_152 = arith.constant dense<0.000000e+00> : vector<1xf32>
    %622 = vector.multi_reduction <add>, %621, %cst_152 [1, 2] : vector<1x8x128xf32> to vector<1xf32>
    %623 = vector.shape_cast %622 : vector<1xf32> to vector<1x1x1xf32>
    %624 = vector.extract %623[0, 0, 0] : f32 from vector<1x1x1xf32>
    %625 = arith.cmpf olt, %624, %496 : f32
    %626 = arith.select %625, %624, %496 : f32
    %627 = arith.select %625, %501, %497 : f32
    %628 = arith.select %625, %502, %498 : f32
    %629 = arith.select %625, %505, %499 : f32
    %630 = vector.shape_cast %604 : vector<8x128xf32> to vector<1x8x128xf32>
    %cst_153 = arith.constant dense<0.000000e+00> : vector<1xf32>
    %631 = vector.multi_reduction <add>, %630, %cst_153 [1, 2] : vector<1x8x128xf32> to vector<1xf32>
    %632 = vector.shape_cast %631 : vector<1xf32> to vector<1x1x1xf32>
    %633 = vector.extract %632[0, 0, 0] : f32 from vector<1x1x1xf32>
    %634 = arith.cmpf olt, %633, %626 : f32
    %635 = arith.select %634, %633, %626 : f32
    %636 = arith.select %634, %513, %627 : f32
    %637 = arith.select %634, %514, %628 : f32
    %638 = arith.select %634, %517, %629 : f32
    %639 = vector.shape_cast %612 : vector<8x128xf32> to vector<1x8x128xf32>
    %cst_154 = arith.constant dense<0.000000e+00> : vector<1xf32>
    %640 = vector.multi_reduction <add>, %639, %cst_154 [1, 2] : vector<1x8x128xf32> to vector<1xf32>
    %641 = vector.shape_cast %640 : vector<1xf32> to vector<1x1x1xf32>
    %642 = vector.extract %641[0, 0, 0] : f32 from vector<1x1x1xf32>
    %643 = arith.cmpf olt, %642, %635 : f32
    %644 = arith.select %643, %642, %635 : f32
    %645 = arith.select %643, %525, %636 : f32
    %646 = arith.select %643, %526, %637 : f32
    %647 = arith.select %643, %529, %638 : f32
    %648 = vector.shape_cast %620 : vector<8x128xf32> to vector<1x8x128xf32>
    %cst_155 = arith.constant dense<0.000000e+00> : vector<1xf32>
    %649 = vector.multi_reduction <add>, %648, %cst_155 [1, 2] : vector<1x8x128xf32> to vector<1xf32>
    %650 = vector.shape_cast %649 : vector<1xf32> to vector<1x1x1xf32>
    %651 = vector.extract %650[0, 0, 0] : f32 from vector<1x1x1xf32>
    %652 = arith.cmpf olt, %651, %644 : f32
    %653 = arith.select %652, %651, %644 : f32
    %654 = arith.select %652, %537, %645 : f32
    %655 = arith.select %652, %538, %646 : f32
    %656 = arith.select %652, %541, %647 : f32
    %cst_156 = arith.constant 1.600000e-01 : f32
    %657 = arith.subf %28, %cst_156 : f32
    %cst_157 = arith.constant 2.550000e+02 : f32
    %658 = arith.divf %657, %cst_157 : f32
    %cst_158 = arith.constant 1.000000e+00 : f32
    %659 = arith.divf %cst_158, %658 : f32
    %cst_159 = arith.constant 0.000000e+00 : f32
    %660 = arith.subf %cst_159, %22 : f32
    %661 = arith.divf %660, %658 : f32
    %662 = math.roundeven %661 : f32
    %cst_160 = arith.constant 0.000000e+00 : f32
    %663 = arith.subf %cst_160, %662 : f32
    %cst_161 = arith.constant 2.550000e+02 : f32
    %664 = arith.subf %cst_161, %662 : f32
    %665 = vector.broadcast %658 : f32 to vector<8x128xf32>
    %666 = vector.broadcast %659 : f32 to vector<8x128xf32>
    %667 = vector.broadcast %663 : f32 to vector<8x128xf32>
    %668 = vector.broadcast %664 : f32 to vector<8x128xf32>
    %cst_162 = arith.constant 1.700000e-01 : f32
    %669 = arith.subf %28, %cst_162 : f32
    %cst_163 = arith.constant 2.550000e+02 : f32
    %670 = arith.divf %669, %cst_163 : f32
    %cst_164 = arith.constant 1.000000e+00 : f32
    %671 = arith.divf %cst_164, %670 : f32
    %cst_165 = arith.constant 0.000000e+00 : f32
    %672 = arith.subf %cst_165, %22 : f32
    %673 = arith.divf %672, %670 : f32
    %674 = math.roundeven %673 : f32
    %cst_166 = arith.constant 0.000000e+00 : f32
    %675 = arith.subf %cst_166, %674 : f32
    %cst_167 = arith.constant 2.550000e+02 : f32
    %676 = arith.subf %cst_167, %674 : f32
    %677 = vector.broadcast %670 : f32 to vector<8x128xf32>
    %678 = vector.broadcast %671 : f32 to vector<8x128xf32>
    %679 = vector.broadcast %675 : f32 to vector<8x128xf32>
    %680 = vector.broadcast %676 : f32 to vector<8x128xf32>
    %cst_168 = arith.constant 0.179999992 : f32
    %681 = arith.subf %28, %cst_168 : f32
    %cst_169 = arith.constant 2.550000e+02 : f32
    %682 = arith.divf %681, %cst_169 : f32
    %cst_170 = arith.constant 1.000000e+00 : f32
    %683 = arith.divf %cst_170, %682 : f32
    %cst_171 = arith.constant 0.000000e+00 : f32
    %684 = arith.subf %cst_171, %22 : f32
    %685 = arith.divf %684, %682 : f32
    %686 = math.roundeven %685 : f32
    %cst_172 = arith.constant 0.000000e+00 : f32
    %687 = arith.subf %cst_172, %686 : f32
    %cst_173 = arith.constant 2.550000e+02 : f32
    %688 = arith.subf %cst_173, %686 : f32
    %689 = vector.broadcast %682 : f32 to vector<8x128xf32>
    %690 = vector.broadcast %683 : f32 to vector<8x128xf32>
    %691 = vector.broadcast %687 : f32 to vector<8x128xf32>
    %692 = vector.broadcast %688 : f32 to vector<8x128xf32>
    %cst_174 = arith.constant 1.900000e-01 : f32
    %693 = arith.subf %28, %cst_174 : f32
    %cst_175 = arith.constant 2.550000e+02 : f32
    %694 = arith.divf %693, %cst_175 : f32
    %cst_176 = arith.constant 1.000000e+00 : f32
    %695 = arith.divf %cst_176, %694 : f32
    %cst_177 = arith.constant 0.000000e+00 : f32
    %696 = arith.subf %cst_177, %22 : f32
    %697 = arith.divf %696, %694 : f32
    %698 = math.roundeven %697 : f32
    %cst_178 = arith.constant 0.000000e+00 : f32
    %699 = arith.subf %cst_178, %698 : f32
    %cst_179 = arith.constant 2.550000e+02 : f32
    %700 = arith.subf %cst_179, %698 : f32
    %701 = vector.broadcast %694 : f32 to vector<8x128xf32>
    %702 = vector.broadcast %695 : f32 to vector<8x128xf32>
    %703 = vector.broadcast %699 : f32 to vector<8x128xf32>
    %704 = vector.broadcast %700 : f32 to vector<8x128xf32>
    %cst_180 = arith.constant 0.000000e+00 : f32
    %705 = vector.broadcast %cst_180 : f32 to vector<8x128xf32>
    %c0_i32_181 = arith.constant 0 : i32
    %c8_i32_182 = arith.constant 8 : i32
    %706 = arith.muli %c0_i32_181, %c8_i32_182 : i32
    %707 = tpu.assume_multiple %706, 8 : i32
    %708 = arith.index_cast %707 : i32 to index
    %c0_183 = arith.constant 0 : index
    %709 = vector.load %arg1[%708, %c0_183] : memref<16x128xf32, #tpu.memory_space<vmem>>, vector<8x128xf32>
    %710 = arith.mulf %709, %666 : vector<8x128xf32>
    %711 = math.roundeven %710 : vector<8x128xf32>
    %712 = arith.maximumf %711, %667 : vector<8x128xf32>
    %713 = arith.minimumf %712, %668 : vector<8x128xf32>
    %714 = arith.mulf %713, %665 : vector<8x128xf32>
    %715 = arith.subf %714, %709 : vector<8x128xf32>
    %716 = arith.mulf %715, %715 : vector<8x128xf32>
    %717 = arith.addf %705, %716 : vector<8x128xf32>
    %718 = arith.mulf %709, %678 : vector<8x128xf32>
    %719 = math.roundeven %718 : vector<8x128xf32>
    %720 = arith.maximumf %719, %679 : vector<8x128xf32>
    %721 = arith.minimumf %720, %680 : vector<8x128xf32>
    %722 = arith.mulf %721, %677 : vector<8x128xf32>
    %723 = arith.subf %722, %709 : vector<8x128xf32>
    %724 = arith.mulf %723, %723 : vector<8x128xf32>
    %725 = arith.addf %705, %724 : vector<8x128xf32>
    %726 = arith.mulf %709, %690 : vector<8x128xf32>
    %727 = math.roundeven %726 : vector<8x128xf32>
    %728 = arith.maximumf %727, %691 : vector<8x128xf32>
    %729 = arith.minimumf %728, %692 : vector<8x128xf32>
    %730 = arith.mulf %729, %689 : vector<8x128xf32>
    %731 = arith.subf %730, %709 : vector<8x128xf32>
    %732 = arith.mulf %731, %731 : vector<8x128xf32>
    %733 = arith.addf %705, %732 : vector<8x128xf32>
    %734 = arith.mulf %709, %702 : vector<8x128xf32>
    %735 = math.roundeven %734 : vector<8x128xf32>
    %736 = arith.maximumf %735, %703 : vector<8x128xf32>
    %737 = arith.minimumf %736, %704 : vector<8x128xf32>
    %738 = arith.mulf %737, %701 : vector<8x128xf32>
    %739 = arith.subf %738, %709 : vector<8x128xf32>
    %740 = arith.mulf %739, %739 : vector<8x128xf32>
    %741 = arith.addf %705, %740 : vector<8x128xf32>
    %c1_i32_184 = arith.constant 1 : i32
    %c8_i32_185 = arith.constant 8 : i32
    %742 = arith.muli %c1_i32_184, %c8_i32_185 : i32
    %743 = tpu.assume_multiple %742, 8 : i32
    %744 = arith.index_cast %743 : i32 to index
    %c0_186 = arith.constant 0 : index
    %745 = vector.load %arg1[%744, %c0_186] : memref<16x128xf32, #tpu.memory_space<vmem>>, vector<8x128xf32>
    %746 = arith.mulf %745, %666 : vector<8x128xf32>
    %747 = math.roundeven %746 : vector<8x128xf32>
    %748 = arith.maximumf %747, %667 : vector<8x128xf32>
    %749 = arith.minimumf %748, %668 : vector<8x128xf32>
    %750 = arith.mulf %749, %665 : vector<8x128xf32>
    %751 = arith.subf %750, %745 : vector<8x128xf32>
    %752 = arith.mulf %751, %751 : vector<8x128xf32>
    %753 = arith.addf %717, %752 : vector<8x128xf32>
    %754 = arith.mulf %745, %678 : vector<8x128xf32>
    %755 = math.roundeven %754 : vector<8x128xf32>
    %756 = arith.maximumf %755, %679 : vector<8x128xf32>
    %757 = arith.minimumf %756, %680 : vector<8x128xf32>
    %758 = arith.mulf %757, %677 : vector<8x128xf32>
    %759 = arith.subf %758, %745 : vector<8x128xf32>
    %760 = arith.mulf %759, %759 : vector<8x128xf32>
    %761 = arith.addf %725, %760 : vector<8x128xf32>
    %762 = arith.mulf %745, %690 : vector<8x128xf32>
    %763 = math.roundeven %762 : vector<8x128xf32>
    %764 = arith.maximumf %763, %691 : vector<8x128xf32>
    %765 = arith.minimumf %764, %692 : vector<8x128xf32>
    %766 = arith.mulf %765, %689 : vector<8x128xf32>
    %767 = arith.subf %766, %745 : vector<8x128xf32>
    %768 = arith.mulf %767, %767 : vector<8x128xf32>
    %769 = arith.addf %733, %768 : vector<8x128xf32>
    %770 = arith.mulf %745, %702 : vector<8x128xf32>
    %771 = math.roundeven %770 : vector<8x128xf32>
    %772 = arith.maximumf %771, %703 : vector<8x128xf32>
    %773 = arith.minimumf %772, %704 : vector<8x128xf32>
    %774 = arith.mulf %773, %701 : vector<8x128xf32>
    %775 = arith.subf %774, %745 : vector<8x128xf32>
    %776 = arith.mulf %775, %775 : vector<8x128xf32>
    %777 = arith.addf %741, %776 : vector<8x128xf32>
    %c2_i32_187 = arith.constant 2 : i32
    %778 = vector.shape_cast %753 : vector<8x128xf32> to vector<1x8x128xf32>
    %cst_188 = arith.constant dense<0.000000e+00> : vector<1xf32>
    %779 = vector.multi_reduction <add>, %778, %cst_188 [1, 2] : vector<1x8x128xf32> to vector<1xf32>
    %780 = vector.shape_cast %779 : vector<1xf32> to vector<1x1x1xf32>
    %781 = vector.extract %780[0, 0, 0] : f32 from vector<1x1x1xf32>
    %782 = arith.cmpf olt, %781, %653 : f32
    %783 = arith.select %782, %781, %653 : f32
    %784 = arith.select %782, %658, %654 : f32
    %785 = arith.select %782, %659, %655 : f32
    %786 = arith.select %782, %662, %656 : f32
    %787 = vector.shape_cast %761 : vector<8x128xf32> to vector<1x8x128xf32>
    %cst_189 = arith.constant dense<0.000000e+00> : vector<1xf32>
    %788 = vector.multi_reduction <add>, %787, %cst_189 [1, 2] : vector<1x8x128xf32> to vector<1xf32>
    %789 = vector.shape_cast %788 : vector<1xf32> to vector<1x1x1xf32>
    %790 = vector.extract %789[0, 0, 0] : f32 from vector<1x1x1xf32>
    %791 = arith.cmpf olt, %790, %783 : f32
    %792 = arith.select %791, %790, %783 : f32
    %793 = arith.select %791, %670, %784 : f32
    %794 = arith.select %791, %671, %785 : f32
    %795 = arith.select %791, %674, %786 : f32
    %796 = vector.shape_cast %769 : vector<8x128xf32> to vector<1x8x128xf32>
    %cst_190 = arith.constant dense<0.000000e+00> : vector<1xf32>
    %797 = vector.multi_reduction <add>, %796, %cst_190 [1, 2] : vector<1x8x128xf32> to vector<1xf32>
    %798 = vector.shape_cast %797 : vector<1xf32> to vector<1x1x1xf32>
    %799 = vector.extract %798[0, 0, 0] : f32 from vector<1x1x1xf32>
    %800 = arith.cmpf olt, %799, %792 : f32
    %801 = arith.select %800, %799, %792 : f32
    %802 = arith.select %800, %682, %793 : f32
    %803 = arith.select %800, %683, %794 : f32
    %804 = arith.select %800, %686, %795 : f32
    %805 = vector.shape_cast %777 : vector<8x128xf32> to vector<1x8x128xf32>
    %cst_191 = arith.constant dense<0.000000e+00> : vector<1xf32>
    %806 = vector.multi_reduction <add>, %805, %cst_191 [1, 2] : vector<1x8x128xf32> to vector<1xf32>
    %807 = vector.shape_cast %806 : vector<1xf32> to vector<1x1x1xf32>
    %808 = vector.extract %807[0, 0, 0] : f32 from vector<1x1x1xf32>
    %809 = arith.cmpf olt, %808, %801 : f32
    %810 = arith.select %809, %808, %801 : f32
    %811 = arith.select %809, %694, %802 : f32
    %812 = arith.select %809, %695, %803 : f32
    %813 = arith.select %809, %698, %804 : f32
    %cst_192 = arith.constant 0.199999988 : f32
    %814 = arith.subf %28, %cst_192 : f32
    %cst_193 = arith.constant 2.550000e+02 : f32
    %815 = arith.divf %814, %cst_193 : f32
    %cst_194 = arith.constant 1.000000e+00 : f32
    %816 = arith.divf %cst_194, %815 : f32
    %cst_195 = arith.constant 0.000000e+00 : f32
    %817 = arith.subf %cst_195, %22 : f32
    %818 = arith.divf %817, %815 : f32
    %819 = math.roundeven %818 : f32
    %cst_196 = arith.constant 0.000000e+00 : f32
    %820 = arith.subf %cst_196, %819 : f32
    %cst_197 = arith.constant 2.550000e+02 : f32
    %821 = arith.subf %cst_197, %819 : f32
    %822 = vector.broadcast %815 : f32 to vector<8x128xf32>
    %823 = vector.broadcast %816 : f32 to vector<8x128xf32>
    %824 = vector.broadcast %820 : f32 to vector<8x128xf32>
    %825 = vector.broadcast %821 : f32 to vector<8x128xf32>
    %cst_198 = arith.constant 2.100000e-01 : f32
    %826 = arith.subf %28, %cst_198 : f32
    %cst_199 = arith.constant 2.550000e+02 : f32
    %827 = arith.divf %826, %cst_199 : f32
    %cst_200 = arith.constant 1.000000e+00 : f32
    %828 = arith.divf %cst_200, %827 : f32
    %cst_201 = arith.constant 0.000000e+00 : f32
    %829 = arith.subf %cst_201, %22 : f32
    %830 = arith.divf %829, %827 : f32
    %831 = math.roundeven %830 : f32
    %cst_202 = arith.constant 0.000000e+00 : f32
    %832 = arith.subf %cst_202, %831 : f32
    %cst_203 = arith.constant 2.550000e+02 : f32
    %833 = arith.subf %cst_203, %831 : f32
    %834 = vector.broadcast %827 : f32 to vector<8x128xf32>
    %835 = vector.broadcast %828 : f32 to vector<8x128xf32>
    %836 = vector.broadcast %832 : f32 to vector<8x128xf32>
    %837 = vector.broadcast %833 : f32 to vector<8x128xf32>
    %cst_204 = arith.constant 2.200000e-01 : f32
    %838 = arith.subf %28, %cst_204 : f32
    %cst_205 = arith.constant 2.550000e+02 : f32
    %839 = arith.divf %838, %cst_205 : f32
    %cst_206 = arith.constant 1.000000e+00 : f32
    %840 = arith.divf %cst_206, %839 : f32
    %cst_207 = arith.constant 0.000000e+00 : f32
    %841 = arith.subf %cst_207, %22 : f32
    %842 = arith.divf %841, %839 : f32
    %843 = math.roundeven %842 : f32
    %cst_208 = arith.constant 0.000000e+00 : f32
    %844 = arith.subf %cst_208, %843 : f32
    %cst_209 = arith.constant 2.550000e+02 : f32
    %845 = arith.subf %cst_209, %843 : f32
    %846 = vector.broadcast %839 : f32 to vector<8x128xf32>
    %847 = vector.broadcast %840 : f32 to vector<8x128xf32>
    %848 = vector.broadcast %844 : f32 to vector<8x128xf32>
    %849 = vector.broadcast %845 : f32 to vector<8x128xf32>
    %cst_210 = arith.constant 0.229999989 : f32
    %850 = arith.subf %28, %cst_210 : f32
    %cst_211 = arith.constant 2.550000e+02 : f32
    %851 = arith.divf %850, %cst_211 : f32
    %cst_212 = arith.constant 1.000000e+00 : f32
    %852 = arith.divf %cst_212, %851 : f32
    %cst_213 = arith.constant 0.000000e+00 : f32
    %853 = arith.subf %cst_213, %22 : f32
    %854 = arith.divf %853, %851 : f32
    %855 = math.roundeven %854 : f32
    %cst_214 = arith.constant 0.000000e+00 : f32
    %856 = arith.subf %cst_214, %855 : f32
    %cst_215 = arith.constant 2.550000e+02 : f32
    %857 = arith.subf %cst_215, %855 : f32
    %858 = vector.broadcast %851 : f32 to vector<8x128xf32>
    %859 = vector.broadcast %852 : f32 to vector<8x128xf32>
    %860 = vector.broadcast %856 : f32 to vector<8x128xf32>
    %861 = vector.broadcast %857 : f32 to vector<8x128xf32>
    %cst_216 = arith.constant 0.000000e+00 : f32
    %862 = vector.broadcast %cst_216 : f32 to vector<8x128xf32>
    %c0_i32_217 = arith.constant 0 : i32
    %c8_i32_218 = arith.constant 8 : i32
    %863 = arith.muli %c0_i32_217, %c8_i32_218 : i32
    %864 = tpu.assume_multiple %863, 8 : i32
    %865 = arith.index_cast %864 : i32 to index
    %c0_219 = arith.constant 0 : index
    %866 = vector.load %arg1[%865, %c0_219] : memref<16x128xf32, #tpu.memory_space<vmem>>, vector<8x128xf32>
    %867 = arith.mulf %866, %823 : vector<8x128xf32>
    %868 = math.roundeven %867 : vector<8x128xf32>
    %869 = arith.maximumf %868, %824 : vector<8x128xf32>
    %870 = arith.minimumf %869, %825 : vector<8x128xf32>
    %871 = arith.mulf %870, %822 : vector<8x128xf32>
    %872 = arith.subf %871, %866 : vector<8x128xf32>
    %873 = arith.mulf %872, %872 : vector<8x128xf32>
    %874 = arith.addf %862, %873 : vector<8x128xf32>
    %875 = arith.mulf %866, %835 : vector<8x128xf32>
    %876 = math.roundeven %875 : vector<8x128xf32>
    %877 = arith.maximumf %876, %836 : vector<8x128xf32>
    %878 = arith.minimumf %877, %837 : vector<8x128xf32>
    %879 = arith.mulf %878, %834 : vector<8x128xf32>
    %880 = arith.subf %879, %866 : vector<8x128xf32>
    %881 = arith.mulf %880, %880 : vector<8x128xf32>
    %882 = arith.addf %862, %881 : vector<8x128xf32>
    %883 = arith.mulf %866, %847 : vector<8x128xf32>
    %884 = math.roundeven %883 : vector<8x128xf32>
    %885 = arith.maximumf %884, %848 : vector<8x128xf32>
    %886 = arith.minimumf %885, %849 : vector<8x128xf32>
    %887 = arith.mulf %886, %846 : vector<8x128xf32>
    %888 = arith.subf %887, %866 : vector<8x128xf32>
    %889 = arith.mulf %888, %888 : vector<8x128xf32>
    %890 = arith.addf %862, %889 : vector<8x128xf32>
    %891 = arith.mulf %866, %859 : vector<8x128xf32>
    %892 = math.roundeven %891 : vector<8x128xf32>
    %893 = arith.maximumf %892, %860 : vector<8x128xf32>
    %894 = arith.minimumf %893, %861 : vector<8x128xf32>
    %895 = arith.mulf %894, %858 : vector<8x128xf32>
    %896 = arith.subf %895, %866 : vector<8x128xf32>
    %897 = arith.mulf %896, %896 : vector<8x128xf32>
    %898 = arith.addf %862, %897 : vector<8x128xf32>
    %c1_i32_220 = arith.constant 1 : i32
    %c8_i32_221 = arith.constant 8 : i32
    %899 = arith.muli %c1_i32_220, %c8_i32_221 : i32
    %900 = tpu.assume_multiple %899, 8 : i32
    %901 = arith.index_cast %900 : i32 to index
    %c0_222 = arith.constant 0 : index
    %902 = vector.load %arg1[%901, %c0_222] : memref<16x128xf32, #tpu.memory_space<vmem>>, vector<8x128xf32>
    %903 = arith.mulf %902, %823 : vector<8x128xf32>
    %904 = math.roundeven %903 : vector<8x128xf32>
    %905 = arith.maximumf %904, %824 : vector<8x128xf32>
    %906 = arith.minimumf %905, %825 : vector<8x128xf32>
    %907 = arith.mulf %906, %822 : vector<8x128xf32>
    %908 = arith.subf %907, %902 : vector<8x128xf32>
    %909 = arith.mulf %908, %908 : vector<8x128xf32>
    %910 = arith.addf %874, %909 : vector<8x128xf32>
    %911 = arith.mulf %902, %835 : vector<8x128xf32>
    %912 = math.roundeven %911 : vector<8x128xf32>
    %913 = arith.maximumf %912, %836 : vector<8x128xf32>
    %914 = arith.minimumf %913, %837 : vector<8x128xf32>
    %915 = arith.mulf %914, %834 : vector<8x128xf32>
    %916 = arith.subf %915, %902 : vector<8x128xf32>
    %917 = arith.mulf %916, %916 : vector<8x128xf32>
    %918 = arith.addf %882, %917 : vector<8x128xf32>
    %919 = arith.mulf %902, %847 : vector<8x128xf32>
    %920 = math.roundeven %919 : vector<8x128xf32>
    %921 = arith.maximumf %920, %848 : vector<8x128xf32>
    %922 = arith.minimumf %921, %849 : vector<8x128xf32>
    %923 = arith.mulf %922, %846 : vector<8x128xf32>
    %924 = arith.subf %923, %902 : vector<8x128xf32>
    %925 = arith.mulf %924, %924 : vector<8x128xf32>
    %926 = arith.addf %890, %925 : vector<8x128xf32>
    %927 = arith.mulf %902, %859 : vector<8x128xf32>
    %928 = math.roundeven %927 : vector<8x128xf32>
    %929 = arith.maximumf %928, %860 : vector<8x128xf32>
    %930 = arith.minimumf %929, %861 : vector<8x128xf32>
    %931 = arith.mulf %930, %858 : vector<8x128xf32>
    %932 = arith.subf %931, %902 : vector<8x128xf32>
    %933 = arith.mulf %932, %932 : vector<8x128xf32>
    %934 = arith.addf %898, %933 : vector<8x128xf32>
    %c2_i32_223 = arith.constant 2 : i32
    %935 = vector.shape_cast %910 : vector<8x128xf32> to vector<1x8x128xf32>
    %cst_224 = arith.constant dense<0.000000e+00> : vector<1xf32>
    %936 = vector.multi_reduction <add>, %935, %cst_224 [1, 2] : vector<1x8x128xf32> to vector<1xf32>
    %937 = vector.shape_cast %936 : vector<1xf32> to vector<1x1x1xf32>
    %938 = vector.extract %937[0, 0, 0] : f32 from vector<1x1x1xf32>
    %939 = arith.cmpf olt, %938, %810 : f32
    %940 = arith.select %939, %938, %810 : f32
    %941 = arith.select %939, %815, %811 : f32
    %942 = arith.select %939, %816, %812 : f32
    %943 = arith.select %939, %819, %813 : f32
    %944 = vector.shape_cast %918 : vector<8x128xf32> to vector<1x8x128xf32>
    %cst_225 = arith.constant dense<0.000000e+00> : vector<1xf32>
    %945 = vector.multi_reduction <add>, %944, %cst_225 [1, 2] : vector<1x8x128xf32> to vector<1xf32>
    %946 = vector.shape_cast %945 : vector<1xf32> to vector<1x1x1xf32>
    %947 = vector.extract %946[0, 0, 0] : f32 from vector<1x1x1xf32>
    %948 = arith.cmpf olt, %947, %940 : f32
    %949 = arith.select %948, %947, %940 : f32
    %950 = arith.select %948, %827, %941 : f32
    %951 = arith.select %948, %828, %942 : f32
    %952 = arith.select %948, %831, %943 : f32
    %953 = vector.shape_cast %926 : vector<8x128xf32> to vector<1x8x128xf32>
    %cst_226 = arith.constant dense<0.000000e+00> : vector<1xf32>
    %954 = vector.multi_reduction <add>, %953, %cst_226 [1, 2] : vector<1x8x128xf32> to vector<1xf32>
    %955 = vector.shape_cast %954 : vector<1xf32> to vector<1x1x1xf32>
    %956 = vector.extract %955[0, 0, 0] : f32 from vector<1x1x1xf32>
    %957 = arith.cmpf olt, %956, %949 : f32
    %958 = arith.select %957, %956, %949 : f32
    %959 = arith.select %957, %839, %950 : f32
    %960 = arith.select %957, %840, %951 : f32
    %961 = arith.select %957, %843, %952 : f32
    %962 = vector.shape_cast %934 : vector<8x128xf32> to vector<1x8x128xf32>
    %cst_227 = arith.constant dense<0.000000e+00> : vector<1xf32>
    %963 = vector.multi_reduction <add>, %962, %cst_227 [1, 2] : vector<1x8x128xf32> to vector<1xf32>
    %964 = vector.shape_cast %963 : vector<1xf32> to vector<1x1x1xf32>
    %965 = vector.extract %964[0, 0, 0] : f32 from vector<1x1x1xf32>
    %966 = arith.cmpf olt, %965, %958 : f32
    %967 = arith.select %966, %965, %958 : f32
    %968 = arith.select %966, %851, %959 : f32
    %969 = arith.select %966, %852, %960 : f32
    %970 = arith.select %966, %855, %961 : f32
    %cst_228 = arith.constant 2.400000e-01 : f32
    %971 = arith.subf %28, %cst_228 : f32
    %cst_229 = arith.constant 2.550000e+02 : f32
    %972 = arith.divf %971, %cst_229 : f32
    %cst_230 = arith.constant 1.000000e+00 : f32
    %973 = arith.divf %cst_230, %972 : f32
    %cst_231 = arith.constant 0.000000e+00 : f32
    %974 = arith.subf %cst_231, %22 : f32
    %975 = arith.divf %974, %972 : f32
    %976 = math.roundeven %975 : f32
    %cst_232 = arith.constant 0.000000e+00 : f32
    %977 = arith.subf %cst_232, %976 : f32
    %cst_233 = arith.constant 2.550000e+02 : f32
    %978 = arith.subf %cst_233, %976 : f32
    %979 = vector.broadcast %972 : f32 to vector<8x128xf32>
    %980 = vector.broadcast %973 : f32 to vector<8x128xf32>
    %981 = vector.broadcast %977 : f32 to vector<8x128xf32>
    %982 = vector.broadcast %978 : f32 to vector<8x128xf32>
    %cst_234 = arith.constant 2.500000e-01 : f32
    %983 = arith.subf %28, %cst_234 : f32
    %cst_235 = arith.constant 2.550000e+02 : f32
    %984 = arith.divf %983, %cst_235 : f32
    %cst_236 = arith.constant 1.000000e+00 : f32
    %985 = arith.divf %cst_236, %984 : f32
    %cst_237 = arith.constant 0.000000e+00 : f32
    %986 = arith.subf %cst_237, %22 : f32
    %987 = arith.divf %986, %984 : f32
    %988 = math.roundeven %987 : f32
    %cst_238 = arith.constant 0.000000e+00 : f32
    %989 = arith.subf %cst_238, %988 : f32
    %cst_239 = arith.constant 2.550000e+02 : f32
    %990 = arith.subf %cst_239, %988 : f32
    %991 = vector.broadcast %984 : f32 to vector<8x128xf32>
    %992 = vector.broadcast %985 : f32 to vector<8x128xf32>
    %993 = vector.broadcast %989 : f32 to vector<8x128xf32>
    %994 = vector.broadcast %990 : f32 to vector<8x128xf32>
    %cst_240 = arith.constant 2.600000e-01 : f32
    %995 = arith.subf %28, %cst_240 : f32
    %cst_241 = arith.constant 2.550000e+02 : f32
    %996 = arith.divf %995, %cst_241 : f32
    %cst_242 = arith.constant 1.000000e+00 : f32
    %997 = arith.divf %cst_242, %996 : f32
    %cst_243 = arith.constant 0.000000e+00 : f32
    %998 = arith.subf %cst_243, %22 : f32
    %999 = arith.divf %998, %996 : f32
    %1000 = math.roundeven %999 : f32
    %cst_244 = arith.constant 0.000000e+00 : f32
    %1001 = arith.subf %cst_244, %1000 : f32
    %cst_245 = arith.constant 2.550000e+02 : f32
    %1002 = arith.subf %cst_245, %1000 : f32
    %1003 = vector.broadcast %996 : f32 to vector<8x128xf32>
    %1004 = vector.broadcast %997 : f32 to vector<8x128xf32>
    %1005 = vector.broadcast %1001 : f32 to vector<8x128xf32>
    %1006 = vector.broadcast %1002 : f32 to vector<8x128xf32>
    %cst_246 = arith.constant 0.269999981 : f32
    %1007 = arith.subf %28, %cst_246 : f32
    %cst_247 = arith.constant 2.550000e+02 : f32
    %1008 = arith.divf %1007, %cst_247 : f32
    %cst_248 = arith.constant 1.000000e+00 : f32
    %1009 = arith.divf %cst_248, %1008 : f32
    %cst_249 = arith.constant 0.000000e+00 : f32
    %1010 = arith.subf %cst_249, %22 : f32
    %1011 = arith.divf %1010, %1008 : f32
    %1012 = math.roundeven %1011 : f32
    %cst_250 = arith.constant 0.000000e+00 : f32
    %1013 = arith.subf %cst_250, %1012 : f32
    %cst_251 = arith.constant 2.550000e+02 : f32
    %1014 = arith.subf %cst_251, %1012 : f32
    %1015 = vector.broadcast %1008 : f32 to vector<8x128xf32>
    %1016 = vector.broadcast %1009 : f32 to vector<8x128xf32>
    %1017 = vector.broadcast %1013 : f32 to vector<8x128xf32>
    %1018 = vector.broadcast %1014 : f32 to vector<8x128xf32>
    %cst_252 = arith.constant 0.000000e+00 : f32
    %1019 = vector.broadcast %cst_252 : f32 to vector<8x128xf32>
    %c0_i32_253 = arith.constant 0 : i32
    %c8_i32_254 = arith.constant 8 : i32
    %1020 = arith.muli %c0_i32_253, %c8_i32_254 : i32
    %1021 = tpu.assume_multiple %1020, 8 : i32
    %1022 = arith.index_cast %1021 : i32 to index
    %c0_255 = arith.constant 0 : index
    %1023 = vector.load %arg1[%1022, %c0_255] : memref<16x128xf32, #tpu.memory_space<vmem>>, vector<8x128xf32>
    %1024 = arith.mulf %1023, %980 : vector<8x128xf32>
    %1025 = math.roundeven %1024 : vector<8x128xf32>
    %1026 = arith.maximumf %1025, %981 : vector<8x128xf32>
    %1027 = arith.minimumf %1026, %982 : vector<8x128xf32>
    %1028 = arith.mulf %1027, %979 : vector<8x128xf32>
    %1029 = arith.subf %1028, %1023 : vector<8x128xf32>
    %1030 = arith.mulf %1029, %1029 : vector<8x128xf32>
    %1031 = arith.addf %1019, %1030 : vector<8x128xf32>
    %1032 = arith.mulf %1023, %992 : vector<8x128xf32>
    %1033 = math.roundeven %1032 : vector<8x128xf32>
    %1034 = arith.maximumf %1033, %993 : vector<8x128xf32>
    %1035 = arith.minimumf %1034, %994 : vector<8x128xf32>
    %1036 = arith.mulf %1035, %991 : vector<8x128xf32>
    %1037 = arith.subf %1036, %1023 : vector<8x128xf32>
    %1038 = arith.mulf %1037, %1037 : vector<8x128xf32>
    %1039 = arith.addf %1019, %1038 : vector<8x128xf32>
    %1040 = arith.mulf %1023, %1004 : vector<8x128xf32>
    %1041 = math.roundeven %1040 : vector<8x128xf32>
    %1042 = arith.maximumf %1041, %1005 : vector<8x128xf32>
    %1043 = arith.minimumf %1042, %1006 : vector<8x128xf32>
    %1044 = arith.mulf %1043, %1003 : vector<8x128xf32>
    %1045 = arith.subf %1044, %1023 : vector<8x128xf32>
    %1046 = arith.mulf %1045, %1045 : vector<8x128xf32>
    %1047 = arith.addf %1019, %1046 : vector<8x128xf32>
    %1048 = arith.mulf %1023, %1016 : vector<8x128xf32>
    %1049 = math.roundeven %1048 : vector<8x128xf32>
    %1050 = arith.maximumf %1049, %1017 : vector<8x128xf32>
    %1051 = arith.minimumf %1050, %1018 : vector<8x128xf32>
    %1052 = arith.mulf %1051, %1015 : vector<8x128xf32>
    %1053 = arith.subf %1052, %1023 : vector<8x128xf32>
    %1054 = arith.mulf %1053, %1053 : vector<8x128xf32>
    %1055 = arith.addf %1019, %1054 : vector<8x128xf32>
    %c1_i32_256 = arith.constant 1 : i32
    %c8_i32_257 = arith.constant 8 : i32
    %1056 = arith.muli %c1_i32_256, %c8_i32_257 : i32
    %1057 = tpu.assume_multiple %1056, 8 : i32
    %1058 = arith.index_cast %1057 : i32 to index
    %c0_258 = arith.constant 0 : index
    %1059 = vector.load %arg1[%1058, %c0_258] : memref<16x128xf32, #tpu.memory_space<vmem>>, vector<8x128xf32>
    %1060 = arith.mulf %1059, %980 : vector<8x128xf32>
    %1061 = math.roundeven %1060 : vector<8x128xf32>
    %1062 = arith.maximumf %1061, %981 : vector<8x128xf32>
    %1063 = arith.minimumf %1062, %982 : vector<8x128xf32>
    %1064 = arith.mulf %1063, %979 : vector<8x128xf32>
    %1065 = arith.subf %1064, %1059 : vector<8x128xf32>
    %1066 = arith.mulf %1065, %1065 : vector<8x128xf32>
    %1067 = arith.addf %1031, %1066 : vector<8x128xf32>
    %1068 = arith.mulf %1059, %992 : vector<8x128xf32>
    %1069 = math.roundeven %1068 : vector<8x128xf32>
    %1070 = arith.maximumf %1069, %993 : vector<8x128xf32>
    %1071 = arith.minimumf %1070, %994 : vector<8x128xf32>
    %1072 = arith.mulf %1071, %991 : vector<8x128xf32>
    %1073 = arith.subf %1072, %1059 : vector<8x128xf32>
    %1074 = arith.mulf %1073, %1073 : vector<8x128xf32>
    %1075 = arith.addf %1039, %1074 : vector<8x128xf32>
    %1076 = arith.mulf %1059, %1004 : vector<8x128xf32>
    %1077 = math.roundeven %1076 : vector<8x128xf32>
    %1078 = arith.maximumf %1077, %1005 : vector<8x128xf32>
    %1079 = arith.minimumf %1078, %1006 : vector<8x128xf32>
    %1080 = arith.mulf %1079, %1003 : vector<8x128xf32>
    %1081 = arith.subf %1080, %1059 : vector<8x128xf32>
    %1082 = arith.mulf %1081, %1081 : vector<8x128xf32>
    %1083 = arith.addf %1047, %1082 : vector<8x128xf32>
    %1084 = arith.mulf %1059, %1016 : vector<8x128xf32>
    %1085 = math.roundeven %1084 : vector<8x128xf32>
    %1086 = arith.maximumf %1085, %1017 : vector<8x128xf32>
    %1087 = arith.minimumf %1086, %1018 : vector<8x128xf32>
    %1088 = arith.mulf %1087, %1015 : vector<8x128xf32>
    %1089 = arith.subf %1088, %1059 : vector<8x128xf32>
    %1090 = arith.mulf %1089, %1089 : vector<8x128xf32>
    %1091 = arith.addf %1055, %1090 : vector<8x128xf32>
    %c2_i32_259 = arith.constant 2 : i32
    %1092 = vector.shape_cast %1067 : vector<8x128xf32> to vector<1x8x128xf32>
    %cst_260 = arith.constant dense<0.000000e+00> : vector<1xf32>
    %1093 = vector.multi_reduction <add>, %1092, %cst_260 [1, 2] : vector<1x8x128xf32> to vector<1xf32>
    %1094 = vector.shape_cast %1093 : vector<1xf32> to vector<1x1x1xf32>
    %1095 = vector.extract %1094[0, 0, 0] : f32 from vector<1x1x1xf32>
    %1096 = arith.cmpf olt, %1095, %967 : f32
    %1097 = arith.select %1096, %1095, %967 : f32
    %1098 = arith.select %1096, %972, %968 : f32
    %1099 = arith.select %1096, %973, %969 : f32
    %1100 = arith.select %1096, %976, %970 : f32
    %1101 = vector.shape_cast %1075 : vector<8x128xf32> to vector<1x8x128xf32>
    %cst_261 = arith.constant dense<0.000000e+00> : vector<1xf32>
    %1102 = vector.multi_reduction <add>, %1101, %cst_261 [1, 2] : vector<1x8x128xf32> to vector<1xf32>
    %1103 = vector.shape_cast %1102 : vector<1xf32> to vector<1x1x1xf32>
    %1104 = vector.extract %1103[0, 0, 0] : f32 from vector<1x1x1xf32>
    %1105 = arith.cmpf olt, %1104, %1097 : f32
    %1106 = arith.select %1105, %1104, %1097 : f32
    %1107 = arith.select %1105, %984, %1098 : f32
    %1108 = arith.select %1105, %985, %1099 : f32
    %1109 = arith.select %1105, %988, %1100 : f32
    %1110 = vector.shape_cast %1083 : vector<8x128xf32> to vector<1x8x128xf32>
    %cst_262 = arith.constant dense<0.000000e+00> : vector<1xf32>
    %1111 = vector.multi_reduction <add>, %1110, %cst_262 [1, 2] : vector<1x8x128xf32> to vector<1xf32>
    %1112 = vector.shape_cast %1111 : vector<1xf32> to vector<1x1x1xf32>
    %1113 = vector.extract %1112[0, 0, 0] : f32 from vector<1x1x1xf32>
    %1114 = arith.cmpf olt, %1113, %1106 : f32
    %1115 = arith.select %1114, %1113, %1106 : f32
    %1116 = arith.select %1114, %996, %1107 : f32
    %1117 = arith.select %1114, %997, %1108 : f32
    %1118 = arith.select %1114, %1000, %1109 : f32
    %1119 = vector.shape_cast %1091 : vector<8x128xf32> to vector<1x8x128xf32>
    %cst_263 = arith.constant dense<0.000000e+00> : vector<1xf32>
    %1120 = vector.multi_reduction <add>, %1119, %cst_263 [1, 2] : vector<1x8x128xf32> to vector<1xf32>
    %1121 = vector.shape_cast %1120 : vector<1xf32> to vector<1x1x1xf32>
    %1122 = vector.extract %1121[0, 0, 0] : f32 from vector<1x1x1xf32>
    %1123 = arith.cmpf olt, %1122, %1115 : f32
    %1124 = arith.select %1123, %1122, %1115 : f32
    %1125 = arith.select %1123, %1008, %1116 : f32
    %1126 = arith.select %1123, %1009, %1117 : f32
    %1127 = arith.select %1123, %1012, %1118 : f32
    %cst_264 = arith.constant 2.800000e-01 : f32
    %1128 = arith.subf %28, %cst_264 : f32
    %cst_265 = arith.constant 2.550000e+02 : f32
    %1129 = arith.divf %1128, %cst_265 : f32
    %cst_266 = arith.constant 1.000000e+00 : f32
    %1130 = arith.divf %cst_266, %1129 : f32
    %cst_267 = arith.constant 0.000000e+00 : f32
    %1131 = arith.subf %cst_267, %22 : f32
    %1132 = arith.divf %1131, %1129 : f32
    %1133 = math.roundeven %1132 : f32
    %cst_268 = arith.constant 0.000000e+00 : f32
    %1134 = arith.subf %cst_268, %1133 : f32
    %cst_269 = arith.constant 2.550000e+02 : f32
    %1135 = arith.subf %cst_269, %1133 : f32
    %1136 = vector.broadcast %1129 : f32 to vector<8x128xf32>
    %1137 = vector.broadcast %1130 : f32 to vector<8x128xf32>
    %1138 = vector.broadcast %1134 : f32 to vector<8x128xf32>
    %1139 = vector.broadcast %1135 : f32 to vector<8x128xf32>
    %cst_270 = arith.constant 2.900000e-01 : f32
    %1140 = arith.subf %28, %cst_270 : f32
    %cst_271 = arith.constant 2.550000e+02 : f32
    %1141 = arith.divf %1140, %cst_271 : f32
    %cst_272 = arith.constant 1.000000e+00 : f32
    %1142 = arith.divf %cst_272, %1141 : f32
    %cst_273 = arith.constant 0.000000e+00 : f32
    %1143 = arith.subf %cst_273, %22 : f32
    %1144 = arith.divf %1143, %1141 : f32
    %1145 = math.roundeven %1144 : f32
    %cst_274 = arith.constant 0.000000e+00 : f32
    %1146 = arith.subf %cst_274, %1145 : f32
    %cst_275 = arith.constant 2.550000e+02 : f32
    %1147 = arith.subf %cst_275, %1145 : f32
    %1148 = vector.broadcast %1141 : f32 to vector<8x128xf32>
    %1149 = vector.broadcast %1142 : f32 to vector<8x128xf32>
    %1150 = vector.broadcast %1146 : f32 to vector<8x128xf32>
    %1151 = vector.broadcast %1147 : f32 to vector<8x128xf32>
    %cst_276 = arith.constant 0.299999982 : f32
    %1152 = arith.subf %28, %cst_276 : f32
    %cst_277 = arith.constant 2.550000e+02 : f32
    %1153 = arith.divf %1152, %cst_277 : f32
    %cst_278 = arith.constant 1.000000e+00 : f32
    %1154 = arith.divf %cst_278, %1153 : f32
    %cst_279 = arith.constant 0.000000e+00 : f32
    %1155 = arith.subf %cst_279, %22 : f32
    %1156 = arith.divf %1155, %1153 : f32
    %1157 = math.roundeven %1156 : f32
    %cst_280 = arith.constant 0.000000e+00 : f32
    %1158 = arith.subf %cst_280, %1157 : f32
    %cst_281 = arith.constant 2.550000e+02 : f32
    %1159 = arith.subf %cst_281, %1157 : f32
    %1160 = vector.broadcast %1153 : f32 to vector<8x128xf32>
    %1161 = vector.broadcast %1154 : f32 to vector<8x128xf32>
    %1162 = vector.broadcast %1158 : f32 to vector<8x128xf32>
    %1163 = vector.broadcast %1159 : f32 to vector<8x128xf32>
    %cst_282 = arith.constant 3.100000e-01 : f32
    %1164 = arith.subf %28, %cst_282 : f32
    %cst_283 = arith.constant 2.550000e+02 : f32
    %1165 = arith.divf %1164, %cst_283 : f32
    %cst_284 = arith.constant 1.000000e+00 : f32
    %1166 = arith.divf %cst_284, %1165 : f32
    %cst_285 = arith.constant 0.000000e+00 : f32
    %1167 = arith.subf %cst_285, %22 : f32
    %1168 = arith.divf %1167, %1165 : f32
    %1169 = math.roundeven %1168 : f32
    %cst_286 = arith.constant 0.000000e+00 : f32
    %1170 = arith.subf %cst_286, %1169 : f32
    %cst_287 = arith.constant 2.550000e+02 : f32
    %1171 = arith.subf %cst_287, %1169 : f32
    %1172 = vector.broadcast %1165 : f32 to vector<8x128xf32>
    %1173 = vector.broadcast %1166 : f32 to vector<8x128xf32>
    %1174 = vector.broadcast %1170 : f32 to vector<8x128xf32>
    %1175 = vector.broadcast %1171 : f32 to vector<8x128xf32>
    %cst_288 = arith.constant 0.000000e+00 : f32
    %1176 = vector.broadcast %cst_288 : f32 to vector<8x128xf32>
    %c0_i32_289 = arith.constant 0 : i32
    %c8_i32_290 = arith.constant 8 : i32
    %1177 = arith.muli %c0_i32_289, %c8_i32_290 : i32
    %1178 = tpu.assume_multiple %1177, 8 : i32
    %1179 = arith.index_cast %1178 : i32 to index
    %c0_291 = arith.constant 0 : index
    %1180 = vector.load %arg1[%1179, %c0_291] : memref<16x128xf32, #tpu.memory_space<vmem>>, vector<8x128xf32>
    %1181 = arith.mulf %1180, %1137 : vector<8x128xf32>
    %1182 = math.roundeven %1181 : vector<8x128xf32>
    %1183 = arith.maximumf %1182, %1138 : vector<8x128xf32>
    %1184 = arith.minimumf %1183, %1139 : vector<8x128xf32>
    %1185 = arith.mulf %1184, %1136 : vector<8x128xf32>
    %1186 = arith.subf %1185, %1180 : vector<8x128xf32>
    %1187 = arith.mulf %1186, %1186 : vector<8x128xf32>
    %1188 = arith.addf %1176, %1187 : vector<8x128xf32>
    %1189 = arith.mulf %1180, %1149 : vector<8x128xf32>
    %1190 = math.roundeven %1189 : vector<8x128xf32>
    %1191 = arith.maximumf %1190, %1150 : vector<8x128xf32>
    %1192 = arith.minimumf %1191, %1151 : vector<8x128xf32>
    %1193 = arith.mulf %1192, %1148 : vector<8x128xf32>
    %1194 = arith.subf %1193, %1180 : vector<8x128xf32>
    %1195 = arith.mulf %1194, %1194 : vector<8x128xf32>
    %1196 = arith.addf %1176, %1195 : vector<8x128xf32>
    %1197 = arith.mulf %1180, %1161 : vector<8x128xf32>
    %1198 = math.roundeven %1197 : vector<8x128xf32>
    %1199 = arith.maximumf %1198, %1162 : vector<8x128xf32>
    %1200 = arith.minimumf %1199, %1163 : vector<8x128xf32>
    %1201 = arith.mulf %1200, %1160 : vector<8x128xf32>
    %1202 = arith.subf %1201, %1180 : vector<8x128xf32>
    %1203 = arith.mulf %1202, %1202 : vector<8x128xf32>
    %1204 = arith.addf %1176, %1203 : vector<8x128xf32>
    %1205 = arith.mulf %1180, %1173 : vector<8x128xf32>
    %1206 = math.roundeven %1205 : vector<8x128xf32>
    %1207 = arith.maximumf %1206, %1174 : vector<8x128xf32>
    %1208 = arith.minimumf %1207, %1175 : vector<8x128xf32>
    %1209 = arith.mulf %1208, %1172 : vector<8x128xf32>
    %1210 = arith.subf %1209, %1180 : vector<8x128xf32>
    %1211 = arith.mulf %1210, %1210 : vector<8x128xf32>
    %1212 = arith.addf %1176, %1211 : vector<8x128xf32>
    %c1_i32_292 = arith.constant 1 : i32
    %c8_i32_293 = arith.constant 8 : i32
    %1213 = arith.muli %c1_i32_292, %c8_i32_293 : i32
    %1214 = tpu.assume_multiple %1213, 8 : i32
    %1215 = arith.index_cast %1214 : i32 to index
    %c0_294 = arith.constant 0 : index
    %1216 = vector.load %arg1[%1215, %c0_294] : memref<16x128xf32, #tpu.memory_space<vmem>>, vector<8x128xf32>
    %1217 = arith.mulf %1216, %1137 : vector<8x128xf32>
    %1218 = math.roundeven %1217 : vector<8x128xf32>
    %1219 = arith.maximumf %1218, %1138 : vector<8x128xf32>
    %1220 = arith.minimumf %1219, %1139 : vector<8x128xf32>
    %1221 = arith.mulf %1220, %1136 : vector<8x128xf32>
    %1222 = arith.subf %1221, %1216 : vector<8x128xf32>
    %1223 = arith.mulf %1222, %1222 : vector<8x128xf32>
    %1224 = arith.addf %1188, %1223 : vector<8x128xf32>
    %1225 = arith.mulf %1216, %1149 : vector<8x128xf32>
    %1226 = math.roundeven %1225 : vector<8x128xf32>
    %1227 = arith.maximumf %1226, %1150 : vector<8x128xf32>
    %1228 = arith.minimumf %1227, %1151 : vector<8x128xf32>
    %1229 = arith.mulf %1228, %1148 : vector<8x128xf32>
    %1230 = arith.subf %1229, %1216 : vector<8x128xf32>
    %1231 = arith.mulf %1230, %1230 : vector<8x128xf32>
    %1232 = arith.addf %1196, %1231 : vector<8x128xf32>
    %1233 = arith.mulf %1216, %1161 : vector<8x128xf32>
    %1234 = math.roundeven %1233 : vector<8x128xf32>
    %1235 = arith.maximumf %1234, %1162 : vector<8x128xf32>
    %1236 = arith.minimumf %1235, %1163 : vector<8x128xf32>
    %1237 = arith.mulf %1236, %1160 : vector<8x128xf32>
    %1238 = arith.subf %1237, %1216 : vector<8x128xf32>
    %1239 = arith.mulf %1238, %1238 : vector<8x128xf32>
    %1240 = arith.addf %1204, %1239 : vector<8x128xf32>
    %1241 = arith.mulf %1216, %1173 : vector<8x128xf32>
    %1242 = math.roundeven %1241 : vector<8x128xf32>
    %1243 = arith.maximumf %1242, %1174 : vector<8x128xf32>
    %1244 = arith.minimumf %1243, %1175 : vector<8x128xf32>
    %1245 = arith.mulf %1244, %1172 : vector<8x128xf32>
    %1246 = arith.subf %1245, %1216 : vector<8x128xf32>
    %1247 = arith.mulf %1246, %1246 : vector<8x128xf32>
    %1248 = arith.addf %1212, %1247 : vector<8x128xf32>
    %c2_i32_295 = arith.constant 2 : i32
    %1249 = vector.shape_cast %1224 : vector<8x128xf32> to vector<1x8x128xf32>
    %cst_296 = arith.constant dense<0.000000e+00> : vector<1xf32>
    %1250 = vector.multi_reduction <add>, %1249, %cst_296 [1, 2] : vector<1x8x128xf32> to vector<1xf32>
    %1251 = vector.shape_cast %1250 : vector<1xf32> to vector<1x1x1xf32>
    %1252 = vector.extract %1251[0, 0, 0] : f32 from vector<1x1x1xf32>
    %1253 = arith.cmpf olt, %1252, %1124 : f32
    %1254 = arith.select %1253, %1252, %1124 : f32
    %1255 = arith.select %1253, %1129, %1125 : f32
    %1256 = arith.select %1253, %1130, %1126 : f32
    %1257 = arith.select %1253, %1133, %1127 : f32
    %1258 = vector.shape_cast %1232 : vector<8x128xf32> to vector<1x8x128xf32>
    %cst_297 = arith.constant dense<0.000000e+00> : vector<1xf32>
    %1259 = vector.multi_reduction <add>, %1258, %cst_297 [1, 2] : vector<1x8x128xf32> to vector<1xf32>
    %1260 = vector.shape_cast %1259 : vector<1xf32> to vector<1x1x1xf32>
    %1261 = vector.extract %1260[0, 0, 0] : f32 from vector<1x1x1xf32>
    %1262 = arith.cmpf olt, %1261, %1254 : f32
    %1263 = arith.select %1262, %1261, %1254 : f32
    %1264 = arith.select %1262, %1141, %1255 : f32
    %1265 = arith.select %1262, %1142, %1256 : f32
    %1266 = arith.select %1262, %1145, %1257 : f32
    %1267 = vector.shape_cast %1240 : vector<8x128xf32> to vector<1x8x128xf32>
    %cst_298 = arith.constant dense<0.000000e+00> : vector<1xf32>
    %1268 = vector.multi_reduction <add>, %1267, %cst_298 [1, 2] : vector<1x8x128xf32> to vector<1xf32>
    %1269 = vector.shape_cast %1268 : vector<1xf32> to vector<1x1x1xf32>
    %1270 = vector.extract %1269[0, 0, 0] : f32 from vector<1x1x1xf32>
    %1271 = arith.cmpf olt, %1270, %1263 : f32
    %1272 = arith.select %1271, %1270, %1263 : f32
    %1273 = arith.select %1271, %1153, %1264 : f32
    %1274 = arith.select %1271, %1154, %1265 : f32
    %1275 = arith.select %1271, %1157, %1266 : f32
    %1276 = vector.shape_cast %1248 : vector<8x128xf32> to vector<1x8x128xf32>
    %cst_299 = arith.constant dense<0.000000e+00> : vector<1xf32>
    %1277 = vector.multi_reduction <add>, %1276, %cst_299 [1, 2] : vector<1x8x128xf32> to vector<1xf32>
    %1278 = vector.shape_cast %1277 : vector<1xf32> to vector<1x1x1xf32>
    %1279 = vector.extract %1278[0, 0, 0] : f32 from vector<1x1x1xf32>
    %1280 = arith.cmpf olt, %1279, %1272 : f32
    %1281 = arith.select %1280, %1279, %1272 : f32
    %1282 = arith.select %1280, %1165, %1273 : f32
    %1283 = arith.select %1280, %1166, %1274 : f32
    %1284 = arith.select %1280, %1169, %1275 : f32
    %cst_300 = arith.constant 3.200000e-01 : f32
    %1285 = arith.subf %28, %cst_300 : f32
    %cst_301 = arith.constant 2.550000e+02 : f32
    %1286 = arith.divf %1285, %cst_301 : f32
    %cst_302 = arith.constant 1.000000e+00 : f32
    %1287 = arith.divf %cst_302, %1286 : f32
    %cst_303 = arith.constant 0.000000e+00 : f32
    %1288 = arith.subf %cst_303, %22 : f32
    %1289 = arith.divf %1288, %1286 : f32
    %1290 = math.roundeven %1289 : f32
    %cst_304 = arith.constant 0.000000e+00 : f32
    %1291 = arith.subf %cst_304, %1290 : f32
    %cst_305 = arith.constant 2.550000e+02 : f32
    %1292 = arith.subf %cst_305, %1290 : f32
    %1293 = vector.broadcast %1286 : f32 to vector<8x128xf32>
    %1294 = vector.broadcast %1287 : f32 to vector<8x128xf32>
    %1295 = vector.broadcast %1291 : f32 to vector<8x128xf32>
    %1296 = vector.broadcast %1292 : f32 to vector<8x128xf32>
    %cst_306 = arith.constant 0.329999983 : f32
    %1297 = arith.subf %28, %cst_306 : f32
    %cst_307 = arith.constant 2.550000e+02 : f32
    %1298 = arith.divf %1297, %cst_307 : f32
    %cst_308 = arith.constant 1.000000e+00 : f32
    %1299 = arith.divf %cst_308, %1298 : f32
    %cst_309 = arith.constant 0.000000e+00 : f32
    %1300 = arith.subf %cst_309, %22 : f32
    %1301 = arith.divf %1300, %1298 : f32
    %1302 = math.roundeven %1301 : f32
    %cst_310 = arith.constant 0.000000e+00 : f32
    %1303 = arith.subf %cst_310, %1302 : f32
    %cst_311 = arith.constant 2.550000e+02 : f32
    %1304 = arith.subf %cst_311, %1302 : f32
    %1305 = vector.broadcast %1298 : f32 to vector<8x128xf32>
    %1306 = vector.broadcast %1299 : f32 to vector<8x128xf32>
    %1307 = vector.broadcast %1303 : f32 to vector<8x128xf32>
    %1308 = vector.broadcast %1304 : f32 to vector<8x128xf32>
    %cst_312 = arith.constant 3.400000e-01 : f32
    %1309 = arith.subf %28, %cst_312 : f32
    %cst_313 = arith.constant 2.550000e+02 : f32
    %1310 = arith.divf %1309, %cst_313 : f32
    %cst_314 = arith.constant 1.000000e+00 : f32
    %1311 = arith.divf %cst_314, %1310 : f32
    %cst_315 = arith.constant 0.000000e+00 : f32
    %1312 = arith.subf %cst_315, %22 : f32
    %1313 = arith.divf %1312, %1310 : f32
    %1314 = math.roundeven %1313 : f32
    %cst_316 = arith.constant 0.000000e+00 : f32
    %1315 = arith.subf %cst_316, %1314 : f32
    %cst_317 = arith.constant 2.550000e+02 : f32
    %1316 = arith.subf %cst_317, %1314 : f32
    %1317 = vector.broadcast %1310 : f32 to vector<8x128xf32>
    %1318 = vector.broadcast %1311 : f32 to vector<8x128xf32>
    %1319 = vector.broadcast %1315 : f32 to vector<8x128xf32>
    %1320 = vector.broadcast %1316 : f32 to vector<8x128xf32>
    %cst_318 = arith.constant 3.500000e-01 : f32
    %1321 = arith.subf %28, %cst_318 : f32
    %cst_319 = arith.constant 2.550000e+02 : f32
    %1322 = arith.divf %1321, %cst_319 : f32
    %cst_320 = arith.constant 1.000000e+00 : f32
    %1323 = arith.divf %cst_320, %1322 : f32
    %cst_321 = arith.constant 0.000000e+00 : f32
    %1324 = arith.subf %cst_321, %22 : f32
    %1325 = arith.divf %1324, %1322 : f32
    %1326 = math.roundeven %1325 : f32
    %cst_322 = arith.constant 0.000000e+00 : f32
    %1327 = arith.subf %cst_322, %1326 : f32
    %cst_323 = arith.constant 2.550000e+02 : f32
    %1328 = arith.subf %cst_323, %1326 : f32
    %1329 = vector.broadcast %1322 : f32 to vector<8x128xf32>
    %1330 = vector.broadcast %1323 : f32 to vector<8x128xf32>
    %1331 = vector.broadcast %1327 : f32 to vector<8x128xf32>
    %1332 = vector.broadcast %1328 : f32 to vector<8x128xf32>
    %cst_324 = arith.constant 0.000000e+00 : f32
    %1333 = vector.broadcast %cst_324 : f32 to vector<8x128xf32>
    %c0_i32_325 = arith.constant 0 : i32
    %c8_i32_326 = arith.constant 8 : i32
    %1334 = arith.muli %c0_i32_325, %c8_i32_326 : i32
    %1335 = tpu.assume_multiple %1334, 8 : i32
    %1336 = arith.index_cast %1335 : i32 to index
    %c0_327 = arith.constant 0 : index
    %1337 = vector.load %arg1[%1336, %c0_327] : memref<16x128xf32, #tpu.memory_space<vmem>>, vector<8x128xf32>
    %1338 = arith.mulf %1337, %1294 : vector<8x128xf32>
    %1339 = math.roundeven %1338 : vector<8x128xf32>
    %1340 = arith.maximumf %1339, %1295 : vector<8x128xf32>
    %1341 = arith.minimumf %1340, %1296 : vector<8x128xf32>
    %1342 = arith.mulf %1341, %1293 : vector<8x128xf32>
    %1343 = arith.subf %1342, %1337 : vector<8x128xf32>
    %1344 = arith.mulf %1343, %1343 : vector<8x128xf32>
    %1345 = arith.addf %1333, %1344 : vector<8x128xf32>
    %1346 = arith.mulf %1337, %1306 : vector<8x128xf32>
    %1347 = math.roundeven %1346 : vector<8x128xf32>
    %1348 = arith.maximumf %1347, %1307 : vector<8x128xf32>
    %1349 = arith.minimumf %1348, %1308 : vector<8x128xf32>
    %1350 = arith.mulf %1349, %1305 : vector<8x128xf32>
    %1351 = arith.subf %1350, %1337 : vector<8x128xf32>
    %1352 = arith.mulf %1351, %1351 : vector<8x128xf32>
    %1353 = arith.addf %1333, %1352 : vector<8x128xf32>
    %1354 = arith.mulf %1337, %1318 : vector<8x128xf32>
    %1355 = math.roundeven %1354 : vector<8x128xf32>
    %1356 = arith.maximumf %1355, %1319 : vector<8x128xf32>
    %1357 = arith.minimumf %1356, %1320 : vector<8x128xf32>
    %1358 = arith.mulf %1357, %1317 : vector<8x128xf32>
    %1359 = arith.subf %1358, %1337 : vector<8x128xf32>
    %1360 = arith.mulf %1359, %1359 : vector<8x128xf32>
    %1361 = arith.addf %1333, %1360 : vector<8x128xf32>
    %1362 = arith.mulf %1337, %1330 : vector<8x128xf32>
    %1363 = math.roundeven %1362 : vector<8x128xf32>
    %1364 = arith.maximumf %1363, %1331 : vector<8x128xf32>
    %1365 = arith.minimumf %1364, %1332 : vector<8x128xf32>
    %1366 = arith.mulf %1365, %1329 : vector<8x128xf32>
    %1367 = arith.subf %1366, %1337 : vector<8x128xf32>
    %1368 = arith.mulf %1367, %1367 : vector<8x128xf32>
    %1369 = arith.addf %1333, %1368 : vector<8x128xf32>
    %c1_i32_328 = arith.constant 1 : i32
    %c8_i32_329 = arith.constant 8 : i32
    %1370 = arith.muli %c1_i32_328, %c8_i32_329 : i32
    %1371 = tpu.assume_multiple %1370, 8 : i32
    %1372 = arith.index_cast %1371 : i32 to index
    %c0_330 = arith.constant 0 : index
    %1373 = vector.load %arg1[%1372, %c0_330] : memref<16x128xf32, #tpu.memory_space<vmem>>, vector<8x128xf32>
    %1374 = arith.mulf %1373, %1294 : vector<8x128xf32>
    %1375 = math.roundeven %1374 : vector<8x128xf32>
    %1376 = arith.maximumf %1375, %1295 : vector<8x128xf32>
    %1377 = arith.minimumf %1376, %1296 : vector<8x128xf32>
    %1378 = arith.mulf %1377, %1293 : vector<8x128xf32>
    %1379 = arith.subf %1378, %1373 : vector<8x128xf32>
    %1380 = arith.mulf %1379, %1379 : vector<8x128xf32>
    %1381 = arith.addf %1345, %1380 : vector<8x128xf32>
    %1382 = arith.mulf %1373, %1306 : vector<8x128xf32>
    %1383 = math.roundeven %1382 : vector<8x128xf32>
    %1384 = arith.maximumf %1383, %1307 : vector<8x128xf32>
    %1385 = arith.minimumf %1384, %1308 : vector<8x128xf32>
    %1386 = arith.mulf %1385, %1305 : vector<8x128xf32>
    %1387 = arith.subf %1386, %1373 : vector<8x128xf32>
    %1388 = arith.mulf %1387, %1387 : vector<8x128xf32>
    %1389 = arith.addf %1353, %1388 : vector<8x128xf32>
    %1390 = arith.mulf %1373, %1318 : vector<8x128xf32>
    %1391 = math.roundeven %1390 : vector<8x128xf32>
    %1392 = arith.maximumf %1391, %1319 : vector<8x128xf32>
    %1393 = arith.minimumf %1392, %1320 : vector<8x128xf32>
    %1394 = arith.mulf %1393, %1317 : vector<8x128xf32>
    %1395 = arith.subf %1394, %1373 : vector<8x128xf32>
    %1396 = arith.mulf %1395, %1395 : vector<8x128xf32>
    %1397 = arith.addf %1361, %1396 : vector<8x128xf32>
    %1398 = arith.mulf %1373, %1330 : vector<8x128xf32>
    %1399 = math.roundeven %1398 : vector<8x128xf32>
    %1400 = arith.maximumf %1399, %1331 : vector<8x128xf32>
    %1401 = arith.minimumf %1400, %1332 : vector<8x128xf32>
    %1402 = arith.mulf %1401, %1329 : vector<8x128xf32>
    %1403 = arith.subf %1402, %1373 : vector<8x128xf32>
    %1404 = arith.mulf %1403, %1403 : vector<8x128xf32>
    %1405 = arith.addf %1369, %1404 : vector<8x128xf32>
    %c2_i32_331 = arith.constant 2 : i32
    %1406 = vector.shape_cast %1381 : vector<8x128xf32> to vector<1x8x128xf32>
    %cst_332 = arith.constant dense<0.000000e+00> : vector<1xf32>
    %1407 = vector.multi_reduction <add>, %1406, %cst_332 [1, 2] : vector<1x8x128xf32> to vector<1xf32>
    %1408 = vector.shape_cast %1407 : vector<1xf32> to vector<1x1x1xf32>
    %1409 = vector.extract %1408[0, 0, 0] : f32 from vector<1x1x1xf32>
    %1410 = arith.cmpf olt, %1409, %1281 : f32
    %1411 = arith.select %1410, %1409, %1281 : f32
    %1412 = arith.select %1410, %1286, %1282 : f32
    %1413 = arith.select %1410, %1287, %1283 : f32
    %1414 = arith.select %1410, %1290, %1284 : f32
    %1415 = vector.shape_cast %1389 : vector<8x128xf32> to vector<1x8x128xf32>
    %cst_333 = arith.constant dense<0.000000e+00> : vector<1xf32>
    %1416 = vector.multi_reduction <add>, %1415, %cst_333 [1, 2] : vector<1x8x128xf32> to vector<1xf32>
    %1417 = vector.shape_cast %1416 : vector<1xf32> to vector<1x1x1xf32>
    %1418 = vector.extract %1417[0, 0, 0] : f32 from vector<1x1x1xf32>
    %1419 = arith.cmpf olt, %1418, %1411 : f32
    %1420 = arith.select %1419, %1418, %1411 : f32
    %1421 = arith.select %1419, %1298, %1412 : f32
    %1422 = arith.select %1419, %1299, %1413 : f32
    %1423 = arith.select %1419, %1302, %1414 : f32
    %1424 = vector.shape_cast %1397 : vector<8x128xf32> to vector<1x8x128xf32>
    %cst_334 = arith.constant dense<0.000000e+00> : vector<1xf32>
    %1425 = vector.multi_reduction <add>, %1424, %cst_334 [1, 2] : vector<1x8x128xf32> to vector<1xf32>
    %1426 = vector.shape_cast %1425 : vector<1xf32> to vector<1x1x1xf32>
    %1427 = vector.extract %1426[0, 0, 0] : f32 from vector<1x1x1xf32>
    %1428 = arith.cmpf olt, %1427, %1420 : f32
    %1429 = arith.select %1428, %1427, %1420 : f32
    %1430 = arith.select %1428, %1310, %1421 : f32
    %1431 = arith.select %1428, %1311, %1422 : f32
    %1432 = arith.select %1428, %1314, %1423 : f32
    %1433 = vector.shape_cast %1405 : vector<8x128xf32> to vector<1x8x128xf32>
    %cst_335 = arith.constant dense<0.000000e+00> : vector<1xf32>
    %1434 = vector.multi_reduction <add>, %1433, %cst_335 [1, 2] : vector<1x8x128xf32> to vector<1xf32>
    %1435 = vector.shape_cast %1434 : vector<1xf32> to vector<1x1x1xf32>
    %1436 = vector.extract %1435[0, 0, 0] : f32 from vector<1x1x1xf32>
    %1437 = arith.cmpf olt, %1436, %1429 : f32
    %1438 = arith.select %1437, %1436, %1429 : f32
    %1439 = arith.select %1437, %1322, %1430 : f32
    %1440 = arith.select %1437, %1323, %1431 : f32
    %1441 = arith.select %1437, %1326, %1432 : f32
    %cst_336 = arith.constant 0.359999985 : f32
    %1442 = arith.subf %28, %cst_336 : f32
    %cst_337 = arith.constant 2.550000e+02 : f32
    %1443 = arith.divf %1442, %cst_337 : f32
    %cst_338 = arith.constant 1.000000e+00 : f32
    %1444 = arith.divf %cst_338, %1443 : f32
    %cst_339 = arith.constant 0.000000e+00 : f32
    %1445 = arith.subf %cst_339, %22 : f32
    %1446 = arith.divf %1445, %1443 : f32
    %1447 = math.roundeven %1446 : f32
    %cst_340 = arith.constant 0.000000e+00 : f32
    %1448 = arith.subf %cst_340, %1447 : f32
    %cst_341 = arith.constant 2.550000e+02 : f32
    %1449 = arith.subf %cst_341, %1447 : f32
    %1450 = vector.broadcast %1443 : f32 to vector<8x128xf32>
    %1451 = vector.broadcast %1444 : f32 to vector<8x128xf32>
    %1452 = vector.broadcast %1448 : f32 to vector<8x128xf32>
    %1453 = vector.broadcast %1449 : f32 to vector<8x128xf32>
    %cst_342 = arith.constant 3.700000e-01 : f32
    %1454 = arith.subf %28, %cst_342 : f32
    %cst_343 = arith.constant 2.550000e+02 : f32
    %1455 = arith.divf %1454, %cst_343 : f32
    %cst_344 = arith.constant 1.000000e+00 : f32
    %1456 = arith.divf %cst_344, %1455 : f32
    %cst_345 = arith.constant 0.000000e+00 : f32
    %1457 = arith.subf %cst_345, %22 : f32
    %1458 = arith.divf %1457, %1455 : f32
    %1459 = math.roundeven %1458 : f32
    %cst_346 = arith.constant 0.000000e+00 : f32
    %1460 = arith.subf %cst_346, %1459 : f32
    %cst_347 = arith.constant 2.550000e+02 : f32
    %1461 = arith.subf %cst_347, %1459 : f32
    %1462 = vector.broadcast %1455 : f32 to vector<8x128xf32>
    %1463 = vector.broadcast %1456 : f32 to vector<8x128xf32>
    %1464 = vector.broadcast %1460 : f32 to vector<8x128xf32>
    %1465 = vector.broadcast %1461 : f32 to vector<8x128xf32>
    %cst_348 = arith.constant 3.800000e-01 : f32
    %1466 = arith.subf %28, %cst_348 : f32
    %cst_349 = arith.constant 2.550000e+02 : f32
    %1467 = arith.divf %1466, %cst_349 : f32
    %cst_350 = arith.constant 1.000000e+00 : f32
    %1468 = arith.divf %cst_350, %1467 : f32
    %cst_351 = arith.constant 0.000000e+00 : f32
    %1469 = arith.subf %cst_351, %22 : f32
    %1470 = arith.divf %1469, %1467 : f32
    %1471 = math.roundeven %1470 : f32
    %cst_352 = arith.constant 0.000000e+00 : f32
    %1472 = arith.subf %cst_352, %1471 : f32
    %cst_353 = arith.constant 2.550000e+02 : f32
    %1473 = arith.subf %cst_353, %1471 : f32
    %1474 = vector.broadcast %1467 : f32 to vector<8x128xf32>
    %1475 = vector.broadcast %1468 : f32 to vector<8x128xf32>
    %1476 = vector.broadcast %1472 : f32 to vector<8x128xf32>
    %1477 = vector.broadcast %1473 : f32 to vector<8x128xf32>
    %cst_354 = arith.constant 3.900000e-01 : f32
    %1478 = arith.subf %28, %cst_354 : f32
    %cst_355 = arith.constant 2.550000e+02 : f32
    %1479 = arith.divf %1478, %cst_355 : f32
    %cst_356 = arith.constant 1.000000e+00 : f32
    %1480 = arith.divf %cst_356, %1479 : f32
    %cst_357 = arith.constant 0.000000e+00 : f32
    %1481 = arith.subf %cst_357, %22 : f32
    %1482 = arith.divf %1481, %1479 : f32
    %1483 = math.roundeven %1482 : f32
    %cst_358 = arith.constant 0.000000e+00 : f32
    %1484 = arith.subf %cst_358, %1483 : f32
    %cst_359 = arith.constant 2.550000e+02 : f32
    %1485 = arith.subf %cst_359, %1483 : f32
    %1486 = vector.broadcast %1479 : f32 to vector<8x128xf32>
    %1487 = vector.broadcast %1480 : f32 to vector<8x128xf32>
    %1488 = vector.broadcast %1484 : f32 to vector<8x128xf32>
    %1489 = vector.broadcast %1485 : f32 to vector<8x128xf32>
    %cst_360 = arith.constant 0.000000e+00 : f32
    %1490 = vector.broadcast %cst_360 : f32 to vector<8x128xf32>
    %c0_i32_361 = arith.constant 0 : i32
    %c8_i32_362 = arith.constant 8 : i32
    %1491 = arith.muli %c0_i32_361, %c8_i32_362 : i32
    %1492 = tpu.assume_multiple %1491, 8 : i32
    %1493 = arith.index_cast %1492 : i32 to index
    %c0_363 = arith.constant 0 : index
    %1494 = vector.load %arg1[%1493, %c0_363] : memref<16x128xf32, #tpu.memory_space<vmem>>, vector<8x128xf32>
    %1495 = arith.mulf %1494, %1451 : vector<8x128xf32>
    %1496 = math.roundeven %1495 : vector<8x128xf32>
    %1497 = arith.maximumf %1496, %1452 : vector<8x128xf32>
    %1498 = arith.minimumf %1497, %1453 : vector<8x128xf32>
    %1499 = arith.mulf %1498, %1450 : vector<8x128xf32>
    %1500 = arith.subf %1499, %1494 : vector<8x128xf32>
    %1501 = arith.mulf %1500, %1500 : vector<8x128xf32>
    %1502 = arith.addf %1490, %1501 : vector<8x128xf32>
    %1503 = arith.mulf %1494, %1463 : vector<8x128xf32>
    %1504 = math.roundeven %1503 : vector<8x128xf32>
    %1505 = arith.maximumf %1504, %1464 : vector<8x128xf32>
    %1506 = arith.minimumf %1505, %1465 : vector<8x128xf32>
    %1507 = arith.mulf %1506, %1462 : vector<8x128xf32>
    %1508 = arith.subf %1507, %1494 : vector<8x128xf32>
    %1509 = arith.mulf %1508, %1508 : vector<8x128xf32>
    %1510 = arith.addf %1490, %1509 : vector<8x128xf32>
    %1511 = arith.mulf %1494, %1475 : vector<8x128xf32>
    %1512 = math.roundeven %1511 : vector<8x128xf32>
    %1513 = arith.maximumf %1512, %1476 : vector<8x128xf32>
    %1514 = arith.minimumf %1513, %1477 : vector<8x128xf32>
    %1515 = arith.mulf %1514, %1474 : vector<8x128xf32>
    %1516 = arith.subf %1515, %1494 : vector<8x128xf32>
    %1517 = arith.mulf %1516, %1516 : vector<8x128xf32>
    %1518 = arith.addf %1490, %1517 : vector<8x128xf32>
    %1519 = arith.mulf %1494, %1487 : vector<8x128xf32>
    %1520 = math.roundeven %1519 : vector<8x128xf32>
    %1521 = arith.maximumf %1520, %1488 : vector<8x128xf32>
    %1522 = arith.minimumf %1521, %1489 : vector<8x128xf32>
    %1523 = arith.mulf %1522, %1486 : vector<8x128xf32>
    %1524 = arith.subf %1523, %1494 : vector<8x128xf32>
    %1525 = arith.mulf %1524, %1524 : vector<8x128xf32>
    %1526 = arith.addf %1490, %1525 : vector<8x128xf32>
    %c1_i32_364 = arith.constant 1 : i32
    %c8_i32_365 = arith.constant 8 : i32
    %1527 = arith.muli %c1_i32_364, %c8_i32_365 : i32
    %1528 = tpu.assume_multiple %1527, 8 : i32
    %1529 = arith.index_cast %1528 : i32 to index
    %c0_366 = arith.constant 0 : index
    %1530 = vector.load %arg1[%1529, %c0_366] : memref<16x128xf32, #tpu.memory_space<vmem>>, vector<8x128xf32>
    %1531 = arith.mulf %1530, %1451 : vector<8x128xf32>
    %1532 = math.roundeven %1531 : vector<8x128xf32>
    %1533 = arith.maximumf %1532, %1452 : vector<8x128xf32>
    %1534 = arith.minimumf %1533, %1453 : vector<8x128xf32>
    %1535 = arith.mulf %1534, %1450 : vector<8x128xf32>
    %1536 = arith.subf %1535, %1530 : vector<8x128xf32>
    %1537 = arith.mulf %1536, %1536 : vector<8x128xf32>
    %1538 = arith.addf %1502, %1537 : vector<8x128xf32>
    %1539 = arith.mulf %1530, %1463 : vector<8x128xf32>
    %1540 = math.roundeven %1539 : vector<8x128xf32>
    %1541 = arith.maximumf %1540, %1464 : vector<8x128xf32>
    %1542 = arith.minimumf %1541, %1465 : vector<8x128xf32>
    %1543 = arith.mulf %1542, %1462 : vector<8x128xf32>
    %1544 = arith.subf %1543, %1530 : vector<8x128xf32>
    %1545 = arith.mulf %1544, %1544 : vector<8x128xf32>
    %1546 = arith.addf %1510, %1545 : vector<8x128xf32>
    %1547 = arith.mulf %1530, %1475 : vector<8x128xf32>
    %1548 = math.roundeven %1547 : vector<8x128xf32>
    %1549 = arith.maximumf %1548, %1476 : vector<8x128xf32>
    %1550 = arith.minimumf %1549, %1477 : vector<8x128xf32>
    %1551 = arith.mulf %1550, %1474 : vector<8x128xf32>
    %1552 = arith.subf %1551, %1530 : vector<8x128xf32>
    %1553 = arith.mulf %1552, %1552 : vector<8x128xf32>
    %1554 = arith.addf %1518, %1553 : vector<8x128xf32>
    %1555 = arith.mulf %1530, %1487 : vector<8x128xf32>
    %1556 = math.roundeven %1555 : vector<8x128xf32>
    %1557 = arith.maximumf %1556, %1488 : vector<8x128xf32>
    %1558 = arith.minimumf %1557, %1489 : vector<8x128xf32>
    %1559 = arith.mulf %1558, %1486 : vector<8x128xf32>
    %1560 = arith.subf %1559, %1530 : vector<8x128xf32>
    %1561 = arith.mulf %1560, %1560 : vector<8x128xf32>
    %1562 = arith.addf %1526, %1561 : vector<8x128xf32>
    %c2_i32_367 = arith.constant 2 : i32
    %1563 = vector.shape_cast %1538 : vector<8x128xf32> to vector<1x8x128xf32>
    %cst_368 = arith.constant dense<0.000000e+00> : vector<1xf32>
    %1564 = vector.multi_reduction <add>, %1563, %cst_368 [1, 2] : vector<1x8x128xf32> to vector<1xf32>
    %1565 = vector.shape_cast %1564 : vector<1xf32> to vector<1x1x1xf32>
    %1566 = vector.extract %1565[0, 0, 0] : f32 from vector<1x1x1xf32>
    %1567 = arith.cmpf olt, %1566, %1438 : f32
    %1568 = arith.select %1567, %1566, %1438 : f32
    %1569 = arith.select %1567, %1443, %1439 : f32
    %1570 = arith.select %1567, %1444, %1440 : f32
    %1571 = arith.select %1567, %1447, %1441 : f32
    %1572 = vector.shape_cast %1546 : vector<8x128xf32> to vector<1x8x128xf32>
    %cst_369 = arith.constant dense<0.000000e+00> : vector<1xf32>
    %1573 = vector.multi_reduction <add>, %1572, %cst_369 [1, 2] : vector<1x8x128xf32> to vector<1xf32>
    %1574 = vector.shape_cast %1573 : vector<1xf32> to vector<1x1x1xf32>
    %1575 = vector.extract %1574[0, 0, 0] : f32 from vector<1x1x1xf32>
    %1576 = arith.cmpf olt, %1575, %1568 : f32
    %1577 = arith.select %1576, %1575, %1568 : f32
    %1578 = arith.select %1576, %1455, %1569 : f32
    %1579 = arith.select %1576, %1456, %1570 : f32
    %1580 = arith.select %1576, %1459, %1571 : f32
    %1581 = vector.shape_cast %1554 : vector<8x128xf32> to vector<1x8x128xf32>
    %cst_370 = arith.constant dense<0.000000e+00> : vector<1xf32>
    %1582 = vector.multi_reduction <add>, %1581, %cst_370 [1, 2] : vector<1x8x128xf32> to vector<1xf32>
    %1583 = vector.shape_cast %1582 : vector<1xf32> to vector<1x1x1xf32>
    %1584 = vector.extract %1583[0, 0, 0] : f32 from vector<1x1x1xf32>
    %1585 = arith.cmpf olt, %1584, %1577 : f32
    %1586 = arith.select %1585, %1584, %1577 : f32
    %1587 = arith.select %1585, %1467, %1578 : f32
    %1588 = arith.select %1585, %1468, %1579 : f32
    %1589 = arith.select %1585, %1471, %1580 : f32
    %1590 = vector.shape_cast %1562 : vector<8x128xf32> to vector<1x8x128xf32>
    %cst_371 = arith.constant dense<0.000000e+00> : vector<1xf32>
    %1591 = vector.multi_reduction <add>, %1590, %cst_371 [1, 2] : vector<1x8x128xf32> to vector<1xf32>
    %1592 = vector.shape_cast %1591 : vector<1xf32> to vector<1x1x1xf32>
    %1593 = vector.extract %1592[0, 0, 0] : f32 from vector<1x1x1xf32>
    %1594 = arith.cmpf olt, %1593, %1586 : f32
    %1595 = arith.select %1594, %1593, %1586 : f32
    %1596 = arith.select %1594, %1479, %1587 : f32
    %1597 = arith.select %1594, %1480, %1588 : f32
    %1598 = arith.select %1594, %1483, %1589 : f32
    %cst_372 = arith.constant 0.399999976 : f32
    %1599 = arith.subf %28, %cst_372 : f32
    %cst_373 = arith.constant 2.550000e+02 : f32
    %1600 = arith.divf %1599, %cst_373 : f32
    %cst_374 = arith.constant 1.000000e+00 : f32
    %1601 = arith.divf %cst_374, %1600 : f32
    %cst_375 = arith.constant 0.000000e+00 : f32
    %1602 = arith.subf %cst_375, %22 : f32
    %1603 = arith.divf %1602, %1600 : f32
    %1604 = math.roundeven %1603 : f32
    %cst_376 = arith.constant 0.000000e+00 : f32
    %1605 = arith.subf %cst_376, %1604 : f32
    %cst_377 = arith.constant 2.550000e+02 : f32
    %1606 = arith.subf %cst_377, %1604 : f32
    %1607 = vector.broadcast %1600 : f32 to vector<8x128xf32>
    %1608 = vector.broadcast %1601 : f32 to vector<8x128xf32>
    %1609 = vector.broadcast %1605 : f32 to vector<8x128xf32>
    %1610 = vector.broadcast %1606 : f32 to vector<8x128xf32>
    %cst_378 = arith.constant 4.100000e-01 : f32
    %1611 = arith.subf %28, %cst_378 : f32
    %cst_379 = arith.constant 2.550000e+02 : f32
    %1612 = arith.divf %1611, %cst_379 : f32
    %cst_380 = arith.constant 1.000000e+00 : f32
    %1613 = arith.divf %cst_380, %1612 : f32
    %cst_381 = arith.constant 0.000000e+00 : f32
    %1614 = arith.subf %cst_381, %22 : f32
    %1615 = arith.divf %1614, %1612 : f32
    %1616 = math.roundeven %1615 : f32
    %cst_382 = arith.constant 0.000000e+00 : f32
    %1617 = arith.subf %cst_382, %1616 : f32
    %cst_383 = arith.constant 2.550000e+02 : f32
    %1618 = arith.subf %cst_383, %1616 : f32
    %1619 = vector.broadcast %1612 : f32 to vector<8x128xf32>
    %1620 = vector.broadcast %1613 : f32 to vector<8x128xf32>
    %1621 = vector.broadcast %1617 : f32 to vector<8x128xf32>
    %1622 = vector.broadcast %1618 : f32 to vector<8x128xf32>
    %cst_384 = arith.constant 4.200000e-01 : f32
    %1623 = arith.subf %28, %cst_384 : f32
    %cst_385 = arith.constant 2.550000e+02 : f32
    %1624 = arith.divf %1623, %cst_385 : f32
    %cst_386 = arith.constant 1.000000e+00 : f32
    %1625 = arith.divf %cst_386, %1624 : f32
    %cst_387 = arith.constant 0.000000e+00 : f32
    %1626 = arith.subf %cst_387, %22 : f32
    %1627 = arith.divf %1626, %1624 : f32
    %1628 = math.roundeven %1627 : f32
    %cst_388 = arith.constant 0.000000e+00 : f32
    %1629 = arith.subf %cst_388, %1628 : f32
    %cst_389 = arith.constant 2.550000e+02 : f32
    %1630 = arith.subf %cst_389, %1628 : f32
    %1631 = vector.broadcast %1624 : f32 to vector<8x128xf32>
    %1632 = vector.broadcast %1625 : f32 to vector<8x128xf32>
    %1633 = vector.broadcast %1629 : f32 to vector<8x128xf32>
    %1634 = vector.broadcast %1630 : f32 to vector<8x128xf32>
    %cst_390 = arith.constant 0.429999977 : f32
    %1635 = arith.subf %28, %cst_390 : f32
    %cst_391 = arith.constant 2.550000e+02 : f32
    %1636 = arith.divf %1635, %cst_391 : f32
    %cst_392 = arith.constant 1.000000e+00 : f32
    %1637 = arith.divf %cst_392, %1636 : f32
    %cst_393 = arith.constant 0.000000e+00 : f32
    %1638 = arith.subf %cst_393, %22 : f32
    %1639 = arith.divf %1638, %1636 : f32
    %1640 = math.roundeven %1639 : f32
    %cst_394 = arith.constant 0.000000e+00 : f32
    %1641 = arith.subf %cst_394, %1640 : f32
    %cst_395 = arith.constant 2.550000e+02 : f32
    %1642 = arith.subf %cst_395, %1640 : f32
    %1643 = vector.broadcast %1636 : f32 to vector<8x128xf32>
    %1644 = vector.broadcast %1637 : f32 to vector<8x128xf32>
    %1645 = vector.broadcast %1641 : f32 to vector<8x128xf32>
    %1646 = vector.broadcast %1642 : f32 to vector<8x128xf32>
    %cst_396 = arith.constant 0.000000e+00 : f32
    %1647 = vector.broadcast %cst_396 : f32 to vector<8x128xf32>
    %c0_i32_397 = arith.constant 0 : i32
    %c8_i32_398 = arith.constant 8 : i32
    %1648 = arith.muli %c0_i32_397, %c8_i32_398 : i32
    %1649 = tpu.assume_multiple %1648, 8 : i32
    %1650 = arith.index_cast %1649 : i32 to index
    %c0_399 = arith.constant 0 : index
    %1651 = vector.load %arg1[%1650, %c0_399] : memref<16x128xf32, #tpu.memory_space<vmem>>, vector<8x128xf32>
    %1652 = arith.mulf %1651, %1608 : vector<8x128xf32>
    %1653 = math.roundeven %1652 : vector<8x128xf32>
    %1654 = arith.maximumf %1653, %1609 : vector<8x128xf32>
    %1655 = arith.minimumf %1654, %1610 : vector<8x128xf32>
    %1656 = arith.mulf %1655, %1607 : vector<8x128xf32>
    %1657 = arith.subf %1656, %1651 : vector<8x128xf32>
    %1658 = arith.mulf %1657, %1657 : vector<8x128xf32>
    %1659 = arith.addf %1647, %1658 : vector<8x128xf32>
    %1660 = arith.mulf %1651, %1620 : vector<8x128xf32>
    %1661 = math.roundeven %1660 : vector<8x128xf32>
    %1662 = arith.maximumf %1661, %1621 : vector<8x128xf32>
    %1663 = arith.minimumf %1662, %1622 : vector<8x128xf32>
    %1664 = arith.mulf %1663, %1619 : vector<8x128xf32>
    %1665 = arith.subf %1664, %1651 : vector<8x128xf32>
    %1666 = arith.mulf %1665, %1665 : vector<8x128xf32>
    %1667 = arith.addf %1647, %1666 : vector<8x128xf32>
    %1668 = arith.mulf %1651, %1632 : vector<8x128xf32>
    %1669 = math.roundeven %1668 : vector<8x128xf32>
    %1670 = arith.maximumf %1669, %1633 : vector<8x128xf32>
    %1671 = arith.minimumf %1670, %1634 : vector<8x128xf32>
    %1672 = arith.mulf %1671, %1631 : vector<8x128xf32>
    %1673 = arith.subf %1672, %1651 : vector<8x128xf32>
    %1674 = arith.mulf %1673, %1673 : vector<8x128xf32>
    %1675 = arith.addf %1647, %1674 : vector<8x128xf32>
    %1676 = arith.mulf %1651, %1644 : vector<8x128xf32>
    %1677 = math.roundeven %1676 : vector<8x128xf32>
    %1678 = arith.maximumf %1677, %1645 : vector<8x128xf32>
    %1679 = arith.minimumf %1678, %1646 : vector<8x128xf32>
    %1680 = arith.mulf %1679, %1643 : vector<8x128xf32>
    %1681 = arith.subf %1680, %1651 : vector<8x128xf32>
    %1682 = arith.mulf %1681, %1681 : vector<8x128xf32>
    %1683 = arith.addf %1647, %1682 : vector<8x128xf32>
    %c1_i32_400 = arith.constant 1 : i32
    %c8_i32_401 = arith.constant 8 : i32
    %1684 = arith.muli %c1_i32_400, %c8_i32_401 : i32
    %1685 = tpu.assume_multiple %1684, 8 : i32
    %1686 = arith.index_cast %1685 : i32 to index
    %c0_402 = arith.constant 0 : index
    %1687 = vector.load %arg1[%1686, %c0_402] : memref<16x128xf32, #tpu.memory_space<vmem>>, vector<8x128xf32>
    %1688 = arith.mulf %1687, %1608 : vector<8x128xf32>
    %1689 = math.roundeven %1688 : vector<8x128xf32>
    %1690 = arith.maximumf %1689, %1609 : vector<8x128xf32>
    %1691 = arith.minimumf %1690, %1610 : vector<8x128xf32>
    %1692 = arith.mulf %1691, %1607 : vector<8x128xf32>
    %1693 = arith.subf %1692, %1687 : vector<8x128xf32>
    %1694 = arith.mulf %1693, %1693 : vector<8x128xf32>
    %1695 = arith.addf %1659, %1694 : vector<8x128xf32>
    %1696 = arith.mulf %1687, %1620 : vector<8x128xf32>
    %1697 = math.roundeven %1696 : vector<8x128xf32>
    %1698 = arith.maximumf %1697, %1621 : vector<8x128xf32>
    %1699 = arith.minimumf %1698, %1622 : vector<8x128xf32>
    %1700 = arith.mulf %1699, %1619 : vector<8x128xf32>
    %1701 = arith.subf %1700, %1687 : vector<8x128xf32>
    %1702 = arith.mulf %1701, %1701 : vector<8x128xf32>
    %1703 = arith.addf %1667, %1702 : vector<8x128xf32>
    %1704 = arith.mulf %1687, %1632 : vector<8x128xf32>
    %1705 = math.roundeven %1704 : vector<8x128xf32>
    %1706 = arith.maximumf %1705, %1633 : vector<8x128xf32>
    %1707 = arith.minimumf %1706, %1634 : vector<8x128xf32>
    %1708 = arith.mulf %1707, %1631 : vector<8x128xf32>
    %1709 = arith.subf %1708, %1687 : vector<8x128xf32>
    %1710 = arith.mulf %1709, %1709 : vector<8x128xf32>
    %1711 = arith.addf %1675, %1710 : vector<8x128xf32>
    %1712 = arith.mulf %1687, %1644 : vector<8x128xf32>
    %1713 = math.roundeven %1712 : vector<8x128xf32>
    %1714 = arith.maximumf %1713, %1645 : vector<8x128xf32>
    %1715 = arith.minimumf %1714, %1646 : vector<8x128xf32>
    %1716 = arith.mulf %1715, %1643 : vector<8x128xf32>
    %1717 = arith.subf %1716, %1687 : vector<8x128xf32>
    %1718 = arith.mulf %1717, %1717 : vector<8x128xf32>
    %1719 = arith.addf %1683, %1718 : vector<8x128xf32>
    %c2_i32_403 = arith.constant 2 : i32
    %1720 = vector.shape_cast %1695 : vector<8x128xf32> to vector<1x8x128xf32>
    %cst_404 = arith.constant dense<0.000000e+00> : vector<1xf32>
    %1721 = vector.multi_reduction <add>, %1720, %cst_404 [1, 2] : vector<1x8x128xf32> to vector<1xf32>
    %1722 = vector.shape_cast %1721 : vector<1xf32> to vector<1x1x1xf32>
    %1723 = vector.extract %1722[0, 0, 0] : f32 from vector<1x1x1xf32>
    %1724 = arith.cmpf olt, %1723, %1595 : f32
    %1725 = arith.select %1724, %1723, %1595 : f32
    %1726 = arith.select %1724, %1600, %1596 : f32
    %1727 = arith.select %1724, %1601, %1597 : f32
    %1728 = arith.select %1724, %1604, %1598 : f32
    %1729 = vector.shape_cast %1703 : vector<8x128xf32> to vector<1x8x128xf32>
    %cst_405 = arith.constant dense<0.000000e+00> : vector<1xf32>
    %1730 = vector.multi_reduction <add>, %1729, %cst_405 [1, 2] : vector<1x8x128xf32> to vector<1xf32>
    %1731 = vector.shape_cast %1730 : vector<1xf32> to vector<1x1x1xf32>
    %1732 = vector.extract %1731[0, 0, 0] : f32 from vector<1x1x1xf32>
    %1733 = arith.cmpf olt, %1732, %1725 : f32
    %1734 = arith.select %1733, %1732, %1725 : f32
    %1735 = arith.select %1733, %1612, %1726 : f32
    %1736 = arith.select %1733, %1613, %1727 : f32
    %1737 = arith.select %1733, %1616, %1728 : f32
    %1738 = vector.shape_cast %1711 : vector<8x128xf32> to vector<1x8x128xf32>
    %cst_406 = arith.constant dense<0.000000e+00> : vector<1xf32>
    %1739 = vector.multi_reduction <add>, %1738, %cst_406 [1, 2] : vector<1x8x128xf32> to vector<1xf32>
    %1740 = vector.shape_cast %1739 : vector<1xf32> to vector<1x1x1xf32>
    %1741 = vector.extract %1740[0, 0, 0] : f32 from vector<1x1x1xf32>
    %1742 = arith.cmpf olt, %1741, %1734 : f32
    %1743 = arith.select %1742, %1741, %1734 : f32
    %1744 = arith.select %1742, %1624, %1735 : f32
    %1745 = arith.select %1742, %1625, %1736 : f32
    %1746 = arith.select %1742, %1628, %1737 : f32
    %1747 = vector.shape_cast %1719 : vector<8x128xf32> to vector<1x8x128xf32>
    %cst_407 = arith.constant dense<0.000000e+00> : vector<1xf32>
    %1748 = vector.multi_reduction <add>, %1747, %cst_407 [1, 2] : vector<1x8x128xf32> to vector<1xf32>
    %1749 = vector.shape_cast %1748 : vector<1xf32> to vector<1x1x1xf32>
    %1750 = vector.extract %1749[0, 0, 0] : f32 from vector<1x1x1xf32>
    %1751 = arith.cmpf olt, %1750, %1743 : f32
    %1752 = arith.select %1751, %1750, %1743 : f32
    %1753 = arith.select %1751, %1636, %1744 : f32
    %1754 = arith.select %1751, %1637, %1745 : f32
    %1755 = arith.select %1751, %1640, %1746 : f32
    %cst_408 = arith.constant 4.400000e-01 : f32
    %1756 = arith.subf %28, %cst_408 : f32
    %cst_409 = arith.constant 2.550000e+02 : f32
    %1757 = arith.divf %1756, %cst_409 : f32
    %cst_410 = arith.constant 1.000000e+00 : f32
    %1758 = arith.divf %cst_410, %1757 : f32
    %cst_411 = arith.constant 0.000000e+00 : f32
    %1759 = arith.subf %cst_411, %22 : f32
    %1760 = arith.divf %1759, %1757 : f32
    %1761 = math.roundeven %1760 : f32
    %cst_412 = arith.constant 0.000000e+00 : f32
    %1762 = arith.subf %cst_412, %1761 : f32
    %cst_413 = arith.constant 2.550000e+02 : f32
    %1763 = arith.subf %cst_413, %1761 : f32
    %1764 = vector.broadcast %1757 : f32 to vector<8x128xf32>
    %1765 = vector.broadcast %1758 : f32 to vector<8x128xf32>
    %1766 = vector.broadcast %1762 : f32 to vector<8x128xf32>
    %1767 = vector.broadcast %1763 : f32 to vector<8x128xf32>
    %cst_414 = arith.constant 4.500000e-01 : f32
    %1768 = arith.subf %28, %cst_414 : f32
    %cst_415 = arith.constant 2.550000e+02 : f32
    %1769 = arith.divf %1768, %cst_415 : f32
    %cst_416 = arith.constant 1.000000e+00 : f32
    %1770 = arith.divf %cst_416, %1769 : f32
    %cst_417 = arith.constant 0.000000e+00 : f32
    %1771 = arith.subf %cst_417, %22 : f32
    %1772 = arith.divf %1771, %1769 : f32
    %1773 = math.roundeven %1772 : f32
    %cst_418 = arith.constant 0.000000e+00 : f32
    %1774 = arith.subf %cst_418, %1773 : f32
    %cst_419 = arith.constant 2.550000e+02 : f32
    %1775 = arith.subf %cst_419, %1773 : f32
    %1776 = vector.broadcast %1769 : f32 to vector<8x128xf32>
    %1777 = vector.broadcast %1770 : f32 to vector<8x128xf32>
    %1778 = vector.broadcast %1774 : f32 to vector<8x128xf32>
    %1779 = vector.broadcast %1775 : f32 to vector<8x128xf32>
    %cst_420 = arith.constant 0.459999979 : f32
    %1780 = arith.subf %28, %cst_420 : f32
    %cst_421 = arith.constant 2.550000e+02 : f32
    %1781 = arith.divf %1780, %cst_421 : f32
    %cst_422 = arith.constant 1.000000e+00 : f32
    %1782 = arith.divf %cst_422, %1781 : f32
    %cst_423 = arith.constant 0.000000e+00 : f32
    %1783 = arith.subf %cst_423, %22 : f32
    %1784 = arith.divf %1783, %1781 : f32
    %1785 = math.roundeven %1784 : f32
    %cst_424 = arith.constant 0.000000e+00 : f32
    %1786 = arith.subf %cst_424, %1785 : f32
    %cst_425 = arith.constant 2.550000e+02 : f32
    %1787 = arith.subf %cst_425, %1785 : f32
    %1788 = vector.broadcast %1781 : f32 to vector<8x128xf32>
    %1789 = vector.broadcast %1782 : f32 to vector<8x128xf32>
    %1790 = vector.broadcast %1786 : f32 to vector<8x128xf32>
    %1791 = vector.broadcast %1787 : f32 to vector<8x128xf32>
    %cst_426 = arith.constant 4.700000e-01 : f32
    %1792 = arith.subf %28, %cst_426 : f32
    %cst_427 = arith.constant 2.550000e+02 : f32
    %1793 = arith.divf %1792, %cst_427 : f32
    %cst_428 = arith.constant 1.000000e+00 : f32
    %1794 = arith.divf %cst_428, %1793 : f32
    %cst_429 = arith.constant 0.000000e+00 : f32
    %1795 = arith.subf %cst_429, %22 : f32
    %1796 = arith.divf %1795, %1793 : f32
    %1797 = math.roundeven %1796 : f32
    %cst_430 = arith.constant 0.000000e+00 : f32
    %1798 = arith.subf %cst_430, %1797 : f32
    %cst_431 = arith.constant 2.550000e+02 : f32
    %1799 = arith.subf %cst_431, %1797 : f32
    %1800 = vector.broadcast %1793 : f32 to vector<8x128xf32>
    %1801 = vector.broadcast %1794 : f32 to vector<8x128xf32>
    %1802 = vector.broadcast %1798 : f32 to vector<8x128xf32>
    %1803 = vector.broadcast %1799 : f32 to vector<8x128xf32>
    %cst_432 = arith.constant 0.000000e+00 : f32
    %1804 = vector.broadcast %cst_432 : f32 to vector<8x128xf32>
    %c0_i32_433 = arith.constant 0 : i32
    %c8_i32_434 = arith.constant 8 : i32
    %1805 = arith.muli %c0_i32_433, %c8_i32_434 : i32
    %1806 = tpu.assume_multiple %1805, 8 : i32
    %1807 = arith.index_cast %1806 : i32 to index
    %c0_435 = arith.constant 0 : index
    %1808 = vector.load %arg1[%1807, %c0_435] : memref<16x128xf32, #tpu.memory_space<vmem>>, vector<8x128xf32>
    %1809 = arith.mulf %1808, %1765 : vector<8x128xf32>
    %1810 = math.roundeven %1809 : vector<8x128xf32>
    %1811 = arith.maximumf %1810, %1766 : vector<8x128xf32>
    %1812 = arith.minimumf %1811, %1767 : vector<8x128xf32>
    %1813 = arith.mulf %1812, %1764 : vector<8x128xf32>
    %1814 = arith.subf %1813, %1808 : vector<8x128xf32>
    %1815 = arith.mulf %1814, %1814 : vector<8x128xf32>
    %1816 = arith.addf %1804, %1815 : vector<8x128xf32>
    %1817 = arith.mulf %1808, %1777 : vector<8x128xf32>
    %1818 = math.roundeven %1817 : vector<8x128xf32>
    %1819 = arith.maximumf %1818, %1778 : vector<8x128xf32>
    %1820 = arith.minimumf %1819, %1779 : vector<8x128xf32>
    %1821 = arith.mulf %1820, %1776 : vector<8x128xf32>
    %1822 = arith.subf %1821, %1808 : vector<8x128xf32>
    %1823 = arith.mulf %1822, %1822 : vector<8x128xf32>
    %1824 = arith.addf %1804, %1823 : vector<8x128xf32>
    %1825 = arith.mulf %1808, %1789 : vector<8x128xf32>
    %1826 = math.roundeven %1825 : vector<8x128xf32>
    %1827 = arith.maximumf %1826, %1790 : vector<8x128xf32>
    %1828 = arith.minimumf %1827, %1791 : vector<8x128xf32>
    %1829 = arith.mulf %1828, %1788 : vector<8x128xf32>
    %1830 = arith.subf %1829, %1808 : vector<8x128xf32>
    %1831 = arith.mulf %1830, %1830 : vector<8x128xf32>
    %1832 = arith.addf %1804, %1831 : vector<8x128xf32>
    %1833 = arith.mulf %1808, %1801 : vector<8x128xf32>
    %1834 = math.roundeven %1833 : vector<8x128xf32>
    %1835 = arith.maximumf %1834, %1802 : vector<8x128xf32>
    %1836 = arith.minimumf %1835, %1803 : vector<8x128xf32>
    %1837 = arith.mulf %1836, %1800 : vector<8x128xf32>
    %1838 = arith.subf %1837, %1808 : vector<8x128xf32>
    %1839 = arith.mulf %1838, %1838 : vector<8x128xf32>
    %1840 = arith.addf %1804, %1839 : vector<8x128xf32>
    %c1_i32_436 = arith.constant 1 : i32
    %c8_i32_437 = arith.constant 8 : i32
    %1841 = arith.muli %c1_i32_436, %c8_i32_437 : i32
    %1842 = tpu.assume_multiple %1841, 8 : i32
    %1843 = arith.index_cast %1842 : i32 to index
    %c0_438 = arith.constant 0 : index
    %1844 = vector.load %arg1[%1843, %c0_438] : memref<16x128xf32, #tpu.memory_space<vmem>>, vector<8x128xf32>
    %1845 = arith.mulf %1844, %1765 : vector<8x128xf32>
    %1846 = math.roundeven %1845 : vector<8x128xf32>
    %1847 = arith.maximumf %1846, %1766 : vector<8x128xf32>
    %1848 = arith.minimumf %1847, %1767 : vector<8x128xf32>
    %1849 = arith.mulf %1848, %1764 : vector<8x128xf32>
    %1850 = arith.subf %1849, %1844 : vector<8x128xf32>
    %1851 = arith.mulf %1850, %1850 : vector<8x128xf32>
    %1852 = arith.addf %1816, %1851 : vector<8x128xf32>
    %1853 = arith.mulf %1844, %1777 : vector<8x128xf32>
    %1854 = math.roundeven %1853 : vector<8x128xf32>
    %1855 = arith.maximumf %1854, %1778 : vector<8x128xf32>
    %1856 = arith.minimumf %1855, %1779 : vector<8x128xf32>
    %1857 = arith.mulf %1856, %1776 : vector<8x128xf32>
    %1858 = arith.subf %1857, %1844 : vector<8x128xf32>
    %1859 = arith.mulf %1858, %1858 : vector<8x128xf32>
    %1860 = arith.addf %1824, %1859 : vector<8x128xf32>
    %1861 = arith.mulf %1844, %1789 : vector<8x128xf32>
    %1862 = math.roundeven %1861 : vector<8x128xf32>
    %1863 = arith.maximumf %1862, %1790 : vector<8x128xf32>
    %1864 = arith.minimumf %1863, %1791 : vector<8x128xf32>
    %1865 = arith.mulf %1864, %1788 : vector<8x128xf32>
    %1866 = arith.subf %1865, %1844 : vector<8x128xf32>
    %1867 = arith.mulf %1866, %1866 : vector<8x128xf32>
    %1868 = arith.addf %1832, %1867 : vector<8x128xf32>
    %1869 = arith.mulf %1844, %1801 : vector<8x128xf32>
    %1870 = math.roundeven %1869 : vector<8x128xf32>
    %1871 = arith.maximumf %1870, %1802 : vector<8x128xf32>
    %1872 = arith.minimumf %1871, %1803 : vector<8x128xf32>
    %1873 = arith.mulf %1872, %1800 : vector<8x128xf32>
    %1874 = arith.subf %1873, %1844 : vector<8x128xf32>
    %1875 = arith.mulf %1874, %1874 : vector<8x128xf32>
    %1876 = arith.addf %1840, %1875 : vector<8x128xf32>
    %c2_i32_439 = arith.constant 2 : i32
    %1877 = vector.shape_cast %1852 : vector<8x128xf32> to vector<1x8x128xf32>
    %cst_440 = arith.constant dense<0.000000e+00> : vector<1xf32>
    %1878 = vector.multi_reduction <add>, %1877, %cst_440 [1, 2] : vector<1x8x128xf32> to vector<1xf32>
    %1879 = vector.shape_cast %1878 : vector<1xf32> to vector<1x1x1xf32>
    %1880 = vector.extract %1879[0, 0, 0] : f32 from vector<1x1x1xf32>
    %1881 = arith.cmpf olt, %1880, %1752 : f32
    %1882 = arith.select %1881, %1880, %1752 : f32
    %1883 = arith.select %1881, %1757, %1753 : f32
    %1884 = arith.select %1881, %1758, %1754 : f32
    %1885 = arith.select %1881, %1761, %1755 : f32
    %1886 = vector.shape_cast %1860 : vector<8x128xf32> to vector<1x8x128xf32>
    %cst_441 = arith.constant dense<0.000000e+00> : vector<1xf32>
    %1887 = vector.multi_reduction <add>, %1886, %cst_441 [1, 2] : vector<1x8x128xf32> to vector<1xf32>
    %1888 = vector.shape_cast %1887 : vector<1xf32> to vector<1x1x1xf32>
    %1889 = vector.extract %1888[0, 0, 0] : f32 from vector<1x1x1xf32>
    %1890 = arith.cmpf olt, %1889, %1882 : f32
    %1891 = arith.select %1890, %1889, %1882 : f32
    %1892 = arith.select %1890, %1769, %1883 : f32
    %1893 = arith.select %1890, %1770, %1884 : f32
    %1894 = arith.select %1890, %1773, %1885 : f32
    %1895 = vector.shape_cast %1868 : vector<8x128xf32> to vector<1x8x128xf32>
    %cst_442 = arith.constant dense<0.000000e+00> : vector<1xf32>
    %1896 = vector.multi_reduction <add>, %1895, %cst_442 [1, 2] : vector<1x8x128xf32> to vector<1xf32>
    %1897 = vector.shape_cast %1896 : vector<1xf32> to vector<1x1x1xf32>
    %1898 = vector.extract %1897[0, 0, 0] : f32 from vector<1x1x1xf32>
    %1899 = arith.cmpf olt, %1898, %1891 : f32
    %1900 = arith.select %1899, %1898, %1891 : f32
    %1901 = arith.select %1899, %1781, %1892 : f32
    %1902 = arith.select %1899, %1782, %1893 : f32
    %1903 = arith.select %1899, %1785, %1894 : f32
    %1904 = vector.shape_cast %1876 : vector<8x128xf32> to vector<1x8x128xf32>
    %cst_443 = arith.constant dense<0.000000e+00> : vector<1xf32>
    %1905 = vector.multi_reduction <add>, %1904, %cst_443 [1, 2] : vector<1x8x128xf32> to vector<1xf32>
    %1906 = vector.shape_cast %1905 : vector<1xf32> to vector<1x1x1xf32>
    %1907 = vector.extract %1906[0, 0, 0] : f32 from vector<1x1x1xf32>
    %1908 = arith.cmpf olt, %1907, %1900 : f32
    %1909 = arith.select %1908, %1907, %1900 : f32
    %1910 = arith.select %1908, %1793, %1901 : f32
    %1911 = arith.select %1908, %1794, %1902 : f32
    %1912 = arith.select %1908, %1797, %1903 : f32
    %cst_444 = arith.constant 4.800000e-01 : f32
    %1913 = arith.subf %28, %cst_444 : f32
    %cst_445 = arith.constant 2.550000e+02 : f32
    %1914 = arith.divf %1913, %cst_445 : f32
    %cst_446 = arith.constant 1.000000e+00 : f32
    %1915 = arith.divf %cst_446, %1914 : f32
    %cst_447 = arith.constant 0.000000e+00 : f32
    %1916 = arith.subf %cst_447, %22 : f32
    %1917 = arith.divf %1916, %1914 : f32
    %1918 = math.roundeven %1917 : f32
    %cst_448 = arith.constant 0.000000e+00 : f32
    %1919 = arith.subf %cst_448, %1918 : f32
    %cst_449 = arith.constant 2.550000e+02 : f32
    %1920 = arith.subf %cst_449, %1918 : f32
    %1921 = vector.broadcast %1914 : f32 to vector<8x128xf32>
    %1922 = vector.broadcast %1915 : f32 to vector<8x128xf32>
    %1923 = vector.broadcast %1919 : f32 to vector<8x128xf32>
    %1924 = vector.broadcast %1920 : f32 to vector<8x128xf32>
    %cst_450 = arith.constant 0.48999998 : f32
    %1925 = arith.subf %28, %cst_450 : f32
    %cst_451 = arith.constant 2.550000e+02 : f32
    %1926 = arith.divf %1925, %cst_451 : f32
    %cst_452 = arith.constant 1.000000e+00 : f32
    %1927 = arith.divf %cst_452, %1926 : f32
    %cst_453 = arith.constant 0.000000e+00 : f32
    %1928 = arith.subf %cst_453, %22 : f32
    %1929 = arith.divf %1928, %1926 : f32
    %1930 = math.roundeven %1929 : f32
    %cst_454 = arith.constant 0.000000e+00 : f32
    %1931 = arith.subf %cst_454, %1930 : f32
    %cst_455 = arith.constant 2.550000e+02 : f32
    %1932 = arith.subf %cst_455, %1930 : f32
    %1933 = vector.broadcast %1926 : f32 to vector<8x128xf32>
    %1934 = vector.broadcast %1927 : f32 to vector<8x128xf32>
    %1935 = vector.broadcast %1931 : f32 to vector<8x128xf32>
    %1936 = vector.broadcast %1932 : f32 to vector<8x128xf32>
    %cst_456 = arith.constant 5.000000e-01 : f32
    %1937 = arith.subf %28, %cst_456 : f32
    %cst_457 = arith.constant 2.550000e+02 : f32
    %1938 = arith.divf %1937, %cst_457 : f32
    %cst_458 = arith.constant 1.000000e+00 : f32
    %1939 = arith.divf %cst_458, %1938 : f32
    %cst_459 = arith.constant 0.000000e+00 : f32
    %1940 = arith.subf %cst_459, %22 : f32
    %1941 = arith.divf %1940, %1938 : f32
    %1942 = math.roundeven %1941 : f32
    %cst_460 = arith.constant 0.000000e+00 : f32
    %1943 = arith.subf %cst_460, %1942 : f32
    %cst_461 = arith.constant 2.550000e+02 : f32
    %1944 = arith.subf %cst_461, %1942 : f32
    %1945 = vector.broadcast %1938 : f32 to vector<8x128xf32>
    %1946 = vector.broadcast %1939 : f32 to vector<8x128xf32>
    %1947 = vector.broadcast %1943 : f32 to vector<8x128xf32>
    %1948 = vector.broadcast %1944 : f32 to vector<8x128xf32>
    %cst_462 = arith.constant 5.100000e-01 : f32
    %1949 = arith.subf %28, %cst_462 : f32
    %cst_463 = arith.constant 2.550000e+02 : f32
    %1950 = arith.divf %1949, %cst_463 : f32
    %cst_464 = arith.constant 1.000000e+00 : f32
    %1951 = arith.divf %cst_464, %1950 : f32
    %cst_465 = arith.constant 0.000000e+00 : f32
    %1952 = arith.subf %cst_465, %22 : f32
    %1953 = arith.divf %1952, %1950 : f32
    %1954 = math.roundeven %1953 : f32
    %cst_466 = arith.constant 0.000000e+00 : f32
    %1955 = arith.subf %cst_466, %1954 : f32
    %cst_467 = arith.constant 2.550000e+02 : f32
    %1956 = arith.subf %cst_467, %1954 : f32
    %1957 = vector.broadcast %1950 : f32 to vector<8x128xf32>
    %1958 = vector.broadcast %1951 : f32 to vector<8x128xf32>
    %1959 = vector.broadcast %1955 : f32 to vector<8x128xf32>
    %1960 = vector.broadcast %1956 : f32 to vector<8x128xf32>
    %cst_468 = arith.constant 0.000000e+00 : f32
    %1961 = vector.broadcast %cst_468 : f32 to vector<8x128xf32>
    %c0_i32_469 = arith.constant 0 : i32
    %c8_i32_470 = arith.constant 8 : i32
    %1962 = arith.muli %c0_i32_469, %c8_i32_470 : i32
    %1963 = tpu.assume_multiple %1962, 8 : i32
    %1964 = arith.index_cast %1963 : i32 to index
    %c0_471 = arith.constant 0 : index
    %1965 = vector.load %arg1[%1964, %c0_471] : memref<16x128xf32, #tpu.memory_space<vmem>>, vector<8x128xf32>
    %1966 = arith.mulf %1965, %1922 : vector<8x128xf32>
    %1967 = math.roundeven %1966 : vector<8x128xf32>
    %1968 = arith.maximumf %1967, %1923 : vector<8x128xf32>
    %1969 = arith.minimumf %1968, %1924 : vector<8x128xf32>
    %1970 = arith.mulf %1969, %1921 : vector<8x128xf32>
    %1971 = arith.subf %1970, %1965 : vector<8x128xf32>
    %1972 = arith.mulf %1971, %1971 : vector<8x128xf32>
    %1973 = arith.addf %1961, %1972 : vector<8x128xf32>
    %1974 = arith.mulf %1965, %1934 : vector<8x128xf32>
    %1975 = math.roundeven %1974 : vector<8x128xf32>
    %1976 = arith.maximumf %1975, %1935 : vector<8x128xf32>
    %1977 = arith.minimumf %1976, %1936 : vector<8x128xf32>
    %1978 = arith.mulf %1977, %1933 : vector<8x128xf32>
    %1979 = arith.subf %1978, %1965 : vector<8x128xf32>
    %1980 = arith.mulf %1979, %1979 : vector<8x128xf32>
    %1981 = arith.addf %1961, %1980 : vector<8x128xf32>
    %1982 = arith.mulf %1965, %1946 : vector<8x128xf32>
    %1983 = math.roundeven %1982 : vector<8x128xf32>
    %1984 = arith.maximumf %1983, %1947 : vector<8x128xf32>
    %1985 = arith.minimumf %1984, %1948 : vector<8x128xf32>
    %1986 = arith.mulf %1985, %1945 : vector<8x128xf32>
    %1987 = arith.subf %1986, %1965 : vector<8x128xf32>
    %1988 = arith.mulf %1987, %1987 : vector<8x128xf32>
    %1989 = arith.addf %1961, %1988 : vector<8x128xf32>
    %1990 = arith.mulf %1965, %1958 : vector<8x128xf32>
    %1991 = math.roundeven %1990 : vector<8x128xf32>
    %1992 = arith.maximumf %1991, %1959 : vector<8x128xf32>
    %1993 = arith.minimumf %1992, %1960 : vector<8x128xf32>
    %1994 = arith.mulf %1993, %1957 : vector<8x128xf32>
    %1995 = arith.subf %1994, %1965 : vector<8x128xf32>
    %1996 = arith.mulf %1995, %1995 : vector<8x128xf32>
    %1997 = arith.addf %1961, %1996 : vector<8x128xf32>
    %c1_i32_472 = arith.constant 1 : i32
    %c8_i32_473 = arith.constant 8 : i32
    %1998 = arith.muli %c1_i32_472, %c8_i32_473 : i32
    %1999 = tpu.assume_multiple %1998, 8 : i32
    %2000 = arith.index_cast %1999 : i32 to index
    %c0_474 = arith.constant 0 : index
    %2001 = vector.load %arg1[%2000, %c0_474] : memref<16x128xf32, #tpu.memory_space<vmem>>, vector<8x128xf32>
    %2002 = arith.mulf %2001, %1922 : vector<8x128xf32>
    %2003 = math.roundeven %2002 : vector<8x128xf32>
    %2004 = arith.maximumf %2003, %1923 : vector<8x128xf32>
    %2005 = arith.minimumf %2004, %1924 : vector<8x128xf32>
    %2006 = arith.mulf %2005, %1921 : vector<8x128xf32>
    %2007 = arith.subf %2006, %2001 : vector<8x128xf32>
    %2008 = arith.mulf %2007, %2007 : vector<8x128xf32>
    %2009 = arith.addf %1973, %2008 : vector<8x128xf32>
    %2010 = arith.mulf %2001, %1934 : vector<8x128xf32>
    %2011 = math.roundeven %2010 : vector<8x128xf32>
    %2012 = arith.maximumf %2011, %1935 : vector<8x128xf32>
    %2013 = arith.minimumf %2012, %1936 : vector<8x128xf32>
    %2014 = arith.mulf %2013, %1933 : vector<8x128xf32>
    %2015 = arith.subf %2014, %2001 : vector<8x128xf32>
    %2016 = arith.mulf %2015, %2015 : vector<8x128xf32>
    %2017 = arith.addf %1981, %2016 : vector<8x128xf32>
    %2018 = arith.mulf %2001, %1946 : vector<8x128xf32>
    %2019 = math.roundeven %2018 : vector<8x128xf32>
    %2020 = arith.maximumf %2019, %1947 : vector<8x128xf32>
    %2021 = arith.minimumf %2020, %1948 : vector<8x128xf32>
    %2022 = arith.mulf %2021, %1945 : vector<8x128xf32>
    %2023 = arith.subf %2022, %2001 : vector<8x128xf32>
    %2024 = arith.mulf %2023, %2023 : vector<8x128xf32>
    %2025 = arith.addf %1989, %2024 : vector<8x128xf32>
    %2026 = arith.mulf %2001, %1958 : vector<8x128xf32>
    %2027 = math.roundeven %2026 : vector<8x128xf32>
    %2028 = arith.maximumf %2027, %1959 : vector<8x128xf32>
    %2029 = arith.minimumf %2028, %1960 : vector<8x128xf32>
    %2030 = arith.mulf %2029, %1957 : vector<8x128xf32>
    %2031 = arith.subf %2030, %2001 : vector<8x128xf32>
    %2032 = arith.mulf %2031, %2031 : vector<8x128xf32>
    %2033 = arith.addf %1997, %2032 : vector<8x128xf32>
    %c2_i32_475 = arith.constant 2 : i32
    %2034 = vector.shape_cast %2009 : vector<8x128xf32> to vector<1x8x128xf32>
    %cst_476 = arith.constant dense<0.000000e+00> : vector<1xf32>
    %2035 = vector.multi_reduction <add>, %2034, %cst_476 [1, 2] : vector<1x8x128xf32> to vector<1xf32>
    %2036 = vector.shape_cast %2035 : vector<1xf32> to vector<1x1x1xf32>
    %2037 = vector.extract %2036[0, 0, 0] : f32 from vector<1x1x1xf32>
    %2038 = arith.cmpf olt, %2037, %1909 : f32
    %2039 = arith.select %2038, %2037, %1909 : f32
    %2040 = arith.select %2038, %1914, %1910 : f32
    %2041 = arith.select %2038, %1915, %1911 : f32
    %2042 = arith.select %2038, %1918, %1912 : f32
    %2043 = vector.shape_cast %2017 : vector<8x128xf32> to vector<1x8x128xf32>
    %cst_477 = arith.constant dense<0.000000e+00> : vector<1xf32>
    %2044 = vector.multi_reduction <add>, %2043, %cst_477 [1, 2] : vector<1x8x128xf32> to vector<1xf32>
    %2045 = vector.shape_cast %2044 : vector<1xf32> to vector<1x1x1xf32>
    %2046 = vector.extract %2045[0, 0, 0] : f32 from vector<1x1x1xf32>
    %2047 = arith.cmpf olt, %2046, %2039 : f32
    %2048 = arith.select %2047, %2046, %2039 : f32
    %2049 = arith.select %2047, %1926, %2040 : f32
    %2050 = arith.select %2047, %1927, %2041 : f32
    %2051 = arith.select %2047, %1930, %2042 : f32
    %2052 = vector.shape_cast %2025 : vector<8x128xf32> to vector<1x8x128xf32>
    %cst_478 = arith.constant dense<0.000000e+00> : vector<1xf32>
    %2053 = vector.multi_reduction <add>, %2052, %cst_478 [1, 2] : vector<1x8x128xf32> to vector<1xf32>
    %2054 = vector.shape_cast %2053 : vector<1xf32> to vector<1x1x1xf32>
    %2055 = vector.extract %2054[0, 0, 0] : f32 from vector<1x1x1xf32>
    %2056 = arith.cmpf olt, %2055, %2048 : f32
    %2057 = arith.select %2056, %2055, %2048 : f32
    %2058 = arith.select %2056, %1938, %2049 : f32
    %2059 = arith.select %2056, %1939, %2050 : f32
    %2060 = arith.select %2056, %1942, %2051 : f32
    %2061 = vector.shape_cast %2033 : vector<8x128xf32> to vector<1x8x128xf32>
    %cst_479 = arith.constant dense<0.000000e+00> : vector<1xf32>
    %2062 = vector.multi_reduction <add>, %2061, %cst_479 [1, 2] : vector<1x8x128xf32> to vector<1xf32>
    %2063 = vector.shape_cast %2062 : vector<1xf32> to vector<1x1x1xf32>
    %2064 = vector.extract %2063[0, 0, 0] : f32 from vector<1x1x1xf32>
    %2065 = arith.cmpf olt, %2064, %2057 : f32
    %2066 = arith.select %2065, %2064, %2057 : f32
    %2067 = arith.select %2065, %1950, %2058 : f32
    %2068 = arith.select %2065, %1951, %2059 : f32
    %2069 = arith.select %2065, %1954, %2060 : f32
    %cst_480 = arith.constant 5.200000e-01 : f32
    %2070 = arith.subf %28, %cst_480 : f32
    %cst_481 = arith.constant 2.550000e+02 : f32
    %2071 = arith.divf %2070, %cst_481 : f32
    %cst_482 = arith.constant 1.000000e+00 : f32
    %2072 = arith.divf %cst_482, %2071 : f32
    %cst_483 = arith.constant 0.000000e+00 : f32
    %2073 = arith.subf %cst_483, %22 : f32
    %2074 = arith.divf %2073, %2071 : f32
    %2075 = math.roundeven %2074 : f32
    %cst_484 = arith.constant 0.000000e+00 : f32
    %2076 = arith.subf %cst_484, %2075 : f32
    %cst_485 = arith.constant 2.550000e+02 : f32
    %2077 = arith.subf %cst_485, %2075 : f32
    %2078 = vector.broadcast %2071 : f32 to vector<8x128xf32>
    %2079 = vector.broadcast %2072 : f32 to vector<8x128xf32>
    %2080 = vector.broadcast %2076 : f32 to vector<8x128xf32>
    %2081 = vector.broadcast %2077 : f32 to vector<8x128xf32>
    %cst_486 = arith.constant 5.300000e-01 : f32
    %2082 = arith.subf %28, %cst_486 : f32
    %cst_487 = arith.constant 2.550000e+02 : f32
    %2083 = arith.divf %2082, %cst_487 : f32
    %cst_488 = arith.constant 1.000000e+00 : f32
    %2084 = arith.divf %cst_488, %2083 : f32
    %cst_489 = arith.constant 0.000000e+00 : f32
    %2085 = arith.subf %cst_489, %22 : f32
    %2086 = arith.divf %2085, %2083 : f32
    %2087 = math.roundeven %2086 : f32
    %cst_490 = arith.constant 0.000000e+00 : f32
    %2088 = arith.subf %cst_490, %2087 : f32
    %cst_491 = arith.constant 2.550000e+02 : f32
    %2089 = arith.subf %cst_491, %2087 : f32
    %2090 = vector.broadcast %2083 : f32 to vector<8x128xf32>
    %2091 = vector.broadcast %2084 : f32 to vector<8x128xf32>
    %2092 = vector.broadcast %2088 : f32 to vector<8x128xf32>
    %2093 = vector.broadcast %2089 : f32 to vector<8x128xf32>
    %cst_492 = arith.constant 0.539999962 : f32
    %2094 = arith.subf %28, %cst_492 : f32
    %cst_493 = arith.constant 2.550000e+02 : f32
    %2095 = arith.divf %2094, %cst_493 : f32
    %cst_494 = arith.constant 1.000000e+00 : f32
    %2096 = arith.divf %cst_494, %2095 : f32
    %cst_495 = arith.constant 0.000000e+00 : f32
    %2097 = arith.subf %cst_495, %22 : f32
    %2098 = arith.divf %2097, %2095 : f32
    %2099 = math.roundeven %2098 : f32
    %cst_496 = arith.constant 0.000000e+00 : f32
    %2100 = arith.subf %cst_496, %2099 : f32
    %cst_497 = arith.constant 2.550000e+02 : f32
    %2101 = arith.subf %cst_497, %2099 : f32
    %2102 = vector.broadcast %2095 : f32 to vector<8x128xf32>
    %2103 = vector.broadcast %2096 : f32 to vector<8x128xf32>
    %2104 = vector.broadcast %2100 : f32 to vector<8x128xf32>
    %2105 = vector.broadcast %2101 : f32 to vector<8x128xf32>
    %cst_498 = arith.constant 5.500000e-01 : f32
    %2106 = arith.subf %28, %cst_498 : f32
    %cst_499 = arith.constant 2.550000e+02 : f32
    %2107 = arith.divf %2106, %cst_499 : f32
    %cst_500 = arith.constant 1.000000e+00 : f32
    %2108 = arith.divf %cst_500, %2107 : f32
    %cst_501 = arith.constant 0.000000e+00 : f32
    %2109 = arith.subf %cst_501, %22 : f32
    %2110 = arith.divf %2109, %2107 : f32
    %2111 = math.roundeven %2110 : f32
    %cst_502 = arith.constant 0.000000e+00 : f32
    %2112 = arith.subf %cst_502, %2111 : f32
    %cst_503 = arith.constant 2.550000e+02 : f32
    %2113 = arith.subf %cst_503, %2111 : f32
    %2114 = vector.broadcast %2107 : f32 to vector<8x128xf32>
    %2115 = vector.broadcast %2108 : f32 to vector<8x128xf32>
    %2116 = vector.broadcast %2112 : f32 to vector<8x128xf32>
    %2117 = vector.broadcast %2113 : f32 to vector<8x128xf32>
    %cst_504 = arith.constant 0.000000e+00 : f32
    %2118 = vector.broadcast %cst_504 : f32 to vector<8x128xf32>
    %c0_i32_505 = arith.constant 0 : i32
    %c8_i32_506 = arith.constant 8 : i32
    %2119 = arith.muli %c0_i32_505, %c8_i32_506 : i32
    %2120 = tpu.assume_multiple %2119, 8 : i32
    %2121 = arith.index_cast %2120 : i32 to index
    %c0_507 = arith.constant 0 : index
    %2122 = vector.load %arg1[%2121, %c0_507] : memref<16x128xf32, #tpu.memory_space<vmem>>, vector<8x128xf32>
    %2123 = arith.mulf %2122, %2079 : vector<8x128xf32>
    %2124 = math.roundeven %2123 : vector<8x128xf32>
    %2125 = arith.maximumf %2124, %2080 : vector<8x128xf32>
    %2126 = arith.minimumf %2125, %2081 : vector<8x128xf32>
    %2127 = arith.mulf %2126, %2078 : vector<8x128xf32>
    %2128 = arith.subf %2127, %2122 : vector<8x128xf32>
    %2129 = arith.mulf %2128, %2128 : vector<8x128xf32>
    %2130 = arith.addf %2118, %2129 : vector<8x128xf32>
    %2131 = arith.mulf %2122, %2091 : vector<8x128xf32>
    %2132 = math.roundeven %2131 : vector<8x128xf32>
    %2133 = arith.maximumf %2132, %2092 : vector<8x128xf32>
    %2134 = arith.minimumf %2133, %2093 : vector<8x128xf32>
    %2135 = arith.mulf %2134, %2090 : vector<8x128xf32>
    %2136 = arith.subf %2135, %2122 : vector<8x128xf32>
    %2137 = arith.mulf %2136, %2136 : vector<8x128xf32>
    %2138 = arith.addf %2118, %2137 : vector<8x128xf32>
    %2139 = arith.mulf %2122, %2103 : vector<8x128xf32>
    %2140 = math.roundeven %2139 : vector<8x128xf32>
    %2141 = arith.maximumf %2140, %2104 : vector<8x128xf32>
    %2142 = arith.minimumf %2141, %2105 : vector<8x128xf32>
    %2143 = arith.mulf %2142, %2102 : vector<8x128xf32>
    %2144 = arith.subf %2143, %2122 : vector<8x128xf32>
    %2145 = arith.mulf %2144, %2144 : vector<8x128xf32>
    %2146 = arith.addf %2118, %2145 : vector<8x128xf32>
    %2147 = arith.mulf %2122, %2115 : vector<8x128xf32>
    %2148 = math.roundeven %2147 : vector<8x128xf32>
    %2149 = arith.maximumf %2148, %2116 : vector<8x128xf32>
    %2150 = arith.minimumf %2149, %2117 : vector<8x128xf32>
    %2151 = arith.mulf %2150, %2114 : vector<8x128xf32>
    %2152 = arith.subf %2151, %2122 : vector<8x128xf32>
    %2153 = arith.mulf %2152, %2152 : vector<8x128xf32>
    %2154 = arith.addf %2118, %2153 : vector<8x128xf32>
    %c1_i32_508 = arith.constant 1 : i32
    %c8_i32_509 = arith.constant 8 : i32
    %2155 = arith.muli %c1_i32_508, %c8_i32_509 : i32
    %2156 = tpu.assume_multiple %2155, 8 : i32
    %2157 = arith.index_cast %2156 : i32 to index
    %c0_510 = arith.constant 0 : index
    %2158 = vector.load %arg1[%2157, %c0_510] : memref<16x128xf32, #tpu.memory_space<vmem>>, vector<8x128xf32>
    %2159 = arith.mulf %2158, %2079 : vector<8x128xf32>
    %2160 = math.roundeven %2159 : vector<8x128xf32>
    %2161 = arith.maximumf %2160, %2080 : vector<8x128xf32>
    %2162 = arith.minimumf %2161, %2081 : vector<8x128xf32>
    %2163 = arith.mulf %2162, %2078 : vector<8x128xf32>
    %2164 = arith.subf %2163, %2158 : vector<8x128xf32>
    %2165 = arith.mulf %2164, %2164 : vector<8x128xf32>
    %2166 = arith.addf %2130, %2165 : vector<8x128xf32>
    %2167 = arith.mulf %2158, %2091 : vector<8x128xf32>
    %2168 = math.roundeven %2167 : vector<8x128xf32>
    %2169 = arith.maximumf %2168, %2092 : vector<8x128xf32>
    %2170 = arith.minimumf %2169, %2093 : vector<8x128xf32>
    %2171 = arith.mulf %2170, %2090 : vector<8x128xf32>
    %2172 = arith.subf %2171, %2158 : vector<8x128xf32>
    %2173 = arith.mulf %2172, %2172 : vector<8x128xf32>
    %2174 = arith.addf %2138, %2173 : vector<8x128xf32>
    %2175 = arith.mulf %2158, %2103 : vector<8x128xf32>
    %2176 = math.roundeven %2175 : vector<8x128xf32>
    %2177 = arith.maximumf %2176, %2104 : vector<8x128xf32>
    %2178 = arith.minimumf %2177, %2105 : vector<8x128xf32>
    %2179 = arith.mulf %2178, %2102 : vector<8x128xf32>
    %2180 = arith.subf %2179, %2158 : vector<8x128xf32>
    %2181 = arith.mulf %2180, %2180 : vector<8x128xf32>
    %2182 = arith.addf %2146, %2181 : vector<8x128xf32>
    %2183 = arith.mulf %2158, %2115 : vector<8x128xf32>
    %2184 = math.roundeven %2183 : vector<8x128xf32>
    %2185 = arith.maximumf %2184, %2116 : vector<8x128xf32>
    %2186 = arith.minimumf %2185, %2117 : vector<8x128xf32>
    %2187 = arith.mulf %2186, %2114 : vector<8x128xf32>
    %2188 = arith.subf %2187, %2158 : vector<8x128xf32>
    %2189 = arith.mulf %2188, %2188 : vector<8x128xf32>
    %2190 = arith.addf %2154, %2189 : vector<8x128xf32>
    %c2_i32_511 = arith.constant 2 : i32
    %2191 = vector.shape_cast %2166 : vector<8x128xf32> to vector<1x8x128xf32>
    %cst_512 = arith.constant dense<0.000000e+00> : vector<1xf32>
    %2192 = vector.multi_reduction <add>, %2191, %cst_512 [1, 2] : vector<1x8x128xf32> to vector<1xf32>
    %2193 = vector.shape_cast %2192 : vector<1xf32> to vector<1x1x1xf32>
    %2194 = vector.extract %2193[0, 0, 0] : f32 from vector<1x1x1xf32>
    %2195 = arith.cmpf olt, %2194, %2066 : f32
    %2196 = arith.select %2195, %2194, %2066 : f32
    %2197 = arith.select %2195, %2071, %2067 : f32
    %2198 = arith.select %2195, %2072, %2068 : f32
    %2199 = arith.select %2195, %2075, %2069 : f32
    %2200 = vector.shape_cast %2174 : vector<8x128xf32> to vector<1x8x128xf32>
    %cst_513 = arith.constant dense<0.000000e+00> : vector<1xf32>
    %2201 = vector.multi_reduction <add>, %2200, %cst_513 [1, 2] : vector<1x8x128xf32> to vector<1xf32>
    %2202 = vector.shape_cast %2201 : vector<1xf32> to vector<1x1x1xf32>
    %2203 = vector.extract %2202[0, 0, 0] : f32 from vector<1x1x1xf32>
    %2204 = arith.cmpf olt, %2203, %2196 : f32
    %2205 = arith.select %2204, %2203, %2196 : f32
    %2206 = arith.select %2204, %2083, %2197 : f32
    %2207 = arith.select %2204, %2084, %2198 : f32
    %2208 = arith.select %2204, %2087, %2199 : f32
    %2209 = vector.shape_cast %2182 : vector<8x128xf32> to vector<1x8x128xf32>
    %cst_514 = arith.constant dense<0.000000e+00> : vector<1xf32>
    %2210 = vector.multi_reduction <add>, %2209, %cst_514 [1, 2] : vector<1x8x128xf32> to vector<1xf32>
    %2211 = vector.shape_cast %2210 : vector<1xf32> to vector<1x1x1xf32>
    %2212 = vector.extract %2211[0, 0, 0] : f32 from vector<1x1x1xf32>
    %2213 = arith.cmpf olt, %2212, %2205 : f32
    %2214 = arith.select %2213, %2212, %2205 : f32
    %2215 = arith.select %2213, %2095, %2206 : f32
    %2216 = arith.select %2213, %2096, %2207 : f32
    %2217 = arith.select %2213, %2099, %2208 : f32
    %2218 = vector.shape_cast %2190 : vector<8x128xf32> to vector<1x8x128xf32>
    %cst_515 = arith.constant dense<0.000000e+00> : vector<1xf32>
    %2219 = vector.multi_reduction <add>, %2218, %cst_515 [1, 2] : vector<1x8x128xf32> to vector<1xf32>
    %2220 = vector.shape_cast %2219 : vector<1xf32> to vector<1x1x1xf32>
    %2221 = vector.extract %2220[0, 0, 0] : f32 from vector<1x1x1xf32>
    %2222 = arith.cmpf olt, %2221, %2214 : f32
    %2223 = arith.select %2222, %2221, %2214 : f32
    %2224 = arith.select %2222, %2107, %2215 : f32
    %2225 = arith.select %2222, %2108, %2216 : f32
    %2226 = arith.select %2222, %2111, %2217 : f32
    %cst_516 = arith.constant 5.600000e-01 : f32
    %2227 = arith.subf %28, %cst_516 : f32
    %cst_517 = arith.constant 2.550000e+02 : f32
    %2228 = arith.divf %2227, %cst_517 : f32
    %cst_518 = arith.constant 1.000000e+00 : f32
    %2229 = arith.divf %cst_518, %2228 : f32
    %cst_519 = arith.constant 0.000000e+00 : f32
    %2230 = arith.subf %cst_519, %22 : f32
    %2231 = arith.divf %2230, %2228 : f32
    %2232 = math.roundeven %2231 : f32
    %cst_520 = arith.constant 0.000000e+00 : f32
    %2233 = arith.subf %cst_520, %2232 : f32
    %cst_521 = arith.constant 2.550000e+02 : f32
    %2234 = arith.subf %cst_521, %2232 : f32
    %2235 = vector.broadcast %2228 : f32 to vector<8x128xf32>
    %2236 = vector.broadcast %2229 : f32 to vector<8x128xf32>
    %2237 = vector.broadcast %2233 : f32 to vector<8x128xf32>
    %2238 = vector.broadcast %2234 : f32 to vector<8x128xf32>
    %cst_522 = arith.constant 5.700000e-01 : f32
    %2239 = arith.subf %28, %cst_522 : f32
    %cst_523 = arith.constant 2.550000e+02 : f32
    %2240 = arith.divf %2239, %cst_523 : f32
    %cst_524 = arith.constant 1.000000e+00 : f32
    %2241 = arith.divf %cst_524, %2240 : f32
    %cst_525 = arith.constant 0.000000e+00 : f32
    %2242 = arith.subf %cst_525, %22 : f32
    %2243 = arith.divf %2242, %2240 : f32
    %2244 = math.roundeven %2243 : f32
    %cst_526 = arith.constant 0.000000e+00 : f32
    %2245 = arith.subf %cst_526, %2244 : f32
    %cst_527 = arith.constant 2.550000e+02 : f32
    %2246 = arith.subf %cst_527, %2244 : f32
    %2247 = vector.broadcast %2240 : f32 to vector<8x128xf32>
    %2248 = vector.broadcast %2241 : f32 to vector<8x128xf32>
    %2249 = vector.broadcast %2245 : f32 to vector<8x128xf32>
    %2250 = vector.broadcast %2246 : f32 to vector<8x128xf32>
    %cst_528 = arith.constant 5.800000e-01 : f32
    %2251 = arith.subf %28, %cst_528 : f32
    %cst_529 = arith.constant 2.550000e+02 : f32
    %2252 = arith.divf %2251, %cst_529 : f32
    %cst_530 = arith.constant 1.000000e+00 : f32
    %2253 = arith.divf %cst_530, %2252 : f32
    %cst_531 = arith.constant 0.000000e+00 : f32
    %2254 = arith.subf %cst_531, %22 : f32
    %2255 = arith.divf %2254, %2252 : f32
    %2256 = math.roundeven %2255 : f32
    %cst_532 = arith.constant 0.000000e+00 : f32
    %2257 = arith.subf %cst_532, %2256 : f32
    %cst_533 = arith.constant 2.550000e+02 : f32
    %2258 = arith.subf %cst_533, %2256 : f32
    %2259 = vector.broadcast %2252 : f32 to vector<8x128xf32>
    %2260 = vector.broadcast %2253 : f32 to vector<8x128xf32>
    %2261 = vector.broadcast %2257 : f32 to vector<8x128xf32>
    %2262 = vector.broadcast %2258 : f32 to vector<8x128xf32>
    %cst_534 = arith.constant 5.900000e-01 : f32
    %2263 = arith.subf %28, %cst_534 : f32
    %cst_535 = arith.constant 2.550000e+02 : f32
    %2264 = arith.divf %2263, %cst_535 : f32
    %cst_536 = arith.constant 1.000000e+00 : f32
    %2265 = arith.divf %cst_536, %2264 : f32
    %cst_537 = arith.constant 0.000000e+00 : f32
    %2266 = arith.subf %cst_537, %22 : f32
    %2267 = arith.divf %2266, %2264 : f32
    %2268 = math.roundeven %2267 : f32
    %cst_538 = arith.constant 0.000000e+00 : f32
    %2269 = arith.subf %cst_538, %2268 : f32
    %cst_539 = arith.constant 2.550000e+02 : f32
    %2270 = arith.subf %cst_539, %2268 : f32
    %2271 = vector.broadcast %2264 : f32 to vector<8x128xf32>
    %2272 = vector.broadcast %2265 : f32 to vector<8x128xf32>
    %2273 = vector.broadcast %2269 : f32 to vector<8x128xf32>
    %2274 = vector.broadcast %2270 : f32 to vector<8x128xf32>
    %cst_540 = arith.constant 0.000000e+00 : f32
    %2275 = vector.broadcast %cst_540 : f32 to vector<8x128xf32>
    %c0_i32_541 = arith.constant 0 : i32
    %c8_i32_542 = arith.constant 8 : i32
    %2276 = arith.muli %c0_i32_541, %c8_i32_542 : i32
    %2277 = tpu.assume_multiple %2276, 8 : i32
    %2278 = arith.index_cast %2277 : i32 to index
    %c0_543 = arith.constant 0 : index
    %2279 = vector.load %arg1[%2278, %c0_543] : memref<16x128xf32, #tpu.memory_space<vmem>>, vector<8x128xf32>
    %2280 = arith.mulf %2279, %2236 : vector<8x128xf32>
    %2281 = math.roundeven %2280 : vector<8x128xf32>
    %2282 = arith.maximumf %2281, %2237 : vector<8x128xf32>
    %2283 = arith.minimumf %2282, %2238 : vector<8x128xf32>
    %2284 = arith.mulf %2283, %2235 : vector<8x128xf32>
    %2285 = arith.subf %2284, %2279 : vector<8x128xf32>
    %2286 = arith.mulf %2285, %2285 : vector<8x128xf32>
    %2287 = arith.addf %2275, %2286 : vector<8x128xf32>
    %2288 = arith.mulf %2279, %2248 : vector<8x128xf32>
    %2289 = math.roundeven %2288 : vector<8x128xf32>
    %2290 = arith.maximumf %2289, %2249 : vector<8x128xf32>
    %2291 = arith.minimumf %2290, %2250 : vector<8x128xf32>
    %2292 = arith.mulf %2291, %2247 : vector<8x128xf32>
    %2293 = arith.subf %2292, %2279 : vector<8x128xf32>
    %2294 = arith.mulf %2293, %2293 : vector<8x128xf32>
    %2295 = arith.addf %2275, %2294 : vector<8x128xf32>
    %2296 = arith.mulf %2279, %2260 : vector<8x128xf32>
    %2297 = math.roundeven %2296 : vector<8x128xf32>
    %2298 = arith.maximumf %2297, %2261 : vector<8x128xf32>
    %2299 = arith.minimumf %2298, %2262 : vector<8x128xf32>
    %2300 = arith.mulf %2299, %2259 : vector<8x128xf32>
    %2301 = arith.subf %2300, %2279 : vector<8x128xf32>
    %2302 = arith.mulf %2301, %2301 : vector<8x128xf32>
    %2303 = arith.addf %2275, %2302 : vector<8x128xf32>
    %2304 = arith.mulf %2279, %2272 : vector<8x128xf32>
    %2305 = math.roundeven %2304 : vector<8x128xf32>
    %2306 = arith.maximumf %2305, %2273 : vector<8x128xf32>
    %2307 = arith.minimumf %2306, %2274 : vector<8x128xf32>
    %2308 = arith.mulf %2307, %2271 : vector<8x128xf32>
    %2309 = arith.subf %2308, %2279 : vector<8x128xf32>
    %2310 = arith.mulf %2309, %2309 : vector<8x128xf32>
    %2311 = arith.addf %2275, %2310 : vector<8x128xf32>
    %c1_i32_544 = arith.constant 1 : i32
    %c8_i32_545 = arith.constant 8 : i32
    %2312 = arith.muli %c1_i32_544, %c8_i32_545 : i32
    %2313 = tpu.assume_multiple %2312, 8 : i32
    %2314 = arith.index_cast %2313 : i32 to index
    %c0_546 = arith.constant 0 : index
    %2315 = vector.load %arg1[%2314, %c0_546] : memref<16x128xf32, #tpu.memory_space<vmem>>, vector<8x128xf32>
    %2316 = arith.mulf %2315, %2236 : vector<8x128xf32>
    %2317 = math.roundeven %2316 : vector<8x128xf32>
    %2318 = arith.maximumf %2317, %2237 : vector<8x128xf32>
    %2319 = arith.minimumf %2318, %2238 : vector<8x128xf32>
    %2320 = arith.mulf %2319, %2235 : vector<8x128xf32>
    %2321 = arith.subf %2320, %2315 : vector<8x128xf32>
    %2322 = arith.mulf %2321, %2321 : vector<8x128xf32>
    %2323 = arith.addf %2287, %2322 : vector<8x128xf32>
    %2324 = arith.mulf %2315, %2248 : vector<8x128xf32>
    %2325 = math.roundeven %2324 : vector<8x128xf32>
    %2326 = arith.maximumf %2325, %2249 : vector<8x128xf32>
    %2327 = arith.minimumf %2326, %2250 : vector<8x128xf32>
    %2328 = arith.mulf %2327, %2247 : vector<8x128xf32>
    %2329 = arith.subf %2328, %2315 : vector<8x128xf32>
    %2330 = arith.mulf %2329, %2329 : vector<8x128xf32>
    %2331 = arith.addf %2295, %2330 : vector<8x128xf32>
    %2332 = arith.mulf %2315, %2260 : vector<8x128xf32>
    %2333 = math.roundeven %2332 : vector<8x128xf32>
    %2334 = arith.maximumf %2333, %2261 : vector<8x128xf32>
    %2335 = arith.minimumf %2334, %2262 : vector<8x128xf32>
    %2336 = arith.mulf %2335, %2259 : vector<8x128xf32>
    %2337 = arith.subf %2336, %2315 : vector<8x128xf32>
    %2338 = arith.mulf %2337, %2337 : vector<8x128xf32>
    %2339 = arith.addf %2303, %2338 : vector<8x128xf32>
    %2340 = arith.mulf %2315, %2272 : vector<8x128xf32>
    %2341 = math.roundeven %2340 : vector<8x128xf32>
    %2342 = arith.maximumf %2341, %2273 : vector<8x128xf32>
    %2343 = arith.minimumf %2342, %2274 : vector<8x128xf32>
    %2344 = arith.mulf %2343, %2271 : vector<8x128xf32>
    %2345 = arith.subf %2344, %2315 : vector<8x128xf32>
    %2346 = arith.mulf %2345, %2345 : vector<8x128xf32>
    %2347 = arith.addf %2311, %2346 : vector<8x128xf32>
    %c2_i32_547 = arith.constant 2 : i32
    %2348 = vector.shape_cast %2323 : vector<8x128xf32> to vector<1x8x128xf32>
    %cst_548 = arith.constant dense<0.000000e+00> : vector<1xf32>
    %2349 = vector.multi_reduction <add>, %2348, %cst_548 [1, 2] : vector<1x8x128xf32> to vector<1xf32>
    %2350 = vector.shape_cast %2349 : vector<1xf32> to vector<1x1x1xf32>
    %2351 = vector.extract %2350[0, 0, 0] : f32 from vector<1x1x1xf32>
    %2352 = arith.cmpf olt, %2351, %2223 : f32
    %2353 = arith.select %2352, %2351, %2223 : f32
    %2354 = arith.select %2352, %2228, %2224 : f32
    %2355 = arith.select %2352, %2229, %2225 : f32
    %2356 = arith.select %2352, %2232, %2226 : f32
    %2357 = vector.shape_cast %2331 : vector<8x128xf32> to vector<1x8x128xf32>
    %cst_549 = arith.constant dense<0.000000e+00> : vector<1xf32>
    %2358 = vector.multi_reduction <add>, %2357, %cst_549 [1, 2] : vector<1x8x128xf32> to vector<1xf32>
    %2359 = vector.shape_cast %2358 : vector<1xf32> to vector<1x1x1xf32>
    %2360 = vector.extract %2359[0, 0, 0] : f32 from vector<1x1x1xf32>
    %2361 = arith.cmpf olt, %2360, %2353 : f32
    %2362 = arith.select %2361, %2360, %2353 : f32
    %2363 = arith.select %2361, %2240, %2354 : f32
    %2364 = arith.select %2361, %2241, %2355 : f32
    %2365 = arith.select %2361, %2244, %2356 : f32
    %2366 = vector.shape_cast %2339 : vector<8x128xf32> to vector<1x8x128xf32>
    %cst_550 = arith.constant dense<0.000000e+00> : vector<1xf32>
    %2367 = vector.multi_reduction <add>, %2366, %cst_550 [1, 2] : vector<1x8x128xf32> to vector<1xf32>
    %2368 = vector.shape_cast %2367 : vector<1xf32> to vector<1x1x1xf32>
    %2369 = vector.extract %2368[0, 0, 0] : f32 from vector<1x1x1xf32>
    %2370 = arith.cmpf olt, %2369, %2362 : f32
    %2371 = arith.select %2370, %2369, %2362 : f32
    %2372 = arith.select %2370, %2252, %2363 : f32
    %2373 = arith.select %2370, %2253, %2364 : f32
    %2374 = arith.select %2370, %2256, %2365 : f32
    %2375 = vector.shape_cast %2347 : vector<8x128xf32> to vector<1x8x128xf32>
    %cst_551 = arith.constant dense<0.000000e+00> : vector<1xf32>
    %2376 = vector.multi_reduction <add>, %2375, %cst_551 [1, 2] : vector<1x8x128xf32> to vector<1xf32>
    %2377 = vector.shape_cast %2376 : vector<1xf32> to vector<1x1x1xf32>
    %2378 = vector.extract %2377[0, 0, 0] : f32 from vector<1x1x1xf32>
    %2379 = arith.cmpf olt, %2378, %2371 : f32
    %2380 = arith.select %2379, %2378, %2371 : f32
    %2381 = arith.select %2379, %2264, %2372 : f32
    %2382 = arith.select %2379, %2265, %2373 : f32
    %2383 = arith.select %2379, %2268, %2374 : f32
    %cst_552 = arith.constant 0.599999964 : f32
    %2384 = arith.subf %28, %cst_552 : f32
    %cst_553 = arith.constant 2.550000e+02 : f32
    %2385 = arith.divf %2384, %cst_553 : f32
    %cst_554 = arith.constant 1.000000e+00 : f32
    %2386 = arith.divf %cst_554, %2385 : f32
    %cst_555 = arith.constant 0.000000e+00 : f32
    %2387 = arith.subf %cst_555, %22 : f32
    %2388 = arith.divf %2387, %2385 : f32
    %2389 = math.roundeven %2388 : f32
    %cst_556 = arith.constant 0.000000e+00 : f32
    %2390 = arith.subf %cst_556, %2389 : f32
    %cst_557 = arith.constant 2.550000e+02 : f32
    %2391 = arith.subf %cst_557, %2389 : f32
    %2392 = vector.broadcast %2385 : f32 to vector<8x128xf32>
    %2393 = vector.broadcast %2386 : f32 to vector<8x128xf32>
    %2394 = vector.broadcast %2390 : f32 to vector<8x128xf32>
    %2395 = vector.broadcast %2391 : f32 to vector<8x128xf32>
    %cst_558 = arith.constant 6.100000e-01 : f32
    %2396 = arith.subf %28, %cst_558 : f32
    %cst_559 = arith.constant 2.550000e+02 : f32
    %2397 = arith.divf %2396, %cst_559 : f32
    %cst_560 = arith.constant 1.000000e+00 : f32
    %2398 = arith.divf %cst_560, %2397 : f32
    %cst_561 = arith.constant 0.000000e+00 : f32
    %2399 = arith.subf %cst_561, %22 : f32
    %2400 = arith.divf %2399, %2397 : f32
    %2401 = math.roundeven %2400 : f32
    %cst_562 = arith.constant 0.000000e+00 : f32
    %2402 = arith.subf %cst_562, %2401 : f32
    %cst_563 = arith.constant 2.550000e+02 : f32
    %2403 = arith.subf %cst_563, %2401 : f32
    %2404 = vector.broadcast %2397 : f32 to vector<8x128xf32>
    %2405 = vector.broadcast %2398 : f32 to vector<8x128xf32>
    %2406 = vector.broadcast %2402 : f32 to vector<8x128xf32>
    %2407 = vector.broadcast %2403 : f32 to vector<8x128xf32>
    %cst_564 = arith.constant 6.200000e-01 : f32
    %2408 = arith.subf %28, %cst_564 : f32
    %cst_565 = arith.constant 2.550000e+02 : f32
    %2409 = arith.divf %2408, %cst_565 : f32
    %cst_566 = arith.constant 1.000000e+00 : f32
    %2410 = arith.divf %cst_566, %2409 : f32
    %cst_567 = arith.constant 0.000000e+00 : f32
    %2411 = arith.subf %cst_567, %22 : f32
    %2412 = arith.divf %2411, %2409 : f32
    %2413 = math.roundeven %2412 : f32
    %cst_568 = arith.constant 0.000000e+00 : f32
    %2414 = arith.subf %cst_568, %2413 : f32
    %cst_569 = arith.constant 2.550000e+02 : f32
    %2415 = arith.subf %cst_569, %2413 : f32
    %2416 = vector.broadcast %2409 : f32 to vector<8x128xf32>
    %2417 = vector.broadcast %2410 : f32 to vector<8x128xf32>
    %2418 = vector.broadcast %2414 : f32 to vector<8x128xf32>
    %2419 = vector.broadcast %2415 : f32 to vector<8x128xf32>
    %cst_570 = arith.constant 6.300000e-01 : f32
    %2420 = arith.subf %28, %cst_570 : f32
    %cst_571 = arith.constant 2.550000e+02 : f32
    %2421 = arith.divf %2420, %cst_571 : f32
    %cst_572 = arith.constant 1.000000e+00 : f32
    %2422 = arith.divf %cst_572, %2421 : f32
    %cst_573 = arith.constant 0.000000e+00 : f32
    %2423 = arith.subf %cst_573, %22 : f32
    %2424 = arith.divf %2423, %2421 : f32
    %2425 = math.roundeven %2424 : f32
    %cst_574 = arith.constant 0.000000e+00 : f32
    %2426 = arith.subf %cst_574, %2425 : f32
    %cst_575 = arith.constant 2.550000e+02 : f32
    %2427 = arith.subf %cst_575, %2425 : f32
    %2428 = vector.broadcast %2421 : f32 to vector<8x128xf32>
    %2429 = vector.broadcast %2422 : f32 to vector<8x128xf32>
    %2430 = vector.broadcast %2426 : f32 to vector<8x128xf32>
    %2431 = vector.broadcast %2427 : f32 to vector<8x128xf32>
    %cst_576 = arith.constant 0.000000e+00 : f32
    %2432 = vector.broadcast %cst_576 : f32 to vector<8x128xf32>
    %c0_i32_577 = arith.constant 0 : i32
    %c8_i32_578 = arith.constant 8 : i32
    %2433 = arith.muli %c0_i32_577, %c8_i32_578 : i32
    %2434 = tpu.assume_multiple %2433, 8 : i32
    %2435 = arith.index_cast %2434 : i32 to index
    %c0_579 = arith.constant 0 : index
    %2436 = vector.load %arg1[%2435, %c0_579] : memref<16x128xf32, #tpu.memory_space<vmem>>, vector<8x128xf32>
    %2437 = arith.mulf %2436, %2393 : vector<8x128xf32>
    %2438 = math.roundeven %2437 : vector<8x128xf32>
    %2439 = arith.maximumf %2438, %2394 : vector<8x128xf32>
    %2440 = arith.minimumf %2439, %2395 : vector<8x128xf32>
    %2441 = arith.mulf %2440, %2392 : vector<8x128xf32>
    %2442 = arith.subf %2441, %2436 : vector<8x128xf32>
    %2443 = arith.mulf %2442, %2442 : vector<8x128xf32>
    %2444 = arith.addf %2432, %2443 : vector<8x128xf32>
    %2445 = arith.mulf %2436, %2405 : vector<8x128xf32>
    %2446 = math.roundeven %2445 : vector<8x128xf32>
    %2447 = arith.maximumf %2446, %2406 : vector<8x128xf32>
    %2448 = arith.minimumf %2447, %2407 : vector<8x128xf32>
    %2449 = arith.mulf %2448, %2404 : vector<8x128xf32>
    %2450 = arith.subf %2449, %2436 : vector<8x128xf32>
    %2451 = arith.mulf %2450, %2450 : vector<8x128xf32>
    %2452 = arith.addf %2432, %2451 : vector<8x128xf32>
    %2453 = arith.mulf %2436, %2417 : vector<8x128xf32>
    %2454 = math.roundeven %2453 : vector<8x128xf32>
    %2455 = arith.maximumf %2454, %2418 : vector<8x128xf32>
    %2456 = arith.minimumf %2455, %2419 : vector<8x128xf32>
    %2457 = arith.mulf %2456, %2416 : vector<8x128xf32>
    %2458 = arith.subf %2457, %2436 : vector<8x128xf32>
    %2459 = arith.mulf %2458, %2458 : vector<8x128xf32>
    %2460 = arith.addf %2432, %2459 : vector<8x128xf32>
    %2461 = arith.mulf %2436, %2429 : vector<8x128xf32>
    %2462 = math.roundeven %2461 : vector<8x128xf32>
    %2463 = arith.maximumf %2462, %2430 : vector<8x128xf32>
    %2464 = arith.minimumf %2463, %2431 : vector<8x128xf32>
    %2465 = arith.mulf %2464, %2428 : vector<8x128xf32>
    %2466 = arith.subf %2465, %2436 : vector<8x128xf32>
    %2467 = arith.mulf %2466, %2466 : vector<8x128xf32>
    %2468 = arith.addf %2432, %2467 : vector<8x128xf32>
    %c1_i32_580 = arith.constant 1 : i32
    %c8_i32_581 = arith.constant 8 : i32
    %2469 = arith.muli %c1_i32_580, %c8_i32_581 : i32
    %2470 = tpu.assume_multiple %2469, 8 : i32
    %2471 = arith.index_cast %2470 : i32 to index
    %c0_582 = arith.constant 0 : index
    %2472 = vector.load %arg1[%2471, %c0_582] : memref<16x128xf32, #tpu.memory_space<vmem>>, vector<8x128xf32>
    %2473 = arith.mulf %2472, %2393 : vector<8x128xf32>
    %2474 = math.roundeven %2473 : vector<8x128xf32>
    %2475 = arith.maximumf %2474, %2394 : vector<8x128xf32>
    %2476 = arith.minimumf %2475, %2395 : vector<8x128xf32>
    %2477 = arith.mulf %2476, %2392 : vector<8x128xf32>
    %2478 = arith.subf %2477, %2472 : vector<8x128xf32>
    %2479 = arith.mulf %2478, %2478 : vector<8x128xf32>
    %2480 = arith.addf %2444, %2479 : vector<8x128xf32>
    %2481 = arith.mulf %2472, %2405 : vector<8x128xf32>
    %2482 = math.roundeven %2481 : vector<8x128xf32>
    %2483 = arith.maximumf %2482, %2406 : vector<8x128xf32>
    %2484 = arith.minimumf %2483, %2407 : vector<8x128xf32>
    %2485 = arith.mulf %2484, %2404 : vector<8x128xf32>
    %2486 = arith.subf %2485, %2472 : vector<8x128xf32>
    %2487 = arith.mulf %2486, %2486 : vector<8x128xf32>
    %2488 = arith.addf %2452, %2487 : vector<8x128xf32>
    %2489 = arith.mulf %2472, %2417 : vector<8x128xf32>
    %2490 = math.roundeven %2489 : vector<8x128xf32>
    %2491 = arith.maximumf %2490, %2418 : vector<8x128xf32>
    %2492 = arith.minimumf %2491, %2419 : vector<8x128xf32>
    %2493 = arith.mulf %2492, %2416 : vector<8x128xf32>
    %2494 = arith.subf %2493, %2472 : vector<8x128xf32>
    %2495 = arith.mulf %2494, %2494 : vector<8x128xf32>
    %2496 = arith.addf %2460, %2495 : vector<8x128xf32>
    %2497 = arith.mulf %2472, %2429 : vector<8x128xf32>
    %2498 = math.roundeven %2497 : vector<8x128xf32>
    %2499 = arith.maximumf %2498, %2430 : vector<8x128xf32>
    %2500 = arith.minimumf %2499, %2431 : vector<8x128xf32>
    %2501 = arith.mulf %2500, %2428 : vector<8x128xf32>
    %2502 = arith.subf %2501, %2472 : vector<8x128xf32>
    %2503 = arith.mulf %2502, %2502 : vector<8x128xf32>
    %2504 = arith.addf %2468, %2503 : vector<8x128xf32>
    %c2_i32_583 = arith.constant 2 : i32
    %2505 = vector.shape_cast %2480 : vector<8x128xf32> to vector<1x8x128xf32>
    %cst_584 = arith.constant dense<0.000000e+00> : vector<1xf32>
    %2506 = vector.multi_reduction <add>, %2505, %cst_584 [1, 2] : vector<1x8x128xf32> to vector<1xf32>
    %2507 = vector.shape_cast %2506 : vector<1xf32> to vector<1x1x1xf32>
    %2508 = vector.extract %2507[0, 0, 0] : f32 from vector<1x1x1xf32>
    %2509 = arith.cmpf olt, %2508, %2380 : f32
    %2510 = arith.select %2509, %2508, %2380 : f32
    %2511 = arith.select %2509, %2385, %2381 : f32
    %2512 = arith.select %2509, %2386, %2382 : f32
    %2513 = arith.select %2509, %2389, %2383 : f32
    %2514 = vector.shape_cast %2488 : vector<8x128xf32> to vector<1x8x128xf32>
    %cst_585 = arith.constant dense<0.000000e+00> : vector<1xf32>
    %2515 = vector.multi_reduction <add>, %2514, %cst_585 [1, 2] : vector<1x8x128xf32> to vector<1xf32>
    %2516 = vector.shape_cast %2515 : vector<1xf32> to vector<1x1x1xf32>
    %2517 = vector.extract %2516[0, 0, 0] : f32 from vector<1x1x1xf32>
    %2518 = arith.cmpf olt, %2517, %2510 : f32
    %2519 = arith.select %2518, %2517, %2510 : f32
    %2520 = arith.select %2518, %2397, %2511 : f32
    %2521 = arith.select %2518, %2398, %2512 : f32
    %2522 = arith.select %2518, %2401, %2513 : f32
    %2523 = vector.shape_cast %2496 : vector<8x128xf32> to vector<1x8x128xf32>
    %cst_586 = arith.constant dense<0.000000e+00> : vector<1xf32>
    %2524 = vector.multi_reduction <add>, %2523, %cst_586 [1, 2] : vector<1x8x128xf32> to vector<1xf32>
    %2525 = vector.shape_cast %2524 : vector<1xf32> to vector<1x1x1xf32>
    %2526 = vector.extract %2525[0, 0, 0] : f32 from vector<1x1x1xf32>
    %2527 = arith.cmpf olt, %2526, %2519 : f32
    %2528 = arith.select %2527, %2526, %2519 : f32
    %2529 = arith.select %2527, %2409, %2520 : f32
    %2530 = arith.select %2527, %2410, %2521 : f32
    %2531 = arith.select %2527, %2413, %2522 : f32
    %2532 = vector.shape_cast %2504 : vector<8x128xf32> to vector<1x8x128xf32>
    %cst_587 = arith.constant dense<0.000000e+00> : vector<1xf32>
    %2533 = vector.multi_reduction <add>, %2532, %cst_587 [1, 2] : vector<1x8x128xf32> to vector<1xf32>
    %2534 = vector.shape_cast %2533 : vector<1xf32> to vector<1x1x1xf32>
    %2535 = vector.extract %2534[0, 0, 0] : f32 from vector<1x1x1xf32>
    %2536 = arith.cmpf olt, %2535, %2528 : f32
    %2537 = arith.select %2536, %2535, %2528 : f32
    %2538 = arith.select %2536, %2421, %2529 : f32
    %2539 = arith.select %2536, %2422, %2530 : f32
    %2540 = arith.select %2536, %2425, %2531 : f32
    %cst_588 = arith.constant 6.400000e-01 : f32
    %2541 = arith.subf %28, %cst_588 : f32
    %cst_589 = arith.constant 2.550000e+02 : f32
    %2542 = arith.divf %2541, %cst_589 : f32
    %cst_590 = arith.constant 1.000000e+00 : f32
    %2543 = arith.divf %cst_590, %2542 : f32
    %cst_591 = arith.constant 0.000000e+00 : f32
    %2544 = arith.subf %cst_591, %22 : f32
    %2545 = arith.divf %2544, %2542 : f32
    %2546 = math.roundeven %2545 : f32
    %cst_592 = arith.constant 0.000000e+00 : f32
    %2547 = arith.subf %cst_592, %2546 : f32
    %cst_593 = arith.constant 2.550000e+02 : f32
    %2548 = arith.subf %cst_593, %2546 : f32
    %2549 = vector.broadcast %2542 : f32 to vector<8x128xf32>
    %2550 = vector.broadcast %2543 : f32 to vector<8x128xf32>
    %2551 = vector.broadcast %2547 : f32 to vector<8x128xf32>
    %2552 = vector.broadcast %2548 : f32 to vector<8x128xf32>
    %cst_594 = arith.constant 6.500000e-01 : f32
    %2553 = arith.subf %28, %cst_594 : f32
    %cst_595 = arith.constant 2.550000e+02 : f32
    %2554 = arith.divf %2553, %cst_595 : f32
    %cst_596 = arith.constant 1.000000e+00 : f32
    %2555 = arith.divf %cst_596, %2554 : f32
    %cst_597 = arith.constant 0.000000e+00 : f32
    %2556 = arith.subf %cst_597, %22 : f32
    %2557 = arith.divf %2556, %2554 : f32
    %2558 = math.roundeven %2557 : f32
    %cst_598 = arith.constant 0.000000e+00 : f32
    %2559 = arith.subf %cst_598, %2558 : f32
    %cst_599 = arith.constant 2.550000e+02 : f32
    %2560 = arith.subf %cst_599, %2558 : f32
    %2561 = vector.broadcast %2554 : f32 to vector<8x128xf32>
    %2562 = vector.broadcast %2555 : f32 to vector<8x128xf32>
    %2563 = vector.broadcast %2559 : f32 to vector<8x128xf32>
    %2564 = vector.broadcast %2560 : f32 to vector<8x128xf32>
    %cst_600 = arith.constant 0.659999967 : f32
    %2565 = arith.subf %28, %cst_600 : f32
    %cst_601 = arith.constant 2.550000e+02 : f32
    %2566 = arith.divf %2565, %cst_601 : f32
    %cst_602 = arith.constant 1.000000e+00 : f32
    %2567 = arith.divf %cst_602, %2566 : f32
    %cst_603 = arith.constant 0.000000e+00 : f32
    %2568 = arith.subf %cst_603, %22 : f32
    %2569 = arith.divf %2568, %2566 : f32
    %2570 = math.roundeven %2569 : f32
    %cst_604 = arith.constant 0.000000e+00 : f32
    %2571 = arith.subf %cst_604, %2570 : f32
    %cst_605 = arith.constant 2.550000e+02 : f32
    %2572 = arith.subf %cst_605, %2570 : f32
    %2573 = vector.broadcast %2566 : f32 to vector<8x128xf32>
    %2574 = vector.broadcast %2567 : f32 to vector<8x128xf32>
    %2575 = vector.broadcast %2571 : f32 to vector<8x128xf32>
    %2576 = vector.broadcast %2572 : f32 to vector<8x128xf32>
    %cst_606 = arith.constant 0.669999957 : f32
    %2577 = arith.subf %28, %cst_606 : f32
    %cst_607 = arith.constant 2.550000e+02 : f32
    %2578 = arith.divf %2577, %cst_607 : f32
    %cst_608 = arith.constant 1.000000e+00 : f32
    %2579 = arith.divf %cst_608, %2578 : f32
    %cst_609 = arith.constant 0.000000e+00 : f32
    %2580 = arith.subf %cst_609, %22 : f32
    %2581 = arith.divf %2580, %2578 : f32
    %2582 = math.roundeven %2581 : f32
    %cst_610 = arith.constant 0.000000e+00 : f32
    %2583 = arith.subf %cst_610, %2582 : f32
    %cst_611 = arith.constant 2.550000e+02 : f32
    %2584 = arith.subf %cst_611, %2582 : f32
    %2585 = vector.broadcast %2578 : f32 to vector<8x128xf32>
    %2586 = vector.broadcast %2579 : f32 to vector<8x128xf32>
    %2587 = vector.broadcast %2583 : f32 to vector<8x128xf32>
    %2588 = vector.broadcast %2584 : f32 to vector<8x128xf32>
    %cst_612 = arith.constant 0.000000e+00 : f32
    %2589 = vector.broadcast %cst_612 : f32 to vector<8x128xf32>
    %c0_i32_613 = arith.constant 0 : i32
    %c8_i32_614 = arith.constant 8 : i32
    %2590 = arith.muli %c0_i32_613, %c8_i32_614 : i32
    %2591 = tpu.assume_multiple %2590, 8 : i32
    %2592 = arith.index_cast %2591 : i32 to index
    %c0_615 = arith.constant 0 : index
    %2593 = vector.load %arg1[%2592, %c0_615] : memref<16x128xf32, #tpu.memory_space<vmem>>, vector<8x128xf32>
    %2594 = arith.mulf %2593, %2550 : vector<8x128xf32>
    %2595 = math.roundeven %2594 : vector<8x128xf32>
    %2596 = arith.maximumf %2595, %2551 : vector<8x128xf32>
    %2597 = arith.minimumf %2596, %2552 : vector<8x128xf32>
    %2598 = arith.mulf %2597, %2549 : vector<8x128xf32>
    %2599 = arith.subf %2598, %2593 : vector<8x128xf32>
    %2600 = arith.mulf %2599, %2599 : vector<8x128xf32>
    %2601 = arith.addf %2589, %2600 : vector<8x128xf32>
    %2602 = arith.mulf %2593, %2562 : vector<8x128xf32>
    %2603 = math.roundeven %2602 : vector<8x128xf32>
    %2604 = arith.maximumf %2603, %2563 : vector<8x128xf32>
    %2605 = arith.minimumf %2604, %2564 : vector<8x128xf32>
    %2606 = arith.mulf %2605, %2561 : vector<8x128xf32>
    %2607 = arith.subf %2606, %2593 : vector<8x128xf32>
    %2608 = arith.mulf %2607, %2607 : vector<8x128xf32>
    %2609 = arith.addf %2589, %2608 : vector<8x128xf32>
    %2610 = arith.mulf %2593, %2574 : vector<8x128xf32>
    %2611 = math.roundeven %2610 : vector<8x128xf32>
    %2612 = arith.maximumf %2611, %2575 : vector<8x128xf32>
    %2613 = arith.minimumf %2612, %2576 : vector<8x128xf32>
    %2614 = arith.mulf %2613, %2573 : vector<8x128xf32>
    %2615 = arith.subf %2614, %2593 : vector<8x128xf32>
    %2616 = arith.mulf %2615, %2615 : vector<8x128xf32>
    %2617 = arith.addf %2589, %2616 : vector<8x128xf32>
    %2618 = arith.mulf %2593, %2586 : vector<8x128xf32>
    %2619 = math.roundeven %2618 : vector<8x128xf32>
    %2620 = arith.maximumf %2619, %2587 : vector<8x128xf32>
    %2621 = arith.minimumf %2620, %2588 : vector<8x128xf32>
    %2622 = arith.mulf %2621, %2585 : vector<8x128xf32>
    %2623 = arith.subf %2622, %2593 : vector<8x128xf32>
    %2624 = arith.mulf %2623, %2623 : vector<8x128xf32>
    %2625 = arith.addf %2589, %2624 : vector<8x128xf32>
    %c1_i32_616 = arith.constant 1 : i32
    %c8_i32_617 = arith.constant 8 : i32
    %2626 = arith.muli %c1_i32_616, %c8_i32_617 : i32
    %2627 = tpu.assume_multiple %2626, 8 : i32
    %2628 = arith.index_cast %2627 : i32 to index
    %c0_618 = arith.constant 0 : index
    %2629 = vector.load %arg1[%2628, %c0_618] : memref<16x128xf32, #tpu.memory_space<vmem>>, vector<8x128xf32>
    %2630 = arith.mulf %2629, %2550 : vector<8x128xf32>
    %2631 = math.roundeven %2630 : vector<8x128xf32>
    %2632 = arith.maximumf %2631, %2551 : vector<8x128xf32>
    %2633 = arith.minimumf %2632, %2552 : vector<8x128xf32>
    %2634 = arith.mulf %2633, %2549 : vector<8x128xf32>
    %2635 = arith.subf %2634, %2629 : vector<8x128xf32>
    %2636 = arith.mulf %2635, %2635 : vector<8x128xf32>
    %2637 = arith.addf %2601, %2636 : vector<8x128xf32>
    %2638 = arith.mulf %2629, %2562 : vector<8x128xf32>
    %2639 = math.roundeven %2638 : vector<8x128xf32>
    %2640 = arith.maximumf %2639, %2563 : vector<8x128xf32>
    %2641 = arith.minimumf %2640, %2564 : vector<8x128xf32>
    %2642 = arith.mulf %2641, %2561 : vector<8x128xf32>
    %2643 = arith.subf %2642, %2629 : vector<8x128xf32>
    %2644 = arith.mulf %2643, %2643 : vector<8x128xf32>
    %2645 = arith.addf %2609, %2644 : vector<8x128xf32>
    %2646 = arith.mulf %2629, %2574 : vector<8x128xf32>
    %2647 = math.roundeven %2646 : vector<8x128xf32>
    %2648 = arith.maximumf %2647, %2575 : vector<8x128xf32>
    %2649 = arith.minimumf %2648, %2576 : vector<8x128xf32>
    %2650 = arith.mulf %2649, %2573 : vector<8x128xf32>
    %2651 = arith.subf %2650, %2629 : vector<8x128xf32>
    %2652 = arith.mulf %2651, %2651 : vector<8x128xf32>
    %2653 = arith.addf %2617, %2652 : vector<8x128xf32>
    %2654 = arith.mulf %2629, %2586 : vector<8x128xf32>
    %2655 = math.roundeven %2654 : vector<8x128xf32>
    %2656 = arith.maximumf %2655, %2587 : vector<8x128xf32>
    %2657 = arith.minimumf %2656, %2588 : vector<8x128xf32>
    %2658 = arith.mulf %2657, %2585 : vector<8x128xf32>
    %2659 = arith.subf %2658, %2629 : vector<8x128xf32>
    %2660 = arith.mulf %2659, %2659 : vector<8x128xf32>
    %2661 = arith.addf %2625, %2660 : vector<8x128xf32>
    %c2_i32_619 = arith.constant 2 : i32
    %2662 = vector.shape_cast %2637 : vector<8x128xf32> to vector<1x8x128xf32>
    %cst_620 = arith.constant dense<0.000000e+00> : vector<1xf32>
    %2663 = vector.multi_reduction <add>, %2662, %cst_620 [1, 2] : vector<1x8x128xf32> to vector<1xf32>
    %2664 = vector.shape_cast %2663 : vector<1xf32> to vector<1x1x1xf32>
    %2665 = vector.extract %2664[0, 0, 0] : f32 from vector<1x1x1xf32>
    %2666 = arith.cmpf olt, %2665, %2537 : f32
    %2667 = arith.select %2666, %2665, %2537 : f32
    %2668 = arith.select %2666, %2542, %2538 : f32
    %2669 = arith.select %2666, %2543, %2539 : f32
    %2670 = arith.select %2666, %2546, %2540 : f32
    %2671 = vector.shape_cast %2645 : vector<8x128xf32> to vector<1x8x128xf32>
    %cst_621 = arith.constant dense<0.000000e+00> : vector<1xf32>
    %2672 = vector.multi_reduction <add>, %2671, %cst_621 [1, 2] : vector<1x8x128xf32> to vector<1xf32>
    %2673 = vector.shape_cast %2672 : vector<1xf32> to vector<1x1x1xf32>
    %2674 = vector.extract %2673[0, 0, 0] : f32 from vector<1x1x1xf32>
    %2675 = arith.cmpf olt, %2674, %2667 : f32
    %2676 = arith.select %2675, %2674, %2667 : f32
    %2677 = arith.select %2675, %2554, %2668 : f32
    %2678 = arith.select %2675, %2555, %2669 : f32
    %2679 = arith.select %2675, %2558, %2670 : f32
    %2680 = vector.shape_cast %2653 : vector<8x128xf32> to vector<1x8x128xf32>
    %cst_622 = arith.constant dense<0.000000e+00> : vector<1xf32>
    %2681 = vector.multi_reduction <add>, %2680, %cst_622 [1, 2] : vector<1x8x128xf32> to vector<1xf32>
    %2682 = vector.shape_cast %2681 : vector<1xf32> to vector<1x1x1xf32>
    %2683 = vector.extract %2682[0, 0, 0] : f32 from vector<1x1x1xf32>
    %2684 = arith.cmpf olt, %2683, %2676 : f32
    %2685 = arith.select %2684, %2683, %2676 : f32
    %2686 = arith.select %2684, %2566, %2677 : f32
    %2687 = arith.select %2684, %2567, %2678 : f32
    %2688 = arith.select %2684, %2570, %2679 : f32
    %2689 = vector.shape_cast %2661 : vector<8x128xf32> to vector<1x8x128xf32>
    %cst_623 = arith.constant dense<0.000000e+00> : vector<1xf32>
    %2690 = vector.multi_reduction <add>, %2689, %cst_623 [1, 2] : vector<1x8x128xf32> to vector<1xf32>
    %2691 = vector.shape_cast %2690 : vector<1xf32> to vector<1x1x1xf32>
    %2692 = vector.extract %2691[0, 0, 0] : f32 from vector<1x1x1xf32>
    %2693 = arith.cmpf olt, %2692, %2685 : f32
    %2694 = arith.select %2693, %2692, %2685 : f32
    %2695 = arith.select %2693, %2578, %2686 : f32
    %2696 = arith.select %2693, %2579, %2687 : f32
    %2697 = arith.select %2693, %2582, %2688 : f32
    %cst_624 = arith.constant 6.800000e-01 : f32
    %2698 = arith.subf %28, %cst_624 : f32
    %cst_625 = arith.constant 2.550000e+02 : f32
    %2699 = arith.divf %2698, %cst_625 : f32
    %cst_626 = arith.constant 1.000000e+00 : f32
    %2700 = arith.divf %cst_626, %2699 : f32
    %cst_627 = arith.constant 0.000000e+00 : f32
    %2701 = arith.subf %cst_627, %22 : f32
    %2702 = arith.divf %2701, %2699 : f32
    %2703 = math.roundeven %2702 : f32
    %cst_628 = arith.constant 0.000000e+00 : f32
    %2704 = arith.subf %cst_628, %2703 : f32
    %cst_629 = arith.constant 2.550000e+02 : f32
    %2705 = arith.subf %cst_629, %2703 : f32
    %2706 = vector.broadcast %2699 : f32 to vector<8x128xf32>
    %2707 = vector.broadcast %2700 : f32 to vector<8x128xf32>
    %2708 = vector.broadcast %2704 : f32 to vector<8x128xf32>
    %2709 = vector.broadcast %2705 : f32 to vector<8x128xf32>
    %cst_630 = arith.constant 0.689999997 : f32
    %2710 = arith.subf %28, %cst_630 : f32
    %cst_631 = arith.constant 2.550000e+02 : f32
    %2711 = arith.divf %2710, %cst_631 : f32
    %cst_632 = arith.constant 1.000000e+00 : f32
    %2712 = arith.divf %cst_632, %2711 : f32
    %cst_633 = arith.constant 0.000000e+00 : f32
    %2713 = arith.subf %cst_633, %22 : f32
    %2714 = arith.divf %2713, %2711 : f32
    %2715 = math.roundeven %2714 : f32
    %cst_634 = arith.constant 0.000000e+00 : f32
    %2716 = arith.subf %cst_634, %2715 : f32
    %cst_635 = arith.constant 2.550000e+02 : f32
    %2717 = arith.subf %cst_635, %2715 : f32
    %2718 = vector.broadcast %2711 : f32 to vector<8x128xf32>
    %2719 = vector.broadcast %2712 : f32 to vector<8x128xf32>
    %2720 = vector.broadcast %2716 : f32 to vector<8x128xf32>
    %2721 = vector.broadcast %2717 : f32 to vector<8x128xf32>
    %cst_636 = arith.constant 0.699999988 : f32
    %2722 = arith.subf %28, %cst_636 : f32
    %cst_637 = arith.constant 2.550000e+02 : f32
    %2723 = arith.divf %2722, %cst_637 : f32
    %cst_638 = arith.constant 1.000000e+00 : f32
    %2724 = arith.divf %cst_638, %2723 : f32
    %cst_639 = arith.constant 0.000000e+00 : f32
    %2725 = arith.subf %cst_639, %22 : f32
    %2726 = arith.divf %2725, %2723 : f32
    %2727 = math.roundeven %2726 : f32
    %cst_640 = arith.constant 0.000000e+00 : f32
    %2728 = arith.subf %cst_640, %2727 : f32
    %cst_641 = arith.constant 2.550000e+02 : f32
    %2729 = arith.subf %cst_641, %2727 : f32
    %2730 = vector.broadcast %2723 : f32 to vector<8x128xf32>
    %2731 = vector.broadcast %2724 : f32 to vector<8x128xf32>
    %2732 = vector.broadcast %2728 : f32 to vector<8x128xf32>
    %2733 = vector.broadcast %2729 : f32 to vector<8x128xf32>
    %cst_642 = arith.constant 0.709999978 : f32
    %2734 = arith.subf %28, %cst_642 : f32
    %cst_643 = arith.constant 2.550000e+02 : f32
    %2735 = arith.divf %2734, %cst_643 : f32
    %cst_644 = arith.constant 1.000000e+00 : f32
    %2736 = arith.divf %cst_644, %2735 : f32
    %cst_645 = arith.constant 0.000000e+00 : f32
    %2737 = arith.subf %cst_645, %22 : f32
    %2738 = arith.divf %2737, %2735 : f32
    %2739 = math.roundeven %2738 : f32
    %cst_646 = arith.constant 0.000000e+00 : f32
    %2740 = arith.subf %cst_646, %2739 : f32
    %cst_647 = arith.constant 2.550000e+02 : f32
    %2741 = arith.subf %cst_647, %2739 : f32
    %2742 = vector.broadcast %2735 : f32 to vector<8x128xf32>
    %2743 = vector.broadcast %2736 : f32 to vector<8x128xf32>
    %2744 = vector.broadcast %2740 : f32 to vector<8x128xf32>
    %2745 = vector.broadcast %2741 : f32 to vector<8x128xf32>
    %cst_648 = arith.constant 0.000000e+00 : f32
    %2746 = vector.broadcast %cst_648 : f32 to vector<8x128xf32>
    %c0_i32_649 = arith.constant 0 : i32
    %c8_i32_650 = arith.constant 8 : i32
    %2747 = arith.muli %c0_i32_649, %c8_i32_650 : i32
    %2748 = tpu.assume_multiple %2747, 8 : i32
    %2749 = arith.index_cast %2748 : i32 to index
    %c0_651 = arith.constant 0 : index
    %2750 = vector.load %arg1[%2749, %c0_651] : memref<16x128xf32, #tpu.memory_space<vmem>>, vector<8x128xf32>
    %2751 = arith.mulf %2750, %2707 : vector<8x128xf32>
    %2752 = math.roundeven %2751 : vector<8x128xf32>
    %2753 = arith.maximumf %2752, %2708 : vector<8x128xf32>
    %2754 = arith.minimumf %2753, %2709 : vector<8x128xf32>
    %2755 = arith.mulf %2754, %2706 : vector<8x128xf32>
    %2756 = arith.subf %2755, %2750 : vector<8x128xf32>
    %2757 = arith.mulf %2756, %2756 : vector<8x128xf32>
    %2758 = arith.addf %2746, %2757 : vector<8x128xf32>
    %2759 = arith.mulf %2750, %2719 : vector<8x128xf32>
    %2760 = math.roundeven %2759 : vector<8x128xf32>
    %2761 = arith.maximumf %2760, %2720 : vector<8x128xf32>
    %2762 = arith.minimumf %2761, %2721 : vector<8x128xf32>
    %2763 = arith.mulf %2762, %2718 : vector<8x128xf32>
    %2764 = arith.subf %2763, %2750 : vector<8x128xf32>
    %2765 = arith.mulf %2764, %2764 : vector<8x128xf32>
    %2766 = arith.addf %2746, %2765 : vector<8x128xf32>
    %2767 = arith.mulf %2750, %2731 : vector<8x128xf32>
    %2768 = math.roundeven %2767 : vector<8x128xf32>
    %2769 = arith.maximumf %2768, %2732 : vector<8x128xf32>
    %2770 = arith.minimumf %2769, %2733 : vector<8x128xf32>
    %2771 = arith.mulf %2770, %2730 : vector<8x128xf32>
    %2772 = arith.subf %2771, %2750 : vector<8x128xf32>
    %2773 = arith.mulf %2772, %2772 : vector<8x128xf32>
    %2774 = arith.addf %2746, %2773 : vector<8x128xf32>
    %2775 = arith.mulf %2750, %2743 : vector<8x128xf32>
    %2776 = math.roundeven %2775 : vector<8x128xf32>
    %2777 = arith.maximumf %2776, %2744 : vector<8x128xf32>
    %2778 = arith.minimumf %2777, %2745 : vector<8x128xf32>
    %2779 = arith.mulf %2778, %2742 : vector<8x128xf32>
    %2780 = arith.subf %2779, %2750 : vector<8x128xf32>
    %2781 = arith.mulf %2780, %2780 : vector<8x128xf32>
    %2782 = arith.addf %2746, %2781 : vector<8x128xf32>
    %c1_i32_652 = arith.constant 1 : i32
    %c8_i32_653 = arith.constant 8 : i32
    %2783 = arith.muli %c1_i32_652, %c8_i32_653 : i32
    %2784 = tpu.assume_multiple %2783, 8 : i32
    %2785 = arith.index_cast %2784 : i32 to index
    %c0_654 = arith.constant 0 : index
    %2786 = vector.load %arg1[%2785, %c0_654] : memref<16x128xf32, #tpu.memory_space<vmem>>, vector<8x128xf32>
    %2787 = arith.mulf %2786, %2707 : vector<8x128xf32>
    %2788 = math.roundeven %2787 : vector<8x128xf32>
    %2789 = arith.maximumf %2788, %2708 : vector<8x128xf32>
    %2790 = arith.minimumf %2789, %2709 : vector<8x128xf32>
    %2791 = arith.mulf %2790, %2706 : vector<8x128xf32>
    %2792 = arith.subf %2791, %2786 : vector<8x128xf32>
    %2793 = arith.mulf %2792, %2792 : vector<8x128xf32>
    %2794 = arith.addf %2758, %2793 : vector<8x128xf32>
    %2795 = arith.mulf %2786, %2719 : vector<8x128xf32>
    %2796 = math.roundeven %2795 : vector<8x128xf32>
    %2797 = arith.maximumf %2796, %2720 : vector<8x128xf32>
    %2798 = arith.minimumf %2797, %2721 : vector<8x128xf32>
    %2799 = arith.mulf %2798, %2718 : vector<8x128xf32>
    %2800 = arith.subf %2799, %2786 : vector<8x128xf32>
    %2801 = arith.mulf %2800, %2800 : vector<8x128xf32>
    %2802 = arith.addf %2766, %2801 : vector<8x128xf32>
    %2803 = arith.mulf %2786, %2731 : vector<8x128xf32>
    %2804 = math.roundeven %2803 : vector<8x128xf32>
    %2805 = arith.maximumf %2804, %2732 : vector<8x128xf32>
    %2806 = arith.minimumf %2805, %2733 : vector<8x128xf32>
    %2807 = arith.mulf %2806, %2730 : vector<8x128xf32>
    %2808 = arith.subf %2807, %2786 : vector<8x128xf32>
    %2809 = arith.mulf %2808, %2808 : vector<8x128xf32>
    %2810 = arith.addf %2774, %2809 : vector<8x128xf32>
    %2811 = arith.mulf %2786, %2743 : vector<8x128xf32>
    %2812 = math.roundeven %2811 : vector<8x128xf32>
    %2813 = arith.maximumf %2812, %2744 : vector<8x128xf32>
    %2814 = arith.minimumf %2813, %2745 : vector<8x128xf32>
    %2815 = arith.mulf %2814, %2742 : vector<8x128xf32>
    %2816 = arith.subf %2815, %2786 : vector<8x128xf32>
    %2817 = arith.mulf %2816, %2816 : vector<8x128xf32>
    %2818 = arith.addf %2782, %2817 : vector<8x128xf32>
    %c2_i32_655 = arith.constant 2 : i32
    %2819 = vector.shape_cast %2794 : vector<8x128xf32> to vector<1x8x128xf32>
    %cst_656 = arith.constant dense<0.000000e+00> : vector<1xf32>
    %2820 = vector.multi_reduction <add>, %2819, %cst_656 [1, 2] : vector<1x8x128xf32> to vector<1xf32>
    %2821 = vector.shape_cast %2820 : vector<1xf32> to vector<1x1x1xf32>
    %2822 = vector.extract %2821[0, 0, 0] : f32 from vector<1x1x1xf32>
    %2823 = arith.cmpf olt, %2822, %2694 : f32
    %2824 = arith.select %2823, %2822, %2694 : f32
    %2825 = arith.select %2823, %2699, %2695 : f32
    %2826 = arith.select %2823, %2700, %2696 : f32
    %2827 = arith.select %2823, %2703, %2697 : f32
    %2828 = vector.shape_cast %2802 : vector<8x128xf32> to vector<1x8x128xf32>
    %cst_657 = arith.constant dense<0.000000e+00> : vector<1xf32>
    %2829 = vector.multi_reduction <add>, %2828, %cst_657 [1, 2] : vector<1x8x128xf32> to vector<1xf32>
    %2830 = vector.shape_cast %2829 : vector<1xf32> to vector<1x1x1xf32>
    %2831 = vector.extract %2830[0, 0, 0] : f32 from vector<1x1x1xf32>
    %2832 = arith.cmpf olt, %2831, %2824 : f32
    %2833 = arith.select %2832, %2831, %2824 : f32
    %2834 = arith.select %2832, %2711, %2825 : f32
    %2835 = arith.select %2832, %2712, %2826 : f32
    %2836 = arith.select %2832, %2715, %2827 : f32
    %2837 = vector.shape_cast %2810 : vector<8x128xf32> to vector<1x8x128xf32>
    %cst_658 = arith.constant dense<0.000000e+00> : vector<1xf32>
    %2838 = vector.multi_reduction <add>, %2837, %cst_658 [1, 2] : vector<1x8x128xf32> to vector<1xf32>
    %2839 = vector.shape_cast %2838 : vector<1xf32> to vector<1x1x1xf32>
    %2840 = vector.extract %2839[0, 0, 0] : f32 from vector<1x1x1xf32>
    %2841 = arith.cmpf olt, %2840, %2833 : f32
    %2842 = arith.select %2841, %2840, %2833 : f32
    %2843 = arith.select %2841, %2723, %2834 : f32
    %2844 = arith.select %2841, %2724, %2835 : f32
    %2845 = arith.select %2841, %2727, %2836 : f32
    %2846 = vector.shape_cast %2818 : vector<8x128xf32> to vector<1x8x128xf32>
    %cst_659 = arith.constant dense<0.000000e+00> : vector<1xf32>
    %2847 = vector.multi_reduction <add>, %2846, %cst_659 [1, 2] : vector<1x8x128xf32> to vector<1xf32>
    %2848 = vector.shape_cast %2847 : vector<1xf32> to vector<1x1x1xf32>
    %2849 = vector.extract %2848[0, 0, 0] : f32 from vector<1x1x1xf32>
    %2850 = arith.cmpf olt, %2849, %2842 : f32
    %2851 = arith.select %2850, %2849, %2842 : f32
    %2852 = arith.select %2850, %2735, %2843 : f32
    %2853 = arith.select %2850, %2736, %2844 : f32
    %2854 = arith.select %2850, %2739, %2845 : f32
    %cst_660 = arith.constant 0.719999969 : f32
    %2855 = arith.subf %28, %cst_660 : f32
    %cst_661 = arith.constant 2.550000e+02 : f32
    %2856 = arith.divf %2855, %cst_661 : f32
    %cst_662 = arith.constant 1.000000e+00 : f32
    %2857 = arith.divf %cst_662, %2856 : f32
    %cst_663 = arith.constant 0.000000e+00 : f32
    %2858 = arith.subf %cst_663, %22 : f32
    %2859 = arith.divf %2858, %2856 : f32
    %2860 = math.roundeven %2859 : f32
    %cst_664 = arith.constant 0.000000e+00 : f32
    %2861 = arith.subf %cst_664, %2860 : f32
    %cst_665 = arith.constant 2.550000e+02 : f32
    %2862 = arith.subf %cst_665, %2860 : f32
    %2863 = vector.broadcast %2856 : f32 to vector<8x128xf32>
    %2864 = vector.broadcast %2857 : f32 to vector<8x128xf32>
    %2865 = vector.broadcast %2861 : f32 to vector<8x128xf32>
    %2866 = vector.broadcast %2862 : f32 to vector<8x128xf32>
    %cst_666 = arith.constant 0.729999959 : f32
    %2867 = arith.subf %28, %cst_666 : f32
    %cst_667 = arith.constant 2.550000e+02 : f32
    %2868 = arith.divf %2867, %cst_667 : f32
    %cst_668 = arith.constant 1.000000e+00 : f32
    %2869 = arith.divf %cst_668, %2868 : f32
    %cst_669 = arith.constant 0.000000e+00 : f32
    %2870 = arith.subf %cst_669, %22 : f32
    %2871 = arith.divf %2870, %2868 : f32
    %2872 = math.roundeven %2871 : f32
    %cst_670 = arith.constant 0.000000e+00 : f32
    %2873 = arith.subf %cst_670, %2872 : f32
    %cst_671 = arith.constant 2.550000e+02 : f32
    %2874 = arith.subf %cst_671, %2872 : f32
    %2875 = vector.broadcast %2868 : f32 to vector<8x128xf32>
    %2876 = vector.broadcast %2869 : f32 to vector<8x128xf32>
    %2877 = vector.broadcast %2873 : f32 to vector<8x128xf32>
    %2878 = vector.broadcast %2874 : f32 to vector<8x128xf32>
    %cst_672 = arith.constant 7.400000e-01 : f32
    %2879 = arith.subf %28, %cst_672 : f32
    %cst_673 = arith.constant 2.550000e+02 : f32
    %2880 = arith.divf %2879, %cst_673 : f32
    %cst_674 = arith.constant 1.000000e+00 : f32
    %2881 = arith.divf %cst_674, %2880 : f32
    %cst_675 = arith.constant 0.000000e+00 : f32
    %2882 = arith.subf %cst_675, %22 : f32
    %2883 = arith.divf %2882, %2880 : f32
    %2884 = math.roundeven %2883 : f32
    %cst_676 = arith.constant 0.000000e+00 : f32
    %2885 = arith.subf %cst_676, %2884 : f32
    %cst_677 = arith.constant 2.550000e+02 : f32
    %2886 = arith.subf %cst_677, %2884 : f32
    %2887 = vector.broadcast %2880 : f32 to vector<8x128xf32>
    %2888 = vector.broadcast %2881 : f32 to vector<8x128xf32>
    %2889 = vector.broadcast %2885 : f32 to vector<8x128xf32>
    %2890 = vector.broadcast %2886 : f32 to vector<8x128xf32>
    %cst_678 = arith.constant 7.500000e-01 : f32
    %2891 = arith.subf %28, %cst_678 : f32
    %cst_679 = arith.constant 2.550000e+02 : f32
    %2892 = arith.divf %2891, %cst_679 : f32
    %cst_680 = arith.constant 1.000000e+00 : f32
    %2893 = arith.divf %cst_680, %2892 : f32
    %cst_681 = arith.constant 0.000000e+00 : f32
    %2894 = arith.subf %cst_681, %22 : f32
    %2895 = arith.divf %2894, %2892 : f32
    %2896 = math.roundeven %2895 : f32
    %cst_682 = arith.constant 0.000000e+00 : f32
    %2897 = arith.subf %cst_682, %2896 : f32
    %cst_683 = arith.constant 2.550000e+02 : f32
    %2898 = arith.subf %cst_683, %2896 : f32
    %2899 = vector.broadcast %2892 : f32 to vector<8x128xf32>
    %2900 = vector.broadcast %2893 : f32 to vector<8x128xf32>
    %2901 = vector.broadcast %2897 : f32 to vector<8x128xf32>
    %2902 = vector.broadcast %2898 : f32 to vector<8x128xf32>
    %cst_684 = arith.constant 0.000000e+00 : f32
    %2903 = vector.broadcast %cst_684 : f32 to vector<8x128xf32>
    %c0_i32_685 = arith.constant 0 : i32
    %c8_i32_686 = arith.constant 8 : i32
    %2904 = arith.muli %c0_i32_685, %c8_i32_686 : i32
    %2905 = tpu.assume_multiple %2904, 8 : i32
    %2906 = arith.index_cast %2905 : i32 to index
    %c0_687 = arith.constant 0 : index
    %2907 = vector.load %arg1[%2906, %c0_687] : memref<16x128xf32, #tpu.memory_space<vmem>>, vector<8x128xf32>
    %2908 = arith.mulf %2907, %2864 : vector<8x128xf32>
    %2909 = math.roundeven %2908 : vector<8x128xf32>
    %2910 = arith.maximumf %2909, %2865 : vector<8x128xf32>
    %2911 = arith.minimumf %2910, %2866 : vector<8x128xf32>
    %2912 = arith.mulf %2911, %2863 : vector<8x128xf32>
    %2913 = arith.subf %2912, %2907 : vector<8x128xf32>
    %2914 = arith.mulf %2913, %2913 : vector<8x128xf32>
    %2915 = arith.addf %2903, %2914 : vector<8x128xf32>
    %2916 = arith.mulf %2907, %2876 : vector<8x128xf32>
    %2917 = math.roundeven %2916 : vector<8x128xf32>
    %2918 = arith.maximumf %2917, %2877 : vector<8x128xf32>
    %2919 = arith.minimumf %2918, %2878 : vector<8x128xf32>
    %2920 = arith.mulf %2919, %2875 : vector<8x128xf32>
    %2921 = arith.subf %2920, %2907 : vector<8x128xf32>
    %2922 = arith.mulf %2921, %2921 : vector<8x128xf32>
    %2923 = arith.addf %2903, %2922 : vector<8x128xf32>
    %2924 = arith.mulf %2907, %2888 : vector<8x128xf32>
    %2925 = math.roundeven %2924 : vector<8x128xf32>
    %2926 = arith.maximumf %2925, %2889 : vector<8x128xf32>
    %2927 = arith.minimumf %2926, %2890 : vector<8x128xf32>
    %2928 = arith.mulf %2927, %2887 : vector<8x128xf32>
    %2929 = arith.subf %2928, %2907 : vector<8x128xf32>
    %2930 = arith.mulf %2929, %2929 : vector<8x128xf32>
    %2931 = arith.addf %2903, %2930 : vector<8x128xf32>
    %2932 = arith.mulf %2907, %2900 : vector<8x128xf32>
    %2933 = math.roundeven %2932 : vector<8x128xf32>
    %2934 = arith.maximumf %2933, %2901 : vector<8x128xf32>
    %2935 = arith.minimumf %2934, %2902 : vector<8x128xf32>
    %2936 = arith.mulf %2935, %2899 : vector<8x128xf32>
    %2937 = arith.subf %2936, %2907 : vector<8x128xf32>
    %2938 = arith.mulf %2937, %2937 : vector<8x128xf32>
    %2939 = arith.addf %2903, %2938 : vector<8x128xf32>
    %c1_i32_688 = arith.constant 1 : i32
    %c8_i32_689 = arith.constant 8 : i32
    %2940 = arith.muli %c1_i32_688, %c8_i32_689 : i32
    %2941 = tpu.assume_multiple %2940, 8 : i32
    %2942 = arith.index_cast %2941 : i32 to index
    %c0_690 = arith.constant 0 : index
    %2943 = vector.load %arg1[%2942, %c0_690] : memref<16x128xf32, #tpu.memory_space<vmem>>, vector<8x128xf32>
    %2944 = arith.mulf %2943, %2864 : vector<8x128xf32>
    %2945 = math.roundeven %2944 : vector<8x128xf32>
    %2946 = arith.maximumf %2945, %2865 : vector<8x128xf32>
    %2947 = arith.minimumf %2946, %2866 : vector<8x128xf32>
    %2948 = arith.mulf %2947, %2863 : vector<8x128xf32>
    %2949 = arith.subf %2948, %2943 : vector<8x128xf32>
    %2950 = arith.mulf %2949, %2949 : vector<8x128xf32>
    %2951 = arith.addf %2915, %2950 : vector<8x128xf32>
    %2952 = arith.mulf %2943, %2876 : vector<8x128xf32>
    %2953 = math.roundeven %2952 : vector<8x128xf32>
    %2954 = arith.maximumf %2953, %2877 : vector<8x128xf32>
    %2955 = arith.minimumf %2954, %2878 : vector<8x128xf32>
    %2956 = arith.mulf %2955, %2875 : vector<8x128xf32>
    %2957 = arith.subf %2956, %2943 : vector<8x128xf32>
    %2958 = arith.mulf %2957, %2957 : vector<8x128xf32>
    %2959 = arith.addf %2923, %2958 : vector<8x128xf32>
    %2960 = arith.mulf %2943, %2888 : vector<8x128xf32>
    %2961 = math.roundeven %2960 : vector<8x128xf32>
    %2962 = arith.maximumf %2961, %2889 : vector<8x128xf32>
    %2963 = arith.minimumf %2962, %2890 : vector<8x128xf32>
    %2964 = arith.mulf %2963, %2887 : vector<8x128xf32>
    %2965 = arith.subf %2964, %2943 : vector<8x128xf32>
    %2966 = arith.mulf %2965, %2965 : vector<8x128xf32>
    %2967 = arith.addf %2931, %2966 : vector<8x128xf32>
    %2968 = arith.mulf %2943, %2900 : vector<8x128xf32>
    %2969 = math.roundeven %2968 : vector<8x128xf32>
    %2970 = arith.maximumf %2969, %2901 : vector<8x128xf32>
    %2971 = arith.minimumf %2970, %2902 : vector<8x128xf32>
    %2972 = arith.mulf %2971, %2899 : vector<8x128xf32>
    %2973 = arith.subf %2972, %2943 : vector<8x128xf32>
    %2974 = arith.mulf %2973, %2973 : vector<8x128xf32>
    %2975 = arith.addf %2939, %2974 : vector<8x128xf32>
    %c2_i32_691 = arith.constant 2 : i32
    %2976 = vector.shape_cast %2951 : vector<8x128xf32> to vector<1x8x128xf32>
    %cst_692 = arith.constant dense<0.000000e+00> : vector<1xf32>
    %2977 = vector.multi_reduction <add>, %2976, %cst_692 [1, 2] : vector<1x8x128xf32> to vector<1xf32>
    %2978 = vector.shape_cast %2977 : vector<1xf32> to vector<1x1x1xf32>
    %2979 = vector.extract %2978[0, 0, 0] : f32 from vector<1x1x1xf32>
    %2980 = arith.cmpf olt, %2979, %2851 : f32
    %2981 = arith.select %2980, %2979, %2851 : f32
    %2982 = arith.select %2980, %2856, %2852 : f32
    %2983 = arith.select %2980, %2857, %2853 : f32
    %2984 = arith.select %2980, %2860, %2854 : f32
    %2985 = vector.shape_cast %2959 : vector<8x128xf32> to vector<1x8x128xf32>
    %cst_693 = arith.constant dense<0.000000e+00> : vector<1xf32>
    %2986 = vector.multi_reduction <add>, %2985, %cst_693 [1, 2] : vector<1x8x128xf32> to vector<1xf32>
    %2987 = vector.shape_cast %2986 : vector<1xf32> to vector<1x1x1xf32>
    %2988 = vector.extract %2987[0, 0, 0] : f32 from vector<1x1x1xf32>
    %2989 = arith.cmpf olt, %2988, %2981 : f32
    %2990 = arith.select %2989, %2988, %2981 : f32
    %2991 = arith.select %2989, %2868, %2982 : f32
    %2992 = arith.select %2989, %2869, %2983 : f32
    %2993 = arith.select %2989, %2872, %2984 : f32
    %2994 = vector.shape_cast %2967 : vector<8x128xf32> to vector<1x8x128xf32>
    %cst_694 = arith.constant dense<0.000000e+00> : vector<1xf32>
    %2995 = vector.multi_reduction <add>, %2994, %cst_694 [1, 2] : vector<1x8x128xf32> to vector<1xf32>
    %2996 = vector.shape_cast %2995 : vector<1xf32> to vector<1x1x1xf32>
    %2997 = vector.extract %2996[0, 0, 0] : f32 from vector<1x1x1xf32>
    %2998 = arith.cmpf olt, %2997, %2990 : f32
    %2999 = arith.select %2998, %2997, %2990 : f32
    %3000 = arith.select %2998, %2880, %2991 : f32
    %3001 = arith.select %2998, %2881, %2992 : f32
    %3002 = arith.select %2998, %2884, %2993 : f32
    %3003 = vector.shape_cast %2975 : vector<8x128xf32> to vector<1x8x128xf32>
    %cst_695 = arith.constant dense<0.000000e+00> : vector<1xf32>
    %3004 = vector.multi_reduction <add>, %3003, %cst_695 [1, 2] : vector<1x8x128xf32> to vector<1xf32>
    %3005 = vector.shape_cast %3004 : vector<1xf32> to vector<1x1x1xf32>
    %3006 = vector.extract %3005[0, 0, 0] : f32 from vector<1x1x1xf32>
    %3007 = arith.cmpf olt, %3006, %2999 : f32
    %3008 = arith.select %3007, %3006, %2999 : f32
    %3009 = arith.select %3007, %2892, %3000 : f32
    %3010 = arith.select %3007, %2893, %3001 : f32
    %3011 = arith.select %3007, %2896, %3002 : f32
    %cst_696 = arith.constant 7.600000e-01 : f32
    %3012 = arith.subf %28, %cst_696 : f32
    %cst_697 = arith.constant 2.550000e+02 : f32
    %3013 = arith.divf %3012, %cst_697 : f32
    %cst_698 = arith.constant 1.000000e+00 : f32
    %3014 = arith.divf %cst_698, %3013 : f32
    %cst_699 = arith.constant 0.000000e+00 : f32
    %3015 = arith.subf %cst_699, %22 : f32
    %3016 = arith.divf %3015, %3013 : f32
    %3017 = math.roundeven %3016 : f32
    %cst_700 = arith.constant 0.000000e+00 : f32
    %3018 = arith.subf %cst_700, %3017 : f32
    %cst_701 = arith.constant 2.550000e+02 : f32
    %3019 = arith.subf %cst_701, %3017 : f32
    %3020 = vector.broadcast %3013 : f32 to vector<8x128xf32>
    %3021 = vector.broadcast %3014 : f32 to vector<8x128xf32>
    %3022 = vector.broadcast %3018 : f32 to vector<8x128xf32>
    %3023 = vector.broadcast %3019 : f32 to vector<8x128xf32>
    %cst_702 = arith.constant 0.76999998 : f32
    %3024 = arith.subf %28, %cst_702 : f32
    %cst_703 = arith.constant 2.550000e+02 : f32
    %3025 = arith.divf %3024, %cst_703 : f32
    %cst_704 = arith.constant 1.000000e+00 : f32
    %3026 = arith.divf %cst_704, %3025 : f32
    %cst_705 = arith.constant 0.000000e+00 : f32
    %3027 = arith.subf %cst_705, %22 : f32
    %3028 = arith.divf %3027, %3025 : f32
    %3029 = math.roundeven %3028 : f32
    %cst_706 = arith.constant 0.000000e+00 : f32
    %3030 = arith.subf %cst_706, %3029 : f32
    %cst_707 = arith.constant 2.550000e+02 : f32
    %3031 = arith.subf %cst_707, %3029 : f32
    %3032 = vector.broadcast %3025 : f32 to vector<8x128xf32>
    %3033 = vector.broadcast %3026 : f32 to vector<8x128xf32>
    %3034 = vector.broadcast %3030 : f32 to vector<8x128xf32>
    %3035 = vector.broadcast %3031 : f32 to vector<8x128xf32>
    %cst_708 = arith.constant 7.800000e-01 : f32
    %3036 = arith.subf %28, %cst_708 : f32
    %cst_709 = arith.constant 2.550000e+02 : f32
    %3037 = arith.divf %3036, %cst_709 : f32
    %cst_710 = arith.constant 1.000000e+00 : f32
    %3038 = arith.divf %cst_710, %3037 : f32
    %cst_711 = arith.constant 0.000000e+00 : f32
    %3039 = arith.subf %cst_711, %22 : f32
    %3040 = arith.divf %3039, %3037 : f32
    %3041 = math.roundeven %3040 : f32
    %cst_712 = arith.constant 0.000000e+00 : f32
    %3042 = arith.subf %cst_712, %3041 : f32
    %cst_713 = arith.constant 2.550000e+02 : f32
    %3043 = arith.subf %cst_713, %3041 : f32
    %3044 = vector.broadcast %3037 : f32 to vector<8x128xf32>
    %3045 = vector.broadcast %3038 : f32 to vector<8x128xf32>
    %3046 = vector.broadcast %3042 : f32 to vector<8x128xf32>
    %3047 = vector.broadcast %3043 : f32 to vector<8x128xf32>
    %cst_714 = arith.constant 0.789999961 : f32
    %3048 = arith.subf %28, %cst_714 : f32
    %cst_715 = arith.constant 2.550000e+02 : f32
    %3049 = arith.divf %3048, %cst_715 : f32
    %cst_716 = arith.constant 1.000000e+00 : f32
    %3050 = arith.divf %cst_716, %3049 : f32
    %cst_717 = arith.constant 0.000000e+00 : f32
    %3051 = arith.subf %cst_717, %22 : f32
    %3052 = arith.divf %3051, %3049 : f32
    %3053 = math.roundeven %3052 : f32
    %cst_718 = arith.constant 0.000000e+00 : f32
    %3054 = arith.subf %cst_718, %3053 : f32
    %cst_719 = arith.constant 2.550000e+02 : f32
    %3055 = arith.subf %cst_719, %3053 : f32
    %3056 = vector.broadcast %3049 : f32 to vector<8x128xf32>
    %3057 = vector.broadcast %3050 : f32 to vector<8x128xf32>
    %3058 = vector.broadcast %3054 : f32 to vector<8x128xf32>
    %3059 = vector.broadcast %3055 : f32 to vector<8x128xf32>
    %cst_720 = arith.constant 0.000000e+00 : f32
    %3060 = vector.broadcast %cst_720 : f32 to vector<8x128xf32>
    %c0_i32_721 = arith.constant 0 : i32
    %c8_i32_722 = arith.constant 8 : i32
    %3061 = arith.muli %c0_i32_721, %c8_i32_722 : i32
    %3062 = tpu.assume_multiple %3061, 8 : i32
    %3063 = arith.index_cast %3062 : i32 to index
    %c0_723 = arith.constant 0 : index
    %3064 = vector.load %arg1[%3063, %c0_723] : memref<16x128xf32, #tpu.memory_space<vmem>>, vector<8x128xf32>
    %3065 = arith.mulf %3064, %3021 : vector<8x128xf32>
    %3066 = math.roundeven %3065 : vector<8x128xf32>
    %3067 = arith.maximumf %3066, %3022 : vector<8x128xf32>
    %3068 = arith.minimumf %3067, %3023 : vector<8x128xf32>
    %3069 = arith.mulf %3068, %3020 : vector<8x128xf32>
    %3070 = arith.subf %3069, %3064 : vector<8x128xf32>
    %3071 = arith.mulf %3070, %3070 : vector<8x128xf32>
    %3072 = arith.addf %3060, %3071 : vector<8x128xf32>
    %3073 = arith.mulf %3064, %3033 : vector<8x128xf32>
    %3074 = math.roundeven %3073 : vector<8x128xf32>
    %3075 = arith.maximumf %3074, %3034 : vector<8x128xf32>
    %3076 = arith.minimumf %3075, %3035 : vector<8x128xf32>
    %3077 = arith.mulf %3076, %3032 : vector<8x128xf32>
    %3078 = arith.subf %3077, %3064 : vector<8x128xf32>
    %3079 = arith.mulf %3078, %3078 : vector<8x128xf32>
    %3080 = arith.addf %3060, %3079 : vector<8x128xf32>
    %3081 = arith.mulf %3064, %3045 : vector<8x128xf32>
    %3082 = math.roundeven %3081 : vector<8x128xf32>
    %3083 = arith.maximumf %3082, %3046 : vector<8x128xf32>
    %3084 = arith.minimumf %3083, %3047 : vector<8x128xf32>
    %3085 = arith.mulf %3084, %3044 : vector<8x128xf32>
    %3086 = arith.subf %3085, %3064 : vector<8x128xf32>
    %3087 = arith.mulf %3086, %3086 : vector<8x128xf32>
    %3088 = arith.addf %3060, %3087 : vector<8x128xf32>
    %3089 = arith.mulf %3064, %3057 : vector<8x128xf32>
    %3090 = math.roundeven %3089 : vector<8x128xf32>
    %3091 = arith.maximumf %3090, %3058 : vector<8x128xf32>
    %3092 = arith.minimumf %3091, %3059 : vector<8x128xf32>
    %3093 = arith.mulf %3092, %3056 : vector<8x128xf32>
    %3094 = arith.subf %3093, %3064 : vector<8x128xf32>
    %3095 = arith.mulf %3094, %3094 : vector<8x128xf32>
    %3096 = arith.addf %3060, %3095 : vector<8x128xf32>
    %c1_i32_724 = arith.constant 1 : i32
    %c8_i32_725 = arith.constant 8 : i32
    %3097 = arith.muli %c1_i32_724, %c8_i32_725 : i32
    %3098 = tpu.assume_multiple %3097, 8 : i32
    %3099 = arith.index_cast %3098 : i32 to index
    %c0_726 = arith.constant 0 : index
    %3100 = vector.load %arg1[%3099, %c0_726] : memref<16x128xf32, #tpu.memory_space<vmem>>, vector<8x128xf32>
    %3101 = arith.mulf %3100, %3021 : vector<8x128xf32>
    %3102 = math.roundeven %3101 : vector<8x128xf32>
    %3103 = arith.maximumf %3102, %3022 : vector<8x128xf32>
    %3104 = arith.minimumf %3103, %3023 : vector<8x128xf32>
    %3105 = arith.mulf %3104, %3020 : vector<8x128xf32>
    %3106 = arith.subf %3105, %3100 : vector<8x128xf32>
    %3107 = arith.mulf %3106, %3106 : vector<8x128xf32>
    %3108 = arith.addf %3072, %3107 : vector<8x128xf32>
    %3109 = arith.mulf %3100, %3033 : vector<8x128xf32>
    %3110 = math.roundeven %3109 : vector<8x128xf32>
    %3111 = arith.maximumf %3110, %3034 : vector<8x128xf32>
    %3112 = arith.minimumf %3111, %3035 : vector<8x128xf32>
    %3113 = arith.mulf %3112, %3032 : vector<8x128xf32>
    %3114 = arith.subf %3113, %3100 : vector<8x128xf32>
    %3115 = arith.mulf %3114, %3114 : vector<8x128xf32>
    %3116 = arith.addf %3080, %3115 : vector<8x128xf32>
    %3117 = arith.mulf %3100, %3045 : vector<8x128xf32>
    %3118 = math.roundeven %3117 : vector<8x128xf32>
    %3119 = arith.maximumf %3118, %3046 : vector<8x128xf32>
    %3120 = arith.minimumf %3119, %3047 : vector<8x128xf32>
    %3121 = arith.mulf %3120, %3044 : vector<8x128xf32>
    %3122 = arith.subf %3121, %3100 : vector<8x128xf32>
    %3123 = arith.mulf %3122, %3122 : vector<8x128xf32>
    %3124 = arith.addf %3088, %3123 : vector<8x128xf32>
    %3125 = arith.mulf %3100, %3057 : vector<8x128xf32>
    %3126 = math.roundeven %3125 : vector<8x128xf32>
    %3127 = arith.maximumf %3126, %3058 : vector<8x128xf32>
    %3128 = arith.minimumf %3127, %3059 : vector<8x128xf32>
    %3129 = arith.mulf %3128, %3056 : vector<8x128xf32>
    %3130 = arith.subf %3129, %3100 : vector<8x128xf32>
    %3131 = arith.mulf %3130, %3130 : vector<8x128xf32>
    %3132 = arith.addf %3096, %3131 : vector<8x128xf32>
    %c2_i32_727 = arith.constant 2 : i32
    %3133 = vector.shape_cast %3108 : vector<8x128xf32> to vector<1x8x128xf32>
    %cst_728 = arith.constant dense<0.000000e+00> : vector<1xf32>
    %3134 = vector.multi_reduction <add>, %3133, %cst_728 [1, 2] : vector<1x8x128xf32> to vector<1xf32>
    %3135 = vector.shape_cast %3134 : vector<1xf32> to vector<1x1x1xf32>
    %3136 = vector.extract %3135[0, 0, 0] : f32 from vector<1x1x1xf32>
    %3137 = arith.cmpf olt, %3136, %3008 : f32
    %3138 = arith.select %3137, %3136, %3008 : f32
    %3139 = arith.select %3137, %3013, %3009 : f32
    %3140 = arith.select %3137, %3014, %3010 : f32
    %3141 = arith.select %3137, %3017, %3011 : f32
    %3142 = vector.shape_cast %3116 : vector<8x128xf32> to vector<1x8x128xf32>
    %cst_729 = arith.constant dense<0.000000e+00> : vector<1xf32>
    %3143 = vector.multi_reduction <add>, %3142, %cst_729 [1, 2] : vector<1x8x128xf32> to vector<1xf32>
    %3144 = vector.shape_cast %3143 : vector<1xf32> to vector<1x1x1xf32>
    %3145 = vector.extract %3144[0, 0, 0] : f32 from vector<1x1x1xf32>
    %3146 = arith.cmpf olt, %3145, %3138 : f32
    %3147 = arith.select %3146, %3145, %3138 : f32
    %3148 = arith.select %3146, %3025, %3139 : f32
    %3149 = arith.select %3146, %3026, %3140 : f32
    %3150 = arith.select %3146, %3029, %3141 : f32
    %3151 = vector.shape_cast %3124 : vector<8x128xf32> to vector<1x8x128xf32>
    %cst_730 = arith.constant dense<0.000000e+00> : vector<1xf32>
    %3152 = vector.multi_reduction <add>, %3151, %cst_730 [1, 2] : vector<1x8x128xf32> to vector<1xf32>
    %3153 = vector.shape_cast %3152 : vector<1xf32> to vector<1x1x1xf32>
    %3154 = vector.extract %3153[0, 0, 0] : f32 from vector<1x1x1xf32>
    %3155 = arith.cmpf olt, %3154, %3147 : f32
    %3156 = arith.select %3155, %3154, %3147 : f32
    %3157 = arith.select %3155, %3037, %3148 : f32
    %3158 = arith.select %3155, %3038, %3149 : f32
    %3159 = arith.select %3155, %3041, %3150 : f32
    %3160 = vector.shape_cast %3132 : vector<8x128xf32> to vector<1x8x128xf32>
    %cst_731 = arith.constant dense<0.000000e+00> : vector<1xf32>
    %3161 = vector.multi_reduction <add>, %3160, %cst_731 [1, 2] : vector<1x8x128xf32> to vector<1xf32>
    %3162 = vector.shape_cast %3161 : vector<1xf32> to vector<1x1x1xf32>
    %3163 = vector.extract %3162[0, 0, 0] : f32 from vector<1x1x1xf32>
    %3164 = arith.cmpf olt, %3163, %3156 : f32
    %3165 = arith.select %3164, %3049, %3157 : f32
    %3166 = arith.select %3164, %3050, %3158 : f32
    %3167 = arith.select %3164, %3053, %3159 : f32
    %c0_732 = arith.constant 0 : index
    %3168 = memref.load %arg4[%c0_732] : memref<2xf32, #tpu.memory_space<smem>>
    memref.store %3165, %arg4[%c0_732] : memref<2xf32, #tpu.memory_space<smem>>
    %c1 = arith.constant 1 : index
    %3169 = memref.load %arg4[%c1] : memref<2xf32, #tpu.memory_space<smem>>
    memref.store %3167, %arg4[%c1] : memref<2xf32, #tpu.memory_space<smem>>
    %3170 = vector.broadcast %3165 : f32 to vector<8x128xf32>
    %3171 = vector.broadcast %3166 : f32 to vector<8x128xf32>
    %cst_733 = arith.constant 0.000000e+00 : f32
    %3172 = arith.subf %cst_733, %3167 : f32
    %3173 = vector.broadcast %3172 : f32 to vector<8x128xf32>
    %cst_734 = arith.constant 2.550000e+02 : f32
    %3174 = arith.subf %cst_734, %3167 : f32
    %3175 = vector.broadcast %3174 : f32 to vector<8x128xf32>
    %c0_i32_735 = arith.constant 0 : i32
    %c8_i32_736 = arith.constant 8 : i32
    %3176 = arith.muli %c0_i32_735, %c8_i32_736 : i32
    %3177 = tpu.assume_multiple %3176, 8 : i32
    %3178 = arith.index_cast %3177 : i32 to index
    %c0_737 = arith.constant 0 : index
    %3179 = vector.load %arg1[%3178, %c0_737] : memref<16x128xf32, #tpu.memory_space<vmem>>, vector<8x128xf32>
    %3180 = arith.mulf %3179, %3171 : vector<8x128xf32>
    %3181 = math.roundeven %3180 : vector<8x128xf32>
    %3182 = arith.maximumf %3181, %3173 : vector<8x128xf32>
    %3183 = arith.minimumf %3182, %3175 : vector<8x128xf32>
    %3184 = arith.mulf %3183, %3170 : vector<8x128xf32>
    %3185 = arith.index_cast %3177 : i32 to index
    %c0_738 = arith.constant 0 : index
    %3186 = vector.load %arg3[%3185, %c0_738] : memref<16x128xf32, #tpu.memory_space<vmem>>, vector<8x128xf32>
    tpu.vector_store %arg3[%3185, %c0_738], %3184 {strides = array<i32>} : memref<16x128xf32, #tpu.memory_space<vmem>>, vector<8x128xf32>,
    %c1_i32_739 = arith.constant 1 : i32
    %c8_i32_740 = arith.constant 8 : i32
    %3187 = arith.muli %c1_i32_739, %c8_i32_740 : i32
    %3188 = tpu.assume_multiple %3187, 8 : i32
    %3189 = arith.index_cast %3188 : i32 to index
    %c0_741 = arith.constant 0 : index
    %3190 = vector.load %arg1[%3189, %c0_741] : memref<16x128xf32, #tpu.memory_space<vmem>>, vector<8x128xf32>
    %3191 = arith.mulf %3190, %3171 : vector<8x128xf32>
    %3192 = math.roundeven %3191 : vector<8x128xf32>
    %3193 = arith.maximumf %3192, %3173 : vector<8x128xf32>
    %3194 = arith.minimumf %3193, %3175 : vector<8x128xf32>
    %3195 = arith.mulf %3194, %3170 : vector<8x128xf32>
    %3196 = arith.index_cast %3188 : i32 to index
    %c0_742 = arith.constant 0 : index
    %3197 = vector.load %arg3[%3196, %c0_742] : memref<16x128xf32, #tpu.memory_space<vmem>>, vector<8x128xf32>
    tpu.vector_store %arg3[%3196, %c0_742], %3195 {strides = array<i32>} : memref<16x128xf32, #tpu.memory_space<vmem>>, vector<8x128xf32>,
    %c2_i32_743 = arith.constant 2 : i32
    return
  }
  func.func @transform_0(%arg0: i32) -> (i32, i32) {
    %c0_i32 = arith.constant 0 : i32
    %c0_i32_0 = arith.constant 0 : i32
    %c0_i32_1 = arith.constant 0 : i32
    return %c0_i32, %c0_i32_0 : i32, i32
  }
  func.func @transform_1(%arg0: i32) -> i32 {
    %c0_i32 = arith.constant 0 : i32
    %c0_i32_0 = arith.constant 0 : i32
    return %c0_i32 : i32
  }
  func.func @transform_2(%arg0: i32) -> (i32, i32) {
    %c0_i32 = arith.constant 0 : i32
    %c0_i32_0 = arith.constant 0 : i32
    %c0_i32_1 = arith.constant 0 : i32
    return %c0_i32, %c0_i32_0 : i32, i32
  }
  func.func @transform_3(%arg0: i32) -> i32 {
    %c0_i32 = arith.constant 0 : i32
    %c0_i32_0 = arith.constant 0 : i32
    return %c0_i32 : i32
  }
}

</mosaic_0001>

<bundles_post_ra>
// kernel: quantizers_forward.1
= control target key start
LH: loop header
LB: loop body
LE: loop exit
PB: predicated region body
PF: predicated region fallthrough
CT: control target
= control target key end

     0   :  { %s8048_s0 = inlined_call_operand.vmem [shape: f32[16,128], index: 0, kind: input, shape index: {}]   ;;  %s8049_s1 = inlined_call_operand.<no memory space> [shape: f32[1], index: 1, kind: input, shape index: {}]   ;;  %s8050_s2 = inlined_call_operand.vmem [shape: f32[16,128], index: 2, kind: output, shape index: {0}]   ;;  %s8051_s3 = inlined_call_operand.vmem [shape: f32[2], index: 3, kind: output, shape index: {1}]  }
   0x1   :  { %8056 = sst [smem:[#allocation8_spill]] %s8050_s2 }
   0x2   :  { %8057 = sst [smem:[#allocation9_spill]] %s8051_s3 }
   0x3   :  { %v5283_v0 = vld [vmem:[%s8048_s0 + $0x8] sm:$0xff]  ;;  %v5288_v1 = vld [vmem:[%s8048_s0] sm:$0xff] }
   0x4   :  { %10 = vsyncpa [#allocation4], 0  ;;  %36 = vmin.xlane.f32.xlu1 %v5283_v0  ;;  %16 = vmin.xlane.f32.xlu0 %v5288_v1 }
   0x8   :  { %46 = vmax.xlane.f32.xlu1 %v5283_v0  ;;  %25 = vmax.xlane.f32.xlu0 %v5288_v1 }
  0x91   :  { %v37_v2 = vpop.xlane.xlu1 %36  ;;  %v17_v3 = vpop.xlane.xlu0 %16 }
  0x92   :  { %v38_v4 = vrot.slane %v37_v2, 4  ;;  %v18_v5 = vrot.slane %v17_v3, 4 }
  0x94   :  { %v39_v6 = vmin.f32 %v37_v2, %v38_v4  ;;  %v19_v7 = vmin.f32 %v17_v3, %v18_v5 }
  0x95   :  { %v47_v8 = vpop.xlane.xlu1 %46  ;;  %v26_v9 = vpop.xlane.xlu0 %25 }
  0x96   :  { %v40_v10 = vrot.slane %v39_v6, 2  ;;  %v20_v11 = vrot.slane %v19_v7, 2  ;;  %v48_v12 = vrot.slane %v47_v8, 4  ;;  %v27_v13 = vrot.slane %v26_v9, 4 }
  0x98   :  { %v49_v14 = vmax.f32 %v47_v8, %v48_v12  ;;  %v28_v15 = vmax.f32 %v26_v9, %v27_v13  ;;  %v21_v16 = vmin.f32 %v19_v7, %v20_v11  ;;  %v41_v17 = vmin.f32 %v39_v6, %v40_v10 }
  0x9a   :  { %v50_v18 = vrot.slane %v49_v14, 2  ;;  %v29_v19 = vrot.slane %v28_v15, 2  ;;  %v22_v20 = vrot.slane %v21_v16, 1  ;;  %v42_v24 = vrot.slane %v41_v17, 1 }
  0x9c   :  { %v23_v21 = vmin.f32 %v21_v16, %v22_v20  ;;  %v30_v22 = vmax.f32 %v28_v15, %v29_v19  ;;  %v51_v23 = vmax.f32 %v49_v14, %v50_v18  ;;  %v43_v29 = vmin.f32 %v41_v17, %v42_v24 }
  0x9e   :  { %4582 = vpush %v23_v21  ;;  %v31_v25 = vrot.slane %v30_v22, 1  ;;  %v52_v26 = vrot.slane %v51_v23, 1 }
  0xa0   :  { %v32_v27 = vmax.f32 %v30_v22, %v31_v25  ;;  %v53_v28 = vmax.f32 %v51_v23, %v52_v26 }
  0xa2   :  { %4584 = vpush %v32_v27 }
  0xa3   :  { %4586 = vpush %v43_v29 }
  0xa4   :  { %4588 = vpush %v53_v28 }
  0xcf   :  { %s4583_s1 = spop %4582 }
  0xd3   :  { %s4585_s16 = spop %4584 }
  0xd4   :  { %s4587_s17 = spop %4586 }
  0xd5   :  { %s45_s18 = smin.f32 %s4587_s17, %s4583_s1  ;;  %s4589_s19 = spop %4588 }
  0xd6   :  { %s55_s20 = smax.f32 %s4589_s19, %s4585_s16  ;;  %s5323_s29 = ssub.f32 0.0, %s45_s18 }
  0xd7   :  { %s5294_s21 = ssub.f32 %s55_s20, %s45_s18 }
  0xd8   :  { %8058 = sst [smem:[#allocation6_spill]] %s5323_s29 }
  0xd9   :  { %s59_s22 = smul.f32 0.003921569, %s5294_s21  ;;  %s4501_s23 = sadd.f32 -0.01, %s5294_s21 }
  0xda   :  { %s4502_s24 = sadd.f32 -0.02, %s5294_s21 }
  0xdb   :  { %v5301_v30 = vstv %s59_s22  ;;  %s5303_s25 = smul.f32 0.003921569, %s4501_s23  ;;  %s4503_s26 = sadd.f32 -0.03, %s5294_s21 }
  0xdc   :  { %5073 = vrcp.f32 %v5301_v30  ;;  %s5307_s27 = smul.f32 0.003921569, %s4502_s24 }
  0xdd   :  { %v5310_v31 = vstv %s5303_s25  ;;  %s5312_s28 = smul.f32 0.003921569, %s4503_s26 }
  0xde   :  { %5075 = vrcp.f32 %v5310_v31  ;;  %v5316_v32 = vstv %s5307_s27 }
  0xdf   :  { %5077 = vrcp.f32 %v5316_v32  ;;  %v5320_v33 = vstv %s5312_s28 }
  0xe0   :  { %5079 = vrcp.f32 %v5320_v33 }
  0xe6   :  { %v5074_v34 = vpop.eup %5073 }
  0xe7   :  { %4590 = vpush %v5074_v34 }
  0xe8   :  { %v5076_v35 = vpop.eup %5075 }
  0xe9   :  { %v5078_v36 = vpop.eup %5077  ;;  %4592 = vpush %v5076_v35 }
  0xea   :  { %v5080_v37 = vpop.eup %5079  ;;  %4594 = vpush %v5078_v36 }
  0xeb   :  { %4596 = vpush %v5080_v37 }
 0x118   :  { %s5325_s30 = spop %4590 }
 0x119   :  { %s67_s4 = smul.f32 %s5325_s30, %s5323_s29  ;;  %v79_v38 = vstv %s5325_s30 }
 0x11a   :  { %s5329_s5 = spop %4592  ;;  %v157_v39 = vmul.f32 %v79_v38, %v5288_v1  ;;  %v189_v40 = vmul.f32 %v5283_v0, %v79_v38 }
 0x11b   :  { %s68_s6 = scvt.f32.s32 %s67_s4  ;;  %s71_s7 = sand.u32 2147483648, %s67_s4  ;;  %v104_v41 = vstv %s5329_s5 }
 0x11c   :  { %s73_s8 = sand.u32 2147483647, %s67_s4  ;;  %s92_s9 = smul.f32 %s5329_s5, %s5323_s29  ;;  %v165_v42 = vmul.f32 %v104_v41, %v5288_v1  ;;  %v197_v43 = vmul.f32 %v5283_v0, %v104_v41  ;;  %v4598_v44 = vround.rtne.f32 %v157_v39  ;;  %v4602_v45 = vround.rtne.f32 %v189_v40 }
 0x11d   :  { %s69_s10 = scvt.s32.f32 %s68_s6  ;;  %p74_p0 = scmp.lt.f32.partialorder %s73_s8, 2.1474836e+09 }
 0x11e   :  { %s93_s11 = scvt.f32.s32 %s92_s9  ;;  %s96_s12 = sand.u32 2147483648, %s92_s9  ;;  %v4599_v49 = vround.rtne.f32 %v165_v42  ;;  %v4603_v50 = vround.rtne.f32 %v197_v43 }
 0x11f   :  { %s70_s13 = sand.u32 2147483647, %s69_s10  ;;  %s98_s14 = sand.u32 2147483647, %s92_s9 }
 0x120   :  { %s72_s15 = sor.u32 %s71_s7, %s70_s13  ;;  %s94_s1 = scvt.s32.f32 %s93_s11 }
 0x121   :  { %s8085_s15 = smov (!%p74_p0, %s72_s15), %s67_s4  ;;  %p99_p1 = scmp.lt.f32.partialorder %s98_s14, 2.1474836e+09 }
 0x122   :  { %s95_s16 = sand.u32 2147483647, %s94_s1  ;;  %s76_s17 = ssub.f32 0.0, %s8085_s15 }
 0x123   :  { %s97_s18 = sor.u32 %s96_s12, %s95_s16  ;;  %s5344_s19 = spop %4594 }
 0x124   :  { %s8087_s18 = smov (!%p99_p1, %s97_s18), %s92_s9  ;;  %v80_v46 = vstv %s76_s17  ;;  %s77_s20 = ssub.f32 255.0, %s8085_s15  ;;  %v129_v57 = vstv %s5344_s19 }
 0x125   :  { %v159_v47 = vmax.f32 %v4598_v44, %v80_v46  ;;  %v191_v48 = vmax.f32 %v4602_v45, %v80_v46  ;;  %s101_s23 = ssub.f32 0.0, %s8087_s18  ;;  %s5350_s24 = smul.f32 %s5344_s19, %s5323_s29  ;;  %v173_v60 = vmul.f32 %v129_v57, %v5288_v1  ;;  %v205_v2 = vmul.f32 %v5283_v0, %v129_v57 }
 0x126   :  { %s5352_s26 = spop %4596  ;;  %v81_v51 = vstv %s77_s20  ;;  %s102_s4 = ssub.f32 255.0, %s8087_s18 }
 0x127   :  { %v105_v52 = vstv %s101_s23  ;;  %s118_s6 = scvt.f32.s32 %s5350_s24  ;;  %s121_s7 = sand.u32 2147483648, %s5350_s24  ;;  %v160_v53 = vmin.f32 %v159_v47, %v81_v51  ;;  %v192_v54 = vmin.f32 %v191_v48, %v81_v51  ;;  %v154_v3 = vstv %s5352_s26 }
 0x128   :  { %v167_v55 = vmax.f32 %v4599_v49, %v105_v52  ;;  %v199_v56 = vmax.f32 %v4603_v50, %v105_v52  ;;  %s123_s8 = sand.u32 2147483647, %s5350_s24  ;;  %s5361_s9 = smul.f32 %s5352_s26, %s5323_s29  ;;  %v106_v63 = vstv %s102_s4  ;;  %v181_v10 = vmul.f32 %v154_v3, %v5288_v1 }
 0x129   :  { %s119_s10 = scvt.s32.f32 %s118_s6  ;;  %p5363_p2 = scmp.lt.f32.partialorder %s123_s8, 2.1474836e+09  ;;  %v161_v58 = vmul.f32 %v160_v53, %v5301_v30  ;;  %v193_v59 = vmul.f32 %v192_v54, %v5301_v30  ;;  %v213_v11 = vmul.f32 %v5283_v0, %v154_v3  ;;  %v4600_v13 = vround.rtne.f32 %v173_v60 }
 0x12a   :  { %s143_s12 = scvt.f32.s32 %s5361_s9  ;;  %s146_s13 = sand.u32 2147483648, %s5361_s9  ;;  %v168_v4 = vmin.f32 %v167_v55, %v106_v63  ;;  %v200_v5 = vmin.f32 %v199_v56, %v106_v63  ;;  %v4604_v14 = vround.rtne.f32 %v205_v2  ;;  %v4601_v22 = vround.rtne.f32 %v181_v10 }
 0x12b   :  { %s120_s14 = sand.u32 2147483647, %s119_s10  ;;  %s148_s1 = sand.u32 2147483647, %s5361_s9  ;;  %v162_v61 = vsub.f32 %v161_v58, %v5288_v1  ;;  %v194_v62 = vsub.f32 %v193_v59, %v5283_v0  ;;  %v4605_v23 = vround.rtne.f32 %v213_v11 }
 0x12c   :  { %s122_s16 = sor.u32 %s121_s7, %s120_s14  ;;  %s144_s17 = scvt.s32.f32 %s143_s12  ;;  %v169_v8 = vmul.f32 %v168_v4, %v5310_v31  ;;  %v201_v9 = vmul.f32 %v200_v5, %v5310_v31 }
 0x12d   :  { %s8089_s16 = smov (!%p5363_p2, %s122_s16), %s5350_s24  ;;  %v163_v6 = vmul.f32 %v162_v61, %v162_v61  ;;  %v195_v7 = vmul.f32 %v194_v62, %v194_v62  ;;  %p149_p3 = scmp.lt.f32.partialorder %s148_s1, 2.1474836e+09 }
 0x12e   :  { %s145_s20 = sand.u32 2147483647, %s144_s17  ;;  %s126_s23 = ssub.f32 0.0, %s8089_s16  ;;  %v170_v15 = vsub.f32 %v169_v8, %v5288_v1  ;;  %v202_v16 = vsub.f32 %v201_v9, %v5283_v0 }
 0x12f   :  { %s147_s4 = sor.u32 %s146_s13, %s145_s20  ;;  %v196_v12 = vadd.f32 %v195_v7, %v163_v6  ;;  %s127_s24 = ssub.f32 255.0, %s8089_s16 }
 0x130   :  { %s8091_s4 = smov (!%p149_p3, %s147_s4), %s5361_s9  ;;  %v130_v17 = vstv %s126_s23  ;;  %v171_v20 = vmul.f32 %v170_v15, %v170_v15  ;;  %v203_v21 = vmul.f32 %v202_v16, %v202_v16  ;;  %s4504_s8 = sadd.f32 -0.04, %s5294_s21 }
 0x131   :  { %221 = vadd.xlane.f32.xlu0 %v196_v12  ;;  %v175_v18 = vmax.f32 %v4600_v13, %v130_v17  ;;  %v207_v19 = vmax.f32 %v4604_v14, %v130_v17  ;;  %s151_s6 = ssub.f32 0.0, %s8091_s4  ;;  %v131_v24 = vstv %s127_s24 }
 0x132   :  { %s152_s7 = ssub.f32 255.0, %s8091_s4  ;;  %v204_v26 = vadd.f32 %v203_v21, %v171_v20  ;;  %s5407_s12 = smul.f32 0.003921569, %s4504_s8 }
 0x133   :  { %v155_v25 = vstv %s151_s6  ;;  %v176_v27 = vmin.f32 %v175_v18, %v131_v24  ;;  %v208_v28 = vmin.f32 %v207_v19, %v131_v24  ;;  %s4505_s9 = sadd.f32 -0.049999997, %s5294_s21 }
 0x134   :  { %v183_v29 = vmax.f32 %v4601_v22, %v155_v25  ;;  %v215_v30 = vmax.f32 %v4605_v23, %v155_v25  ;;  %235 = vadd.xlane.f32.xlu1 %v204_v26  ;;  %v156_v35 = vstv %s152_s7  ;;  %s4506_s10 = sadd.f32 -0.06, %s5294_s21  ;;  %v5416_v4 = vstv %s5407_s12 }
 0x135   :  { %v177_v31 = vmul.f32 %v176_v27, %v5316_v32  ;;  %v209_v34 = vmul.f32 %v208_v28, %v5316_v32  ;;  %s4507_s11 = sadd.f32 -0.07, %s5294_s21  ;;  %s5409_s13 = smul.f32 0.003921569, %s4505_s9  ;;  %5081 = vrcp.f32 %v5416_v4 }
 0x136   :  { %v184_v36 = vmin.f32 %v183_v29, %v156_v35  ;;  %v216_v37 = vmin.f32 %v215_v30, %v156_v35  ;;  %s5411_s14 = smul.f32 0.003921569, %s4506_s10 }
 0x137   :  { %v178_v38 = vsub.f32 %v177_v31, %v5288_v1  ;;  %v210_v39 = vsub.f32 %v209_v34, %v5283_v0  ;;  %s5413_s1 = smul.f32 0.003921569, %s4507_s11  ;;  %v5419_v6 = vstv %s5409_s13 }
 0x138   :  { %v185_v40 = vmul.f32 %v184_v36, %v5320_v33  ;;  %v217_v41 = vmul.f32 %v216_v37, %v5320_v33  ;;  %v5422_v8 = vstv %s5411_s14  ;;  %5083 = vrcp.f32 %v5419_v6 }
 0x139   :  { %v179_v42 = vmul.f32 %v178_v38, %v178_v38  ;;  %v211_v43 = vmul.f32 %v210_v39, %v210_v39  ;;  %v5426_v10 = vstv %s5413_s1  ;;  %5085 = vrcp.f32 %v5422_v8 }
 0x13a   :  { %v186_v44 = vsub.f32 %v185_v40, %v5288_v1  ;;  %v218_v45 = vsub.f32 %v217_v41, %v5283_v0  ;;  %5087 = vrcp.f32 %v5426_v10 }
 0x13b   :  { %v212_v46 = vadd.f32 %v211_v43, %v179_v42 }
 0x13c   :  { %v187_v32 = vmul.f32 %v186_v44, %v186_v44  ;;  %v219_v47 = vmul.f32 %v218_v45, %v218_v45 }
 0x13d   :  { %249 = vadd.xlane.f32.xlu0 %v212_v46 }
 0x13e   :  { %v220_v48 = vadd.f32 %v219_v47, %v187_v32 }
 0x13f   :  { %v5082_v18 = vpop.eup %5081 }
 0x140   :  { %263 = vadd.xlane.f32.xlu1 %v220_v48 }
 0x142   :  { %v5084_v19 = vpop.eup %5083 }
 0x143   :  { %v5086_v20 = vpop.eup %5085 }
 0x144   :  { %v5088_v21 = vpop.eup %5087 }
 0x1be   :  { %v222_v49 = vpop.xlane.xlu0 %221 }
 0x1bf   :  { %v223_v50 = vrot.slane %v222_v49, 4 }
 0x1c1   :  { %v224_v51 = vadd.f32 %v223_v50, %v222_v49  ;;  %v236_v52 = vpop.xlane.xlu1 %235 }
 0x1c2   :  { %v237_v53 = vrot.slane %v236_v52, 4 }
 0x1c3   :  { %v225_v33 = vrot.slane %v224_v51, 2 }
 0x1c4   :  { %v238_v55 = vadd.f32 %v237_v53, %v236_v52 }
 0x1c5   :  { %v226_v54 = vadd.f32 %v225_v33, %v224_v51 }
 0x1c6   :  { %v239_v57 = vrot.slane %v238_v55, 2 }
 0x1c7   :  { %v227_v56 = vrot.slane %v226_v54, 1 }
 0x1c8   :  { %v240_v59 = vadd.f32 %v239_v57, %v238_v55 }
 0x1c9   :  { %v228_v58 = vadd.f32 %v227_v56, %v226_v54 }
 0x1ca   :  { %v250_v60 = vpop.xlane.xlu0 %249  ;;  %v241_v62 = vrot.slane %v240_v59, 1 }
 0x1cb   :  { %4606 = vpush %v228_v58  ;;  %v251_v61 = vrot.slane %v250_v60, 4 }
 0x1cc   :  { %v242_v3 = vadd.f32 %v241_v62, %v240_v59 }
 0x1cd   :  { %v252_v63 = vadd.f32 %v251_v61, %v250_v60  ;;  %v264_v2 = vpop.xlane.xlu1 %263 }
 0x1ce   :  { %v265_v5 = vrot.slane %v264_v2, 4  ;;  %4608 = vpush %v242_v3 }
 0x1cf   :  { %v253_v7 = vrot.slane %v252_v63, 2 }
 0x1d0   :  { %v266_v9 = vadd.f32 %v265_v5, %v264_v2 }
 0x1d1   :  { %v254_v11 = vadd.f32 %v253_v7, %v252_v63 }
 0x1d2   :  { %v267_v12 = vrot.slane %v266_v9, 2 }
 0x1d3   :  { %v255_v13 = vrot.slane %v254_v11, 1 }
 0x1d4   :  { %v268_v14 = vadd.f32 %v267_v12, %v266_v9 }
 0x1d5   :  { %v256_v15 = vadd.f32 %v255_v13, %v254_v11 }
 0x1d6   :  { %v269_v16 = vrot.slane %v268_v14, 1 }
 0x1d7   :  { %4610 = vpush %v256_v15 }
 0x1d8   :  { %v270_v17 = vadd.f32 %v269_v16, %v268_v14 }
 0x1da   :  { %4612 = vpush %v270_v17 }
 0x1db   :  { %4614 = vpush %v5082_v18 }
 0x1dc   :  { %4616 = vpush %v5084_v19 }
 0x1dd   :  { %4618 = vpush %v5086_v20 }
 0x1de   :  { %4620 = vpush %v5088_v21 }
 0x1fc   :  { %s4607_s17 = spop %4606 }
 0x1fd   :  { %p230_p4 = scmp.lt.f32.partialorder %s4607_s17, inf }
 0x1ff   :  { %s8093_s17 = smov (!%p230_p4, %s4607_s17), inf  ;;  %s8095_s22 = smov (!%p230_p4, %s59_s22), 1.0 }
 0x200   :  { %s8097_s30 = smov (!%p230_p4, %s5325_s30), 1.0  ;;  %s4609_s20 = spop %4608 }
 0x201   :  { %p244_p5 = scmp.lt.f32.partialorder %s4609_s20, %s8093_s17  ;;  %s8099_s15 = smov (!%p230_p4, %s8085_s15), 0.0 }
 0x203   :  { %s8101_s20 = smov (!%p244_p5, %s4609_s20), %s8093_s17  ;;  %s8103_s25 = smov (!%p244_p5, %s5303_s25), %s8095_s22 }
 0x204   :  { %s8105_s5 = smov (!%p244_p5, %s5329_s5), %s8097_s30  ;;  %s8107_s18 = smov (!%p244_p5, %s8087_s18), %s8099_s15 }
 0x208   :  { %s4611_s23 = spop %4610 }
 0x209   :  { %p258_p6 = scmp.lt.f32.partialorder %s4611_s23, %s8101_s20 }
 0x20b   :  { %s5438_s24 = spop %4612  ;;  %s8109_s23 = smov (!%p258_p6, %s4611_s23), %s8101_s20 }
 0x20c   :  { %s8111_s27 = smov (!%p258_p6, %s5307_s27), %s8103_s25  ;;  %s8113_s19 = smov (!%p258_p6, %s5344_s19), %s8105_s5 }
 0x20d   :  { %s8115_s16 = smov (!%p258_p6, %s8089_s16), %s8107_s18  ;;  %p272_p7 = scmp.lt.f32.partialorder %s5438_s24, %s8109_s23 }
 0x20e   :  { %s5447_s22 = spop %4614 }
 0x20f   :  { %s287_s30 = smul.f32 %s5447_s22, %s5323_s29  ;;  %s5451_s15 = spop %4616  ;;  %v299_v22 = vstv %s5447_s22 }
 0x210   :  { %s8117_s28 = smov (!%p272_p7, %s5312_s28), %s8111_s27  ;;  %s8119_s26 = smov (!%p272_p7, %s5352_s26), %s8113_s19  ;;  %v377_v23 = vmul.f32 %v299_v22, %v5288_v1  ;;  %v409_v24 = vmul.f32 %v5283_v0, %v299_v22  ;;  %v324_v25 = vstv %s5451_s15 }
 0x211   :  { %s8121_s4 = smov (!%p272_p7, %s8091_s4), %s8115_s16  ;;  %s288_s25 = scvt.f32.s32 %s287_s30  ;;  %v385_v26 = vmul.f32 %v324_v25, %v5288_v1  ;;  %v417_v27 = vmul.f32 %v5283_v0, %v324_v25 }
 0x212   :  { %s291_s5 = sand.u32 2147483648, %s287_s30  ;;  %s293_s18 = sand.u32 2147483647, %s287_s30  ;;  %v4622_v28 = vround.rtne.f32 %v377_v23  ;;  %v4626_v29 = vround.rtne.f32 %v409_v24 }
 0x213   :  { %s312_s6 = smul.f32 %s5451_s15, %s5323_s29  ;;  %s289_s7 = scvt.s32.f32 %s288_s25  ;;  %v4623_v35 = vround.rtne.f32 %v385_v26  ;;  %v4627_v36 = vround.rtne.f32 %v417_v27 }
 0x214   :  { %p294_p8 = scmp.lt.f32.partialorder %s293_s18, 2.1474836e+09  ;;  %s8131_s24 = smov (!%p272_p7, %s5438_s24), %s8109_s23 }
 0x215   :  { %s313_s8 = scvt.f32.s32 %s312_s6  ;;  %s316_s9 = sand.u32 2147483648, %s312_s6 }
 0x216   :  { %s290_s10 = sand.u32 2147483647, %s289_s7  ;;  %s318_s11 = sand.u32 2147483647, %s312_s6 }
 0x217   :  { %s292_s27 = sor.u32 %s291_s5, %s290_s10  ;;  %s314_s19 = scvt.s32.f32 %s313_s8 }
 0x218   :  { %s8123_s27 = smov (!%p294_p8, %s292_s27), %s287_s30  ;;  %p319_p9 = scmp.lt.f32.partialorder %s318_s11, 2.1474836e+09 }
 0x219   :  { %s315_s16 = sand.u32 2147483647, %s314_s19  ;;  %s296_s17 = ssub.f32 0.0, %s8123_s27 }
 0x21a   :  { %s317_s20 = sor.u32 %s316_s9, %s315_s16  ;;  %s5484_s30 = spop %4618 }
 0x21b   :  { %s8125_s20 = smov (!%p319_p9, %s317_s20), %s312_s6  ;;  %v300_v30 = vstv %s296_s17  ;;  %s297_s25 = ssub.f32 255.0, %s8123_s27  ;;  %v349_v43 = vstv %s5484_s30 }
 0x21c   :  { %v379_v31 = vmax.f32 %v4622_v28, %v300_v30  ;;  %v411_v34 = vmax.f32 %v4626_v29, %v300_v30  ;;  %s321_s5 = ssub.f32 0.0, %s8125_s20  ;;  %s5490_s18 = smul.f32 %s5484_s30, %s5323_s29  ;;  %v393_v48 = vmul.f32 %v349_v43, %v5288_v1  ;;  %v425_v49 = vmul.f32 %v5283_v0, %v349_v43 }
 0x21d   :  { %s5492_s6 = spop %4620  ;;  %s322_s7 = ssub.f32 255.0, %s8125_s20  ;;  %v301_v37 = vstv %s297_s25 }
 0x21e   :  { %v325_v38 = vstv %s321_s5  ;;  %s338_s8 = scvt.f32.s32 %s5490_s18  ;;  %s341_s9 = sand.u32 2147483648, %s5490_s18  ;;  %v380_v39 = vmin.f32 %v379_v31, %v301_v37  ;;  %v412_v40 = vmin.f32 %v411_v34, %v301_v37  ;;  %v374_v51 = vstv %s5492_s6 }
 0x21f   :  { %v387_v41 = vmax.f32 %v4623_v35, %v325_v38  ;;  %v419_v42 = vmax.f32 %v4627_v36, %v325_v38  ;;  %s343_s10 = sand.u32 2147483647, %s5490_s18  ;;  %s5501_s11 = smul.f32 %s5492_s6, %s5323_s29  ;;  %v326_v44 = vstv %s322_s7  ;;  %v4624_v58 = vround.rtne.f32 %v393_v48 }
 0x220   :  { %s339_s19 = scvt.s32.f32 %s338_s8  ;;  %p5503_p10 = scmp.lt.f32.partialorder %s343_s10, 2.1474836e+09  ;;  %v381_v45 = vmul.f32 %v380_v39, %v5416_v4  ;;  %v413_v47 = vmul.f32 %v412_v40, %v5416_v4  ;;  %v401_v59 = vmul.f32 %v374_v51, %v5288_v1  ;;  %v433_v60 = vmul.f32 %v5283_v0, %v374_v51 }
 0x221   :  { %s363_s17 = scvt.f32.s32 %s5501_s11  ;;  %s366_s25 = sand.u32 2147483648, %s5501_s11  ;;  %v388_v46 = vmin.f32 %v387_v41, %v326_v44  ;;  %v420_v32 = vmin.f32 %v419_v42, %v326_v44  ;;  %v4628_v61 = vround.rtne.f32 %v425_v49 }
 0x222   :  { %s340_s5 = sand.u32 2147483647, %s339_s19  ;;  %s368_s8 = sand.u32 2147483647, %s5501_s11  ;;  %v382_v50 = vsub.f32 %v381_v45, %v5288_v1  ;;  %v414_v53 = vsub.f32 %v413_v47, %v5283_v0  ;;  %v4625_v7 = vround.rtne.f32 %v401_v59  ;;  %v4629_v9 = vround.rtne.f32 %v433_v60 }
 0x223   :  { %s342_s10 = sor.u32 %s341_s9, %s340_s5  ;;  %s364_s7 = scvt.s32.f32 %s363_s17  ;;  %v389_v33 = vmul.f32 %v388_v46, %v5419_v6  ;;  %v421_v52 = vmul.f32 %v420_v32, %v5419_v6 }
 0x224   :  { %s8127_s10 = smov (!%p5503_p10, %s342_s10), %s5490_s18  ;;  %v383_v54 = vmul.f32 %v382_v50, %v382_v50  ;;  %p369_p11 = scmp.lt.f32.partialorder %s368_s8, 2.1474836e+09  ;;  %v415_v57 = vmul.f32 %v414_v53, %v414_v53 }
 0x225   :  { %s365_s19 = sand.u32 2147483647, %s364_s7  ;;  %v390_v55 = vsub.f32 %v389_v33, %v5288_v1  ;;  %v422_v56 = vsub.f32 %v421_v52, %v5283_v0  ;;  %s346_s9 = ssub.f32 0.0, %s8127_s10 }
 0x226   :  { %s367_s17 = sor.u32 %s366_s25, %s365_s19  ;;  %v416_v2 = vadd.f32 %v415_v57, %v383_v54  ;;  %s347_s18 = ssub.f32 255.0, %s8127_s10 }
 0x227   :  { %s8129_s17 = smov (!%p369_p11, %s367_s17), %s5501_s11  ;;  %v391_v62 = vmul.f32 %v390_v55, %v390_v55  ;;  %v423_v63 = vmul.f32 %v422_v56, %v422_v56  ;;  %v350_v3 = vstv %s346_s9  ;;  %s4508_s11 = sadd.f32 -0.08, %s5294_s21 }
 0x228   :  { %v395_v4 = vmax.f32 %v4624_v58, %v350_v3  ;;  %v427_v5 = vmax.f32 %v4628_v61, %v350_v3  ;;  %s371_s16 = ssub.f32 0.0, %s8129_s17  ;;  %441 = vadd.xlane.f32.xlu0 %v416_v2  ;;  %v351_v11 = vstv %s347_s18 }
 0x229   :  { %v424_v6 = vadd.f32 %v423_v63, %v391_v62  ;;  %s372_s25 = ssub.f32 255.0, %s8129_s17  ;;  %s5547_s19 = smul.f32 0.003921569, %s4508_s11 }
 0x22a   :  { %v375_v12 = vstv %s371_s16  ;;  %v396_v13 = vmin.f32 %v395_v4, %v351_v11  ;;  %v428_v14 = vmin.f32 %v427_v5, %v351_v11  ;;  %s4509_s5 = sadd.f32 -0.089999996, %s5294_s21 }
 0x22b   :  { %455 = vadd.xlane.f32.xlu1 %v424_v6  ;;  %v403_v15 = vmax.f32 %v4625_v7, %v375_v12  ;;  %v435_v16 = vmax.f32 %v4629_v9, %v375_v12  ;;  %v376_v17 = vstv %s372_s25  ;;  %s4510_s8 = sadd.f32 -0.099999994, %s5294_s21  ;;  %v5556_v51 = vstv %s5547_s19 }
 0x22c   :  { %v397_v18 = vmul.f32 %v396_v13, %v5422_v8  ;;  %v429_v19 = vmul.f32 %v428_v14, %v5422_v8  ;;  %s4511_s7 = sadd.f32 -0.11, %s5294_s21  ;;  %s5549_s9 = smul.f32 0.003921569, %s4509_s5  ;;  %5089 = vrcp.f32 %v5556_v51 }
 0x22d   :  { %v404_v20 = vmin.f32 %v403_v15, %v376_v17  ;;  %v436_v21 = vmin.f32 %v435_v16, %v376_v17  ;;  %s5551_s18 = smul.f32 0.003921569, %s4510_s8 }
 0x22e   :  { %v398_v22 = vsub.f32 %v397_v18, %v5288_v1  ;;  %v430_v23 = vsub.f32 %v429_v19, %v5283_v0  ;;  %s5553_s16 = smul.f32 0.003921569, %s4511_s7  ;;  %v5559_v52 = vstv %s5549_s9 }
 0x22f   :  { %v405_v24 = vmul.f32 %v404_v20, %v5426_v10  ;;  %v437_v25 = vmul.f32 %v436_v21, %v5426_v10  ;;  %v5562_v54 = vstv %s5551_s18  ;;  %5091 = vrcp.f32 %v5559_v52 }
 0x230   :  { %v399_v26 = vmul.f32 %v398_v22, %v398_v22  ;;  %v431_v27 = vmul.f32 %v430_v23, %v430_v23  ;;  %8061 = sst [smem:[#allocation7_spill]] %s5553_s16  ;;  %v5566_v56 = vstv %s5553_s16  ;;  %5093 = vrcp.f32 %v5562_v54 }
 0x231   :  { %v406_v28 = vsub.f32 %v405_v24, %v5288_v1  ;;  %v438_v29 = vsub.f32 %v437_v25, %v5283_v0  ;;  %5095 = vrcp.f32 %v5566_v56 }
 0x232   :  { %v432_v30 = vadd.f32 %v431_v27, %v399_v26 }
 0x233   :  { %v407_v8 = vmul.f32 %v406_v28, %v406_v28  ;;  %v439_v31 = vmul.f32 %v438_v29, %v438_v29 }
 0x234   :  { %469 = vadd.xlane.f32.xlu0 %v432_v30 }
 0x235   :  { %v440_v34 = vadd.f32 %v439_v31, %v407_v8  ;;  %v5661_v8 = vld [vmem:[%s8048_s0] sm:$0xff] }
 0x236   :  { %v5090_v2 = vpop.eup %5089 }
 0x237   :  { %483 = vadd.xlane.f32.xlu1 %v440_v34  ;;  %v5667_v34 = vld [vmem:[%s8048_s0 + $0x8] sm:$0xff] }
 0x239   :  { %v5092_v3 = vpop.eup %5091 }
 0x23a   :  { %v5094_v4 = vpop.eup %5093 }
 0x23b   :  { %v5096_v5 = vpop.eup %5095 }
 0x2b5   :  { %v442_v35 = vpop.xlane.xlu0 %441 }
 0x2b6   :  { %v443_v36 = vrot.slane %v442_v35, 4 }
 0x2b8   :  { %v456_v37 = vpop.xlane.xlu1 %455  ;;  %v444_v38 = vadd.f32 %v443_v36, %v442_v35 }
 0x2b9   :  { %v457_v10 = vrot.slane %v456_v37, 4 }
 0x2ba   :  { %v445_v40 = vrot.slane %v444_v38, 2 }
 0x2bb   :  { %v458_v39 = vadd.f32 %v457_v10, %v456_v37 }
 0x2bc   :  { %v446_v42 = vadd.f32 %v445_v40, %v444_v38 }
 0x2bd   :  { %v459_v41 = vrot.slane %v458_v39, 2 }
 0x2be   :  { %v447_v43 = vrot.slane %v446_v42, 1 }
 0x2bf   :  { %v460_v44 = vadd.f32 %v459_v41, %v458_v39 }
 0x2c0   :  { %v448_v45 = vadd.f32 %v447_v43, %v446_v42 }
 0x2c1   :  { %v461_v46 = vrot.slane %v460_v44, 1  ;;  %v470_v32 = vpop.xlane.xlu0 %469 }
 0x2c2   :  { %v471_v47 = vrot.slane %v470_v32, 4  ;;  %4630 = vpush %v448_v45 }
 0x2c3   :  { %v462_v48 = vadd.f32 %v461_v46, %v460_v44 }
 0x2c4   :  { %v484_v49 = vpop.xlane.xlu1 %483  ;;  %v472_v50 = vadd.f32 %v471_v47, %v470_v32 }
 0x2c5   :  { %4632 = vpush %v462_v48  ;;  %v485_v33 = vrot.slane %v484_v49, 4 }
 0x2c6   :  { %v473_v53 = vrot.slane %v472_v50, 2 }
 0x2c7   :  { %v486_v55 = vadd.f32 %v485_v33, %v484_v49 }
 0x2c8   :  { %v474_v57 = vadd.f32 %v473_v53, %v472_v50 }
 0x2c9   :  { %v487_v58 = vrot.slane %v486_v55, 2 }
 0x2ca   :  { %v475_v59 = vrot.slane %v474_v57, 1 }
 0x2cb   :  { %v488_v60 = vadd.f32 %v487_v58, %v486_v55 }
 0x2cc   :  { %v476_v61 = vadd.f32 %v475_v59, %v474_v57 }
 0x2cd   :  { %v489_v62 = vrot.slane %v488_v60, 1 }
 0x2ce   :  { %4634 = vpush %v476_v61 }
 0x2cf   :  { %v490_v63 = vadd.f32 %v489_v62, %v488_v60 }
 0x2d1   :  { %4636 = vpush %v490_v63 }
 0x2d2   :  { %4638 = vpush %v5090_v2 }
 0x2d3   :  { %4640 = vpush %v5092_v3 }
 0x2d4   :  { %4642 = vpush %v5094_v4 }
 0x2d5   :  { %4644 = vpush %v5096_v5 }
 0x2f3   :  { %s4631_s25 = spop %4630 }
 0x2f4   :  { %p450_p12 = scmp.lt.f32.partialorder %s4631_s25, %s8131_s24 }
 0x2f6   :  { %s4633_s11 = spop %4632  ;;  %s8133_s25 = smov (!%p450_p12, %s4631_s25), %s8131_s24 }
 0x2f7   :  { %s8135_s12 = smov (!%p450_p12, %s5407_s12), %s8117_s28  ;;  %s8137_s22 = smov (!%p450_p12, %s5447_s22), %s8119_s26 }
 0x2f8   :  { %s8139_s27 = smov (!%p450_p12, %s8123_s27), %s8121_s4  ;;  %p464_p13 = scmp.lt.f32.partialorder %s4633_s11, %s8133_s25 }
 0x2fa   :  { %s8141_s11 = smov (!%p464_p13, %s4633_s11), %s8133_s25  ;;  %s8143_s13 = smov (!%p464_p13, %s5409_s13), %s8135_s12 }
 0x2fb   :  { %s8145_s15 = smov (!%p464_p13, %s5451_s15), %s8137_s22  ;;  %s8147_s20 = smov (!%p464_p13, %s8125_s20), %s8139_s27 }
 0x2ff   :  { %s4635_s23 = spop %4634 }
 0x300   :  { %p478_p0 = scmp.lt.f32.partialorder %s4635_s23, %s8141_s11 }
 0x302   :  { %s5585_s5 = spop %4636  ;;  %s8149_s23 = smov (!%p478_p0, %s4635_s23), %s8141_s11 }
 0x303   :  { %s8151_s14 = smov (!%p478_p0, %s5411_s14), %s8143_s13  ;;  %s8153_s30 = smov (!%p478_p0, %s5484_s30), %s8145_s15 }
 0x304   :  { %s8155_s10 = smov (!%p478_p0, %s8127_s10), %s8147_s20  ;;  %p492_p1 = scmp.lt.f32.partialorder %s5585_s5, %s8149_s23 }
 0x305   :  { %s5594_s28 = spop %4638 }
 0x306   :  { %s507_s26 = smul.f32 %s5594_s28, %s5323_s29  ;;  %s5598_s4 = spop %4640  ;;  %v519_v6 = vstv %s5594_s28 }
 0x307   :  { %s8157_s1 = smov (!%p492_p1, %s5413_s1), %s8151_s14  ;;  %s8159_s6 = smov (!%p492_p1, %s5492_s6), %s8153_s30  ;;  %v597_v7 = vmul.f32 %v519_v6, %v5288_v1  ;;  %v629_v9 = vmul.f32 %v5283_v0, %v519_v6  ;;  %v544_v11 = vstv %s5598_s4 }
 0x308   :  { %s8161_s17 = smov (!%p492_p1, %s8129_s17), %s8155_s10  ;;  %s508_s12 = scvt.f32.s32 %s507_s26  ;;  %v605_v12 = vmul.f32 %v544_v11, %v5288_v1  ;;  %v637_v13 = vmul.f32 %v5283_v0, %v544_v11 }
 0x309   :  { %s511_s13 = sand.u32 2147483648, %s507_s26  ;;  %s513_s24 = sand.u32 2147483647, %s507_s26  ;;  %v4646_v14 = vround.rtne.f32 %v597_v7  ;;  %v4650_v15 = vround.rtne.f32 %v629_v9 }
 0x30a   :  { %s532_s22 = smul.f32 %s5598_s4, %s5323_s29  ;;  %s509_s15 = scvt.s32.f32 %s508_s12  ;;  %v4647_v0 = vround.rtne.f32 %v605_v12  ;;  %v4651_v1 = vround.rtne.f32 %v637_v13 }
 0x30b   :  { %p514_p2 = scmp.lt.f32.partialorder %s513_s24, 2.1474836e+09  ;;  %s8171_s5 = smov (!%p492_p1, %s5585_s5), %s8149_s23 }
 0x30c   :  { %s533_s27 = scvt.f32.s32 %s532_s22  ;;  %s536_s20 = sand.u32 2147483648, %s532_s22 }
 0x30d   :  { %s510_s8 = sand.u32 2147483647, %s509_s15  ;;  %s538_s7 = sand.u32 2147483647, %s532_s22 }
 0x30e   :  { %s512_s14 = sor.u32 %s511_s13, %s510_s8  ;;  %s534_s30 = scvt.s32.f32 %s533_s27 }
 0x30f   :  { %s8163_s14 = smov (!%p514_p2, %s512_s14), %s507_s26  ;;  %p539_p3 = scmp.lt.f32.partialorder %s538_s7, 2.1474836e+09 }
 0x310   :  { %s535_s10 = sand.u32 2147483647, %s534_s30  ;;  %s516_s25 = ssub.f32 0.0, %s8163_s14 }
 0x311   :  { %s537_s11 = sor.u32 %s536_s20, %s535_s10  ;;  %s5631_s26 = spop %4642 }
 0x312   :  { %s8165_s11 = smov (!%p539_p3, %s537_s11), %s532_s22  ;;  %v520_v16 = vstv %s516_s25  ;;  %s517_s12 = ssub.f32 255.0, %s8163_s14  ;;  %v569_v25 = vstv %s5631_s26 }
 0x313   :  { %v599_v17 = vmax.f32 %v4646_v14, %v520_v16  ;;  %v631_v18 = vmax.f32 %v4650_v15, %v520_v16  ;;  %s541_s13 = ssub.f32 0.0, %s8165_s11  ;;  %s5637_s24 = smul.f32 %s5631_s26, %s5323_s29  ;;  %v613_v31 = vmul.f32 %v5661_v8, %v569_v25  ;;  %v645_v35 = vmul.f32 %v5667_v34, %v569_v25 }
 0x314   :  { %s5639_s22 = spop %4644  ;;  %s542_s15 = ssub.f32 255.0, %s8165_s11  ;;  %v521_v19 = vstv %s517_s12 }
 0x315   :  { %v545_v20 = vstv %s541_s13  ;;  %s558_s27 = scvt.f32.s32 %s5637_s24  ;;  %s561_s20 = sand.u32 2147483648, %s5637_s24  ;;  %v600_v21 = vmin.f32 %v599_v17, %v521_v19  ;;  %v632_v22 = vmin.f32 %v631_v18, %v521_v19  ;;  %v594_v37 = vstv %s5639_s22 }
 0x316   :  { %v607_v23 = vmax.f32 %v4647_v0, %v545_v20  ;;  %v639_v24 = vmax.f32 %v4651_v1, %v545_v20  ;;  %s563_s8 = sand.u32 2147483647, %s5637_s24  ;;  %s5648_s7 = smul.f32 %s5639_s22, %s5323_s29  ;;  %v546_v26 = vstv %s542_s15  ;;  %v4648_v44 = vround.rtne.f32 %v613_v31 }
 0x317   :  { %s559_s30 = scvt.s32.f32 %s558_s27  ;;  %p5650_p4 = scmp.lt.f32.partialorder %s563_s8, 2.1474836e+09  ;;  %v601_v27 = vmul.f32 %v600_v21, %v5556_v51  ;;  %v633_v30 = vmul.f32 %v632_v22, %v5556_v51  ;;  %v621_v45 = vmul.f32 %v5661_v8, %v594_v37  ;;  %v653_v46 = vmul.f32 %v5667_v34, %v594_v37 }
 0x318   :  { %s583_s25 = scvt.f32.s32 %s5648_s7  ;;  %s586_s12 = sand.u32 2147483648, %s5648_s7  ;;  %v608_v28 = vmin.f32 %v607_v23, %v546_v26  ;;  %v640_v29 = vmin.f32 %v639_v24, %v546_v26  ;;  %v4652_v32 = vround.rtne.f32 %v645_v35 }
 0x319   :  { %s560_s13 = sand.u32 2147483647, %s559_s30  ;;  %s588_s8 = sand.u32 2147483647, %s5648_s7  ;;  %v602_v36 = vsub.f32 %v601_v27, %v5661_v8  ;;  %v634_v39 = vsub.f32 %v633_v30, %v5667_v34  ;;  %v4649_v53 = vround.rtne.f32 %v621_v45  ;;  %v4653_v55 = vround.rtne.f32 %v653_v46 }
 0x31a   :  { %s562_s16 = sor.u32 %s561_s20, %s560_s13  ;;  %s584_s29 = scvt.s32.f32 %s583_s25  ;;  %v609_v10 = vmul.f32 %v608_v28, %v5559_v52  ;;  %v641_v38 = vmul.f32 %v640_v29, %v5559_v52 }
 0x31b   :  { %s8167_s16 = smov (!%p5650_p4, %s562_s16), %s5637_s24  ;;  %v603_v40 = vmul.f32 %v602_v36, %v602_v36  ;;  %p589_p5 = scmp.lt.f32.partialorder %s588_s8, 2.1474836e+09  ;;  %v635_v43 = vmul.f32 %v634_v39, %v634_v39 }
 0x31c   :  { %s585_s2 = sand.u32 2147483647, %s584_s29  ;;  %v610_v41 = vsub.f32 %v609_v10, %v5661_v8  ;;  %v642_v42 = vsub.f32 %v641_v38, %v5667_v34  ;;  %s566_s3 = ssub.f32 0.0, %s8167_s16 }
 0x31d   :  { %s587_s20 = sor.u32 %s586_s12, %s585_s2  ;;  %v636_v49 = vadd.f32 %v635_v43, %v603_v40  ;;  %s567_s29 = ssub.f32 255.0, %s8167_s16 }
 0x31e   :  { %s8169_s20 = smov (!%p589_p5, %s587_s20), %s5648_s7  ;;  %v611_v47 = vmul.f32 %v610_v41, %v610_v41  ;;  %v643_v48 = vmul.f32 %v642_v42, %v642_v42  ;;  %v570_v50 = vstv %s566_s3  ;;  %s4512_s7 = sadd.f32 -0.12, %s5294_s21 }
 0x31f   :  { %v615_v51 = vmax.f32 %v4648_v44, %v570_v50  ;;  %v647_v33 = vmax.f32 %v4652_v32, %v570_v50  ;;  %s591_s24 = ssub.f32 0.0, %s8169_s20  ;;  %661 = vadd.xlane.f32.xlu0 %v636_v49  ;;  %v571_v57 = vstv %s567_s29  ;;  %s8063_s29 = sld [smem:[#allocation6_spill]] }
 0x320   :  { %v644_v52 = vadd.f32 %v643_v48, %v611_v47  ;;  %s592_s30 = ssub.f32 255.0, %s8169_s20  ;;  %s5704_s13 = smul.f32 0.003921569, %s4512_s7 }
 0x321   :  { %v595_v58 = vstv %s591_s24  ;;  %v616_v59 = vmin.f32 %v615_v51, %v571_v57  ;;  %v648_v60 = vmin.f32 %v647_v33, %v571_v57  ;;  %s4513_s10 = sadd.f32 -0.13, %s5294_s21  ;;  %s8064_s24 = sld [smem:[#allocation7_spill]] }
 0x322   :  { %675 = vadd.xlane.f32.xlu1 %v644_v52  ;;  %v623_v61 = vmax.f32 %v4649_v53, %v595_v58  ;;  %v655_v62 = vmax.f32 %v4653_v55, %v595_v58  ;;  %v596_v63 = vstv %s592_s30  ;;  %s4514_s25 = sadd.f32 -0.14, %s5294_s21  ;;  %v5713_v37 = vstv %s5704_s13 }
 0x323   :  { %v617_v2 = vmul.f32 %v616_v59, %v5562_v54  ;;  %v649_v3 = vmul.f32 %v648_v60, %v5562_v54  ;;  %s4515_s12 = sadd.f32 -0.14999999, %s5294_s21  ;;  %s5706_s15 = smul.f32 0.003921569, %s4513_s10  ;;  %5097 = vrcp.f32 %v5713_v37 }
 0x324   :  { %v624_v4 = vmin.f32 %v623_v61, %v596_v63  ;;  %v656_v5 = vmin.f32 %v655_v62, %v596_v63  ;;  %s5708_s27 = smul.f32 0.003921569, %s4514_s25 }
 0x325   :  { %v618_v6 = vsub.f32 %v617_v2, %v5661_v8  ;;  %v650_v7 = vsub.f32 %v649_v3, %v5667_v34  ;;  %s5710_s8 = smul.f32 0.003921569, %s4515_s12  ;;  %v5716_v38 = vstv %s5706_s15 }
 0x326   :  { %v625_v9 = vmul.f32 %v624_v4, %v5566_v56  ;;  %v657_v11 = vmul.f32 %v656_v5, %v5566_v56  ;;  %v5719_v40 = vstv %s5708_s27  ;;  %5099 = vrcp.f32 %v5716_v38 }
 0x327   :  { %v619_v12 = vmul.f32 %v618_v6, %v618_v6  ;;  %v651_v13 = vmul.f32 %v650_v7, %v650_v7  ;;  %v5723_v42 = vstv %s5710_s8  ;;  %5101 = vrcp.f32 %v5719_v40 }
 0x328   :  { %v626_v14 = vsub.f32 %v625_v9, %v5661_v8  ;;  %v658_v15 = vsub.f32 %v657_v11, %v5667_v34  ;;  %5103 = vrcp.f32 %v5723_v42 }
 0x329   :  { %v652_v16 = vadd.f32 %v651_v13, %v619_v12 }
 0x32a   :  { %v627_v54 = vmul.f32 %v626_v14, %v626_v14  ;;  %v659_v17 = vmul.f32 %v658_v15, %v658_v15 }
 0x32b   :  { %689 = vadd.xlane.f32.xlu0 %v652_v16 }
 0x32c   :  { %v660_v18 = vadd.f32 %v659_v17, %v627_v54 }
 0x32d   :  { %v5098_v49 = vpop.eup %5097 }
 0x32e   :  { %703 = vadd.xlane.f32.xlu1 %v660_v18 }
 0x330   :  { %v5100_v50 = vpop.eup %5099 }
 0x331   :  { %v5102_v51 = vpop.eup %5101 }
 0x332   :  { %v5104_v33 = vpop.eup %5103 }
 0x3ac   :  { %v662_v0 = vpop.xlane.xlu0 %661 }
 0x3ad   :  { %v663_v1 = vrot.slane %v662_v0, 4 }
 0x3af   :  { %v676_v19 = vpop.xlane.xlu1 %675  ;;  %v664_v20 = vadd.f32 %v663_v1, %v662_v0 }
 0x3b0   :  { %v677_v56 = vrot.slane %v676_v19, 4 }
 0x3b1   :  { %v665_v22 = vrot.slane %v664_v20, 2 }
 0x3b2   :  { %v678_v21 = vadd.f32 %v677_v56, %v676_v19 }
 0x3b3   :  { %v666_v24 = vadd.f32 %v665_v22, %v664_v20 }
 0x3b4   :  { %v679_v23 = vrot.slane %v678_v21, 2 }
 0x3b5   :  { %v667_v25 = vrot.slane %v666_v24, 1 }
 0x3b6   :  { %v680_v26 = vadd.f32 %v679_v23, %v678_v21 }
 0x3b7   :  { %v668_v27 = vadd.f32 %v667_v25, %v666_v24 }
 0x3b8   :  { %v681_v28 = vrot.slane %v680_v26, 1  ;;  %v690_v29 = vpop.xlane.xlu0 %689 }
 0x3b9   :  { %v691_v30 = vrot.slane %v690_v29, 4  ;;  %4654 = vpush %v668_v27 }
 0x3ba   :  { %v682_v31 = vadd.f32 %v681_v28, %v680_v26 }
 0x3bb   :  { %v704_v35 = vpop.xlane.xlu1 %703  ;;  %v692_v36 = vadd.f32 %v691_v30, %v690_v29 }
 0x3bc   :  { %4656 = vpush %v682_v31  ;;  %v705_v10 = vrot.slane %v704_v35, 4 }
 0x3bd   :  { %v693_v39 = vrot.slane %v692_v36, 2 }
 0x3be   :  { %v706_v41 = vadd.f32 %v705_v10, %v704_v35 }
 0x3bf   :  { %v694_v43 = vadd.f32 %v693_v39, %v692_v36 }
 0x3c0   :  { %v707_v44 = vrot.slane %v706_v41, 2 }
 0x3c1   :  { %v695_v45 = vrot.slane %v694_v43, 1 }
 0x3c2   :  { %v708_v46 = vadd.f32 %v707_v44, %v706_v41 }
 0x3c3   :  { %v696_v32 = vadd.f32 %v695_v45, %v694_v43 }
 0x3c4   :  { %v709_v47 = vrot.slane %v708_v46, 1 }
 0x3c5   :  { %4658 = vpush %v696_v32 }
 0x3c6   :  { %v710_v48 = vadd.f32 %v709_v47, %v708_v46 }
 0x3c8   :  { %4660 = vpush %v710_v48 }
 0x3c9   :  { %4662 = vpush %v5098_v49 }
 0x3ca   :  { %4664 = vpush %v5100_v50 }
 0x3cb   :  { %4666 = vpush %v5102_v51 }
 0x3cc   :  { %4668 = vpush %v5104_v33 }
 0x3ea   :  { %s4655_s2 = spop %4654 }
 0x3eb   :  { %p670_p6 = scmp.lt.f32.partialorder %s4655_s2, %s8171_s5 }
 0x3ed   :  { %s4657_s3 = spop %4656  ;;  %s8173_s2 = smov (!%p670_p6, %s4655_s2), %s8171_s5 }
 0x3ee   :  { %s8175_s19 = smov (!%p670_p6, %s5547_s19), %s8157_s1  ;;  %s8177_s28 = smov (!%p670_p6, %s5594_s28), %s8159_s6 }
 0x3ef   :  { %s8179_s14 = smov (!%p670_p6, %s8163_s14), %s8161_s17  ;;  %p684_p7 = scmp.lt.f32.partialorder %s4657_s3, %s8173_s2 }
 0x3f1   :  { %s8181_s3 = smov (!%p684_p7, %s4657_s3), %s8173_s2  ;;  %s8183_s9 = smov (!%p684_p7, %s5549_s9), %s8175_s19 }
 0x3f2   :  { %s8185_s4 = smov (!%p684_p7, %s5598_s4), %s8177_s28  ;;  %s8187_s11 = smov (!%p684_p7, %s8165_s11), %s8179_s14 }
 0x3f6   :  { %s4659_s23 = spop %4658 }
 0x3f7   :  { %p698_p8 = scmp.lt.f32.partialorder %s4659_s23, %s8181_s3 }
 0x3f9   :  { %s5742_s30 = spop %4660  ;;  %s8189_s23 = smov (!%p698_p8, %s4659_s23), %s8181_s3 }
 0x3fa   :  { %s8191_s18 = smov (!%p698_p8, %s5551_s18), %s8183_s9  ;;  %s8193_s26 = smov (!%p698_p8, %s5631_s26), %s8185_s4 }
 0x3fb   :  { %s8195_s16 = smov (!%p698_p8, %s8167_s16), %s8187_s11  ;;  %p712_p9 = scmp.lt.f32.partialorder %s5742_s30, %s8189_s23 }
 0x3fc   :  { %s5751_s1 = spop %4662 }
 0x3fd   :  { %s727_s6 = smul.f32 %s5751_s1, %s8063_s29  ;;  %s5755_s17 = spop %4664  ;;  %v739_v52 = vstv %s5751_s1 }
 0x3fe   :  { %s8197_s24 = smov (!%p712_p9, %s8064_s24), %s8191_s18  ;;  %s8199_s22 = smov (!%p712_p9, %s5639_s22), %s8193_s26  ;;  %v817_v53 = vmul.f32 %v5661_v8, %v739_v52  ;;  %v849_v55 = vmul.f32 %v5667_v34, %v739_v52  ;;  %v764_v57 = vstv %s5755_s17 }
 0x3ff   :  { %s8201_s20 = smov (!%p712_p9, %s8169_s20), %s8195_s16  ;;  %s728_s19 = scvt.f32.s32 %s727_s6  ;;  %v825_v58 = vmul.f32 %v5661_v8, %v764_v57  ;;  %v857_v59 = vmul.f32 %v5667_v34, %v764_v57 }
 0x400   :  { %s731_s9 = sand.u32 2147483648, %s727_s6  ;;  %s733_s5 = sand.u32 2147483647, %s727_s6  ;;  %v4670_v60 = vround.rtne.f32 %v817_v53  ;;  %v4674_v61 = vround.rtne.f32 %v849_v55 }
 0x401   :  { %s752_s28 = smul.f32 %s5755_s17, %s8063_s29  ;;  %s729_s4 = scvt.s32.f32 %s728_s19  ;;  %v4671_v3 = vround.rtne.f32 %v825_v58  ;;  %v4675_v4 = vround.rtne.f32 %v857_v59 }
 0x402   :  { %p734_p10 = scmp.lt.f32.partialorder %s733_s5, 2.1474836e+09  ;;  %s5788_s2 = spop %4666 }
 0x403   :  { %s753_s14 = scvt.f32.s32 %s752_s28  ;;  %s756_s11 = sand.u32 2147483648, %s752_s28  ;;  %v789_v13 = vstv %s5788_s2 }
 0x404   :  { %s730_s7 = sand.u32 2147483647, %s729_s4  ;;  %s758_s10 = sand.u32 2147483647, %s752_s28  ;;  %v833_v18 = vmul.f32 %v5661_v8, %v789_v13  ;;  %v865_v0 = vmul.f32 %v5667_v34, %v789_v13 }
 0x405   :  { %s732_s18 = sor.u32 %s731_s9, %s730_s7  ;;  %s754_s26 = scvt.s32.f32 %s753_s14 }
 0x406   :  { %s8203_s18 = smov (!%p734_p10, %s732_s18), %s727_s6  ;;  %p759_p11 = scmp.lt.f32.partialorder %s758_s10, 2.1474836e+09  ;;  %v4672_v26 = vround.rtne.f32 %v833_v18  ;;  %v4676_v29 = vround.rtne.f32 %v865_v0 }
 0x407   :  { %s755_s16 = sand.u32 2147483647, %s754_s26  ;;  %s736_s25 = ssub.f32 0.0, %s8203_s18 }
 0x408   :  { %s757_s12 = sor.u32 %s756_s11, %s755_s16  ;;  %s737_s3 = ssub.f32 255.0, %s8203_s18 }
 0x409   :  { %s8205_s12 = smov (!%p759_p11, %s757_s12), %s752_s28  ;;  %v740_v62 = vstv %s736_s25  ;;  %s5794_s19 = smul.f32 %s5788_s2, %s8063_s29 }
 0x40a   :  { %v819_v63 = vmax.f32 %v4670_v60, %v740_v62  ;;  %v851_v2 = vmax.f32 %v4674_v61, %v740_v62  ;;  %s761_s6 = ssub.f32 0.0, %s8205_s12  ;;  %s5796_s9 = spop %4668  ;;  %v741_v5 = vstv %s737_s3 }
 0x40b   :  { %s762_s5 = ssub.f32 255.0, %s8205_s12  ;;  %s778_s28 = scvt.f32.s32 %s5794_s19  ;;  %v814_v19 = vstv %s5796_s9 }
 0x40c   :  { %v765_v6 = vstv %s761_s6  ;;  %s781_s4 = sand.u32 2147483648, %s5794_s19  ;;  %v820_v7 = vmin.f32 %v819_v63, %v741_v5  ;;  %v852_v9 = vmin.f32 %v851_v2, %v741_v5  ;;  %s783_s14 = sand.u32 2147483647, %s5794_s19  ;;  %v841_v27 = vmul.f32 %v5661_v8, %v814_v19 }
 0x40d   :  { %v827_v11 = vmax.f32 %v4671_v3, %v765_v6  ;;  %v859_v12 = vmax.f32 %v4675_v4, %v765_v6  ;;  %s5805_s11 = smul.f32 %s5796_s9, %s8063_s29  ;;  %s779_s7 = scvt.s32.f32 %s778_s28  ;;  %v766_v14 = vstv %s762_s5  ;;  %v873_v28 = vmul.f32 %v5667_v34, %v814_v19 }
 0x40e   :  { %p5807_p12 = scmp.lt.f32.partialorder %s783_s14, 2.1474836e+09  ;;  %v821_v15 = vmul.f32 %v820_v7, %v5713_v37  ;;  %v853_v17 = vmul.f32 %v852_v9, %v5713_v37  ;;  %v4673_v39 = vround.rtne.f32 %v841_v27  ;;  %s8211_s30 = smov (!%p712_p9, %s5742_s30), %s8189_s23 }
 0x40f   :  { %s803_s26 = scvt.f32.s32 %s5805_s11  ;;  %s806_s16 = sand.u32 2147483648, %s5805_s11  ;;  %v828_v16 = vmin.f32 %v827_v11, %v766_v14  ;;  %v860_v54 = vmin.f32 %v859_v12, %v766_v14  ;;  %v4677_v41 = vround.rtne.f32 %v873_v28 }
 0x410   :  { %s780_s25 = sand.u32 2147483647, %s779_s7  ;;  %s808_s3 = sand.u32 2147483647, %s5805_s11  ;;  %v822_v1 = vsub.f32 %v821_v15, %v5661_v8  ;;  %v854_v21 = vsub.f32 %v853_v17, %v5667_v34 }
 0x411   :  { %s782_s6 = sor.u32 %s781_s4, %s780_s25  ;;  %s804_s5 = scvt.s32.f32 %s803_s26  ;;  %v829_v56 = vmul.f32 %v828_v16, %v5716_v38  ;;  %v861_v20 = vmul.f32 %v860_v54, %v5716_v38 }
 0x412   :  { %s8207_s6 = smov (!%p5807_p12, %s782_s6), %s5794_s19  ;;  %v823_v22 = vmul.f32 %v822_v1, %v822_v1  ;;  %p809_p13 = scmp.lt.f32.partialorder %s808_s3, 2.1474836e+09  ;;  %v855_v25 = vmul.f32 %v854_v21, %v854_v21 }
 0x413   :  { %s805_s28 = sand.u32 2147483647, %s804_s5  ;;  %v830_v23 = vsub.f32 %v829_v56, %v5661_v8  ;;  %v862_v24 = vsub.f32 %v861_v20, %v5667_v34  ;;  %s786_s4 = ssub.f32 0.0, %s8207_s6 }
 0x414   :  { %s807_s14 = sor.u32 %s806_s16, %s805_s28  ;;  %v856_v35 = vadd.f32 %v855_v25, %v823_v22  ;;  %s787_s19 = ssub.f32 255.0, %s8207_s6 }
 0x415   :  { %s8209_s14 = smov (!%p809_p13, %s807_s14), %s5805_s11  ;;  %v831_v30 = vmul.f32 %v830_v23, %v830_v23  ;;  %v863_v31 = vmul.f32 %v862_v24, %v862_v24  ;;  %v790_v36 = vstv %s786_s4  ;;  %s4516_s11 = sadd.f32 -0.16, %s5294_s21 }
 0x416   :  { %v835_v37 = vmax.f32 %v4672_v26, %v790_v36  ;;  %v867_v10 = vmax.f32 %v4676_v29, %v790_v36  ;;  %s811_s7 = ssub.f32 0.0, %s8209_s14  ;;  %881 = vadd.xlane.f32.xlu0 %v856_v35  ;;  %v791_v43 = vstv %s787_s19 }
 0x417   :  { %v864_v38 = vadd.f32 %v863_v31, %v831_v30  ;;  %s812_s10 = ssub.f32 255.0, %s8209_s14  ;;  %s5851_s3 = smul.f32 0.003921569, %s4516_s11 }
 0x418   :  { %v815_v44 = vstv %s811_s7  ;;  %v836_v45 = vmin.f32 %v835_v37, %v791_v43  ;;  %v868_v46 = vmin.f32 %v867_v10, %v791_v43  ;;  %s4517_s26 = sadd.f32 -0.17, %s5294_s21 }
 0x419   :  { %895 = vadd.xlane.f32.xlu1 %v864_v38  ;;  %v843_v32 = vmax.f32 %v4673_v39, %v815_v44  ;;  %v875_v47 = vmax.f32 %v4677_v41, %v815_v44  ;;  %v816_v48 = vstv %s812_s10  ;;  %s4518_s16 = sadd.f32 -0.17999999, %s5294_s21  ;;  %v5860_v19 = vstv %s5851_s3 }
 0x41a   :  { %v837_v49 = vmul.f32 %v836_v45, %v5719_v40  ;;  %v869_v50 = vmul.f32 %v868_v46, %v5719_v40  ;;  %s4519_s25 = sadd.f32 -0.19, %s5294_s21  ;;  %s5853_s5 = smul.f32 0.003921569, %s4517_s26  ;;  %5105 = vrcp.f32 %v5860_v19 }
 0x41b   :  { %v844_v51 = vmin.f32 %v843_v32, %v816_v48  ;;  %v876_v33 = vmin.f32 %v875_v47, %v816_v48  ;;  %s5855_s28 = smul.f32 0.003921569, %s4518_s16 }
 0x41c   :  { %v838_v52 = vsub.f32 %v837_v49, %v5661_v8  ;;  %v870_v53 = vsub.f32 %v869_v50, %v5667_v34  ;;  %s5857_s4 = smul.f32 0.003921569, %s4519_s25  ;;  %v5863_v20 = vstv %s5853_s5 }
 0x41d   :  { %v845_v55 = vmul.f32 %v844_v51, %v5723_v42  ;;  %v877_v57 = vmul.f32 %v876_v33, %v5723_v42  ;;  %v5866_v22 = vstv %s5855_s28  ;;  %5107 = vrcp.f32 %v5863_v20 }
 0x41e   :  { %v839_v58 = vmul.f32 %v838_v52, %v838_v52  ;;  %v871_v59 = vmul.f32 %v870_v53, %v870_v53  ;;  %v5870_v24 = vstv %s5857_s4  ;;  %5109 = vrcp.f32 %v5866_v22 }
 0x41f   :  { %v846_v60 = vsub.f32 %v845_v55, %v5661_v8  ;;  %v878_v61 = vsub.f32 %v877_v57, %v5667_v34  ;;  %5111 = vrcp.f32 %v5870_v24 }
 0x420   :  { %v872_v62 = vadd.f32 %v871_v59, %v839_v58 }
 0x421   :  { %v847_v40 = vmul.f32 %v846_v60, %v846_v60  ;;  %v879_v63 = vmul.f32 %v878_v61, %v878_v61 }
 0x422   :  { %909 = vadd.xlane.f32.xlu0 %v872_v62 }
 0x423   :  { %v880_v2 = vadd.f32 %v879_v63, %v847_v40 }
 0x424   :  { %v5106_v35 = vpop.eup %5105 }
 0x425   :  { %923 = vadd.xlane.f32.xlu1 %v880_v2 }
 0x427   :  { %v5108_v36 = vpop.eup %5107 }
 0x428   :  { %v5110_v37 = vpop.eup %5109 }
 0x429   :  { %v5112_v10 = vpop.eup %5111 }
 0x4a3   :  { %v882_v3 = vpop.xlane.xlu0 %881 }
 0x4a4   :  { %v883_v4 = vrot.slane %v882_v3, 4 }
 0x4a6   :  { %v896_v5 = vpop.xlane.xlu1 %895  ;;  %v884_v6 = vadd.f32 %v883_v4, %v882_v3 }
 0x4a7   :  { %v897_v42 = vrot.slane %v896_v5, 4 }
 0x4a8   :  { %v885_v9 = vrot.slane %v884_v6, 2 }
 0x4a9   :  { %v898_v7 = vadd.f32 %v897_v42, %v896_v5 }
 0x4aa   :  { %v886_v12 = vadd.f32 %v885_v9, %v884_v6 }
 0x4ab   :  { %v899_v11 = vrot.slane %v898_v7, 2 }
 0x4ac   :  { %v887_v13 = vrot.slane %v886_v12, 1 }
 0x4ad   :  { %v900_v14 = vadd.f32 %v899_v11, %v898_v7 }
 0x4ae   :  { %v888_v15 = vadd.f32 %v887_v13, %v886_v12 }
 0x4af   :  { %v901_v16 = vrot.slane %v900_v14, 1  ;;  %v910_v54 = vpop.xlane.xlu0 %909 }
 0x4b0   :  { %v911_v17 = vrot.slane %v910_v54, 4  ;;  %4678 = vpush %v888_v15 }
 0x4b1   :  { %v902_v18 = vadd.f32 %v901_v16, %v900_v14 }
 0x4b2   :  { %v924_v0 = vpop.xlane.xlu1 %923  ;;  %v912_v1 = vadd.f32 %v911_v17, %v910_v54 }
 0x4b3   :  { %4680 = vpush %v902_v18  ;;  %v925_v56 = vrot.slane %v924_v0, 4 }
 0x4b4   :  { %v913_v21 = vrot.slane %v912_v1, 2 }
 0x4b5   :  { %v926_v23 = vadd.f32 %v925_v56, %v924_v0 }
 0x4b6   :  { %v914_v25 = vadd.f32 %v913_v21, %v912_v1 }
 0x4b7   :  { %v927_v26 = vrot.slane %v926_v23, 2 }
 0x4b8   :  { %v915_v27 = vrot.slane %v914_v25, 1 }
 0x4b9   :  { %v928_v28 = vadd.f32 %v927_v26, %v926_v23 }
 0x4ba   :  { %v916_v29 = vadd.f32 %v915_v27, %v914_v25 }
 0x4bb   :  { %v929_v30 = vrot.slane %v928_v28, 1 }
 0x4bc   :  { %4682 = vpush %v916_v29 }
 0x4bd   :  { %v930_v31 = vadd.f32 %v929_v30, %v928_v28 }
 0x4bf   :  { %4684 = vpush %v930_v31 }
 0x4c0   :  { %4686 = vpush %v5106_v35 }
 0x4c1   :  { %4688 = vpush %v5108_v36 }
 0x4c2   :  { %4690 = vpush %v5110_v37 }
 0x4c3   :  { %4692 = vpush %v5112_v10 }
 0x4e1   :  { %s4679_s19 = spop %4678 }
 0x4e2   :  { %p890_p0 = scmp.lt.f32.partialorder %s4679_s19, %s8211_s30 }
 0x4e4   :  { %s4681_s7 = spop %4680  ;;  %s8213_s19 = smov (!%p890_p0, %s4679_s19), %s8211_s30 }
 0x4e5   :  { %s8215_s13 = smov (!%p890_p0, %s5704_s13), %s8197_s24  ;;  %s8217_s1 = smov (!%p890_p0, %s5751_s1), %s8199_s22 }
 0x4e6   :  { %s8219_s18 = smov (!%p890_p0, %s8203_s18), %s8201_s20  ;;  %p904_p1 = scmp.lt.f32.partialorder %s4681_s7, %s8213_s19 }
 0x4e8   :  { %s8221_s7 = smov (!%p904_p1, %s4681_s7), %s8213_s19  ;;  %s8223_s15 = smov (!%p904_p1, %s5706_s15), %s8215_s13 }
 0x4e9   :  { %s8225_s17 = smov (!%p904_p1, %s5755_s17), %s8217_s1  ;;  %s8227_s12 = smov (!%p904_p1, %s8205_s12), %s8219_s18 }
 0x4ed   :  { %s4683_s23 = spop %4682 }
 0x4ee   :  { %p918_p2 = scmp.lt.f32.partialorder %s4683_s23, %s8221_s7 }
 0x4f0   :  { %s5889_s10 = spop %4684  ;;  %s8229_s23 = smov (!%p918_p2, %s4683_s23), %s8221_s7 }
 0x4f1   :  { %s8231_s27 = smov (!%p918_p2, %s5708_s27), %s8223_s15  ;;  %s8233_s2 = smov (!%p918_p2, %s5788_s2), %s8225_s17 }
 0x4f2   :  { %s8235_s6 = smov (!%p918_p2, %s8207_s6), %s8227_s12  ;;  %p932_p3 = scmp.lt.f32.partialorder %s5889_s10, %s8229_s23 }
 0x4f3   :  { %s5898_s22 = spop %4686 }
 0x4f4   :  { %s947_s20 = smul.f32 %s5898_s22, %s8063_s29  ;;  %s5902_s13 = spop %4688  ;;  %v959_v38 = vstv %s5898_s22 }
 0x4f5   :  { %s8237_s8 = smov (!%p932_p3, %s5710_s8), %s8231_s27  ;;  %s8239_s9 = smov (!%p932_p3, %s5796_s9), %s8233_s2  ;;  %v1037_v39 = vmul.f32 %v5661_v8, %v959_v38  ;;  %v1069_v41 = vmul.f32 %v5667_v34, %v959_v38  ;;  %v984_v43 = vstv %s5902_s13 }
 0x4f6   :  { %s8241_s14 = smov (!%p932_p3, %s8209_s14), %s8235_s6  ;;  %s948_s15 = scvt.f32.s32 %s947_s20  ;;  %v1045_v44 = vmul.f32 %v5661_v8, %v984_v43  ;;  %v1077_v45 = vmul.f32 %v5667_v34, %v984_v43 }
 0x4f7   :  { %s951_s24 = sand.u32 2147483648, %s947_s20  ;;  %s953_s30 = sand.u32 2147483647, %s947_s20  ;;  %v4694_v46 = vround.rtne.f32 %v1037_v39  ;;  %v4698_v32 = vround.rtne.f32 %v1069_v41 }
 0x4f8   :  { %s972_s1 = smul.f32 %s5902_s13, %s8063_s29  ;;  %s949_s17 = scvt.s32.f32 %s948_s15  ;;  %v4695_v50 = vround.rtne.f32 %v1045_v44  ;;  %v4699_v51 = vround.rtne.f32 %v1077_v45 }
 0x4f9   :  { %p954_p4 = scmp.lt.f32.partialorder %s953_s30, 2.1474836e+09  ;;  %s5935_s19 = spop %4690 }
 0x4fa   :  { %s973_s18 = scvt.f32.s32 %s972_s1  ;;  %s976_s12 = sand.u32 2147483648, %s972_s1  ;;  %v1009_v59 = vstv %s5935_s19 }
 0x4fb   :  { %s950_s11 = sand.u32 2147483647, %s949_s17  ;;  %s978_s26 = sand.u32 2147483647, %s972_s1  ;;  %v1053_v2 = vmul.f32 %v5661_v8, %v1009_v59  ;;  %v1085_v3 = vmul.f32 %v5667_v34, %v1009_v59 }
 0x4fc   :  { %s952_s27 = sor.u32 %s951_s24, %s950_s11  ;;  %s974_s2 = scvt.s32.f32 %s973_s18 }
 0x4fd   :  { %s8243_s27 = smov (!%p954_p4, %s952_s27), %s947_s20  ;;  %p979_p5 = scmp.lt.f32.partialorder %s978_s26, 2.1474836e+09  ;;  %v4696_v14 = vround.rtne.f32 %v1053_v2  ;;  %v4700_v54 = vround.rtne.f32 %v1085_v3 }
 0x4fe   :  { %s975_s6 = sand.u32 2147483647, %s974_s2  ;;  %s956_s16 = ssub.f32 0.0, %s8243_s27 }
 0x4ff   :  { %s977_s25 = sor.u32 %s976_s12, %s975_s6  ;;  %s957_s7 = ssub.f32 255.0, %s8243_s27 }
 0x500   :  { %s8245_s25 = smov (!%p979_p5, %s977_s25), %s972_s1  ;;  %v960_v47 = vstv %s956_s16  ;;  %s5941_s15 = smul.f32 %s5935_s19, %s8063_s29 }
 0x501   :  { %v1039_v48 = vmax.f32 %v4694_v46, %v960_v47  ;;  %v1071_v49 = vmax.f32 %v4698_v32, %v960_v47  ;;  %s981_s20 = ssub.f32 0.0, %s8245_s25  ;;  %s5943_s24 = spop %4692  ;;  %v961_v33 = vstv %s957_s7 }
 0x502   :  { %s982_s30 = ssub.f32 255.0, %s8245_s25  ;;  %s998_s1 = scvt.f32.s32 %s5941_s15  ;;  %v1034_v5 = vstv %s5943_s24 }
 0x503   :  { %v985_v52 = vstv %s981_s20  ;;  %s1001_s17 = sand.u32 2147483648, %s5941_s15  ;;  %v1040_v53 = vmin.f32 %v1039_v48, %v961_v33  ;;  %v1072_v55 = vmin.f32 %v1071_v49, %v961_v33  ;;  %s1003_s18 = sand.u32 2147483647, %s5941_s15  ;;  %v1061_v15 = vmul.f32 %v5661_v8, %v1034_v5 }
 0x504   :  { %v1047_v57 = vmax.f32 %v4695_v50, %v985_v52  ;;  %v1079_v58 = vmax.f32 %v4699_v51, %v985_v52  ;;  %s5952_s12 = smul.f32 %s5943_s24, %s8063_s29  ;;  %s999_s11 = scvt.s32.f32 %s998_s1  ;;  %v986_v60 = vstv %s982_s30  ;;  %v1093_v16 = vmul.f32 %v5667_v34, %v1034_v5 }
 0x505   :  { %p5954_p6 = scmp.lt.f32.partialorder %s1003_s18, 2.1474836e+09  ;;  %v1041_v61 = vmul.f32 %v1040_v53, %v5860_v19  ;;  %v1073_v63 = vmul.f32 %v1072_v55, %v5860_v19  ;;  %v4697_v21 = vround.rtne.f32 %v1061_v15  ;;  %s8251_s10 = smov (!%p932_p3, %s5889_s10), %s8229_s23 }
 0x506   :  { %s1023_s2 = scvt.f32.s32 %s5952_s12  ;;  %s1026_s6 = sand.u32 2147483648, %s5952_s12  ;;  %v1048_v62 = vmin.f32 %v1047_v57, %v986_v60  ;;  %v1080_v40 = vmin.f32 %v1079_v58, %v986_v60  ;;  %v4701_v23 = vround.rtne.f32 %v1093_v16 }
 0x507   :  { %s1000_s16 = sand.u32 2147483647, %s999_s11  ;;  %s1028_s7 = sand.u32 2147483647, %s5952_s12  ;;  %v1042_v4 = vsub.f32 %v1041_v61, %v5661_v8  ;;  %v1074_v7 = vsub.f32 %v1073_v63, %v5667_v34 }
 0x508   :  { %s1002_s20 = sor.u32 %s1001_s17, %s1000_s16  ;;  %s1024_s30 = scvt.s32.f32 %s1023_s2  ;;  %v1049_v42 = vmul.f32 %v1048_v62, %v5863_v20  ;;  %v1081_v6 = vmul.f32 %v1080_v40, %v5863_v20 }
 0x509   :  { %s8247_s20 = smov (!%p5954_p6, %s1002_s20), %s5941_s15  ;;  %v1043_v9 = vmul.f32 %v1042_v4, %v1042_v4  ;;  %p1029_p7 = scmp.lt.f32.partialorder %s1028_s7, 2.1474836e+09  ;;  %v1075_v13 = vmul.f32 %v1074_v7, %v1074_v7 }
 0x50a   :  { %s1025_s1 = sand.u32 2147483647, %s1024_s30  ;;  %v1050_v11 = vsub.f32 %v1049_v42, %v5661_v8  ;;  %v1082_v12 = vsub.f32 %v1081_v6, %v5667_v34  ;;  %s1006_s17 = ssub.f32 0.0, %s8247_s20 }
 0x50b   :  { %s1027_s18 = sor.u32 %s1026_s6, %s1025_s1  ;;  %v1076_v0 = vadd.f32 %v1075_v13, %v1043_v9  ;;  %s1007_s15 = ssub.f32 255.0, %s8247_s20 }
 0x50c   :  { %s8249_s18 = smov (!%p1029_p7, %s1027_s18), %s5952_s12  ;;  %v1051_v17 = vmul.f32 %v1050_v11, %v1050_v11  ;;  %v1083_v18 = vmul.f32 %v1082_v12, %v1082_v12  ;;  %v1010_v1 = vstv %s1006_s17  ;;  %s4520_s12 = sadd.f32 -0.19999999, %s5294_s21 }
 0x50d   :  { %v1055_v19 = vmax.f32 %v4696_v14, %v1010_v1  ;;  %v1087_v56 = vmax.f32 %v4700_v54, %v1010_v1  ;;  %s1031_s11 = ssub.f32 0.0, %s8249_s18  ;;  %1101 = vadd.xlane.f32.xlu0 %v1076_v0  ;;  %v1011_v25 = vstv %s1007_s15 }
 0x50e   :  { %v1084_v20 = vadd.f32 %v1083_v18, %v1051_v17  ;;  %s1032_s26 = ssub.f32 255.0, %s8249_s18  ;;  %s5998_s7 = smul.f32 0.003921569, %s4520_s12 }
 0x50f   :  { %v1035_v26 = vstv %s1031_s11  ;;  %v1056_v27 = vmin.f32 %v1055_v19, %v1011_v25  ;;  %v1088_v28 = vmin.f32 %v1087_v56, %v1011_v25  ;;  %s4521_s2 = sadd.f32 -0.21, %s5294_s21  ;;  %v6062_v56 = vld [vmem:[%s8048_s0] sm:$0xff] }
 0x510   :  { %1115 = vadd.xlane.f32.xlu1 %v1084_v20  ;;  %v1063_v29 = vmax.f32 %v4697_v21, %v1035_v26  ;;  %v1095_v30 = vmax.f32 %v4701_v23, %v1035_v26  ;;  %v1036_v31 = vstv %s1032_s26  ;;  %s4522_s6 = sadd.f32 -0.22, %s5294_s21  ;;  %v6007_v3 = vstv %s5998_s7  ;;  %v6068_v21 = vld [vmem:[%s8048_s0 + $0x8] sm:$0xff] }
 0x511   :  { %v1057_v35 = vmul.f32 %v1056_v27, %v5866_v22  ;;  %v1089_v36 = vmul.f32 %v1088_v28, %v5866_v22  ;;  %s4523_s16 = sadd.f32 -0.22999999, %s5294_s21  ;;  %s6000_s30 = smul.f32 0.003921569, %s4521_s2  ;;  %5113 = vrcp.f32 %v6007_v3 }
 0x512   :  { %v1064_v37 = vmin.f32 %v1063_v29, %v1036_v31  ;;  %v1096_v10 = vmin.f32 %v1095_v30, %v1036_v31  ;;  %s6002_s1 = smul.f32 0.003921569, %s4522_s6 }
 0x513   :  { %v1058_v38 = vsub.f32 %v1057_v35, %v5661_v8  ;;  %v1090_v39 = vsub.f32 %v1089_v36, %v5667_v34  ;;  %s6004_s17 = smul.f32 0.003921569, %s4523_s16  ;;  %v6010_v5 = vstv %s6000_s30 }
 0x514   :  { %v1065_v41 = vmul.f32 %v1064_v37, %v5870_v24  ;;  %v1097_v43 = vmul.f32 %v1096_v10, %v5870_v24  ;;  %v6013_v6 = vstv %s6002_s1  ;;  %5115 = vrcp.f32 %v6010_v5 }
 0x515   :  { %v1059_v44 = vmul.f32 %v1058_v38, %v1058_v38  ;;  %v1091_v45 = vmul.f32 %v1090_v39, %v1090_v39  ;;  %v6017_v9 = vstv %s6004_s17  ;;  %5117 = vrcp.f32 %v6013_v6 }
 0x516   :  { %v1066_v46 = vsub.f32 %v1065_v41, %v5661_v8  ;;  %v1098_v32 = vsub.f32 %v1097_v43, %v5667_v34  ;;  %5119 = vrcp.f32 %v6017_v9 }
 0x517   :  { %v1092_v47 = vadd.f32 %v1091_v45, %v1059_v44 }
 0x518   :  { %v1067_v22 = vmul.f32 %v1066_v46, %v1066_v46  ;;  %v1099_v48 = vmul.f32 %v1098_v32, %v1098_v32 }
 0x519   :  { %1129 = vadd.xlane.f32.xlu0 %v1092_v47 }
 0x51a   :  { %v1100_v49 = vadd.f32 %v1099_v48, %v1067_v22 }
 0x51b   :  { %v5114_v17 = vpop.eup %5113 }
 0x51c   :  { %1143 = vadd.xlane.f32.xlu1 %v1100_v49 }
 0x51e   :  { %v5116_v18 = vpop.eup %5115 }
 0x51f   :  { %v5118_v0 = vpop.eup %5117 }
 0x520   :  { %v5120_v1 = vpop.eup %5119 }
 0x59a   :  { %v1102_v50 = vpop.xlane.xlu0 %1101 }
 0x59b   :  { %v1103_v51 = vrot.slane %v1102_v50, 4 }
 0x59d   :  { %v1116_v33 = vpop.xlane.xlu1 %1115  ;;  %v1104_v52 = vadd.f32 %v1103_v51, %v1102_v50 }
 0x59e   :  { %v1117_v24 = vrot.slane %v1116_v33, 4 }
 0x59f   :  { %v1105_v55 = vrot.slane %v1104_v52, 2 }
 0x5a0   :  { %v1118_v53 = vadd.f32 %v1117_v24, %v1116_v33 }
 0x5a1   :  { %v1106_v57 = vadd.f32 %v1105_v55, %v1104_v52 }
 0x5a2   :  { %v1119_v8 = vrot.slane %v1118_v53, 2 }
 0x5a3   :  { %v1107_v34 = vrot.slane %v1106_v57, 1 }
 0x5a4   :  { %v1120_v58 = vadd.f32 %v1119_v8, %v1118_v53 }
 0x5a5   :  { %v1108_v59 = vadd.f32 %v1107_v34, %v1106_v57 }
 0x5a6   :  { %v1121_v60 = vrot.slane %v1120_v58, 1  ;;  %v1130_v61 = vpop.xlane.xlu0 %1129 }
 0x5a7   :  { %v1131_v62 = vrot.slane %v1130_v61, 4  ;;  %4702 = vpush %v1108_v59 }
 0x5a8   :  { %v1122_v40 = vadd.f32 %v1121_v60, %v1120_v58 }
 0x5a9   :  { %v1144_v63 = vpop.xlane.xlu1 %1143  ;;  %v1132_v2 = vadd.f32 %v1131_v62, %v1130_v61 }
 0x5aa   :  { %4704 = vpush %v1122_v40  ;;  %v1145_v4 = vrot.slane %v1144_v63, 4 }
 0x5ab   :  { %v1133_v42 = vrot.slane %v1132_v2, 2 }
 0x5ac   :  { %v1146_v7 = vadd.f32 %v1145_v4, %v1144_v63 }
 0x5ad   :  { %v1134_v11 = vadd.f32 %v1133_v42, %v1132_v2 }
 0x5ae   :  { %v1147_v12 = vrot.slane %v1146_v7, 2 }
 0x5af   :  { %v1135_v13 = vrot.slane %v1134_v11, 1 }
 0x5b0   :  { %v1148_v14 = vadd.f32 %v1147_v12, %v1146_v7 }
 0x5b1   :  { %v1136_v15 = vadd.f32 %v1135_v13, %v1134_v11 }
 0x5b2   :  { %v1149_v16 = vrot.slane %v1148_v14, 1 }
 0x5b3   :  { %4706 = vpush %v1136_v15 }
 0x5b4   :  { %v1150_v54 = vadd.f32 %v1149_v16, %v1148_v14 }
 0x5b6   :  { %4708 = vpush %v1150_v54 }
 0x5b7   :  { %4710 = vpush %v5114_v17 }
 0x5b8   :  { %4712 = vpush %v5116_v18 }
 0x5b9   :  { %4714 = vpush %v5118_v0 }
 0x5ba   :  { %4716 = vpush %v5120_v1 }
 0x5d8   :  { %s4703_s15 = spop %4702 }
 0x5d9   :  { %p1110_p8 = scmp.lt.f32.partialorder %s4703_s15, %s8251_s10 }
 0x5db   :  { %s4705_s11 = spop %4704  ;;  %s8253_s15 = smov (!%p1110_p8, %s4703_s15), %s8251_s10 }
 0x5dc   :  { %s8255_s3 = smov (!%p1110_p8, %s5851_s3), %s8237_s8  ;;  %s8257_s22 = smov (!%p1110_p8, %s5898_s22), %s8239_s9 }
 0x5dd   :  { %s8259_s27 = smov (!%p1110_p8, %s8243_s27), %s8241_s14  ;;  %p1124_p9 = scmp.lt.f32.partialorder %s4705_s11, %s8253_s15 }
 0x5df   :  { %s8261_s11 = smov (!%p1124_p9, %s4705_s11), %s8253_s15  ;;  %s8263_s5 = smov (!%p1124_p9, %s5853_s5), %s8255_s3 }
 0x5e0   :  { %s8265_s13 = smov (!%p1124_p9, %s5902_s13), %s8257_s22  ;;  %s8267_s25 = smov (!%p1124_p9, %s8245_s25), %s8259_s27 }
 0x5e4   :  { %s4707_s23 = spop %4706 }
 0x5e5   :  { %p1138_p10 = scmp.lt.f32.partialorder %s4707_s23, %s8261_s11 }
 0x5e7   :  { %s4709_s26 = spop %4708  ;;  %s8269_s23 = smov (!%p1138_p10, %s4707_s23), %s8261_s11 }
 0x5e8   :  { %s8271_s28 = smov (!%p1138_p10, %s5855_s28), %s8263_s5  ;;  %s8273_s19 = smov (!%p1138_p10, %s5935_s19), %s8265_s13 }
 0x5e9   :  { %s8275_s20 = smov (!%p1138_p10, %s8247_s20), %s8267_s25  ;;  %p1152_p11 = scmp.lt.f32.partialorder %s4709_s26, %s8269_s23 }
 0x5ea   :  { %s6039_s8 = spop %4710 }
 0x5eb   :  { %s1167_s9 = smul.f32 %s6039_s8, %s8063_s29  ;;  %s6043_s14 = spop %4712  ;;  %v1179_v19 = vstv %s6039_s8 }
 0x5ec   :  { %s8277_s26 = smov (!%p1152_p11, %s4709_s26), %s8269_s23  ;;  %s8279_s4 = smov (!%p1152_p11, %s5857_s4), %s8271_s28  ;;  %v1257_v20 = vmul.f32 %v6062_v56, %v1179_v19  ;;  %v1289_v23 = vmul.f32 %v6068_v21, %v1179_v19  ;;  %v1204_v25 = vstv %s6043_s14 }
 0x5ed   :  { %s8281_s24 = smov (!%p1152_p11, %s5943_s24), %s8273_s19  ;;  %s8283_s18 = smov (!%p1152_p11, %s8249_s18), %s8275_s20  ;;  %v1265_v26 = vmul.f32 %v6062_v56, %v1204_v25  ;;  %v1297_v27 = vmul.f32 %v6068_v21, %v1204_v25 }
 0x5ee   :  { %s1168_s3 = scvt.f32.s32 %s1167_s9  ;;  %s1171_s5 = sand.u32 2147483648, %s1167_s9  ;;  %v4718_v28 = vround.rtne.f32 %v1257_v20  ;;  %v4722_v29 = vround.rtne.f32 %v1289_v23 }
 0x5ef   :  { %s1173_s10 = sand.u32 2147483647, %s1167_s9  ;;  %s1192_s22 = smul.f32 %s6043_s14, %s8063_s29  ;;  %v4719_v36 = vround.rtne.f32 %v1265_v26  ;;  %v4723_v37 = vround.rtne.f32 %v1297_v27 }
 0x5f0   :  { %s1169_s13 = scvt.s32.f32 %s1168_s3  ;;  %p1174_p12 = scmp.lt.f32.partialorder %s1173_s10, 2.1474836e+09 }
 0x5f1   :  { %s1193_s27 = scvt.f32.s32 %s1192_s22  ;;  %s1196_s25 = sand.u32 2147483648, %s1192_s22 }
 0x5f2   :  { %s1170_s12 = sand.u32 2147483647, %s1169_s13  ;;  %s1198_s2 = sand.u32 2147483647, %s1192_s22 }
 0x5f3   :  { %s1172_s6 = sor.u32 %s1171_s5, %s1170_s12  ;;  %s1194_s15 = scvt.s32.f32 %s1193_s27 }
 0x5f4   :  { %s8285_s6 = smov (!%p1174_p12, %s1172_s6), %s1167_s9  ;;  %p1199_p13 = scmp.lt.f32.partialorder %s1198_s2, 2.1474836e+09 }
 0x5f5   :  { %s1195_s11 = sand.u32 2147483647, %s1194_s15  ;;  %s1176_s23 = ssub.f32 0.0, %s8285_s6 }
 0x5f6   :  { %s1197_s3 = sor.u32 %s1196_s25, %s1195_s11  ;;  %s6079_s9 = spop %4714 }
 0x5f7   :  { %s8287_s3 = smov (!%p1199_p13, %s1197_s3), %s1192_s22  ;;  %v1180_v30 = vstv %s1176_s23  ;;  %s1177_s5 = ssub.f32 255.0, %s8285_s6  ;;  %v1229_v45 = vstv %s6079_s9 }
 0x5f8   :  { %v1259_v31 = vmax.f32 %v4718_v28, %v1180_v30  ;;  %v1291_v35 = vmax.f32 %v4722_v29, %v1180_v30  ;;  %s1201_s10 = ssub.f32 0.0, %s8287_s3  ;;  %s6085_s13 = smul.f32 %s6079_s9, %s8063_s29  ;;  %v1273_v49 = vmul.f32 %v6062_v56, %v1229_v45  ;;  %v1305_v50 = vmul.f32 %v6068_v21, %v1229_v45 }
 0x5f9   :  { %s6087_s22 = spop %4716  ;;  %s1202_s27 = ssub.f32 255.0, %s8287_s3  ;;  %v1181_v10 = vstv %s1177_s5 }
 0x5fa   :  { %v1205_v38 = vstv %s1201_s10  ;;  %s1218_s25 = scvt.f32.s32 %s6085_s13  ;;  %s1221_s12 = sand.u32 2147483648, %s6085_s13  ;;  %v1260_v39 = vmin.f32 %v1259_v31, %v1181_v10  ;;  %v1292_v41 = vmin.f32 %v1291_v35, %v1181_v10  ;;  %v1254_v33 = vstv %s6087_s22 }
 0x5fb   :  { %v1267_v43 = vmax.f32 %v4719_v36, %v1205_v38  ;;  %v1299_v44 = vmax.f32 %v4723_v37, %v1205_v38  ;;  %s1223_s2 = sand.u32 2147483647, %s6085_s13  ;;  %s6096_s16 = smul.f32 %s6087_s22, %s8063_s29  ;;  %v1206_v46 = vstv %s1202_s27  ;;  %v4720_v58 = vround.rtne.f32 %v1273_v49 }
 0x5fc   :  { %s1219_s28 = scvt.s32.f32 %s1218_s25  ;;  %p6098_p0 = scmp.lt.f32.partialorder %s1223_s2, 2.1474836e+09  ;;  %v1261_v32 = vmul.f32 %v1260_v39, %v6007_v3  ;;  %v1293_v48 = vmul.f32 %v1292_v41, %v6007_v3  ;;  %v1281_v59 = vmul.f32 %v6062_v56, %v1254_v33  ;;  %v1313_v60 = vmul.f32 %v6068_v21, %v1254_v33 }
 0x5fd   :  { %s1243_s20 = scvt.f32.s32 %s6096_s16  ;;  %s1246_s15 = sand.u32 2147483648, %s6096_s16  ;;  %v1268_v47 = vmin.f32 %v1267_v43, %v1206_v46  ;;  %v1300_v22 = vmin.f32 %v1299_v44, %v1206_v46  ;;  %v4724_v61 = vround.rtne.f32 %v1305_v50 }
 0x5fe   :  { %s1220_s11 = sand.u32 2147483647, %s1219_s28  ;;  %s1248_s23 = sand.u32 2147483647, %s6096_s16  ;;  %v1262_v51 = vsub.f32 %v1261_v32, %v6062_v56  ;;  %v1294_v53 = vsub.f32 %v1293_v48, %v6068_v21  ;;  %v4721_v42 = vround.rtne.f32 %v1281_v59  ;;  %v4725_v7 = vround.rtne.f32 %v1313_v60 }
 0x5ff   :  { %s1222_s5 = sor.u32 %s1221_s12, %s1220_s11  ;;  %s1244_s10 = scvt.s32.f32 %s1243_s20  ;;  %v1269_v24 = vmul.f32 %v1268_v47, %v6010_v5  ;;  %v1301_v52 = vmul.f32 %v1300_v22, %v6010_v5 }
 0x600   :  { %s8289_s5 = smov (!%p6098_p0, %s1222_s5), %s6085_s13  ;;  %v1263_v55 = vmul.f32 %v1262_v51, %v1262_v51  ;;  %p1249_p1 = scmp.lt.f32.partialorder %s1248_s23, 2.1474836e+09  ;;  %v1295_v34 = vmul.f32 %v1294_v53, %v1294_v53 }
 0x601   :  { %s1245_s27 = sand.u32 2147483647, %s1244_s10  ;;  %v1270_v8 = vsub.f32 %v1269_v24, %v6062_v56  ;;  %v1302_v57 = vsub.f32 %v1301_v52, %v6068_v21  ;;  %s1226_s25 = ssub.f32 0.0, %s8289_s5 }
 0x602   :  { %s1247_s12 = sor.u32 %s1246_s15, %s1245_s27  ;;  %v1296_v63 = vadd.f32 %v1295_v34, %v1263_v55  ;;  %s1227_s13 = ssub.f32 255.0, %s8289_s5 }
 0x603   :  { %s8291_s12 = smov (!%p1249_p1, %s1247_s12), %s6096_s16  ;;  %v1271_v62 = vmul.f32 %v1270_v8, %v1270_v8  ;;  %v1303_v40 = vmul.f32 %v1302_v57, %v1302_v57  ;;  %v1230_v2 = vstv %s1226_s25  ;;  %s4524_s16 = sadd.f32 -0.24, %s5294_s21 }
 0x604   :  { %v1275_v3 = vmax.f32 %v4720_v58, %v1230_v2  ;;  %v1307_v4 = vmax.f32 %v4724_v61, %v1230_v2  ;;  %s1251_s2 = ssub.f32 0.0, %s8291_s12  ;;  %1321 = vadd.xlane.f32.xlu0 %v1296_v63  ;;  %v1231_v11 = vstv %s1227_s13 }
 0x605   :  { %v1304_v5 = vadd.f32 %v1303_v40, %v1271_v62  ;;  %s1252_s28 = ssub.f32 255.0, %s8291_s12  ;;  %s6142_s11 = smul.f32 0.003921569, %s4524_s16 }
 0x606   :  { %v1255_v12 = vstv %s1251_s2  ;;  %v1276_v13 = vmin.f32 %v1275_v3, %v1231_v11  ;;  %v1308_v14 = vmin.f32 %v1307_v4, %v1231_v11  ;;  %s4525_s19 = sadd.f32 -0.25, %s5294_s21 }
 0x607   :  { %1335 = vadd.xlane.f32.xlu1 %v1304_v5  ;;  %v1283_v15 = vmax.f32 %v4721_v42, %v1255_v12  ;;  %v1315_v16 = vmax.f32 %v4725_v7, %v1255_v12  ;;  %v1256_v54 = vstv %s1252_s28  ;;  %s4526_s20 = sadd.f32 -0.26, %s5294_s21  ;;  %v6151_v33 = vstv %s6142_s11 }
 0x608   :  { %v1277_v17 = vmul.f32 %v1276_v13, %v6013_v6  ;;  %v1309_v18 = vmul.f32 %v1308_v14, %v6013_v6  ;;  %s4527_s15 = sadd.f32 -0.26999998, %s5294_s21  ;;  %s6144_s23 = smul.f32 0.003921569, %s4525_s19  ;;  %5121 = vrcp.f32 %v6151_v33 }
 0x609   :  { %v1284_v0 = vmin.f32 %v1283_v15, %v1256_v54  ;;  %v1316_v1 = vmin.f32 %v1315_v16, %v1256_v54  ;;  %s6146_s10 = smul.f32 0.003921569, %s4526_s20 }
 0x60a   :  { %v1278_v19 = vsub.f32 %v1277_v17, %v6062_v56  ;;  %v1310_v20 = vsub.f32 %v1309_v18, %v6068_v21  ;;  %s6148_s27 = smul.f32 0.003921569, %s4527_s15  ;;  %v6154_v52 = vstv %s6144_s23 }
 0x60b   :  { %v1285_v23 = vmul.f32 %v1284_v0, %v6017_v9  ;;  %v1317_v25 = vmul.f32 %v1316_v1, %v6017_v9  ;;  %v6157_v55 = vstv %s6146_s10  ;;  %5123 = vrcp.f32 %v6154_v52 }
 0x60c   :  { %v1279_v26 = vmul.f32 %v1278_v19, %v1278_v19  ;;  %v1311_v27 = vmul.f32 %v1310_v20, %v1310_v20  ;;  %v6161_v57 = vstv %s6148_s27  ;;  %5125 = vrcp.f32 %v6157_v55 }
 0x60d   :  { %v1286_v28 = vsub.f32 %v1285_v23, %v6062_v56  ;;  %v1318_v29 = vsub.f32 %v1317_v25, %v6068_v21  ;;  %5127 = vrcp.f32 %v6161_v57 }
 0x60e   :  { %v1312_v30 = vadd.f32 %v1311_v27, %v1279_v26 }
 0x60f   :  { %v1287_v6 = vmul.f32 %v1286_v28, %v1286_v28  ;;  %v1319_v31 = vmul.f32 %v1318_v29, %v1318_v29 }
 0x610   :  { %1349 = vadd.xlane.f32.xlu0 %v1312_v30 }
 0x611   :  { %v1320_v35 = vadd.f32 %v1319_v31, %v1287_v6 }
 0x612   :  { %v5122_v63 = vpop.eup %5121 }
 0x613   :  { %1363 = vadd.xlane.f32.xlu1 %v1320_v35 }
 0x615   :  { %v5124_v2 = vpop.eup %5123 }
 0x616   :  { %v5126_v3 = vpop.eup %5125 }
 0x617   :  { %v5128_v4 = vpop.eup %5127 }
 0x691   :  { %v1322_v36 = vpop.xlane.xlu0 %1321 }
 0x692   :  { %v1323_v37 = vrot.slane %v1322_v36, 4 }
 0x694   :  { %v1336_v10 = vpop.xlane.xlu1 %1335  ;;  %v1324_v38 = vadd.f32 %v1323_v37, %v1322_v36 }
 0x695   :  { %v1337_v9 = vrot.slane %v1336_v10, 4 }
 0x696   :  { %v1325_v41 = vrot.slane %v1324_v38, 2 }
 0x697   :  { %v1338_v39 = vadd.f32 %v1337_v9, %v1336_v10 }
 0x698   :  { %v1326_v44 = vadd.f32 %v1325_v41, %v1324_v38 }
 0x699   :  { %v1339_v43 = vrot.slane %v1338_v39, 2 }
 0x69a   :  { %v1327_v45 = vrot.slane %v1326_v44, 1 }
 0x69b   :  { %v1340_v46 = vadd.f32 %v1339_v43, %v1338_v39 }
 0x69c   :  { %v1328_v32 = vadd.f32 %v1327_v45, %v1326_v44 }
 0x69d   :  { %v1341_v47 = vrot.slane %v1340_v46, 1  ;;  %v1350_v22 = vpop.xlane.xlu0 %1349 }
 0x69e   :  { %v1351_v48 = vrot.slane %v1350_v22, 4  ;;  %4726 = vpush %v1328_v32 }
 0x69f   :  { %v1342_v49 = vadd.f32 %v1341_v47, %v1340_v46 }
 0x6a0   :  { %v1364_v50 = vpop.xlane.xlu1 %1363  ;;  %v1352_v51 = vadd.f32 %v1351_v48, %v1350_v22 }
 0x6a1   :  { %4728 = vpush %v1342_v49  ;;  %v1365_v24 = vrot.slane %v1364_v50, 4 }
 0x6a2   :  { %v1353_v53 = vrot.slane %v1352_v51, 2 }
 0x6a3   :  { %v1366_v8 = vadd.f32 %v1365_v24, %v1364_v50 }
 0x6a4   :  { %v1354_v34 = vadd.f32 %v1353_v53, %v1352_v51 }
 0x6a5   :  { %v1367_v58 = vrot.slane %v1366_v8, 2 }
 0x6a6   :  { %v1355_v59 = vrot.slane %v1354_v34, 1 }
 0x6a7   :  { %v1368_v60 = vadd.f32 %v1367_v58, %v1366_v8 }
 0x6a8   :  { %v1356_v61 = vadd.f32 %v1355_v59, %v1354_v34 }
 0x6a9   :  { %v1369_v62 = vrot.slane %v1368_v60, 1 }
 0x6aa   :  { %4730 = vpush %v1356_v61 }
 0x6ab   :  { %v1370_v40 = vadd.f32 %v1369_v62, %v1368_v60 }
 0x6ad   :  { %4732 = vpush %v1370_v40 }
 0x6ae   :  { %4734 = vpush %v5122_v63 }
 0x6af   :  { %4736 = vpush %v5124_v2 }
 0x6b0   :  { %4738 = vpush %v5126_v3 }
 0x6b1   :  { %4740 = vpush %v5128_v4 }
 0x6cf   :  { %s4727_s25 = spop %4726 }
 0x6d0   :  { %p1330_p2 = scmp.lt.f32.partialorder %s4727_s25, %s8277_s26 }
 0x6d2   :  { %s4729_s13 = spop %4728  ;;  %s8293_s25 = smov (!%p1330_p2, %s4727_s25), %s8277_s26 }
 0x6d3   :  { %s8295_s7 = smov (!%p1330_p2, %s5998_s7), %s8279_s4  ;;  %s8297_s8 = smov (!%p1330_p2, %s6039_s8), %s8281_s24 }
 0x6d4   :  { %s8299_s6 = smov (!%p1330_p2, %s8285_s6), %s8283_s18  ;;  %p1344_p3 = scmp.lt.f32.partialorder %s4729_s13, %s8293_s25 }
 0x6d6   :  { %s8301_s13 = smov (!%p1344_p3, %s4729_s13), %s8293_s25  ;;  %s8303_s30 = smov (!%p1344_p3, %s6000_s30), %s8295_s7 }
 0x6d7   :  { %s8305_s14 = smov (!%p1344_p3, %s6043_s14), %s8297_s8  ;;  %s8307_s3 = smov (!%p1344_p3, %s8287_s3), %s8299_s6 }
 0x6db   :  { %s4731_s2 = spop %4730 }
 0x6dc   :  { %p1358_p4 = scmp.lt.f32.partialorder %s4731_s2, %s8301_s13 }
 0x6de   :  { %s4733_s28 = spop %4732  ;;  %s8309_s2 = smov (!%p1358_p4, %s4731_s2), %s8301_s13 }
 0x6df   :  { %s8311_s1 = smov (!%p1358_p4, %s6002_s1), %s8303_s30  ;;  %s8313_s9 = smov (!%p1358_p4, %s6079_s9), %s8305_s14 }
 0x6e0   :  { %s8315_s5 = smov (!%p1358_p4, %s8289_s5), %s8307_s3  ;;  %p1372_p5 = scmp.lt.f32.partialorder %s4733_s28, %s8309_s2 }
 0x6e1   :  { %s6180_s4 = spop %4734 }
 0x6e2   :  { %s1387_s24 = smul.f32 %s6180_s4, %s8063_s29  ;;  %s6184_s18 = spop %4736  ;;  %v1399_v5 = vstv %s6180_s4 }
 0x6e3   :  { %s8317_s28 = smov (!%p1372_p5, %s4733_s28), %s8309_s2  ;;  %s8319_s17 = smov (!%p1372_p5, %s6004_s17), %s8311_s1  ;;  %v1477_v42 = vmul.f32 %v6062_v56, %v1399_v5  ;;  %v1509_v7 = vmul.f32 %v6068_v21, %v1399_v5  ;;  %v1424_v11 = vstv %s6184_s18 }
 0x6e4   :  { %s8321_s22 = smov (!%p1372_p5, %s6087_s22), %s8313_s9  ;;  %s8323_s12 = smov (!%p1372_p5, %s8291_s12), %s8315_s5  ;;  %v1485_v12 = vmul.f32 %v6062_v56, %v1424_v11  ;;  %v1517_v13 = vmul.f32 %v6068_v21, %v1424_v11 }
 0x6e5   :  { %s1388_s7 = scvt.f32.s32 %s1387_s24  ;;  %s1391_s30 = sand.u32 2147483648, %s1387_s24  ;;  %v4742_v14 = vround.rtne.f32 %v1477_v42  ;;  %v4746_v15 = vround.rtne.f32 %v1509_v7 }
 0x6e6   :  { %s1393_s26 = sand.u32 2147483647, %s1387_s24  ;;  %s1412_s8 = smul.f32 %s6184_s18, %s8063_s29  ;;  %v4743_v18 = vround.rtne.f32 %v1485_v12  ;;  %v4747_v0 = vround.rtne.f32 %v1517_v13 }
 0x6e7   :  { %s1389_s14 = scvt.s32.f32 %s1388_s7  ;;  %p1394_p6 = scmp.lt.f32.partialorder %s1393_s26, 2.1474836e+09 }
 0x6e8   :  { %s1413_s6 = scvt.f32.s32 %s1412_s8  ;;  %s1416_s3 = sand.u32 2147483648, %s1412_s8 }
 0x6e9   :  { %s1390_s16 = sand.u32 2147483647, %s1389_s14  ;;  %s1418_s19 = sand.u32 2147483647, %s1412_s8 }
 0x6ea   :  { %s1392_s20 = sor.u32 %s1391_s30, %s1390_s16  ;;  %s1414_s1 = scvt.s32.f32 %s1413_s6 }
 0x6eb   :  { %s8325_s20 = smov (!%p1394_p6, %s1392_s20), %s1387_s24  ;;  %p1419_p7 = scmp.lt.f32.partialorder %s1418_s19, 2.1474836e+09 }
 0x6ec   :  { %s1415_s9 = sand.u32 2147483647, %s1414_s1  ;;  %s1396_s5 = ssub.f32 0.0, %s8325_s20 }
 0x6ed   :  { %s1417_s15 = sor.u32 %s1416_s3, %s1415_s9  ;;  %s6210_s25 = spop %4738 }
 0x6ee   :  { %s8327_s15 = smov (!%p1419_p7, %s1417_s15), %s1412_s8  ;;  %v1400_v16 = vstv %s1396_s5  ;;  %s1397_s13 = ssub.f32 255.0, %s8325_s20  ;;  %v1449_v27 = vstv %s6210_s25 }
 0x6ef   :  { %v1479_v54 = vmax.f32 %v4742_v14, %v1400_v16  ;;  %v1511_v17 = vmax.f32 %v4746_v15, %v1400_v16  ;;  %s1421_s2 = ssub.f32 0.0, %s8327_s15  ;;  %s6216_s24 = smul.f32 %s6210_s25, %s8063_s29  ;;  %v1493_v35 = vmul.f32 %v6062_v56, %v1449_v27  ;;  %v1525_v36 = vmul.f32 %v6068_v21, %v1449_v27 }
 0x6f0   :  { %s6218_s7 = spop %4740  ;;  %s1422_s30 = ssub.f32 255.0, %s8327_s15  ;;  %v1401_v1 = vstv %s1397_s13 }
 0x6f1   :  { %v1425_v19 = vstv %s1421_s2  ;;  %s1438_s26 = scvt.f32.s32 %s6216_s24  ;;  %s1441_s8 = sand.u32 2147483648, %s6216_s24  ;;  %v1480_v20 = vmin.f32 %v1479_v54, %v1401_v1  ;;  %v1512_v23 = vmin.f32 %v1511_v17, %v1401_v1  ;;  %v1474_v10 = vstv %s6218_s7 }
 0x6f2   :  { %v1487_v25 = vmax.f32 %v4743_v18, %v1425_v19  ;;  %v1519_v26 = vmax.f32 %v4747_v0, %v1425_v19  ;;  %s1443_s14 = sand.u32 2147483647, %s6216_s24  ;;  %s6227_s6 = smul.f32 %s6218_s7, %s8063_s29  ;;  %v1426_v28 = vstv %s1422_s30  ;;  %v4744_v46 = vround.rtne.f32 %v1493_v35 }
 0x6f3   :  { %s1439_s3 = scvt.s32.f32 %s1438_s26  ;;  %p6229_p8 = scmp.lt.f32.partialorder %s1443_s14, 2.1474836e+09  ;;  %v1481_v29 = vmul.f32 %v1480_v20, %v6151_v33  ;;  %v1513_v31 = vmul.f32 %v1512_v23, %v6151_v33  ;;  %v1501_v32 = vmul.f32 %v6062_v56, %v1474_v10  ;;  %v1533_v47 = vmul.f32 %v6068_v21, %v1474_v10 }
 0x6f4   :  { %s1463_s19 = scvt.f32.s32 %s6227_s6  ;;  %s1466_s1 = sand.u32 2147483648, %s6227_s6  ;;  %v1488_v30 = vmin.f32 %v1487_v25, %v1426_v28  ;;  %v1520_v6 = vmin.f32 %v1519_v26, %v1426_v28  ;;  %v4748_v22 = vround.rtne.f32 %v1525_v36 }
 0x6f5   :  { %s1440_s9 = sand.u32 2147483647, %s1439_s3  ;;  %s1468_s5 = sand.u32 2147483647, %s6227_s6  ;;  %v1482_v37 = vsub.f32 %v1481_v29, %v6062_v56  ;;  %v1514_v39 = vsub.f32 %v1513_v31, %v6068_v21  ;;  %v4745_v53 = vround.rtne.f32 %v1501_v32  ;;  %v4749_v8 = vround.rtne.f32 %v1533_v47 }
 0x6f6   :  { %s1442_s13 = sor.u32 %s1441_s8, %s1440_s9  ;;  %s1464_s2 = scvt.s32.f32 %s1463_s19  ;;  %v1489_v9 = vmul.f32 %v1488_v30, %v6154_v52  ;;  %v1521_v38 = vmul.f32 %v1520_v6, %v6154_v52 }
 0x6f7   :  { %s8329_s13 = smov (!%p6229_p8, %s1442_s13), %s6216_s24  ;;  %v1483_v41 = vmul.f32 %v1482_v37, %v1482_v37  ;;  %p1469_p9 = scmp.lt.f32.partialorder %s1468_s5, 2.1474836e+09  ;;  %v1515_v45 = vmul.f32 %v1514_v39, %v1514_v39 }
 0x6f8   :  { %s1465_s30 = sand.u32 2147483647, %s1464_s2  ;;  %v1490_v43 = vsub.f32 %v1489_v9, %v6062_v56  ;;  %v1522_v44 = vsub.f32 %v1521_v38, %v6068_v21  ;;  %s1446_s26 = ssub.f32 0.0, %s8329_s13 }
 0x6f9   :  { %s1467_s8 = sor.u32 %s1466_s1, %s1465_s30  ;;  %v1516_v50 = vadd.f32 %v1515_v45, %v1483_v41  ;;  %s1447_s24 = ssub.f32 255.0, %s8329_s13 }
 0x6fa   :  { %s8331_s8 = smov (!%p1469_p9, %s1467_s8), %s6227_s6  ;;  %v1491_v48 = vmul.f32 %v1490_v43, %v1490_v43  ;;  %v1523_v49 = vmul.f32 %v1522_v44, %v1522_v44  ;;  %v1450_v51 = vstv %s1446_s26  ;;  %s4528_s6 = sadd.f32 -0.28, %s5294_s21 }
 0x6fb   :  { %v1495_v33 = vmax.f32 %v4744_v46, %v1450_v51  ;;  %v1527_v24 = vmax.f32 %v4748_v22, %v1450_v51  ;;  %s1471_s14 = ssub.f32 0.0, %s8331_s8  ;;  %1541 = vadd.xlane.f32.xlu0 %v1516_v50  ;;  %v1451_v34 = vstv %s1447_s24 }
 0x6fc   :  { %v1524_v52 = vadd.f32 %v1523_v49, %v1491_v48  ;;  %s1472_s3 = ssub.f32 255.0, %s8331_s8  ;;  %s6273_s9 = smul.f32 0.003921569, %s4528_s6 }
 0x6fd   :  { %v1475_v58 = vstv %s1471_s14  ;;  %v1496_v59 = vmin.f32 %v1495_v33, %v1451_v34  ;;  %v1528_v60 = vmin.f32 %v1527_v24, %v1451_v34  ;;  %s4529_s16 = sadd.f32 -0.29, %s5294_s21 }
 0x6fe   :  { %1555 = vadd.xlane.f32.xlu1 %v1524_v52  ;;  %v1503_v61 = vmax.f32 %v4745_v53, %v1475_v58  ;;  %v1535_v62 = vmax.f32 %v4749_v8, %v1475_v58  ;;  %v1476_v40 = vstv %s1472_s3  ;;  %s4530_s19 = sadd.f32 -0.29999998, %s5294_s21  ;;  %v6282_v10 = vstv %s6273_s9 }
 0x6ff   :  { %v1497_v63 = vmul.f32 %v1496_v59, %v6157_v55  ;;  %v1529_v2 = vmul.f32 %v1528_v60, %v6157_v55  ;;  %s4531_s1 = sadd.f32 -0.31, %s5294_s21  ;;  %s6275_s5 = smul.f32 0.003921569, %s4529_s16  ;;  %5129 = vrcp.f32 %v6282_v10 }
 0x700   :  { %v1504_v3 = vmin.f32 %v1503_v61, %v1476_v40  ;;  %v1536_v4 = vmin.f32 %v1535_v62, %v1476_v40  ;;  %s6277_s2 = smul.f32 0.003921569, %s4530_s19 }
 0x701   :  { %v1498_v5 = vsub.f32 %v1497_v63, %v6062_v56  ;;  %v1530_v42 = vsub.f32 %v1529_v2, %v6068_v21  ;;  %s6279_s30 = smul.f32 0.003921569, %s4531_s1  ;;  %v6285_v38 = vstv %s6275_s5 }
 0x702   :  { %v1505_v7 = vmul.f32 %v1504_v3, %v6161_v57  ;;  %v1537_v11 = vmul.f32 %v1536_v4, %v6161_v57  ;;  %v6288_v41 = vstv %s6277_s2  ;;  %5131 = vrcp.f32 %v6285_v38 }
 0x703   :  { %v1499_v12 = vmul.f32 %v1498_v5, %v1498_v5  ;;  %v1531_v13 = vmul.f32 %v1530_v42, %v1530_v42  ;;  %v6292_v44 = vstv %s6279_s30  ;;  %5133 = vrcp.f32 %v6288_v41 }
 0x704   :  { %v1506_v14 = vsub.f32 %v1505_v7, %v6062_v56  ;;  %v1538_v15 = vsub.f32 %v1537_v11, %v6068_v21  ;;  %5135 = vrcp.f32 %v6292_v44 }
 0x705   :  { %v1532_v16 = vadd.f32 %v1531_v13, %v1499_v12 }
 0x706   :  { %v1507_v55 = vmul.f32 %v1506_v14, %v1506_v14  ;;  %v1539_v54 = vmul.f32 %v1538_v15, %v1538_v15 }
 0x707   :  { %1569 = vadd.xlane.f32.xlu0 %v1532_v16 }
 0x708   :  { %v1540_v17 = vadd.f32 %v1539_v54, %v1507_v55 }
 0x709   :  { %v5130_v50 = vpop.eup %5129 }
 0x70a   :  { %1583 = vadd.xlane.f32.xlu1 %v1540_v17 }
 0x70c   :  { %v5132_v51 = vpop.eup %5131 }
 0x70d   :  { %v5134_v33 = vpop.eup %5133 }
 0x70e   :  { %v5136_v24 = vpop.eup %5135 }
 0x788   :  { %v1542_v18 = vpop.xlane.xlu0 %1541 }
 0x789   :  { %v1543_v0 = vrot.slane %v1542_v18, 4 }
 0x78b   :  { %v1556_v1 = vpop.xlane.xlu1 %1555  ;;  %v1544_v19 = vadd.f32 %v1543_v0, %v1542_v18 }
 0x78c   :  { %v1557_v57 = vrot.slane %v1556_v1, 4 }
 0x78d   :  { %v1545_v23 = vrot.slane %v1544_v19, 2 }
 0x78e   :  { %v1558_v20 = vadd.f32 %v1557_v57, %v1556_v1 }
 0x78f   :  { %v1546_v26 = vadd.f32 %v1545_v23, %v1544_v19 }
 0x790   :  { %v1559_v25 = vrot.slane %v1558_v20, 2 }
 0x791   :  { %v1547_v27 = vrot.slane %v1546_v26, 1 }
 0x792   :  { %v1560_v28 = vadd.f32 %v1559_v25, %v1558_v20 }
 0x793   :  { %v1548_v29 = vadd.f32 %v1547_v27, %v1546_v26 }
 0x794   :  { %v1561_v30 = vrot.slane %v1560_v28, 1  ;;  %v1570_v6 = vpop.xlane.xlu0 %1569 }
 0x795   :  { %v1571_v31 = vrot.slane %v1570_v6, 4  ;;  %4750 = vpush %v1548_v29 }
 0x796   :  { %v1562_v35 = vadd.f32 %v1561_v30, %v1560_v28 }
 0x797   :  { %v1584_v36 = vpop.xlane.xlu1 %1583  ;;  %v1572_v37 = vadd.f32 %v1571_v31, %v1570_v6 }
 0x798   :  { %4752 = vpush %v1562_v35  ;;  %v1585_v9 = vrot.slane %v1584_v36, 4 }
 0x799   :  { %v1573_v39 = vrot.slane %v1572_v37, 2 }
 0x79a   :  { %v1586_v43 = vadd.f32 %v1585_v9, %v1584_v36 }
 0x79b   :  { %v1574_v45 = vadd.f32 %v1573_v39, %v1572_v37 }
 0x79c   :  { %v1587_v46 = vrot.slane %v1586_v43, 2 }
 0x79d   :  { %v1575_v32 = vrot.slane %v1574_v45, 1 }
 0x79e   :  { %v1588_v47 = vadd.f32 %v1587_v46, %v1586_v43 }
 0x79f   :  { %v1576_v22 = vadd.f32 %v1575_v32, %v1574_v45 }
 0x7a0   :  { %v1589_v48 = vrot.slane %v1588_v47, 1 }
 0x7a1   :  { %4754 = vpush %v1576_v22 }
 0x7a2   :  { %v1590_v49 = vadd.f32 %v1589_v48, %v1588_v47 }
 0x7a4   :  { %4756 = vpush %v1590_v49 }
 0x7a5   :  { %4758 = vpush %v5130_v50 }
 0x7a6   :  { %4760 = vpush %v5132_v51 }
 0x7a7   :  { %4762 = vpush %v5134_v33 }
 0x7a8   :  { %4764 = vpush %v5136_v24 }
 0x7c6   :  { %s4751_s26 = spop %4750 }
 0x7c7   :  { %p1550_p10 = scmp.lt.f32.partialorder %s4751_s26, %s8317_s28 }
 0x7c9   :  { %s4753_s24 = spop %4752  ;;  %s8333_s26 = smov (!%p1550_p10, %s4751_s26), %s8317_s28 }
 0x7ca   :  { %s8335_s11 = smov (!%p1550_p10, %s6142_s11), %s8319_s17  ;;  %s8337_s4 = smov (!%p1550_p10, %s6180_s4), %s8321_s22 }
 0x7cb   :  { %s8339_s20 = smov (!%p1550_p10, %s8325_s20), %s8323_s12  ;;  %p1564_p11 = scmp.lt.f32.partialorder %s4753_s24, %s8333_s26 }
 0x7cd   :  { %s8341_s24 = smov (!%p1564_p11, %s4753_s24), %s8333_s26  ;;  %s8343_s23 = smov (!%p1564_p11, %s6144_s23), %s8335_s11 }
 0x7ce   :  { %s8345_s18 = smov (!%p1564_p11, %s6184_s18), %s8337_s4  ;;  %s8347_s15 = smov (!%p1564_p11, %s8327_s15), %s8339_s20 }
 0x7d2   :  { %s4755_s14 = spop %4754 }
 0x7d3   :  { %p1578_p12 = scmp.lt.f32.partialorder %s4755_s14, %s8341_s24 }
 0x7d5   :  { %s4757_s3 = spop %4756  ;;  %s8349_s14 = smov (!%p1578_p12, %s4755_s14), %s8341_s24 }
 0x7d6   :  { %s8351_s10 = smov (!%p1578_p12, %s6146_s10), %s8343_s23  ;;  %s8353_s25 = smov (!%p1578_p12, %s6210_s25), %s8345_s18 }
 0x7d7   :  { %s8355_s13 = smov (!%p1578_p12, %s8329_s13), %s8347_s15  ;;  %p1592_p13 = scmp.lt.f32.partialorder %s4757_s3, %s8349_s14 }
 0x7d8   :  { %s6311_s17 = spop %4758 }
 0x7d9   :  { %s1607_s22 = smul.f32 %s6311_s17, %s8063_s29  ;;  %s6315_s12 = spop %4760  ;;  %v1619_v52 = vstv %s6311_s17 }
 0x7da   :  { %s8357_s3 = smov (!%p1592_p13, %s4757_s3), %s8349_s14  ;;  %s8359_s27 = smov (!%p1592_p13, %s6148_s27), %s8351_s10  ;;  %v1697_v53 = vmul.f32 %v6062_v56, %v1619_v52  ;;  %v1729_v8 = vmul.f32 %v6068_v21, %v1619_v52  ;;  %v1644_v34 = vstv %s6315_s12 }
 0x7db   :  { %s8361_s7 = smov (!%p1592_p13, %s6218_s7), %s8353_s25  ;;  %s8363_s8 = smov (!%p1592_p13, %s8331_s8), %s8355_s13  ;;  %v1705_v58 = vmul.f32 %v6062_v56, %v1644_v34  ;;  %v1737_v59 = vmul.f32 %v6068_v21, %v1644_v34 }
 0x7dc   :  { %s1608_s11 = scvt.f32.s32 %s1607_s22  ;;  %s1611_s23 = sand.u32 2147483648, %s1607_s22  ;;  %v4766_v60 = vround.rtne.f32 %v1697_v53  ;;  %v4770_v61 = vround.rtne.f32 %v1729_v8 }
 0x7dd   :  { %s1613_s28 = sand.u32 2147483647, %s1607_s22  ;;  %s1632_s4 = smul.f32 %s6315_s12, %s8063_s29  ;;  %v4767_v2 = vround.rtne.f32 %v1705_v58  ;;  %v4771_v3 = vround.rtne.f32 %v1737_v59 }
 0x7de   :  { %s1609_s18 = scvt.s32.f32 %s1608_s11  ;;  %p1614_p0 = scmp.lt.f32.partialorder %s1613_s28, 2.1474836e+09 }
 0x7df   :  { %s1633_s20 = scvt.f32.s32 %s1632_s4  ;;  %s1636_s15 = sand.u32 2147483648, %s1632_s4 }
 0x7e0   :  { %s1610_s6 = sand.u32 2147483647, %s1609_s18  ;;  %s1638_s16 = sand.u32 2147483647, %s1632_s4 }
 0x7e1   :  { %s1612_s19 = sor.u32 %s1611_s23, %s1610_s6  ;;  %s1634_s10 = scvt.s32.f32 %s1633_s20 }
 0x7e2   :  { %s8365_s19 = smov (!%p1614_p0, %s1612_s19), %s1607_s22  ;;  %p1639_p1 = scmp.lt.f32.partialorder %s1638_s16, 2.1474836e+09 }
 0x7e3   :  { %s1635_s25 = sand.u32 2147483647, %s1634_s10  ;;  %s1616_s13 = ssub.f32 0.0, %s8365_s19 }
 0x7e4   :  { %s1637_s1 = sor.u32 %s1636_s15, %s1635_s25  ;;  %s6341_s26 = spop %4762 }
 0x7e5   :  { %s8367_s1 = smov (!%p1639_p1, %s1637_s1), %s1632_s4  ;;  %v1620_v62 = vstv %s1616_s13  ;;  %s1617_s24 = ssub.f32 255.0, %s8365_s19  ;;  %v1669_v13 = vstv %s6341_s26 }
 0x7e6   :  { %v1699_v40 = vmax.f32 %v4766_v60, %v1620_v62  ;;  %v1731_v63 = vmax.f32 %v4770_v61, %v1620_v62  ;;  %s1641_s14 = ssub.f32 0.0, %s8367_s1  ;;  %s6347_s22 = smul.f32 %s6341_s26, %s8063_s29  ;;  %v1713_v17 = vmul.f32 %v6062_v56, %v1669_v13  ;;  %v1745_v18 = vmul.f32 %v6068_v21, %v1669_v13 }
 0x7e7   :  { %s6349_s11 = spop %4764  ;;  %s1642_s23 = ssub.f32 255.0, %s8367_s1  ;;  %v1621_v4 = vstv %s1617_s24 }
 0x7e8   :  { %v1645_v5 = vstv %s1641_s14  ;;  %s1658_s28 = scvt.f32.s32 %s6347_s22  ;;  %s1661_s4 = sand.u32 2147483648, %s6347_s22  ;;  %v1700_v42 = vmin.f32 %v1699_v40, %v1621_v4  ;;  %v1732_v7 = vmin.f32 %v1731_v63, %v1621_v4  ;;  %v1694_v1 = vstv %s6349_s11 }
 0x7e9   :  { %v1707_v11 = vmax.f32 %v4767_v2, %v1645_v5  ;;  %v1739_v12 = vmax.f32 %v4771_v3, %v1645_v5  ;;  %s1663_s18 = sand.u32 2147483647, %s6347_s22  ;;  %s6358_s20 = smul.f32 %s6349_s11, %s8063_s29  ;;  %v1646_v14 = vstv %s1642_s23  ;;  %v4768_v28 = vround.rtne.f32 %v1713_v17 }
 0x7ea   :  { %s1659_s15 = scvt.s32.f32 %s1658_s28  ;;  %p6360_p2 = scmp.lt.f32.partialorder %s1663_s18, 2.1474836e+09  ;;  %v1701_v15 = vmul.f32 %v1700_v42, %v6282_v10  ;;  %v1733_v54 = vmul.f32 %v1732_v7, %v6282_v10  ;;  %v1721_v29 = vmul.f32 %v6062_v56, %v1694_v1  ;;  %v1753_v30 = vmul.f32 %v6068_v21, %v1694_v1 }
 0x7eb   :  { %s1683_s16 = scvt.f32.s32 %s6358_s20  ;;  %s1686_s10 = sand.u32 2147483648, %s6358_s20  ;;  %v1708_v16 = vmin.f32 %v1707_v11, %v1646_v14  ;;  %v1740_v55 = vmin.f32 %v1739_v12, %v1646_v14  ;;  %v4772_v6 = vround.rtne.f32 %v1745_v18 }
 0x7ec   :  { %s1660_s25 = sand.u32 2147483647, %s1659_s15  ;;  %s1688_s13 = sand.u32 2147483647, %s6358_s20  ;;  %v1702_v0 = vsub.f32 %v1701_v15, %v6062_v56  ;;  %v1734_v20 = vsub.f32 %v1733_v54, %v6068_v21  ;;  %v4769_v39 = vround.rtne.f32 %v1721_v29  ;;  %v4773_v43 = vround.rtne.f32 %v1753_v30 }
 0x7ed   :  { %s1662_s24 = sor.u32 %s1661_s4, %s1660_s25  ;;  %s1684_s14 = scvt.s32.f32 %s1683_s16  ;;  %v1709_v57 = vmul.f32 %v1708_v16, %v6285_v38  ;;  %v1741_v19 = vmul.f32 %v1740_v55, %v6285_v38 }
 0x7ee   :  { %s8369_s24 = smov (!%p6360_p2, %s1662_s24), %s6347_s22  ;;  %v1703_v23 = vmul.f32 %v1702_v0, %v1702_v0  ;;  %p1689_p3 = scmp.lt.f32.partialorder %s1688_s13, 2.1474836e+09  ;;  %v1735_v27 = vmul.f32 %v1734_v20, %v1734_v20 }
 0x7ef   :  { %s1685_s23 = sand.u32 2147483647, %s1684_s14  ;;  %v1710_v25 = vsub.f32 %v1709_v57, %v6062_v56  ;;  %v1742_v26 = vsub.f32 %v1741_v19, %v6068_v21  ;;  %s1666_s28 = ssub.f32 0.0, %s8369_s24 }
 0x7f0   :  { %s1687_s4 = sor.u32 %s1686_s10, %s1685_s23  ;;  %v1736_v36 = vadd.f32 %v1735_v27, %v1703_v23  ;;  %s1667_s22 = ssub.f32 255.0, %s8369_s24 }
 0x7f1   :  { %s8371_s4 = smov (!%p1689_p3, %s1687_s4), %s6358_s20  ;;  %v1711_v31 = vmul.f32 %v1710_v25, %v1710_v25  ;;  %v1743_v35 = vmul.f32 %v1742_v26, %v1742_v26  ;;  %v1670_v37 = vstv %s1666_s28  ;;  %s4532_s20 = sadd.f32 -0.32, %s5294_s21 }
 0x7f2   :  { %v1715_v10 = vmax.f32 %v4768_v28, %v1670_v37  ;;  %v1747_v9 = vmax.f32 %v4772_v6, %v1670_v37  ;;  %s1691_s18 = ssub.f32 0.0, %s8371_s4  ;;  %1761 = vadd.xlane.f32.xlu0 %v1736_v36  ;;  %v1671_v45 = vstv %s1667_s22 }
 0x7f3   :  { %v1744_v38 = vadd.f32 %v1743_v35, %v1711_v31  ;;  %s1692_s15 = ssub.f32 255.0, %s8371_s4  ;;  %s6404_s25 = smul.f32 0.003921569, %s4532_s20 }
 0x7f4   :  { %v1695_v46 = vstv %s1691_s18  ;;  %v1716_v32 = vmin.f32 %v1715_v10, %v1671_v45  ;;  %v1748_v47 = vmin.f32 %v1747_v9, %v1671_v45  ;;  %s4533_s6 = sadd.f32 -0.32999998, %s5294_s21  ;;  %v6465_v9 = vld [vmem:[%s8048_s0] sm:$0xff] }
 0x7f5   :  { %1775 = vadd.xlane.f32.xlu1 %v1744_v38  ;;  %v1723_v22 = vmax.f32 %v4769_v39, %v1695_v46  ;;  %v1755_v48 = vmax.f32 %v4773_v43, %v1695_v46  ;;  %v1696_v49 = vstv %s1692_s15  ;;  %s4534_s16 = sadd.f32 -0.34, %s5294_s21  ;;  %v6413_v18 = vstv %s6404_s25  ;;  %v6471_v39 = vld [vmem:[%s8048_s0 + $0x8] sm:$0xff] }
 0x7f6   :  { %v1717_v50 = vmul.f32 %v1716_v32, %v6288_v41  ;;  %v1749_v51 = vmul.f32 %v1748_v47, %v6288_v41  ;;  %s4535_s10 = sadd.f32 -0.35, %s5294_s21  ;;  %s6406_s13 = smul.f32 0.003921569, %s4533_s6  ;;  %5137 = vrcp.f32 %v6413_v18 }
 0x7f7   :  { %v1724_v33 = vmin.f32 %v1723_v22, %v1696_v49  ;;  %v1756_v24 = vmin.f32 %v1755_v48, %v1696_v49  ;;  %s6408_s14 = smul.f32 0.003921569, %s4534_s16 }
 0x7f8   :  { %v1718_v52 = vsub.f32 %v1717_v50, %v6062_v56  ;;  %v1750_v53 = vsub.f32 %v1749_v51, %v6068_v21  ;;  %s6410_s23 = smul.f32 0.003921569, %s4535_s10  ;;  %v6416_v1 = vstv %s6406_s13 }
 0x7f9   :  { %v1725_v8 = vmul.f32 %v1724_v33, %v6292_v44  ;;  %v1757_v34 = vmul.f32 %v1756_v24, %v6292_v44  ;;  %v6419_v19 = vstv %s6408_s14  ;;  %5139 = vrcp.f32 %v6416_v1 }
 0x7fa   :  { %v1719_v58 = vmul.f32 %v1718_v52, %v1718_v52  ;;  %v1751_v59 = vmul.f32 %v1750_v53, %v1750_v53  ;;  %v6423_v23 = vstv %s6410_s23  ;;  %5141 = vrcp.f32 %v6419_v19 }
 0x7fb   :  { %v1726_v60 = vsub.f32 %v1725_v8, %v6062_v56  ;;  %v1758_v61 = vsub.f32 %v1757_v34, %v6068_v21  ;;  %5143 = vrcp.f32 %v6423_v23 }
 0x7fc   :  { %v1752_v62 = vadd.f32 %v1751_v59, %v1719_v58 }
 0x7fd   :  { %v1727_v41 = vmul.f32 %v1726_v60, %v1726_v60  ;;  %v1759_v40 = vmul.f32 %v1758_v61, %v1758_v61 }
 0x7fe   :  { %1789 = vadd.xlane.f32.xlu0 %v1752_v62 }
 0x7ff   :  { %v1760_v63 = vadd.f32 %v1759_v40, %v1727_v41 }
 0x800   :  { %v5138_v31 = vpop.eup %5137 }
 0x801   :  { %1803 = vadd.xlane.f32.xlu1 %v1760_v63 }
 0x803   :  { %v5140_v35 = vpop.eup %5139 }
 0x804   :  { %v5142_v36 = vpop.eup %5141 }
 0x805   :  { %v5144_v37 = vpop.eup %5143 }
 0x87f   :  { %v1762_v2 = vpop.xlane.xlu0 %1761 }
 0x880   :  { %v1763_v3 = vrot.slane %v1762_v2, 4 }
 0x882   :  { %v1776_v4 = vpop.xlane.xlu1 %1775  ;;  %v1764_v5 = vadd.f32 %v1763_v3, %v1762_v2 }
 0x883   :  { %v1777_v44 = vrot.slane %v1776_v4, 4 }
 0x884   :  { %v1765_v7 = vrot.slane %v1764_v5, 2 }
 0x885   :  { %v1778_v42 = vadd.f32 %v1777_v44, %v1776_v4 }
 0x886   :  { %v1766_v11 = vadd.f32 %v1765_v7, %v1764_v5 }
 0x887   :  { %v1779_v56 = vrot.slane %v1778_v42, 2 }
 0x888   :  { %v1767_v21 = vrot.slane %v1766_v11, 1 }
 0x889   :  { %v1780_v12 = vadd.f32 %v1779_v56, %v1778_v42 }
 0x88a   :  { %v1768_v13 = vadd.f32 %v1767_v21, %v1766_v11 }
 0x88b   :  { %v1781_v14 = vrot.slane %v1780_v12, 1  ;;  %v1790_v15 = vpop.xlane.xlu0 %1789 }
 0x88c   :  { %v1791_v16 = vrot.slane %v1790_v15, 4  ;;  %4774 = vpush %v1768_v13 }
 0x88d   :  { %v1782_v55 = vadd.f32 %v1781_v14, %v1780_v12 }
 0x88e   :  { %v1804_v54 = vpop.xlane.xlu1 %1803  ;;  %v1792_v17 = vadd.f32 %v1791_v16, %v1790_v15 }
 0x88f   :  { %4776 = vpush %v1782_v55  ;;  %v1805_v0 = vrot.slane %v1804_v54, 4 }
 0x890   :  { %v1793_v57 = vrot.slane %v1792_v17, 2 }
 0x891   :  { %v1806_v20 = vadd.f32 %v1805_v0, %v1804_v54 }
 0x892   :  { %v1794_v25 = vadd.f32 %v1793_v57, %v1792_v17 }
 0x893   :  { %v1807_v26 = vrot.slane %v1806_v20, 2 }
 0x894   :  { %v1795_v27 = vrot.slane %v1794_v25, 1 }
 0x895   :  { %v1808_v28 = vadd.f32 %v1807_v26, %v1806_v20 }
 0x896   :  { %v1796_v29 = vadd.f32 %v1795_v27, %v1794_v25 }
 0x897   :  { %v1809_v30 = vrot.slane %v1808_v28, 1 }
 0x898   :  { %4778 = vpush %v1796_v29 }
 0x899   :  { %v1810_v6 = vadd.f32 %v1809_v30, %v1808_v28 }
 0x89b   :  { %4780 = vpush %v1810_v6 }
 0x89c   :  { %4782 = vpush %v5138_v31 }
 0x89d   :  { %4784 = vpush %v5140_v35 }
 0x89e   :  { %4786 = vpush %v5142_v36 }
 0x89f   :  { %4788 = vpush %v5144_v37 }
 0x8bd   :  { %s4775_s28 = spop %4774 }
 0x8be   :  { %p1770_p4 = scmp.lt.f32.partialorder %s4775_s28, %s8357_s3 }
 0x8c0   :  { %s4777_s22 = spop %4776  ;;  %s8373_s28 = smov (!%p1770_p4, %s4775_s28), %s8357_s3 }
 0x8c1   :  { %s8375_s9 = smov (!%p1770_p4, %s6273_s9), %s8359_s27  ;;  %s8377_s17 = smov (!%p1770_p4, %s6311_s17), %s8361_s7 }
 0x8c2   :  { %s8379_s19 = smov (!%p1770_p4, %s8365_s19), %s8363_s8  ;;  %p1784_p5 = scmp.lt.f32.partialorder %s4777_s22, %s8373_s28 }
 0x8c4   :  { %s8381_s22 = smov (!%p1784_p5, %s4777_s22), %s8373_s28  ;;  %s8383_s5 = smov (!%p1784_p5, %s6275_s5), %s8375_s9 }
 0x8c5   :  { %s8385_s12 = smov (!%p1784_p5, %s6315_s12), %s8377_s17  ;;  %s8387_s1 = smov (!%p1784_p5, %s8367_s1), %s8379_s19 }
 0x8c9   :  { %s4779_s18 = spop %4778 }
 0x8ca   :  { %p1798_p6 = scmp.lt.f32.partialorder %s4779_s18, %s8381_s22 }
 0x8cc   :  { %s4781_s15 = spop %4780  ;;  %s8389_s18 = smov (!%p1798_p6, %s4779_s18), %s8381_s22 }
 0x8cd   :  { %s8391_s2 = smov (!%p1798_p6, %s6277_s2), %s8383_s5  ;;  %s8393_s26 = smov (!%p1798_p6, %s6341_s26), %s8385_s12 }
 0x8ce   :  { %s8395_s24 = smov (!%p1798_p6, %s8369_s24), %s8387_s1  ;;  %p1812_p7 = scmp.lt.f32.partialorder %s4781_s15, %s8389_s18 }
 0x8cf   :  { %s6442_s27 = spop %4782 }
 0x8d0   :  { %s1827_s7 = smul.f32 %s6442_s27, %s8063_s29  ;;  %s6446_s8 = spop %4784  ;;  %v1839_v10 = vstv %s6442_s27 }
 0x8d1   :  { %s8397_s15 = smov (!%p1812_p7, %s4781_s15), %s8389_s18  ;;  %s8399_s30 = smov (!%p1812_p7, %s6279_s30), %s8391_s2  ;;  %v1917_v38 = vmul.f32 %v6465_v9, %v1839_v10  ;;  %v1949_v43 = vmul.f32 %v6471_v39, %v1839_v10  ;;  %v1864_v45 = vstv %s6446_s8 }
 0x8d2   :  { %s8401_s11 = smov (!%p1812_p7, %s6349_s11), %s8393_s26  ;;  %s8403_s4 = smov (!%p1812_p7, %s8371_s4), %s8395_s24  ;;  %v1925_v46 = vmul.f32 %v6465_v9, %v1864_v45  ;;  %v1957_v32 = vmul.f32 %v6471_v39, %v1864_v45 }
 0x8d3   :  { %s1828_s9 = scvt.f32.s32 %s1827_s7  ;;  %s1831_s5 = sand.u32 2147483648, %s1827_s7  ;;  %v4790_v47 = vround.rtne.f32 %v1917_v38  ;;  %v4794_v22 = vround.rtne.f32 %v1949_v43 }
 0x8d4   :  { %s1833_s3 = sand.u32 2147483647, %s1827_s7  ;;  %s1852_s17 = smul.f32 %s6446_s8, %s8063_s29  ;;  %v4791_v51 = vround.rtne.f32 %v1925_v46  ;;  %v4795_v33 = vround.rtne.f32 %v1957_v32 }
 0x8d5   :  { %s1829_s12 = scvt.s32.f32 %s1828_s9  ;;  %p1834_p8 = scmp.lt.f32.partialorder %s1833_s3, 2.1474836e+09 }
 0x8d6   :  { %s1853_s19 = scvt.f32.s32 %s1852_s17  ;;  %s1856_s1 = sand.u32 2147483648, %s1852_s17 }
 0x8d7   :  { %s1830_s20 = sand.u32 2147483647, %s1829_s12  ;;  %s1858_s6 = sand.u32 2147483647, %s1852_s17 }
 0x8d8   :  { %s1832_s16 = sor.u32 %s1831_s5, %s1830_s20  ;;  %s1854_s28 = scvt.s32.f32 %s1853_s19 }
 0x8d9   :  { %s8405_s16 = smov (!%p1834_p8, %s1832_s16), %s1827_s7  ;;  %p1859_p9 = scmp.lt.f32.partialorder %s1858_s6, 2.1474836e+09 }
 0x8da   :  { %s1855_s22 = sand.u32 2147483647, %s1854_s28  ;;  %s1836_s18 = ssub.f32 0.0, %s8405_s16 }
 0x8db   :  { %s1857_s9 = sor.u32 %s1856_s1, %s1855_s22  ;;  %s6482_s7 = spop %4786 }
 0x8dc   :  { %s8407_s9 = smov (!%p1859_p9, %s1857_s9), %s1852_s17  ;;  %v1840_v48 = vstv %s1836_s18  ;;  %s1837_s5 = ssub.f32 255.0, %s8405_s16  ;;  %v1889_v59 = vstv %s6482_s7 }
 0x8dd   :  { %v1919_v49 = vmax.f32 %v4790_v47, %v1840_v48  ;;  %v1951_v50 = vmax.f32 %v4794_v22, %v1840_v48  ;;  %s1861_s3 = ssub.f32 0.0, %s8407_s9  ;;  %s6488_s12 = smul.f32 %s6482_s7, %s8063_s29  ;;  %v1933_v63 = vmul.f32 %v6465_v9, %v1889_v59  ;;  %v1965_v2 = vmul.f32 %v6471_v39, %v1889_v59 }
 0x8de   :  { %s6490_s17 = spop %4788  ;;  %s1862_s19 = ssub.f32 255.0, %s8407_s9  ;;  %v1841_v24 = vstv %s1837_s5 }
 0x8df   :  { %v1865_v52 = vstv %s1861_s3  ;;  %s1878_s1 = scvt.f32.s32 %s6488_s12  ;;  %s1881_s20 = sand.u32 2147483648, %s6488_s12  ;;  %v1920_v53 = vmin.f32 %v1919_v49, %v1841_v24  ;;  %v1952_v8 = vmin.f32 %v1951_v50, %v1841_v24  ;;  %v1914_v4 = vstv %s6490_s17 }
 0x8e0   :  { %v1927_v34 = vmax.f32 %v4791_v51, %v1865_v52  ;;  %v1959_v58 = vmax.f32 %v4795_v33, %v1865_v52  ;;  %s1883_s6 = sand.u32 2147483647, %s6488_s12  ;;  %s6499_s10 = smul.f32 %s6490_s17, %s8063_s29  ;;  %v1866_v60 = vstv %s1862_s19  ;;  %v4792_v12 = vround.rtne.f32 %v1933_v63 }
 0x8e1   :  { %s1879_s2 = scvt.s32.f32 %s1878_s1  ;;  %p6501_p10 = scmp.lt.f32.partialorder %s1883_s6, 2.1474836e+09  ;;  %v1921_v61 = vmul.f32 %v1920_v53, %v6413_v18  ;;  %v1953_v40 = vmul.f32 %v1952_v8, %v6413_v18  ;;  %v1941_v13 = vmul.f32 %v6465_v9, %v1914_v4  ;;  %v1973_v14 = vmul.f32 %v6471_v39, %v1914_v4 }
 0x8e2   :  { %s1903_s24 = scvt.f32.s32 %s6499_s10  ;;  %s1906_s28 = sand.u32 2147483648, %s6499_s10  ;;  %v1928_v62 = vmin.f32 %v1927_v34, %v1866_v60  ;;  %v1960_v41 = vmin.f32 %v1959_v58, %v1866_v60  ;;  %v4796_v15 = vround.rtne.f32 %v1965_v2 }
 0x8e3   :  { %s1880_s22 = sand.u32 2147483647, %s1879_s2  ;;  %s1908_s18 = sand.u32 2147483647, %s6499_s10  ;;  %v1922_v3 = vsub.f32 %v1921_v61, %v6465_v9  ;;  %v1954_v42 = vsub.f32 %v1953_v40, %v6471_v39  ;;  %v4793_v57 = vround.rtne.f32 %v1941_v13  ;;  %v4797_v20 = vround.rtne.f32 %v1973_v14 }
 0x8e4   :  { %s1882_s5 = sor.u32 %s1881_s20, %s1880_s22  ;;  %s1904_s3 = scvt.s32.f32 %s1903_s24  ;;  %v1929_v44 = vmul.f32 %v1928_v62, %v6416_v1  ;;  %v1961_v5 = vmul.f32 %v1960_v41, %v6416_v1 }
 0x8e5   :  { %s8409_s5 = smov (!%p6501_p10, %s1882_s5), %s6488_s12  ;;  %v1923_v7 = vmul.f32 %v1922_v3, %v1922_v3  ;;  %p1909_p11 = scmp.lt.f32.partialorder %s1908_s18, 2.1474836e+09  ;;  %v1955_v21 = vmul.f32 %v1954_v42, %v1954_v42 }
 0x8e6   :  { %s1905_s19 = sand.u32 2147483647, %s1904_s3  ;;  %v1930_v56 = vsub.f32 %v1929_v44, %v6465_v9  ;;  %v1962_v11 = vsub.f32 %v1961_v5, %v6471_v39  ;;  %s1886_s1 = ssub.f32 0.0, %s8409_s5 }
 0x8e7   :  { %s1907_s20 = sor.u32 %s1906_s28, %s1905_s19  ;;  %v1956_v54 = vadd.f32 %v1955_v21, %v1923_v7  ;;  %s1887_s12 = ssub.f32 255.0, %s8409_s5 }
 0x8e8   :  { %s8411_s20 = smov (!%p1909_p11, %s1907_s20), %s6499_s10  ;;  %v1931_v16 = vmul.f32 %v1930_v56, %v1930_v56  ;;  %v1963_v55 = vmul.f32 %v1962_v11, %v1962_v11  ;;  %v1890_v17 = vstv %s1886_s1  ;;  %s4536_s10 = sadd.f32 -0.35999998, %s5294_s21 }
 0x8e9   :  { %v1935_v18 = vmax.f32 %v4792_v12, %v1890_v17  ;;  %v1967_v0 = vmax.f32 %v4796_v15, %v1890_v17  ;;  %s1911_s6 = ssub.f32 0.0, %s8411_s20  ;;  %1981 = vadd.xlane.f32.xlu0 %v1956_v54  ;;  %v1891_v25 = vstv %s1887_s12 }
 0x8ea   :  { %v1964_v1 = vadd.f32 %v1963_v55, %v1931_v16  ;;  %s1912_s2 = ssub.f32 255.0, %s8411_s20  ;;  %s6545_s22 = smul.f32 0.003921569, %s4536_s10 }
 0x8eb   :  { %v1915_v26 = vstv %s1911_s6  ;;  %v1936_v27 = vmin.f32 %v1935_v18, %v1891_v25  ;;  %v1968_v28 = vmin.f32 %v1967_v0, %v1891_v25  ;;  %s4537_s26 = sadd.f32 -0.37, %s5294_s21 }
 0x8ec   :  { %1995 = vadd.xlane.f32.xlu1 %v1964_v1  ;;  %v1943_v29 = vmax.f32 %v4793_v57, %v1915_v26  ;;  %v1975_v30 = vmax.f32 %v4797_v20, %v1915_v26  ;;  %v1916_v6 = vstv %s1912_s2  ;;  %s4538_s24 = sadd.f32 -0.38, %s5294_s21  ;;  %v6554_v4 = vstv %s6545_s22 }
 0x8ed   :  { %v1937_v31 = vmul.f32 %v1936_v27, %v6419_v19  ;;  %v1969_v35 = vmul.f32 %v1968_v28, %v6419_v19  ;;  %s4539_s28 = sadd.f32 -0.39, %s5294_s21  ;;  %s6547_s18 = smul.f32 0.003921569, %s4537_s26  ;;  %5145 = vrcp.f32 %v6554_v4 }
 0x8ee   :  { %v1944_v36 = vmin.f32 %v1943_v29, %v1916_v6  ;;  %v1976_v37 = vmin.f32 %v1975_v30, %v1916_v6  ;;  %s6549_s3 = smul.f32 0.003921569, %s4538_s24 }
 0x8ef   :  { %v1938_v10 = vsub.f32 %v1937_v31, %v6465_v9  ;;  %v1970_v38 = vsub.f32 %v1969_v35, %v6471_v39  ;;  %s6551_s19 = smul.f32 0.003921569, %s4539_s28  ;;  %v6557_v5 = vstv %s6547_s18 }
 0x8f0   :  { %v1945_v43 = vmul.f32 %v1944_v36, %v6423_v23  ;;  %v1977_v45 = vmul.f32 %v1976_v37, %v6423_v23  ;;  %v6560_v7 = vstv %s6549_s3  ;;  %5147 = vrcp.f32 %v6557_v5 }
 0x8f1   :  { %v1939_v46 = vmul.f32 %v1938_v10, %v1938_v10  ;;  %v1971_v32 = vmul.f32 %v1970_v38, %v1970_v38  ;;  %v6564_v11 = vstv %s6551_s19  ;;  %5149 = vrcp.f32 %v6560_v7 }
 0x8f2   :  { %v1946_v47 = vsub.f32 %v1945_v43, %v6465_v9  ;;  %v1978_v22 = vsub.f32 %v1977_v45, %v6471_v39  ;;  %5151 = vrcp.f32 %v6564_v11 }
 0x8f3   :  { %v1972_v48 = vadd.f32 %v1971_v32, %v1939_v46 }
 0x8f4   :  { %v1947_v19 = vmul.f32 %v1946_v47, %v1946_v47  ;;  %v1979_v49 = vmul.f32 %v1978_v22, %v1978_v22 }
 0x8f5   :  { %2009 = vadd.xlane.f32.xlu0 %v1972_v48 }
 0x8f6   :  { %v1980_v50 = vadd.f32 %v1979_v49, %v1947_v19 }
 0x8f7   :  { %v5146_v54 = vpop.eup %5145 }
 0x8f8   :  { %2023 = vadd.xlane.f32.xlu1 %v1980_v50 }
 0x8fa   :  { %v5148_v17 = vpop.eup %5147 }
 0x8fb   :  { %v5150_v18 = vpop.eup %5149 }
 0x8fc   :  { %v5152_v0 = vpop.eup %5151 }
 0x976   :  { %v1982_v51 = vpop.xlane.xlu0 %1981 }
 0x977   :  { %v1983_v33 = vrot.slane %v1982_v51, 4 }
 0x979   :  { %v1996_v24 = vpop.xlane.xlu1 %1995  ;;  %v1984_v52 = vadd.f32 %v1983_v33, %v1982_v51 }
 0x97a   :  { %v1997_v23 = vrot.slane %v1996_v24, 4 }
 0x97b   :  { %v1985_v8 = vrot.slane %v1984_v52, 2 }
 0x97c   :  { %v1998_v53 = vadd.f32 %v1997_v23, %v1996_v24 }
 0x97d   :  { %v1986_v58 = vadd.f32 %v1985_v8, %v1984_v52 }
 0x97e   :  { %v1999_v34 = vrot.slane %v1998_v53, 2 }
 0x97f   :  { %v1987_v59 = vrot.slane %v1986_v58, 1 }
 0x980   :  { %v2000_v60 = vadd.f32 %v1999_v34, %v1998_v53 }
 0x981   :  { %v1988_v61 = vadd.f32 %v1987_v59, %v1986_v58 }
 0x982   :  { %v2001_v62 = vrot.slane %v2000_v60, 1  ;;  %v2010_v41 = vpop.xlane.xlu0 %2009 }
 0x983   :  { %v2011_v40 = vrot.slane %v2010_v41, 4  ;;  %4798 = vpush %v1988_v61 }
 0x984   :  { %v2002_v63 = vadd.f32 %v2001_v62, %v2000_v60 }
 0x985   :  { %v2024_v2 = vpop.xlane.xlu1 %2023  ;;  %v2012_v3 = vadd.f32 %v2011_v40, %v2010_v41 }
 0x986   :  { %4800 = vpush %v2002_v63  ;;  %v2025_v44 = vrot.slane %v2024_v2, 4 }
 0x987   :  { %v2013_v42 = vrot.slane %v2012_v3, 2 }
 0x988   :  { %v2026_v56 = vadd.f32 %v2025_v44, %v2024_v2 }
 0x989   :  { %v2014_v21 = vadd.f32 %v2013_v42, %v2012_v3 }
 0x98a   :  { %v2027_v12 = vrot.slane %v2026_v56, 2 }
 0x98b   :  { %v2015_v13 = vrot.slane %v2014_v21, 1 }
 0x98c   :  { %v2028_v14 = vadd.f32 %v2027_v12, %v2026_v56 }
 0x98d   :  { %v2016_v15 = vadd.f32 %v2015_v13, %v2014_v21 }
 0x98e   :  { %v2029_v16 = vrot.slane %v2028_v14, 1 }
 0x98f   :  { %4802 = vpush %v2016_v15 }
 0x990   :  { %v2030_v55 = vadd.f32 %v2029_v16, %v2028_v14 }
 0x992   :  { %4804 = vpush %v2030_v55 }
 0x993   :  { %4806 = vpush %v5146_v54 }
 0x994   :  { %4808 = vpush %v5148_v17 }
 0x995   :  { %4810 = vpush %v5150_v18 }
 0x996   :  { %4812 = vpush %v5152_v0 }
 0x9b4   :  { %s4799_s1 = spop %4798 }
 0x9b5   :  { %p1990_p12 = scmp.lt.f32.partialorder %s4799_s1, %s8397_s15 }
 0x9b7   :  { %s4801_s12 = spop %4800  ;;  %s8413_s1 = smov (!%p1990_p12, %s4799_s1), %s8397_s15 }
 0x9b8   :  { %s8415_s25 = smov (!%p1990_p12, %s6404_s25), %s8399_s30  ;;  %s8417_s27 = smov (!%p1990_p12, %s6442_s27), %s8401_s11 }
 0x9b9   :  { %s8419_s16 = smov (!%p1990_p12, %s8405_s16), %s8403_s4  ;;  %p2004_p13 = scmp.lt.f32.partialorder %s4801_s12, %s8413_s1 }
 0x9bb   :  { %s8421_s12 = smov (!%p2004_p13, %s4801_s12), %s8413_s1  ;;  %s8423_s13 = smov (!%p2004_p13, %s6406_s13), %s8415_s25 }
 0x9bc   :  { %s8425_s8 = smov (!%p2004_p13, %s6446_s8), %s8417_s27  ;;  %s8427_s9 = smov (!%p2004_p13, %s8407_s9), %s8419_s16 }
 0x9c0   :  { %s4803_s6 = spop %4802 }
 0x9c1   :  { %p2018_p0 = scmp.lt.f32.partialorder %s4803_s6, %s8421_s12 }
 0x9c3   :  { %s4805_s2 = spop %4804  ;;  %s8429_s6 = smov (!%p2018_p0, %s4803_s6), %s8421_s12 }
 0x9c4   :  { %s8431_s14 = smov (!%p2018_p0, %s6408_s14), %s8423_s13  ;;  %s8433_s7 = smov (!%p2018_p0, %s6482_s7), %s8425_s8 }
 0x9c5   :  { %s8435_s5 = smov (!%p2018_p0, %s8409_s5), %s8427_s9  ;;  %p2032_p1 = scmp.lt.f32.partialorder %s4805_s2, %s8429_s6 }
 0x9c6   :  { %s6583_s30 = spop %4806 }
 0x9c7   :  { %s2047_s11 = smul.f32 %s6583_s30, %s8063_s29  ;;  %s6587_s4 = spop %4808  ;;  %v2059_v1 = vstv %s6583_s30 }
 0x9c8   :  { %s8437_s2 = smov (!%p2032_p1, %s4805_s2), %s8429_s6  ;;  %s8439_s23 = smov (!%p2032_p1, %s6410_s23), %s8431_s14  ;;  %v2137_v57 = vmul.f32 %v6465_v9, %v2059_v1  ;;  %v2169_v20 = vmul.f32 %v6471_v39, %v2059_v1  ;;  %v2084_v25 = vstv %s6587_s4 }
 0x9c9   :  { %s8441_s17 = smov (!%p2032_p1, %s6490_s17), %s8433_s7  ;;  %s8443_s20 = smov (!%p2032_p1, %s8411_s20), %s8435_s5  ;;  %v2145_v26 = vmul.f32 %v6465_v9, %v2084_v25  ;;  %v2177_v27 = vmul.f32 %v6471_v39, %v2084_v25 }
 0x9ca   :  { %s2048_s25 = scvt.f32.s32 %s2047_s11  ;;  %s2051_s13 = sand.u32 2147483648, %s2047_s11  ;;  %v4814_v28 = vround.rtne.f32 %v2137_v57  ;;  %v4818_v29 = vround.rtne.f32 %v2169_v20 }
 0x9cb   :  { %s2053_s15 = sand.u32 2147483647, %s2047_s11  ;;  %s2072_s27 = smul.f32 %s6587_s4, %s8063_s29  ;;  %v4815_v35 = vround.rtne.f32 %v2145_v26  ;;  %v4819_v36 = vround.rtne.f32 %v2177_v27 }
 0x9cc   :  { %s2049_s8 = scvt.s32.f32 %s2048_s25  ;;  %p2054_p2 = scmp.lt.f32.partialorder %s2053_s15, 2.1474836e+09 }
 0x9cd   :  { %s2073_s16 = scvt.f32.s32 %s2072_s27  ;;  %s2076_s9 = sand.u32 2147483648, %s2072_s27 }
 0x9ce   :  { %s2050_s10 = sand.u32 2147483647, %s2049_s8  ;;  %s2078_s26 = sand.u32 2147483647, %s2072_s27 }
 0x9cf   :  { %s2052_s24 = sor.u32 %s2051_s13, %s2050_s10  ;;  %s2074_s14 = scvt.s32.f32 %s2073_s16 }
 0x9d0   :  { %s8445_s24 = smov (!%p2054_p2, %s2052_s24), %s2047_s11  ;;  %p2079_p3 = scmp.lt.f32.partialorder %s2078_s26, 2.1474836e+09 }
 0x9d1   :  { %s2075_s7 = sand.u32 2147483647, %s2074_s14  ;;  %s2056_s5 = ssub.f32 0.0, %s8445_s24 }
 0x9d2   :  { %s2077_s28 = sor.u32 %s2076_s9, %s2075_s7  ;;  %s6613_s1 = spop %4810 }
 0x9d3   :  { %s8447_s28 = smov (!%p2079_p3, %s2077_s28), %s2072_s27  ;;  %v2060_v30 = vstv %s2056_s5  ;;  %s2057_s12 = ssub.f32 255.0, %s8445_s24  ;;  %v2109_v32 = vstv %s6613_s1 }
 0x9d4   :  { %v2139_v6 = vmax.f32 %v4814_v28, %v2060_v30  ;;  %v2171_v31 = vmax.f32 %v4818_v29, %v2060_v30  ;;  %s2081_s6 = ssub.f32 0.0, %s8447_s28  ;;  %s6619_s11 = smul.f32 %s6613_s1, %s8063_s29  ;;  %v2153_v50 = vmul.f32 %v6465_v9, %v2109_v32  ;;  %v2185_v51 = vmul.f32 %v6471_v39, %v2109_v32 }
 0x9d5   :  { %s6621_s25 = spop %4812  ;;  %s2082_s13 = ssub.f32 255.0, %s8447_s28  ;;  %v2061_v37 = vstv %s2057_s12 }
 0x9d6   :  { %v2085_v10 = vstv %s2081_s6  ;;  %s2098_s15 = scvt.f32.s32 %s6619_s11  ;;  %s2101_s27 = sand.u32 2147483648, %s6619_s11  ;;  %v2140_v38 = vmin.f32 %v2139_v6, %v2061_v37  ;;  %v2172_v43 = vmin.f32 %v2171_v31, %v2061_v37  ;;  %v2134_v24 = vstv %s6621_s25 }
 0x9d7   :  { %v2147_v45 = vmax.f32 %v4815_v35, %v2085_v10  ;;  %v2179_v46 = vmax.f32 %v4819_v36, %v2085_v10  ;;  %s2103_s8 = sand.u32 2147483647, %s6619_s11  ;;  %s6630_s16 = smul.f32 %s6621_s25, %s8063_s29  ;;  %v2086_v47 = vstv %s2082_s13  ;;  %v4816_v60 = vround.rtne.f32 %v2153_v50 }
 0x9d8   :  { %s2099_s9 = scvt.s32.f32 %s2098_s15  ;;  %p6632_p4 = scmp.lt.f32.partialorder %s2103_s8, 2.1474836e+09  ;;  %v2141_v22 = vmul.f32 %v2140_v38, %v6554_v4  ;;  %v2173_v49 = vmul.f32 %v2172_v43, %v6554_v4  ;;  %v2161_v61 = vmul.f32 %v6465_v9, %v2134_v24  ;;  %v2193_v62 = vmul.f32 %v6471_v39, %v2134_v24 }
 0x9d9   :  { %s2123_s26 = scvt.f32.s32 %s6630_s16  ;;  %s2126_s14 = sand.u32 2147483648, %s6630_s16  ;;  %v2148_v48 = vmin.f32 %v2147_v45, %v2086_v47  ;;  %v2180_v19 = vmin.f32 %v2179_v46, %v2086_v47  ;;  %v4820_v41 = vround.rtne.f32 %v2185_v51 }
 0x9da   :  { %s2100_s7 = sand.u32 2147483647, %s2099_s9  ;;  %s2128_s5 = sand.u32 2147483647, %s6630_s16  ;;  %v2142_v33 = vsub.f32 %v2141_v22, %v6465_v9  ;;  %v2174_v53 = vsub.f32 %v2173_v49, %v6471_v39  ;;  %v4817_v42 = vround.rtne.f32 %v2161_v61  ;;  %v4821_v56 = vround.rtne.f32 %v2193_v62 }
 0x9db   :  { %s2102_s12 = sor.u32 %s2101_s27, %s2100_s7  ;;  %s2124_s6 = scvt.s32.f32 %s2123_s26  ;;  %v2149_v23 = vmul.f32 %v2148_v48, %v6557_v5  ;;  %v2181_v52 = vmul.f32 %v2180_v19, %v6557_v5 }
 0x9dc   :  { %s8449_s12 = smov (!%p6632_p4, %s2102_s12), %s6619_s11  ;;  %v2143_v8 = vmul.f32 %v2142_v33, %v2142_v33  ;;  %p2129_p5 = scmp.lt.f32.partialorder %s2128_s5, 2.1474836e+09  ;;  %v2175_v59 = vmul.f32 %v2174_v53, %v2174_v53 }
 0x9dd   :  { %s2125_s13 = sand.u32 2147483647, %s2124_s6  ;;  %v2150_v34 = vsub.f32 %v2149_v23, %v6465_v9  ;;  %v2182_v58 = vsub.f32 %v2181_v52, %v6471_v39  ;;  %s2106_s15 = ssub.f32 0.0, %s8449_s12 }
 0x9de   :  { %s2127_s27 = sor.u32 %s2126_s14, %s2125_s13  ;;  %v2176_v2 = vadd.f32 %v2175_v59, %v2143_v8  ;;  %s2107_s11 = ssub.f32 255.0, %s8449_s12 }
 0x9df   :  { %s8451_s27 = smov (!%p2129_p5, %s2127_s27), %s6630_s16  ;;  %v2151_v40 = vmul.f32 %v2150_v34, %v2150_v34  ;;  %v2183_v63 = vmul.f32 %v2182_v58, %v2182_v58  ;;  %v2110_v3 = vstv %s2106_s15  ;;  %s4540_s16 = sadd.f32 -0.39999998, %s5294_s21 }
 0x9e0   :  { %v2155_v4 = vmax.f32 %v4816_v60, %v2110_v3  ;;  %v2187_v44 = vmax.f32 %v4820_v41, %v2110_v3  ;;  %s2131_s8 = ssub.f32 0.0, %s8451_s27  ;;  %2201 = vadd.xlane.f32.xlu0 %v2176_v2  ;;  %v2111_v21 = vstv %s2107_s11 }
 0x9e1   :  { %v2184_v5 = vadd.f32 %v2183_v63, %v2151_v40  ;;  %s2132_s9 = ssub.f32 255.0, %s8451_s27  ;;  %s6676_s7 = smul.f32 0.003921569, %s4540_s16 }
 0x9e2   :  { %v2135_v12 = vstv %s2131_s8  ;;  %v2156_v13 = vmin.f32 %v2155_v4, %v2111_v21  ;;  %v2188_v14 = vmin.f32 %v2187_v44, %v2111_v21  ;;  %s4541_s10 = sadd.f32 -0.41, %s5294_s21 }
 0x9e3   :  { %2215 = vadd.xlane.f32.xlu1 %v2184_v5  ;;  %v2163_v15 = vmax.f32 %v4817_v42, %v2135_v12  ;;  %v2195_v16 = vmax.f32 %v4821_v56, %v2135_v12  ;;  %v2136_v55 = vstv %s2132_s9  ;;  %s4542_s26 = sadd.f32 -0.42, %s5294_s21  ;;  %v6685_v24 = vstv %s6676_s7 }
 0x9e4   :  { %v2157_v54 = vmul.f32 %v2156_v13, %v6560_v7  ;;  %v2189_v17 = vmul.f32 %v2188_v14, %v6560_v7  ;;  %s4543_s14 = sadd.f32 -0.42999998, %s5294_s21  ;;  %s6678_s5 = smul.f32 0.003921569, %s4541_s10  ;;  %5153 = vrcp.f32 %v6685_v24 }
 0x9e5   :  { %v2164_v18 = vmin.f32 %v2163_v15, %v2136_v55  ;;  %v2196_v0 = vmin.f32 %v2195_v16, %v2136_v55  ;;  %s6680_s6 = smul.f32 0.003921569, %s4542_s26 }
 0x9e6   :  { %v2158_v1 = vsub.f32 %v2157_v54, %v6465_v9  ;;  %v2190_v57 = vsub.f32 %v2189_v17, %v6471_v39  ;;  %s6682_s13 = smul.f32 0.003921569, %s4543_s14  ;;  %v6688_v52 = vstv %s6678_s5 }
 0x9e7   :  { %v2165_v20 = vmul.f32 %v2164_v18, %v6564_v11  ;;  %v2197_v25 = vmul.f32 %v2196_v0, %v6564_v11  ;;  %v6691_v8 = vstv %s6680_s6  ;;  %5155 = vrcp.f32 %v6688_v52 }
 0x9e8   :  { %v2159_v26 = vmul.f32 %v2158_v1, %v2158_v1  ;;  %v2191_v27 = vmul.f32 %v2190_v57, %v2190_v57  ;;  %v6695_v58 = vstv %s6682_s13  ;;  %5157 = vrcp.f32 %v6691_v8 }
 0x9e9   :  { %v2166_v28 = vsub.f32 %v2165_v20, %v6465_v9  ;;  %v2198_v29 = vsub.f32 %v2197_v25, %v6471_v39  ;;  %5159 = vrcp.f32 %v6695_v58 }
 0x9ea   :  { %v2192_v30 = vadd.f32 %v2191_v27, %v2159_v26 }
 0x9eb   :  { %v2167_v7 = vmul.f32 %v2166_v28, %v2166_v28  ;;  %v2199_v6 = vmul.f32 %v2198_v29, %v2198_v29 }
 0x9ec   :  { %2229 = vadd.xlane.f32.xlu0 %v2192_v30 }
 0x9ed   :  { %v2200_v31 = vadd.f32 %v2199_v6, %v2167_v7 }
 0x9ee   :  { %v5154_v2 = vpop.eup %5153 }
 0x9ef   :  { %2243 = vadd.xlane.f32.xlu1 %v2200_v31 }
 0x9f1   :  { %v5156_v3 = vpop.eup %5155 }
 0x9f2   :  { %v5158_v4 = vpop.eup %5157 }
 0x9f3   :  { %v5160_v44 = vpop.eup %5159 }
 0xa6d   :  { %v2202_v35 = vpop.xlane.xlu0 %2201 }
 0xa6e   :  { %v2203_v36 = vrot.slane %v2202_v35, 4 }
 0xa70   :  { %v2216_v37 = vpop.xlane.xlu1 %2215  ;;  %v2204_v10 = vadd.f32 %v2203_v36, %v2202_v35 }
 0xa71   :  { %v2217_v11 = vrot.slane %v2216_v37, 4 }
 0xa72   :  { %v2205_v43 = vrot.slane %v2204_v10, 2 }
 0xa73   :  { %v2218_v38 = vadd.f32 %v2217_v11, %v2216_v37 }
 0xa74   :  { %v2206_v46 = vadd.f32 %v2205_v43, %v2204_v10 }
 0xa75   :  { %v2219_v45 = vrot.slane %v2218_v38, 2 }
 0xa76   :  { %v2207_v32 = vrot.slane %v2206_v46, 1 }
 0xa77   :  { %v2220_v47 = vadd.f32 %v2219_v45, %v2218_v38 }
 0xa78   :  { %v2208_v22 = vadd.f32 %v2207_v32, %v2206_v46 }
 0xa79   :  { %v2221_v48 = vrot.slane %v2220_v47, 1  ;;  %v2230_v19 = vpop.xlane.xlu0 %2229 }
 0xa7a   :  { %v2231_v49 = vrot.slane %v2230_v19, 4  ;;  %4822 = vpush %v2208_v22 }
 0xa7b   :  { %v2222_v50 = vadd.f32 %v2221_v48, %v2220_v47 }
 0xa7c   :  { %v2244_v51 = vpop.xlane.xlu1 %2243  ;;  %v2232_v33 = vadd.f32 %v2231_v49, %v2230_v19 }
 0xa7d   :  { %4824 = vpush %v2222_v50  ;;  %v2245_v23 = vrot.slane %v2244_v51, 4 }
 0xa7e   :  { %v2233_v53 = vrot.slane %v2232_v33, 2 }
 0xa7f   :  { %v2246_v34 = vadd.f32 %v2245_v23, %v2244_v51 }
 0xa80   :  { %v2234_v59 = vadd.f32 %v2233_v53, %v2232_v33 }
 0xa81   :  { %v2247_v60 = vrot.slane %v2246_v34, 2 }
 0xa82   :  { %v2235_v61 = vrot.slane %v2234_v59, 1 }
 0xa83   :  { %v2248_v62 = vadd.f32 %v2247_v60, %v2246_v34 }
 0xa84   :  { %v2236_v41 = vadd.f32 %v2235_v61, %v2234_v59 }
 0xa85   :  { %v2249_v40 = vrot.slane %v2248_v62, 1 }
 0xa86   :  { %4826 = vpush %v2236_v41 }
 0xa87   :  { %v2250_v63 = vadd.f32 %v2249_v40, %v2248_v62 }
 0xa89   :  { %4828 = vpush %v2250_v63 }
 0xa8a   :  { %4830 = vpush %v5154_v2 }
 0xa8b   :  { %4832 = vpush %v5156_v3 }
 0xa8c   :  { %4834 = vpush %v5158_v4 }
 0xa8d   :  { %4836 = vpush %v5160_v44 }
 0xaab   :  { %s4823_s15 = spop %4822 }
 0xaac   :  { %p2210_p6 = scmp.lt.f32.partialorder %s4823_s15, %s8437_s2 }
 0xaae   :  { %s4825_s11 = spop %4824  ;;  %s8453_s15 = smov (!%p2210_p6, %s4823_s15), %s8437_s2 }
 0xaaf   :  { %s8455_s22 = smov (!%p2210_p6, %s6545_s22), %s8439_s23  ;;  %s8457_s30 = smov (!%p2210_p6, %s6583_s30), %s8441_s17 }
 0xab0   :  { %s8459_s24 = smov (!%p2210_p6, %s8445_s24), %s8443_s20  ;;  %p2224_p7 = scmp.lt.f32.partialorder %s4825_s11, %s8453_s15 }
 0xab2   :  { %s8461_s11 = smov (!%p2224_p7, %s4825_s11), %s8453_s15  ;;  %s8463_s18 = smov (!%p2224_p7, %s6547_s18), %s8455_s22 }
 0xab3   :  { %s8465_s4 = smov (!%p2224_p7, %s6587_s4), %s8457_s30  ;;  %s8467_s28 = smov (!%p2224_p7, %s8447_s28), %s8459_s24 }
 0xab7   :  { %s4827_s8 = spop %4826 }
 0xab8   :  { %p2238_p8 = scmp.lt.f32.partialorder %s4827_s8, %s8461_s11 }
 0xaba   :  { %s4829_s9 = spop %4828  ;;  %s8469_s8 = smov (!%p2238_p8, %s4827_s8), %s8461_s11 }
 0xabb   :  { %s8471_s3 = smov (!%p2238_p8, %s6549_s3), %s8463_s18  ;;  %s8473_s1 = smov (!%p2238_p8, %s6613_s1), %s8465_s4 }
 0xabc   :  { %s8475_s12 = smov (!%p2238_p8, %s8449_s12), %s8467_s28  ;;  %p2252_p9 = scmp.lt.f32.partialorder %s4829_s9, %s8469_s8 }
 0xabd   :  { %s6714_s23 = spop %4830 }
 0xabe   :  { %s2267_s17 = smul.f32 %s6714_s23, %s8063_s29  ;;  %s6718_s20 = spop %4832  ;;  %v2279_v5 = vstv %s6714_s23 }
 0xabf   :  { %s8477_s9 = smov (!%p2252_p9, %s4829_s9), %s8469_s8  ;;  %s8479_s19 = smov (!%p2252_p9, %s6551_s19), %s8471_s3  ;;  %v2357_v42 = vmul.f32 %v6465_v9, %v2279_v5  ;;  %v2389_v56 = vmul.f32 %v6471_v39, %v2279_v5  ;;  %v2304_v21 = vstv %s6718_s20 }
 0xac0   :  { %s8481_s25 = smov (!%p2252_p9, %s6621_s25), %s8473_s1  ;;  %s8483_s27 = smov (!%p2252_p9, %s8451_s27), %s8475_s12  ;;  %v2365_v12 = vmul.f32 %v6465_v9, %v2304_v21  ;;  %v2397_v13 = vmul.f32 %v6471_v39, %v2304_v21 }
 0xac1   :  { %s2268_s22 = scvt.f32.s32 %s2267_s17  ;;  %s2271_s18 = sand.u32 2147483648, %s2267_s17  ;;  %v4838_v14 = vround.rtne.f32 %v2357_v42  ;;  %v4842_v15 = vround.rtne.f32 %v2389_v56 }
 0xac2   :  { %s2273_s2 = sand.u32 2147483647, %s2267_s17  ;;  %s2292_s30 = smul.f32 %s6718_s20, %s8063_s29  ;;  %v4839_v17 = vround.rtne.f32 %v2365_v12  ;;  %v4843_v18 = vround.rtne.f32 %v2397_v13 }
 0xac3   :  { %s2269_s4 = scvt.s32.f32 %s2268_s22  ;;  %p2274_p10 = scmp.lt.f32.partialorder %s2273_s2, 2.1474836e+09 }
 0xac4   :  { %s2293_s24 = scvt.f32.s32 %s2292_s30  ;;  %s2296_s28 = sand.u32 2147483648, %s2292_s30 }
 0xac5   :  { %s2270_s16 = sand.u32 2147483647, %s2269_s4  ;;  %s2298_s10 = sand.u32 2147483647, %s2292_s30 }
 0xac6   :  { %s2272_s26 = sor.u32 %s2271_s18, %s2270_s16  ;;  %s2294_s3 = scvt.s32.f32 %s2293_s24 }
 0xac7   :  { %s8485_s26 = smov (!%p2274_p10, %s2272_s26), %s2267_s17  ;;  %p2299_p11 = scmp.lt.f32.partialorder %s2298_s10, 2.1474836e+09 }
 0xac8   :  { %s2295_s1 = sand.u32 2147483647, %s2294_s3  ;;  %s2276_s12 = ssub.f32 0.0, %s8485_s26 }
 0xac9   :  { %s2297_s14 = sor.u32 %s2296_s28, %s2295_s1  ;;  %s6744_s15 = spop %4834 }
 0xaca   :  { %s8487_s14 = smov (!%p2299_p11, %s2297_s14), %s2292_s30  ;;  %v2280_v16 = vstv %s2276_s12  ;;  %s2277_s11 = ssub.f32 255.0, %s8485_s26  ;;  %v2329_v27 = vstv %s6744_s15 }
 0xacb   :  { %v2359_v55 = vmax.f32 %v4838_v14, %v2280_v16  ;;  %v2391_v54 = vmax.f32 %v4842_v15, %v2280_v16  ;;  %s2301_s8 = ssub.f32 0.0, %s8487_s14  ;;  %s6750_s17 = smul.f32 %s6744_s15, %s8063_s29  ;;  %v2373_v31 = vmul.f32 %v6465_v9, %v2329_v27  ;;  %v2405_v35 = vmul.f32 %v6471_v39, %v2329_v27 }
 0xacc   :  { %s6752_s22 = spop %4836  ;;  %s2302_s18 = ssub.f32 255.0, %s8487_s14  ;;  %v2281_v0 = vstv %s2277_s11 }
 0xacd   :  { %v2305_v1 = vstv %s2301_s8  ;;  %s2318_s2 = scvt.f32.s32 %s6750_s17  ;;  %s2321_s30 = sand.u32 2147483648, %s6750_s17  ;;  %v2360_v57 = vmin.f32 %v2359_v55, %v2281_v0  ;;  %v2392_v20 = vmin.f32 %v2391_v54, %v2281_v0  ;;  %v2354_v37 = vstv %s6752_s22 }
 0xace   :  { %v2367_v25 = vmax.f32 %v4839_v17, %v2305_v1  ;;  %v2399_v26 = vmax.f32 %v4843_v18, %v2305_v1  ;;  %s2323_s4 = sand.u32 2147483647, %s6750_s17  ;;  %s6761_s24 = smul.f32 %s6752_s22, %s8063_s29  ;;  %v2306_v28 = vstv %s2302_s18  ;;  %v4840_v47 = vround.rtne.f32 %v2373_v31 }
 0xacf   :  { %s2319_s28 = scvt.s32.f32 %s2318_s2  ;;  %p6763_p12 = scmp.lt.f32.partialorder %s2323_s4, 2.1474836e+09  ;;  %v2361_v29 = vmul.f32 %v2360_v57, %v6685_v24  ;;  %v2393_v6 = vmul.f32 %v2392_v20, %v6685_v24  ;;  %v2381_v22 = vmul.f32 %v6465_v9, %v2354_v37  ;;  %v2413_v48 = vmul.f32 %v6471_v39, %v2354_v37 }
 0xad0   :  { %s2343_s10 = scvt.f32.s32 %s6761_s24  ;;  %s2346_s3 = sand.u32 2147483648, %s6761_s24  ;;  %v2368_v30 = vmin.f32 %v2367_v25, %v2306_v28  ;;  %v2400_v7 = vmin.f32 %v2399_v26, %v2306_v28  ;;  %v4844_v19 = vround.rtne.f32 %v2405_v35 }
 0xad1   :  { %s2320_s1 = sand.u32 2147483647, %s2319_s28  ;;  %s2348_s12 = sand.u32 2147483647, %s6761_s24  ;;  %v2362_v36 = vsub.f32 %v2361_v29, %v6465_v9  ;;  %v2394_v38 = vsub.f32 %v2393_v6, %v6471_v39  ;;  %v4841_v53 = vround.rtne.f32 %v2381_v22  ;;  %v4845_v34 = vround.rtne.f32 %v2413_v48 }
 0xad2   :  { %s2322_s11 = sor.u32 %s2321_s30, %s2320_s1  ;;  %s2344_s8 = scvt.s32.f32 %s2343_s10  ;;  %v2369_v11 = vmul.f32 %v2368_v30, %v6688_v52  ;;  %v2401_v10 = vmul.f32 %v2400_v7, %v6688_v52 }
 0xad3   :  { %s8489_s11 = smov (!%p6763_p12, %s2322_s11), %s6750_s17  ;;  %v2363_v43 = vmul.f32 %v2362_v36, %v2362_v36  ;;  %p2349_p13 = scmp.lt.f32.partialorder %s2348_s12, 2.1474836e+09  ;;  %v2395_v32 = vmul.f32 %v2394_v38, %v2394_v38 }
 0xad4   :  { %s2345_s18 = sand.u32 2147483647, %s2344_s8  ;;  %v2370_v45 = vsub.f32 %v2369_v11, %v6465_v9  ;;  %v2402_v46 = vsub.f32 %v2401_v10, %v6471_v39  ;;  %s2326_s2 = ssub.f32 0.0, %s8489_s11 }
 0xad5   :  { %s2347_s30 = sor.u32 %s2346_s3, %s2345_s18  ;;  %v2396_v51 = vadd.f32 %v2395_v32, %v2363_v43  ;;  %s2327_s17 = ssub.f32 255.0, %s8489_s11 }
 0xad6   :  { %s8491_s30 = smov (!%p2349_p13, %s2347_s30), %s6761_s24  ;;  %v2371_v49 = vmul.f32 %v2370_v45, %v2370_v45  ;;  %v2403_v50 = vmul.f32 %v2402_v46, %v2402_v46  ;;  %v2330_v33 = vstv %s2326_s2  ;;  %s4544_s24 = sadd.f32 -0.44, %s5294_s21 }
 0xad7   :  { %v2375_v24 = vmax.f32 %v4840_v47, %v2330_v33  ;;  %v2407_v23 = vmax.f32 %v4844_v19, %v2330_v33  ;;  %s2351_s4 = ssub.f32 0.0, %s8491_s30  ;;  %2421 = vadd.xlane.f32.xlu0 %v2396_v51  ;;  %v2331_v59 = vstv %s2327_s17 }
 0xad8   :  { %v2404_v52 = vadd.f32 %v2403_v50, %v2371_v49  ;;  %s2352_s28 = ssub.f32 255.0, %s8491_s30  ;;  %s6807_s1 = smul.f32 0.003921569, %s4544_s24 }
 0xad9   :  { %v2355_v60 = vstv %s2351_s4  ;;  %v2376_v61 = vmin.f32 %v2375_v24, %v2331_v59  ;;  %v2408_v62 = vmin.f32 %v2407_v23, %v2331_v59  ;;  %s4545_s16 = sadd.f32 -0.45, %s5294_s21  ;;  %v6868_v23 = vld [vmem:[%s8048_s0] sm:$0xff] }
 0xada   :  { %2435 = vadd.xlane.f32.xlu1 %v2404_v52  ;;  %v2383_v41 = vmax.f32 %v4841_v53, %v2355_v60  ;;  %v2415_v40 = vmax.f32 %v4845_v34, %v2355_v60  ;;  %v2356_v63 = vstv %s2352_s28  ;;  %s4546_s10 = sadd.f32 -0.45999998, %s5294_s21  ;;  %v6816_v35 = vstv %s6807_s1  ;;  %v6874_v53 = vld [vmem:[%s8048_s0 + $0x8] sm:$0xff] }
 0xadb   :  { %v2377_v2 = vmul.f32 %v2376_v61, %v6691_v8  ;;  %v2409_v3 = vmul.f32 %v2408_v62, %v6691_v8  ;;  %s4547_s3 = sadd.f32 -0.47, %s5294_s21  ;;  %s6809_s12 = smul.f32 0.003921569, %s4545_s16  ;;  %5161 = vrcp.f32 %v6816_v35 }
 0xadc   :  { %v2384_v4 = vmin.f32 %v2383_v41, %v2356_v63  ;;  %v2416_v44 = vmin.f32 %v2415_v40, %v2356_v63  ;;  %s6811_s8 = smul.f32 0.003921569, %s4546_s10 }
 0xadd   :  { %v2378_v5 = vsub.f32 %v2377_v2, %v6465_v9  ;;  %v2410_v42 = vsub.f32 %v2409_v3, %v6471_v39  ;;  %s6813_s18 = smul.f32 0.003921569, %s4547_s3  ;;  %v6819_v37 = vstv %s6809_s12 }
 0xade   :  { %v2385_v56 = vmul.f32 %v2384_v4, %v6695_v58  ;;  %v2417_v21 = vmul.f32 %v2416_v44, %v6695_v58  ;;  %v6822_v10 = vstv %s6811_s8  ;;  %5163 = vrcp.f32 %v6819_v37 }
 0xadf   :  { %v2379_v12 = vmul.f32 %v2378_v5, %v2378_v5  ;;  %v2411_v13 = vmul.f32 %v2410_v42, %v2410_v42  ;;  %v6826_v43 = vstv %s6813_s18  ;;  %5165 = vrcp.f32 %v6822_v10 }
 0xae0   :  { %v2386_v14 = vsub.f32 %v2385_v56, %v6465_v9  ;;  %v2418_v15 = vsub.f32 %v2417_v21, %v6471_v39  ;;  %5167 = vrcp.f32 %v6826_v43 }
 0xae1   :  { %v2412_v16 = vadd.f32 %v2411_v13, %v2379_v12 }
 0xae2   :  { %v2387_v8 = vmul.f32 %v2386_v14, %v2386_v14  ;;  %v2419_v55 = vmul.f32 %v2418_v15, %v2418_v15 }
 0xae3   :  { %2449 = vadd.xlane.f32.xlu0 %v2412_v16 }
 0xae4   :  { %v2420_v54 = vadd.f32 %v2419_v55, %v2387_v8 }
 0xae5   :  { %v5162_v49 = vpop.eup %5161 }
 0xae6   :  { %2463 = vadd.xlane.f32.xlu1 %v2420_v54 }
 0xae8   :  { %v5164_v50 = vpop.eup %5163 }
 0xae9   :  { %v5166_v51 = vpop.eup %5165 }
 0xaea   :  { %v5168_v33 = vpop.eup %5167 }
 0xb64   :  { %v2422_v17 = vpop.xlane.xlu0 %2421 }
 0xb65   :  { %v2423_v18 = vrot.slane %v2422_v17, 4 }
 0xb67   :  { %v2436_v0 = vpop.xlane.xlu1 %2435  ;;  %v2424_v1 = vadd.f32 %v2423_v18, %v2422_v17 }
 0xb68   :  { %v2437_v58 = vrot.slane %v2436_v0, 4 }
 0xb69   :  { %v2425_v20 = vrot.slane %v2424_v1, 2 }
 0xb6a   :  { %v2438_v57 = vadd.f32 %v2437_v58, %v2436_v0 }
 0xb6b   :  { %v2426_v25 = vadd.f32 %v2425_v20, %v2424_v1 }
 0xb6c   :  { %v2439_v9 = vrot.slane %v2438_v57, 2 }
 0xb6d   :  { %v2427_v39 = vrot.slane %v2426_v25, 1 }
 0xb6e   :  { %v2440_v26 = vadd.f32 %v2439_v9, %v2438_v57 }
 0xb6f   :  { %v2428_v27 = vadd.f32 %v2427_v39, %v2426_v25 }
 0xb70   :  { %v2441_v28 = vrot.slane %v2440_v26, 1  ;;  %v2450_v29 = vpop.xlane.xlu0 %2449 }
 0xb71   :  { %v2451_v30 = vrot.slane %v2450_v29, 4  ;;  %4846 = vpush %v2428_v27 }
 0xb72   :  { %v2442_v7 = vadd.f32 %v2441_v28, %v2440_v26 }
 0xb73   :  { %v2464_v6 = vpop.xlane.xlu1 %2463  ;;  %v2452_v31 = vadd.f32 %v2451_v30, %v2450_v29 }
 0xb74   :  { %4848 = vpush %v2442_v7  ;;  %v2465_v36 = vrot.slane %v2464_v6, 4 }
 0xb75   :  { %v2453_v11 = vrot.slane %v2452_v31, 2 }
 0xb76   :  { %v2466_v38 = vadd.f32 %v2465_v36, %v2464_v6 }
 0xb77   :  { %v2454_v45 = vadd.f32 %v2453_v11, %v2452_v31 }
 0xb78   :  { %v2467_v46 = vrot.slane %v2466_v38, 2 }
 0xb79   :  { %v2455_v32 = vrot.slane %v2454_v45, 1 }
 0xb7a   :  { %v2468_v47 = vadd.f32 %v2467_v46, %v2466_v38 }
 0xb7b   :  { %v2456_v22 = vadd.f32 %v2455_v32, %v2454_v45 }
 0xb7c   :  { %v2469_v48 = vrot.slane %v2468_v47, 1 }
 0xb7d   :  { %4850 = vpush %v2456_v22 }
 0xb7e   :  { %v2470_v19 = vadd.f32 %v2469_v48, %v2468_v47 }
 0xb80   :  { %4852 = vpush %v2470_v19 }
 0xb81   :  { %4854 = vpush %v5162_v49 }
 0xb82   :  { %4856 = vpush %v5164_v50 }
 0xb83   :  { %4858 = vpush %v5166_v51 }
 0xb84   :  { %4860 = vpush %v5168_v33 }
 0xba2   :  { %s4847_s2 = spop %4846 }
 0xba3   :  { %p2430_p0 = scmp.lt.f32.partialorder %s4847_s2, %s8477_s9 }
 0xba5   :  { %s4849_s17 = spop %4848  ;;  %s8493_s2 = smov (!%p2430_p0, %s4847_s2), %s8477_s9 }
 0xba6   :  { %s8495_s7 = smov (!%p2430_p0, %s6676_s7), %s8479_s19  ;;  %s8497_s23 = smov (!%p2430_p0, %s6714_s23), %s8481_s25 }
 0xba7   :  { %s8499_s26 = smov (!%p2430_p0, %s8485_s26), %s8483_s27  ;;  %p2444_p1 = scmp.lt.f32.partialorder %s4849_s17, %s8493_s2 }
 0xba9   :  { %s8501_s17 = smov (!%p2444_p1, %s4849_s17), %s8493_s2  ;;  %s8503_s5 = smov (!%p2444_p1, %s6678_s5), %s8495_s7 }
 0xbaa   :  { %s8505_s20 = smov (!%p2444_p1, %s6718_s20), %s8497_s23  ;;  %s8507_s14 = smov (!%p2444_p1, %s8487_s14), %s8499_s26 }
 0xbae   :  { %s4851_s4 = spop %4850 }
 0xbaf   :  { %p2458_p2 = scmp.lt.f32.partialorder %s4851_s4, %s8501_s17 }
 0xbb1   :  { %s4853_s28 = spop %4852  ;;  %s8509_s4 = smov (!%p2458_p2, %s4851_s4), %s8501_s17 }
 0xbb2   :  { %s8511_s6 = smov (!%p2458_p2, %s6680_s6), %s8503_s5  ;;  %s8513_s15 = smov (!%p2458_p2, %s6744_s15), %s8505_s20 }
 0xbb3   :  { %s8515_s11 = smov (!%p2458_p2, %s8489_s11), %s8507_s14  ;;  %p2472_p3 = scmp.lt.f32.partialorder %s4853_s28, %s8509_s4 }
 0xbb4   :  { %s6845_s19 = spop %4854 }
 0xbb5   :  { %s2487_s25 = smul.f32 %s6845_s19, %s8063_s29  ;;  %s6849_s27 = spop %4856  ;;  %v2499_v24 = vstv %s6845_s19 }
 0xbb6   :  { %s8517_s28 = smov (!%p2472_p3, %s4853_s28), %s8509_s4  ;;  %s8519_s13 = smov (!%p2472_p3, %s6682_s13), %s8511_s6  ;;  %v2577_v52 = vmul.f32 %v6868_v23, %v2499_v24  ;;  %v2609_v34 = vmul.f32 %v6874_v53, %v2499_v24  ;;  %v2524_v59 = vstv %s6849_s27 }
 0xbb7   :  { %s8521_s22 = smov (!%p2472_p3, %s6752_s22), %s8513_s15  ;;  %s8523_s30 = smov (!%p2472_p3, %s8491_s30), %s8515_s11  ;;  %v2585_v60 = vmul.f32 %v6868_v23, %v2524_v59  ;;  %v2617_v61 = vmul.f32 %v6874_v53, %v2524_v59 }
 0xbb8   :  { %s2488_s7 = scvt.f32.s32 %s2487_s25  ;;  %s2491_s5 = sand.u32 2147483648, %s2487_s25  ;;  %v4862_v62 = vround.rtne.f32 %v2577_v52  ;;  %v4866_v41 = vround.rtne.f32 %v2609_v34 }
 0xbb9   :  { %s2493_s9 = sand.u32 2147483647, %s2487_s25  ;;  %s2512_s23 = smul.f32 %s6849_s27, %s8063_s29  ;;  %v4863_v3 = vround.rtne.f32 %v2585_v60  ;;  %v4867_v4 = vround.rtne.f32 %v2617_v61 }
 0xbba   :  { %s2489_s20 = scvt.s32.f32 %s2488_s7  ;;  %p2494_p4 = scmp.lt.f32.partialorder %s2493_s9, 2.1474836e+09 }
 0xbbb   :  { %s2513_s26 = scvt.f32.s32 %s2512_s23  ;;  %s2516_s14 = sand.u32 2147483648, %s2512_s23 }
 0xbbc   :  { %s2490_s24 = sand.u32 2147483647, %s2489_s20  ;;  %s2518_s16 = sand.u32 2147483647, %s2512_s23 }
 0xbbd   :  { %s2492_s10 = sor.u32 %s2491_s5, %s2490_s24  ;;  %s2514_s2 = scvt.s32.f32 %s2513_s26 }
 0xbbe   :  { %s8525_s10 = smov (!%p2494_p4, %s2492_s10), %s2487_s25  ;;  %p2519_p5 = scmp.lt.f32.partialorder %s2518_s16, 2.1474836e+09 }
 0xbbf   :  { %s2515_s17 = sand.u32 2147483647, %s2514_s2  ;;  %s2496_s4 = ssub.f32 0.0, %s8525_s10 }
 0xbc0   :  { %s2517_s7 = sor.u32 %s2516_s14, %s2515_s17  ;;  %s6885_s25 = spop %4858 }
 0xbc1   :  { %s8527_s7 = smov (!%p2519_p5, %s2517_s7), %s2512_s23  ;;  %v2500_v40 = vstv %s2496_s4  ;;  %s2497_s5 = ssub.f32 255.0, %s8525_s10  ;;  %v2549_v13 = vstv %s6885_s25 }
 0xbc2   :  { %v2579_v63 = vmax.f32 %v4862_v62, %v2500_v40  ;;  %v2611_v2 = vmax.f32 %v4866_v41, %v2500_v40  ;;  %s2521_s9 = ssub.f32 0.0, %s8527_s7  ;;  %s6891_s20 = smul.f32 %s6885_s25, %s8063_s29  ;;  %v2593_v54 = vmul.f32 %v6868_v23, %v2549_v13  ;;  %v2625_v17 = vmul.f32 %v6874_v53, %v2549_v13 }
 0xbc3   :  { %s6893_s23 = spop %4860  ;;  %s2522_s26 = ssub.f32 255.0, %s8527_s7  ;;  %v2501_v44 = vstv %s2497_s5 }
 0xbc4   :  { %v2525_v5 = vstv %s2521_s9  ;;  %s2538_s14 = scvt.f32.s32 %s6891_s20  ;;  %s2541_s24 = sand.u32 2147483648, %s6891_s20  ;;  %v2580_v42 = vmin.f32 %v2579_v63, %v2501_v44  ;;  %v2612_v56 = vmin.f32 %v2611_v2, %v2501_v44  ;;  %v2574_v0 = vstv %s6893_s23 }
 0xbc5   :  { %v2587_v21 = vmax.f32 %v4863_v3, %v2525_v5  ;;  %v2619_v12 = vmax.f32 %v4867_v4, %v2525_v5  ;;  %s2543_s16 = sand.u32 2147483647, %s6891_s20  ;;  %s6902_s3 = smul.f32 %s6893_s23, %s8063_s29  ;;  %v2526_v14 = vstv %s2522_s26  ;;  %v4864_v26 = vround.rtne.f32 %v2593_v54 }
 0xbc6   :  { %s2539_s6 = scvt.s32.f32 %s2538_s14  ;;  %p6904_p6 = scmp.lt.f32.partialorder %s2543_s16, 2.1474836e+09  ;;  %v2581_v15 = vmul.f32 %v2580_v42, %v6816_v35  ;;  %v2613_v55 = vmul.f32 %v2612_v56, %v6816_v35  ;;  %v2601_v27 = vmul.f32 %v6868_v23, %v2574_v0  ;;  %v2633_v28 = vmul.f32 %v6874_v53, %v2574_v0 }
 0xbc7   :  { %s2563_s11 = scvt.f32.s32 %s6902_s3  ;;  %s2566_s2 = sand.u32 2147483648, %s6902_s3  ;;  %v2588_v16 = vmin.f32 %v2587_v21, %v2526_v14  ;;  %v2620_v8 = vmin.f32 %v2619_v12, %v2526_v14  ;;  %v4868_v29 = vround.rtne.f32 %v2625_v17 }
 0xbc8   :  { %s2540_s17 = sand.u32 2147483647, %s2539_s6  ;;  %s2568_s4 = sand.u32 2147483647, %s6902_s3  ;;  %v2582_v18 = vsub.f32 %v2581_v15, %v6868_v23  ;;  %v2614_v57 = vsub.f32 %v2613_v55, %v6874_v53  ;;  %v4865_v11 = vround.rtne.f32 %v2601_v27  ;;  %v4869_v38 = vround.rtne.f32 %v2633_v28 }
 0xbc9   :  { %s2542_s5 = sor.u32 %s2541_s24, %s2540_s17  ;;  %s2564_s9 = scvt.s32.f32 %s2563_s11  ;;  %v2589_v58 = vmul.f32 %v2588_v16, %v6819_v37  ;;  %v2621_v1 = vmul.f32 %v2620_v8, %v6819_v37 }
 0xbca   :  { %s8529_s5 = smov (!%p6904_p6, %s2542_s5), %s6891_s20  ;;  %v2583_v20 = vmul.f32 %v2582_v18, %v2582_v18  ;;  %p2569_p7 = scmp.lt.f32.partialorder %s2568_s4, 2.1474836e+09  ;;  %v2615_v39 = vmul.f32 %v2614_v57, %v2614_v57 }
 0xbcb   :  { %s2565_s26 = sand.u32 2147483647, %s2564_s9  ;;  %v2590_v9 = vsub.f32 %v2589_v58, %v6868_v23  ;;  %v2622_v25 = vsub.f32 %v2621_v1, %v6874_v53  ;;  %s2546_s14 = ssub.f32 0.0, %s8529_s5 }
 0xbcc   :  { %s2567_s24 = sor.u32 %s2566_s2, %s2565_s26  ;;  %v2616_v6 = vadd.f32 %v2615_v39, %v2583_v20  ;;  %s2547_s20 = ssub.f32 255.0, %s8529_s5 }
 0xbcd   :  { %s8531_s24 = smov (!%p2569_p7, %s2567_s24), %s6902_s3  ;;  %v2591_v30 = vmul.f32 %v2590_v9, %v2590_v9  ;;  %v2623_v7 = vmul.f32 %v2622_v25, %v2622_v25  ;;  %v2550_v31 = vstv %s2546_s14  ;;  %s4548_s3 = sadd.f32 -0.48, %s5294_s21 }
 0xbce   :  { %v2595_v35 = vmax.f32 %v4864_v26, %v2550_v31  ;;  %v2627_v36 = vmax.f32 %v4868_v29, %v2550_v31  ;;  %s2571_s16 = ssub.f32 0.0, %s8531_s24  ;;  %2641 = vadd.xlane.f32.xlu0 %v2616_v6  ;;  %v2551_v45 = vstv %s2547_s20 }
 0xbcf   :  { %v2624_v37 = vadd.f32 %v2623_v7, %v2591_v30  ;;  %s2572_s6 = ssub.f32 255.0, %s8531_s24  ;;  %s6948_s17 = smul.f32 0.003921569, %s4548_s3 }
 0xbd0   :  { %v2575_v46 = vstv %s2571_s16  ;;  %v2596_v32 = vmin.f32 %v2595_v35, %v2551_v45  ;;  %v2628_v47 = vmin.f32 %v2627_v36, %v2551_v45  ;;  %s4549_s15 = sadd.f32 -0.48999998, %s5294_s21 }
 0xbd1   :  { %2655 = vadd.xlane.f32.xlu1 %v2624_v37  ;;  %v2603_v22 = vmax.f32 %v4865_v11, %v2575_v46  ;;  %v2635_v48 = vmax.f32 %v4869_v38, %v2575_v46  ;;  %v2576_v19 = vstv %s2572_s6  ;;  %s4550_s11 = sadd.f32 -0.5, %s5294_s21  ;;  %v6957_v0 = vstv %s6948_s17 }
 0xbd2   :  { %v2597_v49 = vmul.f32 %v2596_v32, %v6822_v10  ;;  %v2629_v50 = vmul.f32 %v2628_v47, %v6822_v10  ;;  %s4551_s2 = sadd.f32 -0.51, %s5294_s21  ;;  %s6950_s4 = smul.f32 0.003921569, %s4549_s15  ;;  %5169 = vrcp.f32 %v6957_v0 }
 0xbd3   :  { %v2604_v51 = vmin.f32 %v2603_v22, %v2576_v19  ;;  %v2636_v33 = vmin.f32 %v2635_v48, %v2576_v19  ;;  %s6952_s9 = smul.f32 0.003921569, %s4550_s11 }
 0xbd4   :  { %v2598_v24 = vsub.f32 %v2597_v49, %v6868_v23  ;;  %v2630_v52 = vsub.f32 %v2629_v50, %v6874_v53  ;;  %s6954_s26 = smul.f32 0.003921569, %s4551_s2  ;;  %v6960_v1 = vstv %s6950_s4 }
 0xbd5   :  { %v2605_v34 = vmul.f32 %v2604_v51, %v6826_v43  ;;  %v2637_v59 = vmul.f32 %v2636_v33, %v6826_v43  ;;  %v6963_v20 = vstv %s6952_s9  ;;  %5171 = vrcp.f32 %v6960_v1 }
 0xbd6   :  { %v2599_v60 = vmul.f32 %v2598_v24, %v2598_v24  ;;  %v2631_v61 = vmul.f32 %v2630_v52, %v2630_v52  ;;  %v6967_v25 = vstv %s6954_s26  ;;  %5173 = vrcp.f32 %v6963_v20 }
 0xbd7   :  { %v2606_v62 = vsub.f32 %v2605_v34, %v6868_v23  ;;  %v2638_v41 = vsub.f32 %v2637_v59, %v6874_v53  ;;  %5175 = vrcp.f32 %v6967_v25 }
 0xbd8   :  { %v2632_v40 = vadd.f32 %v2631_v61, %v2599_v60 }
 0xbd9   :  { %v2607_v10 = vmul.f32 %v2606_v62, %v2606_v62  ;;  %v2639_v63 = vmul.f32 %v2638_v41, %v2638_v41 }
 0xbda   :  { %2669 = vadd.xlane.f32.xlu0 %v2632_v40 }
 0xbdb   :  { %v2640_v2 = vadd.f32 %v2639_v63, %v2607_v10 }
 0xbdc   :  { %v5170_v6 = vpop.eup %5169 }
 0xbdd   :  { %2683 = vadd.xlane.f32.xlu1 %v2640_v2 }
 0xbdf   :  { %v5172_v31 = vpop.eup %5171 }
 0xbe0   :  { %v5174_v35 = vpop.eup %5173 }
 0xbe1   :  { %v5176_v36 = vpop.eup %5175 }
 0xc5b   :  { %v2642_v3 = vpop.xlane.xlu0 %2641 }
 0xc5c   :  { %v2643_v4 = vrot.slane %v2642_v3, 4 }
 0xc5e   :  { %v2656_v44 = vpop.xlane.xlu1 %2655  ;;  %v2644_v5 = vadd.f32 %v2643_v4, %v2642_v3 }
 0xc5f   :  { %v2657_v43 = vrot.slane %v2656_v44, 4 }
 0xc60   :  { %v2645_v56 = vrot.slane %v2644_v5, 2 }
 0xc61   :  { %v2658_v42 = vadd.f32 %v2657_v43, %v2656_v44 }
 0xc62   :  { %v2646_v12 = vadd.f32 %v2645_v56, %v2644_v5 }
 0xc63   :  { %v2659_v21 = vrot.slane %v2658_v42, 2 }
 0xc64   :  { %v2647_v13 = vrot.slane %v2646_v12, 1 }
 0xc65   :  { %v2660_v14 = vadd.f32 %v2659_v21, %v2658_v42 }
 0xc66   :  { %v2648_v15 = vadd.f32 %v2647_v13, %v2646_v12 }
 0xc67   :  { %v2661_v16 = vrot.slane %v2660_v14, 1  ;;  %v2670_v8 = vpop.xlane.xlu0 %2669 }
 0xc68   :  { %v2671_v55 = vrot.slane %v2670_v8, 4  ;;  %4870 = vpush %v2648_v15 }
 0xc69   :  { %v2662_v54 = vadd.f32 %v2661_v16, %v2660_v14 }
 0xc6a   :  { %v2684_v17 = vpop.xlane.xlu1 %2683  ;;  %v2672_v18 = vadd.f32 %v2671_v55, %v2670_v8 }
 0xc6b   :  { %4872 = vpush %v2662_v54  ;;  %v2685_v58 = vrot.slane %v2684_v17, 4 }
 0xc6c   :  { %v2673_v57 = vrot.slane %v2672_v18, 2 }
 0xc6d   :  { %v2686_v9 = vadd.f32 %v2685_v58, %v2684_v17 }
 0xc6e   :  { %v2674_v39 = vadd.f32 %v2673_v57, %v2672_v18 }
 0xc6f   :  { %v2687_v26 = vrot.slane %v2686_v9, 2 }
 0xc70   :  { %v2675_v27 = vrot.slane %v2674_v39, 1 }
 0xc71   :  { %v2688_v28 = vadd.f32 %v2687_v26, %v2686_v9 }
 0xc72   :  { %v2676_v29 = vadd.f32 %v2675_v27, %v2674_v39 }
 0xc73   :  { %v2689_v30 = vrot.slane %v2688_v28, 1 }
 0xc74   :  { %4874 = vpush %v2676_v29 }
 0xc75   :  { %v2690_v7 = vadd.f32 %v2689_v30, %v2688_v28 }
 0xc77   :  { %4876 = vpush %v2690_v7 }
 0xc78   :  { %4878 = vpush %v5170_v6 }
 0xc79   :  { %4880 = vpush %v5172_v31 }
 0xc7a   :  { %4882 = vpush %v5174_v35 }
 0xc7b   :  { %4884 = vpush %v5176_v36 }
 0xc99   :  { %s4871_s14 = spop %4870 }
 0xc9a   :  { %p2650_p8 = scmp.lt.f32.partialorder %s4871_s14, %s8517_s28 }
 0xc9c   :  { %s4873_s20 = spop %4872  ;;  %s8533_s14 = smov (!%p2650_p8, %s4871_s14), %s8517_s28 }
 0xc9d   :  { %s8535_s1 = smov (!%p2650_p8, %s6807_s1), %s8519_s13  ;;  %s8537_s19 = smov (!%p2650_p8, %s6845_s19), %s8521_s22 }
 0xc9e   :  { %s8539_s10 = smov (!%p2650_p8, %s8525_s10), %s8523_s30  ;;  %p2664_p9 = scmp.lt.f32.partialorder %s4873_s20, %s8533_s14 }
 0xca0   :  { %s8541_s20 = smov (!%p2664_p9, %s4873_s20), %s8533_s14  ;;  %s8543_s12 = smov (!%p2664_p9, %s6809_s12), %s8535_s1 }
 0xca1   :  { %s8545_s27 = smov (!%p2664_p9, %s6849_s27), %s8537_s19  ;;  %s8547_s7 = smov (!%p2664_p9, %s8527_s7), %s8539_s10 }
 0xca5   :  { %s4875_s16 = spop %4874 }
 0xca6   :  { %p2678_p10 = scmp.lt.f32.partialorder %s4875_s16, %s8541_s20 }
 0xca8   :  { %s4877_s6 = spop %4876  ;;  %s8549_s16 = smov (!%p2678_p10, %s4875_s16), %s8541_s20 }
 0xca9   :  { %s8551_s8 = smov (!%p2678_p10, %s6811_s8), %s8543_s12  ;;  %s8553_s25 = smov (!%p2678_p10, %s6885_s25), %s8545_s27 }
 0xcaa   :  { %s8555_s5 = smov (!%p2678_p10, %s8529_s5), %s8547_s7  ;;  %p2692_p11 = scmp.lt.f32.partialorder %s4877_s6, %s8549_s16 }
 0xcab   :  { %s6986_s13 = spop %4878 }
 0xcac   :  { %s2707_s22 = smul.f32 %s6986_s13, %s8063_s29  ;;  %s6990_s30 = spop %4880  ;;  %v2719_v37 = vstv %s6986_s13 }
 0xcad   :  { %s8557_s6 = smov (!%p2692_p11, %s4877_s6), %s8549_s16  ;;  %s8559_s18 = smov (!%p2692_p11, %s6813_s18), %s8551_s8  ;;  %v2797_v11 = vmul.f32 %v6868_v23, %v2719_v37  ;;  %v2829_v38 = vmul.f32 %v6874_v53, %v2719_v37  ;;  %v2744_v45 = vstv %s6990_s30 }
 0xcae   :  { %s8561_s23 = smov (!%p2692_p11, %s6893_s23), %s8553_s25  ;;  %s8563_s24 = smov (!%p2692_p11, %s8531_s24), %s8555_s5  ;;  %v2805_v46 = vmul.f32 %v6868_v23, %v2744_v45  ;;  %v2837_v32 = vmul.f32 %v6874_v53, %v2744_v45 }
 0xcaf   :  { %s2708_s1 = scvt.f32.s32 %s2707_s22  ;;  %s2711_s12 = sand.u32 2147483648, %s2707_s22  ;;  %v4886_v47 = vround.rtne.f32 %v2797_v11  ;;  %v4890_v22 = vround.rtne.f32 %v2829_v38 }
 0xcb0   :  { %s2713_s28 = sand.u32 2147483647, %s2707_s22  ;;  %s2732_s19 = smul.f32 %s6990_s30, %s8063_s29  ;;  %v4887_v50 = vround.rtne.f32 %v2805_v46  ;;  %v4891_v51 = vround.rtne.f32 %v2837_v32 }
 0xcb1   :  { %s2709_s27 = scvt.s32.f32 %s2708_s1  ;;  %p2714_p12 = scmp.lt.f32.partialorder %s2713_s28, 2.1474836e+09 }
 0xcb2   :  { %s2733_s10 = scvt.f32.s32 %s2732_s19  ;;  %s2736_s7 = sand.u32 2147483648, %s2732_s19 }
 0xcb3   :  { %s2710_s3 = sand.u32 2147483647, %s2709_s27  ;;  %s2738_s15 = sand.u32 2147483647, %s2732_s19 }
 0xcb4   :  { %s2712_s11 = sor.u32 %s2711_s12, %s2710_s3  ;;  %s2734_s8 = scvt.s32.f32 %s2733_s10 }
 0xcb5   :  { %s8565_s11 = smov (!%p2714_p12, %s2712_s11), %s2707_s22  ;;  %p2739_p13 = scmp.lt.f32.partialorder %s2738_s15, 2.1474836e+09 }
 0xcb6   :  { %s2735_s25 = sand.u32 2147483647, %s2734_s8  ;;  %s2716_s5 = ssub.f32 0.0, %s8565_s11 }
 0xcb7   :  { %s2737_s2 = sor.u32 %s2736_s7, %s2735_s25  ;;  %s7016_s14 = spop %4882 }
 0xcb8   :  { %s8567_s2 = smov (!%p2739_p13, %s2737_s2), %s2732_s19  ;;  %v2720_v48 = vstv %s2716_s5  ;;  %s2717_s20 = ssub.f32 255.0, %s8565_s11  ;;  %v2769_v61 = vstv %s7016_s14 }
 0xcb9   :  { %v2799_v19 = vmax.f32 %v4886_v47, %v2720_v48  ;;  %v2831_v49 = vmax.f32 %v4890_v22, %v2720_v48  ;;  %s2741_s16 = ssub.f32 0.0, %s8567_s2  ;;  %s7022_s22 = smul.f32 %s7016_s14, %s8063_s29  ;;  %v2813_v2 = vmul.f32 %v6868_v23, %v2769_v61  ;;  %v2845_v3 = vmul.f32 %v6874_v53, %v2769_v61 }
 0xcba   :  { %s7024_s1 = spop %4884  ;;  %s2742_s12 = ssub.f32 255.0, %s8567_s2  ;;  %v2721_v33 = vstv %s2717_s20 }
 0xcbb   :  { %v2745_v24 = vstv %s2741_s16  ;;  %s2758_s28 = scvt.f32.s32 %s7022_s22  ;;  %s2761_s19 = sand.u32 2147483648, %s7022_s22  ;;  %v2800_v52 = vmin.f32 %v2799_v19, %v2721_v33  ;;  %v2832_v34 = vmin.f32 %v2831_v49, %v2721_v33  ;;  %v2794_v44 = vstv %s7024_s1 }
 0xcbc   :  { %v2807_v59 = vmax.f32 %v4887_v50, %v2745_v24  ;;  %v2839_v60 = vmax.f32 %v4891_v51, %v2745_v24  ;;  %s2763_s27 = sand.u32 2147483647, %s7022_s22  ;;  %s7033_s10 = smul.f32 %s7024_s1, %s8063_s29  ;;  %v2746_v62 = vstv %s2742_s12  ;;  %v4888_v14 = vround.rtne.f32 %v2813_v2 }
 0xcbd   :  { %s2759_s7 = scvt.s32.f32 %s2758_s28  ;;  %p7035_p0 = scmp.lt.f32.partialorder %s2763_s27, 2.1474836e+09  ;;  %v2801_v41 = vmul.f32 %v2800_v52, %v6957_v0  ;;  %v2833_v63 = vmul.f32 %v2832_v34, %v6957_v0  ;;  %v2821_v15 = vmul.f32 %v6868_v23, %v2794_v44  ;;  %v2853_v16 = vmul.f32 %v6874_v53, %v2794_v44 }
 0xcbe   :  { %s2783_s15 = scvt.f32.s32 %s7033_s10  ;;  %s2786_s8 = sand.u32 2147483648, %s7033_s10  ;;  %v2808_v40 = vmin.f32 %v2807_v59, %v2746_v62  ;;  %v2840_v10 = vmin.f32 %v2839_v60, %v2746_v62  ;;  %v4892_v8 = vround.rtne.f32 %v2845_v3 }
 0xcbf   :  { %s2760_s25 = sand.u32 2147483647, %s2759_s7  ;;  %s2788_s5 = sand.u32 2147483647, %s7033_s10  ;;  %v2802_v4 = vsub.f32 %v2801_v41, %v6868_v23  ;;  %v2834_v42 = vsub.f32 %v2833_v63, %v6874_v53  ;;  %v4889_v57 = vround.rtne.f32 %v2821_v15  ;;  %v4893_v9 = vround.rtne.f32 %v2853_v16 }
 0xcc0   :  { %s2762_s20 = sor.u32 %s2761_s19, %s2760_s25  ;;  %s2784_s16 = scvt.s32.f32 %s2783_s15  ;;  %v2809_v43 = vmul.f32 %v2808_v40, %v6960_v1  ;;  %v2841_v5 = vmul.f32 %v2840_v10, %v6960_v1 }
 0xcc1   :  { %s8569_s20 = smov (!%p7035_p0, %s2762_s20), %s7022_s22  ;;  %v2803_v56 = vmul.f32 %v2802_v4, %v2802_v4  ;;  %p2789_p1 = scmp.lt.f32.partialorder %s2788_s5, 2.1474836e+09  ;;  %v2835_v13 = vmul.f32 %v2834_v42, %v2834_v42 }
 0xcc2   :  { %s2785_s12 = sand.u32 2147483647, %s2784_s16  ;;  %v2810_v21 = vsub.f32 %v2809_v43, %v6868_v23  ;;  %v2842_v12 = vsub.f32 %v2841_v5, %v6874_v53  ;;  %s2766_s28 = ssub.f32 0.0, %s8569_s20 }
 0xcc3   :  { %s2787_s19 = sor.u32 %s2786_s8, %s2785_s12  ;;  %v2836_v17 = vadd.f32 %v2835_v13, %v2803_v56  ;;  %s2767_s22 = ssub.f32 255.0, %s8569_s20 }
 0xcc4   :  { %s8571_s19 = smov (!%p2789_p1, %s2787_s19), %s7033_s10  ;;  %v2811_v55 = vmul.f32 %v2810_v21, %v2810_v21  ;;  %v2843_v54 = vmul.f32 %v2842_v12, %v2842_v12  ;;  %v2770_v18 = vstv %s2766_s28  ;;  %s4552_s10 = sadd.f32 -0.52, %s5294_s21 }
 0xcc5   :  { %v2815_v0 = vmax.f32 %v4888_v14, %v2770_v18  ;;  %v2847_v58 = vmax.f32 %v4892_v8, %v2770_v18  ;;  %s2791_s27 = ssub.f32 0.0, %s8571_s19  ;;  %2861 = vadd.xlane.f32.xlu0 %v2836_v17  ;;  %v2771_v39 = vstv %s2767_s22 }
 0xcc6   :  { %v2844_v1 = vadd.f32 %v2843_v54, %v2811_v55  ;;  %s2792_s7 = ssub.f32 255.0, %s8571_s19  ;;  %s7079_s25 = smul.f32 0.003921569, %s4552_s10 }
 0xcc7   :  { %v2795_v26 = vstv %s2791_s27  ;;  %v2816_v27 = vmin.f32 %v2815_v0, %v2771_v39  ;;  %v2848_v28 = vmin.f32 %v2847_v58, %v2771_v39  ;;  %s4553_s3 = sadd.f32 -0.53, %s5294_s21 }
 0xcc8   :  { %2875 = vadd.xlane.f32.xlu1 %v2844_v1  ;;  %v2823_v29 = vmax.f32 %v4889_v57, %v2795_v26  ;;  %v2855_v30 = vmax.f32 %v4893_v9, %v2795_v26  ;;  %v2796_v7 = vstv %s2792_s7  ;;  %s4554_s15 = sadd.f32 -0.53999996, %s5294_s21  ;;  %v7088_v44 = vstv %s7079_s25 }
 0xcc9   :  { %v2817_v6 = vmul.f32 %v2816_v27, %v6963_v20  ;;  %v2849_v31 = vmul.f32 %v2848_v28, %v6963_v20  ;;  %s4555_s8 = sadd.f32 -0.55, %s5294_s21  ;;  %s7081_s5 = smul.f32 0.003921569, %s4553_s3  ;;  %5177 = vrcp.f32 %v7088_v44 }
 0xcca   :  { %v2824_v35 = vmin.f32 %v2823_v29, %v2796_v7  ;;  %v2856_v36 = vmin.f32 %v2855_v30, %v2796_v7  ;;  %s7083_s16 = smul.f32 0.003921569, %s4554_s15 }
 0xccb   :  { %v2818_v37 = vsub.f32 %v2817_v6, %v6868_v23  ;;  %v2850_v11 = vsub.f32 %v2849_v31, %v6874_v53  ;;  %s7085_s12 = smul.f32 0.003921569, %s4555_s8  ;;  %v7091_v5 = vstv %s7081_s5 }
 0xccc   :  { %v2825_v38 = vmul.f32 %v2824_v35, %v6967_v25  ;;  %v2857_v45 = vmul.f32 %v2856_v36, %v6967_v25  ;;  %v7094_v56 = vstv %s7083_s16  ;;  %5179 = vrcp.f32 %v7091_v5 }
 0xccd   :  { %v2819_v46 = vmul.f32 %v2818_v37, %v2818_v37  ;;  %v2851_v32 = vmul.f32 %v2850_v11, %v2850_v11  ;;  %v7098_v12 = vstv %s7085_s12  ;;  %5181 = vrcp.f32 %v7094_v56 }
 0xcce   :  { %v2826_v47 = vsub.f32 %v2825_v38, %v6868_v23  ;;  %v2858_v22 = vsub.f32 %v2857_v45, %v6874_v53  ;;  %5183 = vrcp.f32 %v7098_v12 }
 0xccf   :  { %v2852_v48 = vadd.f32 %v2851_v32, %v2819_v46 }
 0xcd0   :  { %v2827_v20 = vmul.f32 %v2826_v47, %v2826_v47  ;;  %v2859_v19 = vmul.f32 %v2858_v22, %v2858_v22 }
 0xcd1   :  { %2889 = vadd.xlane.f32.xlu0 %v2852_v48 }
 0xcd2   :  { %v2860_v49 = vadd.f32 %v2859_v19, %v2827_v20 }
 0xcd3   :  { %v5178_v17 = vpop.eup %5177 }
 0xcd4   :  { %2903 = vadd.xlane.f32.xlu1 %v2860_v49 }
 0xcd6   :  { %v5180_v18 = vpop.eup %5179 }
 0xcd7   :  { %v5182_v0 = vpop.eup %5181 }
 0xcd8   :  { %v5184_v58 = vpop.eup %5183 }
 0xd52   :  { %v2862_v50 = vpop.xlane.xlu0 %2861 }
 0xd53   :  { %v2863_v51 = vrot.slane %v2862_v50, 4 }
 0xd55   :  { %v2876_v33 = vpop.xlane.xlu1 %2875  ;;  %v2864_v24 = vadd.f32 %v2863_v51, %v2862_v50 }
 0xd56   :  { %v2877_v25 = vrot.slane %v2876_v33, 4 }
 0xd57   :  { %v2865_v34 = vrot.slane %v2864_v24, 2 }
 0xd58   :  { %v2878_v52 = vadd.f32 %v2877_v25, %v2876_v33 }
 0xd59   :  { %v2866_v60 = vadd.f32 %v2865_v34, %v2864_v24 }
 0xd5a   :  { %v2879_v59 = vrot.slane %v2878_v52, 2 }
 0xd5b   :  { %v2867_v61 = vrot.slane %v2866_v60, 1 }
 0xd5c   :  { %v2880_v62 = vadd.f32 %v2879_v59, %v2878_v52 }
 0xd5d   :  { %v2868_v41 = vadd.f32 %v2867_v61, %v2866_v60 }
 0xd5e   :  { %v2881_v40 = vrot.slane %v2880_v62, 1  ;;  %v2890_v10 = vpop.xlane.xlu0 %2889 }
 0xd5f   :  { %v2891_v63 = vrot.slane %v2890_v10, 4  ;;  %4894 = vpush %v2868_v41 }
 0xd60   :  { %v2882_v2 = vadd.f32 %v2881_v40, %v2880_v62 }
 0xd61   :  { %v2904_v3 = vpop.xlane.xlu1 %2903  ;;  %v2892_v4 = vadd.f32 %v2891_v63, %v2890_v10 }
 0xd62   :  { %4896 = vpush %v2882_v2  ;;  %v2905_v43 = vrot.slane %v2904_v3, 4 }
 0xd63   :  { %v2893_v42 = vrot.slane %v2892_v4, 2 }
 0xd64   :  { %v2906_v21 = vadd.f32 %v2905_v43, %v2904_v3 }
 0xd65   :  { %v2894_v13 = vadd.f32 %v2893_v42, %v2892_v4 }
 0xd66   :  { %v2907_v14 = vrot.slane %v2906_v21, 2 }
 0xd67   :  { %v2895_v15 = vrot.slane %v2894_v13, 1 }
 0xd68   :  { %v2908_v16 = vadd.f32 %v2907_v14, %v2906_v21 }
 0xd69   :  { %v2896_v8 = vadd.f32 %v2895_v15, %v2894_v13 }
 0xd6a   :  { %v2909_v55 = vrot.slane %v2908_v16, 1 }
 0xd6b   :  { %4898 = vpush %v2896_v8 }
 0xd6c   :  { %v2910_v54 = vadd.f32 %v2909_v55, %v2908_v16 }
 0xd6e   :  { %4900 = vpush %v2910_v54 }
 0xd6f   :  { %4902 = vpush %v5178_v17 }
 0xd70   :  { %4904 = vpush %v5180_v18 }
 0xd71   :  { %4906 = vpush %v5182_v0 }
 0xd72   :  { %4908 = vpush %v5184_v58 }
 0xd90   :  { %s4895_s28 = spop %4894 }
 0xd91   :  { %p2870_p2 = scmp.lt.f32.partialorder %s4895_s28, %s8557_s6 }
 0xd93   :  { %s4897_s22 = spop %4896  ;;  %s8573_s28 = smov (!%p2870_p2, %s4895_s28), %s8557_s6 }
 0xd94   :  { %s8575_s17 = smov (!%p2870_p2, %s6948_s17), %s8559_s18  ;;  %s8577_s13 = smov (!%p2870_p2, %s6986_s13), %s8561_s23 }
 0xd95   :  { %s8579_s11 = smov (!%p2870_p2, %s8565_s11), %s8563_s24  ;;  %p2884_p3 = scmp.lt.f32.partialorder %s4897_s22, %s8573_s28 }
 0xd97   :  { %s8581_s22 = smov (!%p2884_p3, %s4897_s22), %s8573_s28  ;;  %s8583_s4 = smov (!%p2884_p3, %s6950_s4), %s8575_s17 }
 0xd98   :  { %s8585_s30 = smov (!%p2884_p3, %s6990_s30), %s8577_s13  ;;  %s8587_s2 = smov (!%p2884_p3, %s8567_s2), %s8579_s11 }
 0xd9c   :  { %s4899_s27 = spop %4898 }
 0xd9d   :  { %p2898_p4 = scmp.lt.f32.partialorder %s4899_s27, %s8581_s22 }
 0xd9f   :  { %s4901_s7 = spop %4900  ;;  %s8589_s27 = smov (!%p2898_p4, %s4899_s27), %s8581_s22 }
 0xda0   :  { %s8591_s9 = smov (!%p2898_p4, %s6952_s9), %s8583_s4  ;;  %s8593_s14 = smov (!%p2898_p4, %s7016_s14), %s8585_s30 }
 0xda1   :  { %s8595_s20 = smov (!%p2898_p4, %s8569_s20), %s8587_s2  ;;  %p2912_p5 = scmp.lt.f32.partialorder %s4901_s7, %s8589_s27 }
 0xda2   :  { %s7117_s18 = spop %4902 }
 0xda3   :  { %s2927_s23 = smul.f32 %s7117_s18, %s8063_s29  ;;  %s7121_s24 = spop %4904  ;;  %v2939_v1 = vstv %s7117_s18 }
 0xda4   :  { %s8597_s7 = smov (!%p2912_p5, %s4901_s7), %s8589_s27  ;;  %s8599_s26 = smov (!%p2912_p5, %s6954_s26), %s8591_s9  ;;  %v3017_v57 = vmul.f32 %v6868_v23, %v2939_v1  ;;  %v3049_v9 = vmul.f32 %v6874_v53, %v2939_v1  ;;  %v2964_v39 = vstv %s7121_s24 }
 0xda5   :  { %s8601_s1 = smov (!%p2912_p5, %s7024_s1), %s8593_s14  ;;  %s8603_s19 = smov (!%p2912_p5, %s8571_s19), %s8595_s20  ;;  %v3025_v26 = vmul.f32 %v6868_v23, %v2964_v39  ;;  %v3057_v27 = vmul.f32 %v6874_v53, %v2964_v39 }
 0xda6   :  { %s2928_s17 = scvt.f32.s32 %s2927_s23  ;;  %s2931_s4 = sand.u32 2147483648, %s2927_s23  ;;  %v4910_v28 = vround.rtne.f32 %v3017_v57  ;;  %v4914_v29 = vround.rtne.f32 %v3049_v9 }
 0xda7   :  { %s2933_s6 = sand.u32 2147483647, %s2927_s23  ;;  %s2952_s13 = smul.f32 %s7121_s24, %s8063_s29  ;;  %v4911_v31 = vround.rtne.f32 %v3025_v26  ;;  %v4915_v35 = vround.rtne.f32 %v3057_v27 }
 0xda8   :  { %s2929_s30 = scvt.s32.f32 %s2928_s17  ;;  %p2934_p6 = scmp.lt.f32.partialorder %s2933_s6, 2.1474836e+09 }
 0xda9   :  { %s2953_s11 = scvt.f32.s32 %s2952_s13  ;;  %s2956_s2 = sand.u32 2147483648, %s2952_s13 }
 0xdaa   :  { %s2930_s10 = sand.u32 2147483647, %s2929_s30  ;;  %s2958_s3 = sand.u32 2147483647, %s2952_s13 }
 0xdab   :  { %s2932_s15 = sor.u32 %s2931_s4, %s2930_s10  ;;  %s2954_s9 = scvt.s32.f32 %s2953_s11 }
 0xdac   :  { %s8605_s15 = smov (!%p2934_p6, %s2932_s15), %s2927_s23  ;;  %p2959_p7 = scmp.lt.f32.partialorder %s2958_s3, 2.1474836e+09 }
 0xdad   :  { %s2955_s14 = sand.u32 2147483647, %s2954_s9  ;;  %s2936_s20 = ssub.f32 0.0, %s8605_s15 }
 0xdae   :  { %s2957_s8 = sor.u32 %s2956_s2, %s2955_s14  ;;  %s7147_s28 = spop %4906 }
 0xdaf   :  { %s8607_s8 = smov (!%p2959_p7, %s2957_s8), %s2952_s13  ;;  %v2940_v30 = vstv %s2936_s20  ;;  %s2937_s22 = ssub.f32 255.0, %s8605_s15  ;;  %v2989_v32 = vstv %s7147_s28 }
 0xdb0   :  { %v3019_v7 = vmax.f32 %v4910_v28, %v2940_v30  ;;  %v3051_v6 = vmax.f32 %v4914_v29, %v2940_v30  ;;  %s2961_s27 = ssub.f32 0.0, %s8607_s8  ;;  %s7153_s23 = smul.f32 %s7147_s28, %s8063_s29  ;;  %v3033_v49 = vmul.f32 %v6868_v23, %v2989_v32  ;;  %v3065_v50 = vmul.f32 %v6874_v53, %v2989_v32 }
 0xdb1   :  { %s7155_s17 = spop %4908  ;;  %s2962_s4 = ssub.f32 255.0, %s8607_s8  ;;  %v2941_v36 = vstv %s2937_s22 }
 0xdb2   :  { %v2965_v37 = vstv %s2961_s27  ;;  %s2978_s6 = scvt.f32.s32 %s7153_s23  ;;  %s2981_s13 = sand.u32 2147483648, %s7153_s23  ;;  %v3020_v11 = vmin.f32 %v3019_v7, %v2941_v36  ;;  %v3052_v38 = vmin.f32 %v3051_v6, %v2941_v36  ;;  %v3014_v33 = vstv %s7155_s17 }
 0xdb3   :  { %v3027_v45 = vmax.f32 %v4911_v31, %v2965_v37  ;;  %v3059_v46 = vmax.f32 %v4915_v35, %v2965_v37  ;;  %s2983_s30 = sand.u32 2147483647, %s7153_s23  ;;  %s7164_s11 = smul.f32 %s7155_s17, %s8063_s29  ;;  %v2966_v47 = vstv %s2962_s4  ;;  %v4912_v62 = vround.rtne.f32 %v3033_v49 }
 0xdb4   :  { %s2979_s2 = scvt.s32.f32 %s2978_s6  ;;  %p7166_p8 = scmp.lt.f32.partialorder %s2983_s30, 2.1474836e+09  ;;  %v3021_v22 = vmul.f32 %v3020_v11, %v7088_v44  ;;  %v3053_v19 = vmul.f32 %v3052_v38, %v7088_v44  ;;  %v3041_v41 = vmul.f32 %v6868_v23, %v3014_v33  ;;  %v3073_v40 = vmul.f32 %v6874_v53, %v3014_v33 }
 0xdb5   :  { %s3003_s3 = scvt.f32.s32 %s7164_s11  ;;  %s3006_s9 = sand.u32 2147483648, %s7164_s11  ;;  %v3028_v48 = vmin.f32 %v3027_v45, %v2966_v47  ;;  %v3060_v20 = vmin.f32 %v3059_v46, %v2966_v47  ;;  %v4916_v10 = vround.rtne.f32 %v3065_v50 }
 0xdb6   :  { %s2980_s14 = sand.u32 2147483647, %s2979_s2  ;;  %s3008_s20 = sand.u32 2147483647, %s7164_s11  ;;  %v3022_v51 = vsub.f32 %v3021_v22, %v6868_v23  ;;  %v3054_v52 = vsub.f32 %v3053_v19, %v6874_v53  ;;  %v4913_v42 = vround.rtne.f32 %v3041_v41  ;;  %v4917_v21 = vround.rtne.f32 %v3073_v40 }
 0xdb7   :  { %s2982_s22 = sor.u32 %s2981_s13, %s2980_s14  ;;  %s3004_s27 = scvt.s32.f32 %s3003_s3  ;;  %v3029_v25 = vmul.f32 %v3028_v48, %v7091_v5  ;;  %v3061_v24 = vmul.f32 %v3060_v20, %v7091_v5 }
 0xdb8   :  { %s8609_s22 = smov (!%p7166_p8, %s2982_s22), %s7153_s23  ;;  %v3023_v34 = vmul.f32 %v3022_v51, %v3022_v51  ;;  %p3009_p9 = scmp.lt.f32.partialorder %s3008_s20, 2.1474836e+09  ;;  %v3055_v61 = vmul.f32 %v3054_v52, %v3054_v52 }
 0xdb9   :  { %s3005_s4 = sand.u32 2147483647, %s3004_s27  ;;  %v3030_v59 = vsub.f32 %v3029_v25, %v6868_v23  ;;  %v3062_v60 = vsub.f32 %v3061_v24, %v6874_v53  ;;  %s2986_s6 = ssub.f32 0.0, %s8609_s22 }
 0xdba   :  { %s3007_s13 = sor.u32 %s3006_s9, %s3005_s4  ;;  %v3056_v3 = vadd.f32 %v3055_v61, %v3023_v34  ;;  %s2987_s23 = ssub.f32 255.0, %s8609_s22 }
 0xdbb   :  { %s8611_s13 = smov (!%p3009_p9, %s3007_s13), %s7164_s11  ;;  %v3031_v63 = vmul.f32 %v3030_v59, %v3030_v59  ;;  %v3063_v2 = vmul.f32 %v3062_v60, %v3062_v60  ;;  %v2990_v4 = vstv %s2986_s6  ;;  %s4556_s11 = sadd.f32 -0.56, %s5294_s21 }
 0xdbc   :  { %v3035_v44 = vmax.f32 %v4912_v62, %v2990_v4  ;;  %v3067_v43 = vmax.f32 %v4916_v10, %v2990_v4  ;;  %s3011_s30 = ssub.f32 0.0, %s8611_s13  ;;  %3081 = vadd.xlane.f32.xlu0 %v3056_v3  ;;  %v2991_v13 = vstv %s2987_s23 }
 0xdbd   :  { %v3064_v5 = vadd.f32 %v3063_v2, %v3031_v63  ;;  %s3012_s2 = ssub.f32 255.0, %s8611_s13  ;;  %s7210_s14 = smul.f32 0.003921569, %s4556_s11 }
 0xdbe   :  { %v3015_v14 = vstv %s3011_s30  ;;  %v3036_v15 = vmin.f32 %v3035_v44, %v2991_v13  ;;  %v3068_v16 = vmin.f32 %v3067_v43, %v2991_v13  ;;  %s4557_s10 = sadd.f32 -0.57, %s5294_s21  ;;  %v7271_v43 = vld [vmem:[%s8048_s0] sm:$0xff] }
 0xdbf   :  { %3095 = vadd.xlane.f32.xlu1 %v3064_v5  ;;  %v3043_v8 = vmax.f32 %v4913_v42, %v3015_v14  ;;  %v3075_v55 = vmax.f32 %v4917_v21, %v3015_v14  ;;  %v3016_v54 = vstv %s3012_s2  ;;  %s4558_s3 = sadd.f32 -0.58, %s5294_s21  ;;  %v7219_v50 = vstv %s7210_s14  ;;  %v7277_v42 = vld [vmem:[%s8048_s0 + $0x8] sm:$0xff] }
 0xdc0   :  { %v3037_v17 = vmul.f32 %v3036_v15, %v7094_v56  ;;  %v3069_v18 = vmul.f32 %v3068_v16, %v7094_v56  ;;  %s4559_s9 = sadd.f32 -0.59, %s5294_s21  ;;  %s7212_s20 = smul.f32 0.003921569, %s4557_s10  ;;  %5185 = vrcp.f32 %v7219_v50 }
 0xdc1   :  { %v3044_v0 = vmin.f32 %v3043_v8, %v3016_v54  ;;  %v3076_v58 = vmin.f32 %v3075_v55, %v3016_v54  ;;  %s7214_s27 = smul.f32 0.003921569, %s4558_s3 }
 0xdc2   :  { %v3038_v1 = vsub.f32 %v3037_v17, %v6868_v23  ;;  %v3070_v57 = vsub.f32 %v3069_v18, %v6874_v53  ;;  %s7216_s4 = smul.f32 0.003921569, %s4559_s9  ;;  %v7222_v33 = vstv %s7212_s20 }
 0xdc3   :  { %v3045_v9 = vmul.f32 %v3044_v0, %v7098_v12  ;;  %v3077_v39 = vmul.f32 %v3076_v58, %v7098_v12  ;;  %v7225_v24 = vstv %s7214_s27  ;;  %5187 = vrcp.f32 %v7222_v33 }
 0xdc4   :  { %v3039_v26 = vmul.f32 %v3038_v1, %v3038_v1  ;;  %v3071_v27 = vmul.f32 %v3070_v57, %v3070_v57  ;;  %v7229_v34 = vstv %s7216_s4  ;;  %5189 = vrcp.f32 %v7225_v24 }
 0xdc5   :  { %v3046_v28 = vsub.f32 %v3045_v9, %v6868_v23  ;;  %v3078_v29 = vsub.f32 %v3077_v39, %v6874_v53  ;;  %5191 = vrcp.f32 %v7229_v34 }
 0xdc6   :  { %v3072_v30 = vadd.f32 %v3071_v27, %v3039_v26 }
 0xdc7   :  { %v3047_v56 = vmul.f32 %v3046_v28, %v3046_v28  ;;  %v3079_v7 = vmul.f32 %v3078_v29, %v3078_v29 }
 0xdc8   :  { %3109 = vadd.xlane.f32.xlu0 %v3072_v30 }
 0xdc9   :  { %v3080_v6 = vadd.f32 %v3079_v7, %v3047_v56 }
 0xdca   :  { %v5186_v63 = vpop.eup %5185 }
 0xdcb   :  { %3123 = vadd.xlane.f32.xlu1 %v3080_v6 }
 0xdcd   :  { %v5188_v2 = vpop.eup %5187 }
 0xdce   :  { %v5190_v3 = vpop.eup %5189 }
 0xdcf   :  { %v5192_v4 = vpop.eup %5191 }
 0xe49   :  { %v3082_v31 = vpop.xlane.xlu0 %3081 }
 0xe4a   :  { %v3083_v35 = vrot.slane %v3082_v31, 4 }
 0xe4c   :  { %v3096_v36 = vpop.xlane.xlu1 %3095  ;;  %v3084_v37 = vadd.f32 %v3083_v35, %v3082_v31 }
 0xe4d   :  { %v3097_v12 = vrot.slane %v3096_v36, 4 }
 0xe4e   :  { %v3085_v38 = vrot.slane %v3084_v37, 2 }
 0xe4f   :  { %v3098_v11 = vadd.f32 %v3097_v12, %v3096_v36 }
 0xe50   :  { %v3086_v45 = vadd.f32 %v3085_v38, %v3084_v37 }
 0xe51   :  { %v3099_v23 = vrot.slane %v3098_v11, 2 }
 0xe52   :  { %v3087_v53 = vrot.slane %v3086_v45, 1 }
 0xe53   :  { %v3100_v46 = vadd.f32 %v3099_v23, %v3098_v11 }
 0xe54   :  { %v3088_v32 = vadd.f32 %v3087_v53, %v3086_v45 }
 0xe55   :  { %v3101_v47 = vrot.slane %v3100_v46, 1  ;;  %v3110_v22 = vpop.xlane.xlu0 %3109 }
 0xe56   :  { %v3111_v48 = vrot.slane %v3110_v22, 4  ;;  %4918 = vpush %v3088_v32 }
 0xe57   :  { %v3102_v20 = vadd.f32 %v3101_v47, %v3100_v46 }
 0xe58   :  { %v3124_v19 = vpop.xlane.xlu1 %3123  ;;  %v3112_v49 = vadd.f32 %v3111_v48, %v3110_v22 }
 0xe59   :  { %4920 = vpush %v3102_v20  ;;  %v3125_v51 = vrot.slane %v3124_v19, 4 }
 0xe5a   :  { %v3113_v25 = vrot.slane %v3112_v49, 2 }
 0xe5b   :  { %v3126_v52 = vadd.f32 %v3125_v51, %v3124_v19 }
 0xe5c   :  { %v3114_v59 = vadd.f32 %v3113_v25, %v3112_v49 }
 0xe5d   :  { %v3127_v60 = vrot.slane %v3126_v52, 2 }
 0xe5e   :  { %v3115_v61 = vrot.slane %v3114_v59, 1 }
 0xe5f   :  { %v3128_v62 = vadd.f32 %v3127_v60, %v3126_v52 }
 0xe60   :  { %v3116_v41 = vadd.f32 %v3115_v61, %v3114_v59 }
 0xe61   :  { %v3129_v40 = vrot.slane %v3128_v62, 1 }
 0xe62   :  { %4922 = vpush %v3116_v41 }
 0xe63   :  { %v3130_v10 = vadd.f32 %v3129_v40, %v3128_v62 }
 0xe65   :  { %4924 = vpush %v3130_v10 }
 0xe66   :  { %4926 = vpush %v5186_v63 }
 0xe67   :  { %4928 = vpush %v5188_v2 }
 0xe68   :  { %4930 = vpush %v5190_v3 }
 0xe69   :  { %4932 = vpush %v5192_v4 }
 0xe87   :  { %s4919_s6 = spop %4918 }
 0xe88   :  { %p3090_p10 = scmp.lt.f32.partialorder %s4919_s6, %s8597_s7 }
 0xe8a   :  { %s4921_s23 = spop %4920  ;;  %s8613_s6 = smov (!%p3090_p10, %s4919_s6), %s8597_s7 }
 0xe8b   :  { %s8615_s25 = smov (!%p3090_p10, %s7079_s25), %s8599_s26  ;;  %s8617_s18 = smov (!%p3090_p10, %s7117_s18), %s8601_s1 }
 0xe8c   :  { %s8619_s15 = smov (!%p3090_p10, %s8605_s15), %s8603_s19  ;;  %p3104_p11 = scmp.lt.f32.partialorder %s4921_s23, %s8613_s6 }
 0xe8e   :  { %s8621_s23 = smov (!%p3104_p11, %s4921_s23), %s8613_s6  ;;  %s8623_s5 = smov (!%p3104_p11, %s7081_s5), %s8615_s25 }
 0xe8f   :  { %s8625_s24 = smov (!%p3104_p11, %s7121_s24), %s8617_s18  ;;  %s8627_s8 = smov (!%p3104_p11, %s8607_s8), %s8619_s15 }
 0xe93   :  { %s4923_s30 = spop %4922 }
 0xe94   :  { %p3118_p12 = scmp.lt.f32.partialorder %s4923_s30, %s8621_s23 }
 0xe96   :  { %s4925_s2 = spop %4924  ;;  %s8629_s30 = smov (!%p3118_p12, %s4923_s30), %s8621_s23 }
 0xe97   :  { %s8631_s16 = smov (!%p3118_p12, %s7083_s16), %s8623_s5  ;;  %s8633_s28 = smov (!%p3118_p12, %s7147_s28), %s8625_s24 }
 0xe98   :  { %s8635_s22 = smov (!%p3118_p12, %s8609_s22), %s8627_s8  ;;  %p3132_p13 = scmp.lt.f32.partialorder %s4925_s2, %s8629_s30 }
 0xe99   :  { %s7248_s26 = spop %4926 }
 0xe9a   :  { %s3147_s1 = smul.f32 %s7248_s26, %s8063_s29  ;;  %s7252_s19 = spop %4928  ;;  %v3159_v44 = vstv %s7248_s26 }
 0xe9b   :  { %s8637_s2 = smov (!%p3132_p13, %s4925_s2), %s8629_s30  ;;  %s8639_s12 = smov (!%p3132_p13, %s7085_s12), %s8631_s16  ;;  %v3237_v5 = vmul.f32 %v7271_v43, %v3159_v44  ;;  %v3269_v21 = vmul.f32 %v7277_v42, %v3159_v44  ;;  %v3184_v13 = vstv %s7252_s19 }
 0xe9c   :  { %s8641_s17 = smov (!%p3132_p13, %s7155_s17), %s8633_s28  ;;  %s8643_s13 = smov (!%p3132_p13, %s8611_s13), %s8635_s22  ;;  %v3245_v14 = vmul.f32 %v7271_v43, %v3184_v13  ;;  %v3277_v15 = vmul.f32 %v7277_v42, %v3184_v13 }
 0xe9d   :  { %s3148_s25 = scvt.f32.s32 %s3147_s1  ;;  %s3151_s5 = sand.u32 2147483648, %s3147_s1  ;;  %v4934_v16 = vround.rtne.f32 %v3237_v5  ;;  %v4938_v8 = vround.rtne.f32 %v3269_v21 }
 0xe9e   :  { %s3153_s7 = sand.u32 2147483647, %s3147_s1  ;;  %s3172_s18 = smul.f32 %s7252_s19, %s8063_s29  ;;  %v4935_v18 = vround.rtne.f32 %v3245_v14  ;;  %v4939_v0 = vround.rtne.f32 %v3277_v15 }
 0xe9f   :  { %s3149_s24 = scvt.s32.f32 %s3148_s25  ;;  %p3154_p0 = scmp.lt.f32.partialorder %s3153_s7, 2.1474836e+09 }
 0xea0   :  { %s3173_s15 = scvt.f32.s32 %s3172_s18  ;;  %s3176_s8 = sand.u32 2147483648, %s3172_s18 }
 0xea1   :  { %s3150_s11 = sand.u32 2147483647, %s3149_s24  ;;  %s3178_s10 = sand.u32 2147483647, %s3172_s18 }
 0xea2   :  { %s3152_s3 = sor.u32 %s3151_s5, %s3150_s11  ;;  %s3174_s6 = scvt.s32.f32 %s3173_s15 }
 0xea3   :  { %s8645_s3 = smov (!%p3154_p0, %s3152_s3), %s3147_s1  ;;  %p3179_p1 = scmp.lt.f32.partialorder %s3178_s10, 2.1474836e+09 }
 0xea4   :  { %s3175_s23 = sand.u32 2147483647, %s3174_s6  ;;  %s3156_s30 = ssub.f32 0.0, %s8645_s3 }
 0xea5   :  { %s3177_s25 = sor.u32 %s3176_s8, %s3175_s23  ;;  %s7288_s1 = spop %4930 }
 0xea6   :  { %s8647_s25 = smov (!%p3179_p1, %s3177_s25), %s3172_s18  ;;  %v3160_v55 = vstv %s3156_s30  ;;  %s3157_s5 = ssub.f32 255.0, %s8645_s3  ;;  %v3209_v27 = vstv %s7288_s1 }
 0xea7   :  { %v3239_v54 = vmax.f32 %v4934_v16, %v3160_v55  ;;  %v3271_v17 = vmax.f32 %v4938_v8, %v3160_v55  ;;  %s3181_s7 = ssub.f32 0.0, %s8647_s25  ;;  %s7294_s24 = smul.f32 %s7288_s1, %s8063_s29  ;;  %v3253_v6 = vmul.f32 %v7271_v43, %v3209_v27  ;;  %v3285_v31 = vmul.f32 %v7277_v42, %v3209_v27 }
 0xea8   :  { %s7296_s18 = spop %4932  ;;  %s3182_s15 = ssub.f32 255.0, %s8647_s25  ;;  %v3161_v58 = vstv %s3157_s5 }
 0xea9   :  { %v3185_v1 = vstv %s3181_s7  ;;  %s3198_s8 = scvt.f32.s32 %s7294_s24  ;;  %s3201_s11 = sand.u32 2147483648, %s7294_s24  ;;  %v3240_v57 = vmin.f32 %v3239_v54, %v3161_v58  ;;  %v3272_v9 = vmin.f32 %v3271_v17, %v3161_v58  ;;  %v3234_v36 = vstv %s7296_s18 }
 0xeaa   :  { %v3247_v39 = vmax.f32 %v4935_v18, %v3185_v1  ;;  %v3279_v26 = vmax.f32 %v4939_v0, %v3185_v1  ;;  %s3203_s10 = sand.u32 2147483647, %s7294_s24  ;;  %s7305_s9 = smul.f32 %s7296_s18, %s8063_s29  ;;  %v3186_v28 = vstv %s3182_s15  ;;  %v4936_v46 = vround.rtne.f32 %v3253_v6 }
 0xeab   :  { %s3199_s16 = scvt.s32.f32 %s3198_s8  ;;  %p7307_p2 = scmp.lt.f32.partialorder %s3203_s10, 2.1474836e+09  ;;  %v3241_v29 = vmul.f32 %v3240_v57, %v7219_v50  ;;  %v3273_v7 = vmul.f32 %v3272_v9, %v7219_v50  ;;  %v3261_v32 = vmul.f32 %v7271_v43, %v3234_v36  ;;  %v3293_v47 = vmul.f32 %v7277_v42, %v3234_v36 }
 0xeac   :  { %s3223_s22 = scvt.f32.s32 %s7305_s9  ;;  %s3226_s6 = sand.u32 2147483648, %s7305_s9  ;;  %v3248_v30 = vmin.f32 %v3247_v39, %v3186_v28  ;;  %v3280_v56 = vmin.f32 %v3279_v26, %v3186_v28  ;;  %v4940_v22 = vround.rtne.f32 %v3285_v31 }
 0xead   :  { %s3200_s23 = sand.u32 2147483647, %s3199_s16  ;;  %s3228_s30 = sand.u32 2147483647, %s7305_s9  ;;  %v3242_v35 = vsub.f32 %v3241_v29, %v7271_v43  ;;  %v3274_v11 = vsub.f32 %v3273_v7, %v7277_v42  ;;  %v4937_v25 = vround.rtne.f32 %v3261_v32  ;;  %v4941_v52 = vround.rtne.f32 %v3293_v47 }
 0xeae   :  { %s3202_s5 = sor.u32 %s3201_s11, %s3200_s23  ;;  %s3224_s7 = scvt.s32.f32 %s3223_s22  ;;  %v3249_v12 = vmul.f32 %v3248_v30, %v7222_v33  ;;  %v3281_v37 = vmul.f32 %v3280_v56, %v7222_v33 }
 0xeaf   :  { %s8649_s5 = smov (!%p7307_p2, %s3202_s5), %s7294_s24  ;;  %v3243_v38 = vmul.f32 %v3242_v35, %v3242_v35  ;;  %p3229_p3 = scmp.lt.f32.partialorder %s3228_s30, 2.1474836e+09  ;;  %v3275_v53 = vmul.f32 %v3274_v11, %v3274_v11 }
 0xeb0   :  { %s3225_s15 = sand.u32 2147483647, %s3224_s7  ;;  %v3250_v23 = vsub.f32 %v3249_v12, %v7271_v43  ;;  %v3282_v45 = vsub.f32 %v3281_v37, %v7277_v42  ;;  %s3206_s8 = ssub.f32 0.0, %s8649_s5 }
 0xeb1   :  { %s3227_s11 = sor.u32 %s3226_s6, %s3225_s15  ;;  %v3276_v19 = vadd.f32 %v3275_v53, %v3243_v38  ;;  %s3207_s24 = ssub.f32 255.0, %s8649_s5 }
 0xeb2   :  { %s8651_s11 = smov (!%p3229_p3, %s3227_s11), %s7305_s9  ;;  %v3251_v48 = vmul.f32 %v3250_v23, %v3250_v23  ;;  %v3283_v20 = vmul.f32 %v3282_v45, %v3282_v45  ;;  %v3210_v49 = vstv %s3206_s8  ;;  %s4560_s9 = sadd.f32 -0.59999996, %s5294_s21 }
 0xeb3   :  { %v3255_v50 = vmax.f32 %v4936_v46, %v3210_v49  ;;  %v3287_v51 = vmax.f32 %v4940_v22, %v3210_v49  ;;  %s3231_s10 = ssub.f32 0.0, %s8651_s11  ;;  %3301 = vadd.xlane.f32.xlu0 %v3276_v19  ;;  %v3211_v59 = vstv %s3207_s24 }
 0xeb4   :  { %v3284_v33 = vadd.f32 %v3283_v20, %v3251_v48  ;;  %s3232_s16 = ssub.f32 255.0, %s8651_s11  ;;  %s7351_s23 = smul.f32 0.003921569, %s4560_s9 }
 0xeb5   :  { %v3235_v60 = vstv %s3231_s10  ;;  %v3256_v61 = vmin.f32 %v3255_v50, %v3211_v59  ;;  %v3288_v62 = vmin.f32 %v3287_v51, %v3211_v59  ;;  %s4561_s28 = sadd.f32 -0.61, %s5294_s21 }
 0xeb6   :  { %3315 = vadd.xlane.f32.xlu1 %v3284_v33  ;;  %v3263_v41 = vmax.f32 %v4937_v25, %v3235_v60  ;;  %v3295_v40 = vmax.f32 %v4941_v52, %v3235_v60  ;;  %v3236_v10 = vstv %s3232_s16  ;;  %s4562_s22 = sadd.f32 -0.62, %s5294_s21  ;;  %v7360_v36 = vstv %s7351_s23 }
 0xeb7   :  { %v3257_v63 = vmul.f32 %v3256_v61, %v7225_v24  ;;  %v3289_v2 = vmul.f32 %v3288_v62, %v7225_v24  ;;  %s4563_s6 = sadd.f32 -0.63, %s5294_s21  ;;  %s7353_s30 = smul.f32 0.003921569, %s4561_s28  ;;  %5193 = vrcp.f32 %v7360_v36 }
 0xeb8   :  { %v3264_v3 = vmin.f32 %v3263_v41, %v3236_v10  ;;  %v3296_v4 = vmin.f32 %v3295_v40, %v3236_v10  ;;  %s7355_s7 = smul.f32 0.003921569, %s4562_s22 }
 0xeb9   :  { %v3258_v44 = vsub.f32 %v3257_v63, %v7271_v43  ;;  %v3290_v5 = vsub.f32 %v3289_v2, %v7277_v42  ;;  %s7357_s15 = smul.f32 0.003921569, %s4563_s6  ;;  %v7363_v37 = vstv %s7353_s30 }
 0xeba   :  { %v3265_v21 = vmul.f32 %v3264_v3, %v7229_v34  ;;  %v3297_v13 = vmul.f32 %v3296_v4, %v7229_v34  ;;  %v7366_v38 = vstv %s7355_s7  ;;  %5195 = vrcp.f32 %v7363_v37 }
 0xebb   :  { %v3259_v14 = vmul.f32 %v3258_v44, %v3258_v44  ;;  %v3291_v15 = vmul.f32 %v3290_v5, %v3290_v5  ;;  %v7370_v45 = vstv %s7357_s15  ;;  %5197 = vrcp.f32 %v7366_v38 }
 0xebc   :  { %v3266_v16 = vsub.f32 %v3265_v21, %v7271_v43  ;;  %v3298_v8 = vsub.f32 %v3297_v13, %v7277_v42  ;;  %5199 = vrcp.f32 %v7370_v45 }
 0xebd   :  { %v3292_v55 = vadd.f32 %v3291_v15, %v3259_v14 }
 0xebe   :  { %v3267_v24 = vmul.f32 %v3266_v16, %v3266_v16  ;;  %v3299_v54 = vmul.f32 %v3298_v8, %v3298_v8 }
 0xebf   :  { %3329 = vadd.xlane.f32.xlu0 %v3292_v55 }
 0xec0   :  { %v3300_v17 = vadd.f32 %v3299_v54, %v3267_v24 }
 0xec1   :  { %v5194_v19 = vpop.eup %5193 }
 0xec2   :  { %3343 = vadd.xlane.f32.xlu1 %v3300_v17 }
 0xec4   :  { %v5196_v49 = vpop.eup %5195 }
 0xec5   :  { %v5198_v50 = vpop.eup %5197 }
 0xec6   :  { %v5200_v51 = vpop.eup %5199 }
 0xf40   :  { %v3302_v18 = vpop.xlane.xlu0 %3301 }
 0xf41   :  { %v3303_v0 = vrot.slane %v3302_v18, 4 }
 0xf43   :  { %v3316_v58 = vpop.xlane.xlu1 %3315  ;;  %v3304_v1 = vadd.f32 %v3303_v0, %v3302_v18 }
 0xf44   :  { %v3317_v34 = vrot.slane %v3316_v58, 4 }
 0xf45   :  { %v3305_v9 = vrot.slane %v3304_v1, 2 }
 0xf46   :  { %v3318_v57 = vadd.f32 %v3317_v34, %v3316_v58 }
 0xf47   :  { %v3306_v26 = vadd.f32 %v3305_v9, %v3304_v1 }
 0xf48   :  { %v3319_v39 = vrot.slane %v3318_v57, 2 }
 0xf49   :  { %v3307_v27 = vrot.slane %v3306_v26, 1 }
 0xf4a   :  { %v3320_v28 = vadd.f32 %v3319_v39, %v3318_v57 }
 0xf4b   :  { %v3308_v29 = vadd.f32 %v3307_v27, %v3306_v26 }
 0xf4c   :  { %v3321_v30 = vrot.slane %v3320_v28, 1  ;;  %v3330_v56 = vpop.xlane.xlu0 %3329 }
 0xf4d   :  { %v3331_v7 = vrot.slane %v3330_v56, 4  ;;  %4942 = vpush %v3308_v29 }
 0xf4e   :  { %v3322_v6 = vadd.f32 %v3321_v30, %v3320_v28 }
 0xf4f   :  { %v3344_v31 = vpop.xlane.xlu1 %3343  ;;  %v3332_v35 = vadd.f32 %v3331_v7, %v3330_v56 }
 0xf50   :  { %4944 = vpush %v3322_v6  ;;  %v3345_v12 = vrot.slane %v3344_v31, 4 }
 0xf51   :  { %v3333_v11 = vrot.slane %v3332_v35, 2 }
 0xf52   :  { %v3346_v23 = vadd.f32 %v3345_v12, %v3344_v31 }
 0xf53   :  { %v3334_v53 = vadd.f32 %v3333_v11, %v3332_v35 }
 0xf54   :  { %v3347_v46 = vrot.slane %v3346_v23, 2 }
 0xf55   :  { %v3335_v32 = vrot.slane %v3334_v53, 1 }
 0xf56   :  { %v3348_v47 = vadd.f32 %v3347_v46, %v3346_v23 }
 0xf57   :  { %v3336_v22 = vadd.f32 %v3335_v32, %v3334_v53 }
 0xf58   :  { %v3349_v48 = vrot.slane %v3348_v47, 1 }
 0xf59   :  { %4946 = vpush %v3336_v22 }
 0xf5a   :  { %v3350_v20 = vadd.f32 %v3349_v48, %v3348_v47 }
 0xf5c   :  { %4948 = vpush %v3350_v20 }
 0xf5d   :  { %4950 = vpush %v5194_v19 }
 0xf5e   :  { %4952 = vpush %v5196_v49 }
 0xf5f   :  { %4954 = vpush %v5198_v50 }
 0xf60   :  { %4956 = vpush %v5200_v51 }
 0xf7e   :  { %s4943_s8 = spop %4942 }
 0xf7f   :  { %p3310_p4 = scmp.lt.f32.partialorder %s4943_s8, %s8637_s2 }
 0xf81   :  { %s4945_s24 = spop %4944  ;;  %s8653_s8 = smov (!%p3310_p4, %s4943_s8), %s8637_s2 }
 0xf82   :  { %s8655_s14 = smov (!%p3310_p4, %s7210_s14), %s8639_s12  ;;  %s8657_s26 = smov (!%p3310_p4, %s7248_s26), %s8641_s17 }
 0xf83   :  { %s8659_s3 = smov (!%p3310_p4, %s8645_s3), %s8643_s13  ;;  %p3324_p5 = scmp.lt.f32.partialorder %s4945_s24, %s8653_s8 }
 0xf85   :  { %s8661_s24 = smov (!%p3324_p5, %s4945_s24), %s8653_s8  ;;  %s8663_s20 = smov (!%p3324_p5, %s7212_s20), %s8655_s14 }
 0xf86   :  { %s8665_s19 = smov (!%p3324_p5, %s7252_s19), %s8657_s26  ;;  %s8667_s25 = smov (!%p3324_p5, %s8647_s25), %s8659_s3 }
 0xf8a   :  { %s4947_s10 = spop %4946 }
 0xf8b   :  { %p3338_p6 = scmp.lt.f32.partialorder %s4947_s10, %s8661_s24 }
 0xf8d   :  { %s4949_s16 = spop %4948  ;;  %s8669_s10 = smov (!%p3338_p6, %s4947_s10), %s8661_s24 }
 0xf8e   :  { %s8671_s27 = smov (!%p3338_p6, %s7214_s27), %s8663_s20  ;;  %s8673_s1 = smov (!%p3338_p6, %s7288_s1), %s8665_s19 }
 0xf8f   :  { %s8675_s5 = smov (!%p3338_p6, %s8649_s5), %s8667_s25  ;;  %p3352_p7 = scmp.lt.f32.partialorder %s4949_s16, %s8669_s10 }
 0xf90   :  { %s7389_s12 = spop %4950 }
 0xf91   :  { %s3367_s17 = smul.f32 %s7389_s12, %s8063_s29  ;;  %s7393_s13 = spop %4952  ;;  %v3379_v33 = vstv %s7389_s12 }
 0xf92   :  { %s8677_s16 = smov (!%p3352_p7, %s4949_s16), %s8669_s10  ;;  %s8679_s4 = smov (!%p3352_p7, %s7216_s4), %s8671_s27  ;;  %v3457_v25 = vmul.f32 %v7271_v43, %v3379_v33  ;;  %v3489_v52 = vmul.f32 %v7277_v42, %v3379_v33  ;;  %v3404_v59 = vstv %s7393_s13 }
 0xf93   :  { %s8681_s18 = smov (!%p3352_p7, %s7296_s18), %s8673_s1  ;;  %s8683_s11 = smov (!%p3352_p7, %s8651_s11), %s8675_s5  ;;  %v3465_v60 = vmul.f32 %v7271_v43, %v3404_v59  ;;  %v3497_v61 = vmul.f32 %v7277_v42, %v3404_v59 }
 0xf94   :  { %s3368_s14 = scvt.f32.s32 %s3367_s17  ;;  %s3371_s20 = sand.u32 2147483648, %s3367_s17  ;;  %v4958_v62 = vround.rtne.f32 %v3457_v25  ;;  %v4962_v41 = vround.rtne.f32 %v3489_v52 }
 0xf95   :  { %s3373_s2 = sand.u32 2147483647, %s3367_s17  ;;  %s3392_s26 = smul.f32 %s7393_s13, %s8063_s29  ;;  %v4959_v2 = vround.rtne.f32 %v3465_v60  ;;  %v4963_v3 = vround.rtne.f32 %v3497_v61 }
 0xf96   :  { %s3369_s19 = scvt.s32.f32 %s3368_s14  ;;  %p3374_p8 = scmp.lt.f32.partialorder %s3373_s2, 2.1474836e+09 }
 0xf97   :  { %s3393_s3 = scvt.f32.s32 %s3392_s26  ;;  %s3396_s25 = sand.u32 2147483648, %s3392_s26 }
 0xf98   :  { %s3370_s9 = sand.u32 2147483647, %s3369_s19  ;;  %s3398_s28 = sand.u32 2147483647, %s3392_s26 }
 0xf99   :  { %s3372_s22 = sor.u32 %s3371_s20, %s3370_s9  ;;  %s3394_s27 = scvt.s32.f32 %s3393_s3 }
 0xf9a   :  { %s8685_s22 = smov (!%p3374_p8, %s3372_s22), %s3367_s17  ;;  %p3399_p9 = scmp.lt.f32.partialorder %s3398_s28, 2.1474836e+09 }
 0xf9b   :  { %s3395_s1 = sand.u32 2147483647, %s3394_s27  ;;  %s3376_s5 = ssub.f32 0.0, %s8685_s22 }
 0xf9c   :  { %s3397_s6 = sor.u32 %s3396_s25, %s3395_s1  ;;  %s7419_s8 = spop %4954 }
 0xf9d   :  { %s8687_s6 = smov (!%p3399_p9, %s3397_s6), %s3392_s26  ;;  %v3380_v40 = vstv %s3376_s5  ;;  %s3377_s24 = ssub.f32 255.0, %s8685_s22  ;;  %v3429_v15 = vstv %s7419_s8 }
 0xf9e   :  { %v3459_v10 = vmax.f32 %v4958_v62, %v3380_v40  ;;  %v3491_v63 = vmax.f32 %v4962_v41, %v3380_v40  ;;  %s3401_s10 = ssub.f32 0.0, %s8687_s6  ;;  %s7425_s17 = smul.f32 %s7419_s8, %s8063_s29  ;;  %v3473_v17 = vmul.f32 %v7271_v43, %v3429_v15  ;;  %v3505_v18 = vmul.f32 %v7277_v42, %v3429_v15 }
 0xf9f   :  { %s7427_s14 = spop %4956  ;;  %s3402_s20 = ssub.f32 255.0, %s8687_s6  ;;  %v3381_v4 = vstv %s3377_s24 }
 0xfa0   :  { %v3405_v44 = vstv %s3401_s10  ;;  %s3418_s2 = scvt.f32.s32 %s7425_s17  ;;  %s3421_s26 = sand.u32 2147483648, %s7425_s17  ;;  %v3460_v5 = vmin.f32 %v3459_v10, %v3381_v4  ;;  %v3492_v21 = vmin.f32 %v3491_v63, %v3381_v4  ;;  %v3454_v58 = vstv %s7427_s14 }
 0xfa1   :  { %v3467_v13 = vmax.f32 %v4959_v2, %v3405_v44  ;;  %v3499_v14 = vmax.f32 %v4963_v3, %v3405_v44  ;;  %s3423_s19 = sand.u32 2147483647, %s7425_s17  ;;  %s7436_s3 = smul.f32 %s7427_s14, %s8063_s29  ;;  %v3406_v16 = vstv %s3402_s20  ;;  %v4960_v28 = vround.rtne.f32 %v3473_v17 }
 0xfa2   :  { %s3419_s25 = scvt.s32.f32 %s3418_s2  ;;  %p7438_p10 = scmp.lt.f32.partialorder %s3423_s19, 2.1474836e+09  ;;  %v3461_v8 = vmul.f32 %v3460_v5, %v7360_v36  ;;  %v3493_v54 = vmul.f32 %v3492_v21, %v7360_v36  ;;  %v3481_v29 = vmul.f32 %v7271_v43, %v3454_v58  ;;  %v3513_v30 = vmul.f32 %v7277_v42, %v3454_v58 }
 0xfa3   :  { %s3443_s28 = scvt.f32.s32 %s7436_s3  ;;  %s3446_s27 = sand.u32 2147483648, %s7436_s3  ;;  %v3468_v55 = vmin.f32 %v3467_v13, %v3406_v16  ;;  %v3500_v24 = vmin.f32 %v3499_v14, %v3406_v16  ;;  %v4964_v56 = vround.rtne.f32 %v3505_v18 }
 0xfa4   :  { %s3420_s1 = sand.u32 2147483647, %s3419_s25  ;;  %s3448_s5 = sand.u32 2147483647, %s7436_s3  ;;  %v3462_v0 = vsub.f32 %v3461_v8, %v7271_v43  ;;  %v3494_v57 = vsub.f32 %v3493_v54, %v7277_v42  ;;  %v4961_v11 = vround.rtne.f32 %v3481_v29  ;;  %v4965_v23 = vround.rtne.f32 %v3513_v30 }
 0xfa5   :  { %s3422_s24 = sor.u32 %s3421_s26, %s3420_s1  ;;  %s3444_s10 = scvt.s32.f32 %s3443_s28  ;;  %v3469_v34 = vmul.f32 %v3468_v55, %v7363_v37  ;;  %v3501_v1 = vmul.f32 %v3500_v24, %v7363_v37 }
 0xfa6   :  { %s8689_s24 = smov (!%p7438_p10, %s3422_s24), %s7425_s17  ;;  %v3463_v9 = vmul.f32 %v3462_v0, %v3462_v0  ;;  %p3449_p11 = scmp.lt.f32.partialorder %s3448_s5, 2.1474836e+09  ;;  %v3495_v27 = vmul.f32 %v3494_v57, %v3494_v57 }
 0xfa7   :  { %s3445_s20 = sand.u32 2147483647, %s3444_s10  ;;  %v3470_v39 = vsub.f32 %v3469_v34, %v7271_v43  ;;  %v3502_v26 = vsub.f32 %v3501_v1, %v7277_v42  ;;  %s3426_s2 = ssub.f32 0.0, %s8689_s24 }
 0xfa8   :  { %s3447_s26 = sor.u32 %s3446_s27, %s3445_s20  ;;  %v3496_v31 = vadd.f32 %v3495_v27, %v3463_v9  ;;  %s3427_s17 = ssub.f32 255.0, %s8689_s24 }
 0xfa9   :  { %s8691_s26 = smov (!%p3449_p11, %s3447_s26), %s7436_s3  ;;  %v3471_v7 = vmul.f32 %v3470_v39, %v3470_v39  ;;  %v3503_v6 = vmul.f32 %v3502_v26, %v3502_v26  ;;  %v3430_v35 = vstv %s3426_s2  ;;  %s4564_s3 = sadd.f32 -0.64, %s5294_s21 }
 0xfaa   :  { %v3475_v36 = vmax.f32 %v4960_v28, %v3430_v35  ;;  %v3507_v12 = vmax.f32 %v4964_v56, %v3430_v35  ;;  %s3451_s19 = ssub.f32 0.0, %s8691_s26  ;;  %3521 = vadd.xlane.f32.xlu0 %v3496_v31  ;;  %v3431_v53 = vstv %s3427_s17 }
 0xfab   :  { %v3504_v37 = vadd.f32 %v3503_v6, %v3471_v7  ;;  %s3452_s25 = ssub.f32 255.0, %s8691_s26  ;;  %s7482_s1 = smul.f32 0.003921569, %s4564_s3 }
 0xfac   :  { %v3455_v46 = vstv %s3451_s19  ;;  %v3476_v32 = vmin.f32 %v3475_v36, %v3431_v53  ;;  %v3508_v47 = vmin.f32 %v3507_v12, %v3431_v53  ;;  %s4565_s9 = sadd.f32 -0.65, %s5294_s21 }
 0xfad   :  { %3535 = vadd.xlane.f32.xlu1 %v3504_v37  ;;  %v3483_v22 = vmax.f32 %v4961_v11, %v3455_v46  ;;  %v3515_v48 = vmax.f32 %v4965_v23, %v3455_v46  ;;  %v3456_v20 = vstv %s3452_s25  ;;  %s4566_s28 = sadd.f32 -0.65999997, %s5294_s21  ;;  %v7491_v58 = vstv %s7482_s1 }
 0xfae   :  { %v3477_v19 = vmul.f32 %v3476_v32, %v7366_v38  ;;  %v3509_v49 = vmul.f32 %v3508_v47, %v7366_v38  ;;  %s4567_s27 = sadd.f32 -0.66999996, %s5294_s21  ;;  %s7484_s5 = smul.f32 0.003921569, %s4565_s9  ;;  %5201 = vrcp.f32 %v7491_v58 }
 0xfaf   :  { %v3484_v50 = vmin.f32 %v3483_v22, %v3456_v20  ;;  %v3516_v51 = vmin.f32 %v3515_v48, %v3456_v20  ;;  %s7486_s10 = smul.f32 0.003921569, %s4566_s28 }
 0xfb0   :  { %v3478_v33 = vsub.f32 %v3477_v19, %v7271_v43  ;;  %v3510_v25 = vsub.f32 %v3509_v49, %v7277_v42  ;;  %s7488_s20 = smul.f32 0.003921569, %s4567_s27  ;;  %v7494_v1 = vstv %s7484_s5 }
 0xfb1   :  { %v3485_v52 = vmul.f32 %v3484_v50, %v7370_v45  ;;  %v3517_v59 = vmul.f32 %v3516_v51, %v7370_v45  ;;  %v7497_v9 = vstv %s7486_s10  ;;  %5203 = vrcp.f32 %v7494_v1 }
 0xfb2   :  { %v3479_v60 = vmul.f32 %v3478_v33, %v3478_v33  ;;  %v3511_v61 = vmul.f32 %v3510_v25, %v3510_v25  ;;  %v7501_v26 = vstv %s7488_s20  ;;  %5205 = vrcp.f32 %v7497_v9 }
 0xfb3   :  { %v3486_v62 = vsub.f32 %v3485_v52, %v7271_v43  ;;  %v3518_v41 = vsub.f32 %v3517_v59, %v7277_v42  ;;  %5207 = vrcp.f32 %v7501_v26 }
 0xfb4   :  { %v3512_v40 = vadd.f32 %v3511_v61, %v3479_v60 }
 0xfb5   :  { %v3487_v38 = vmul.f32 %v3486_v62, %v3486_v62  ;;  %v3519_v10 = vmul.f32 %v3518_v41, %v3518_v41 }
 0xfb6   :  { %3549 = vadd.xlane.f32.xlu0 %v3512_v40 }
 0xfb7   :  { %v3520_v63 = vadd.f32 %v3519_v10, %v3487_v38 }
 0xfb8   :  { %v5202_v31 = vpop.eup %5201 }
 0xfb9   :  { %3563 = vadd.xlane.f32.xlu1 %v3520_v63 }
 0xfbb   :  { %v5204_v35 = vpop.eup %5203 }
 0xfbc   :  { %v5206_v36 = vpop.eup %5205 }
 0xfbd   :  { %v5208_v12 = vpop.eup %5207 }
0x1037   :  { %v3522_v2 = vpop.xlane.xlu0 %3521 }
0x1038   :  { %v3523_v3 = vrot.slane %v3522_v2, 4 }
0x103a   :  { %v3536_v4 = vpop.xlane.xlu1 %3535  ;;  %v3524_v44 = vadd.f32 %v3523_v3, %v3522_v2 }
0x103b   :  { %v3537_v45 = vrot.slane %v3536_v4, 4 }
0x103c   :  { %v3525_v21 = vrot.slane %v3524_v44, 2 }
0x103d   :  { %v3538_v5 = vadd.f32 %v3537_v45, %v3536_v4 }
0x103e   :  { %v3526_v14 = vadd.f32 %v3525_v21, %v3524_v44 }
0x103f   :  { %v3539_v13 = vrot.slane %v3538_v5, 2 }
0x1040   :  { %v3527_v16 = vrot.slane %v3526_v14, 1 }
0x1041   :  { %v3540_v15 = vadd.f32 %v3539_v13, %v3538_v5 }
0x1042   :  { %v3528_v55 = vadd.f32 %v3527_v16, %v3526_v14 }
0x1043   :  { %v3541_v8 = vrot.slane %v3540_v15, 1  ;;  %v3550_v24 = vpop.xlane.xlu0 %3549 }
0x1044   :  { %v3551_v54 = vrot.slane %v3550_v24, 4  ;;  %4966 = vpush %v3528_v55 }
0x1045   :  { %v3542_v17 = vadd.f32 %v3541_v8, %v3540_v15 }
0x1046   :  { %v3564_v18 = vpop.xlane.xlu1 %3563  ;;  %v3552_v0 = vadd.f32 %v3551_v54, %v3550_v24 }
0x1047   :  { %4968 = vpush %v3542_v17  ;;  %v3565_v34 = vrot.slane %v3564_v18, 4 }
0x1048   :  { %v3553_v57 = vrot.slane %v3552_v0, 2 }
0x1049   :  { %v3566_v39 = vadd.f32 %v3565_v34, %v3564_v18 }
0x104a   :  { %v3554_v27 = vadd.f32 %v3553_v57, %v3552_v0 }
0x104b   :  { %v3567_v28 = vrot.slane %v3566_v39, 2 }
0x104c   :  { %v3555_v29 = vrot.slane %v3554_v27, 1 }
0x104d   :  { %v3568_v30 = vadd.f32 %v3567_v28, %v3566_v39 }
0x104e   :  { %v3556_v56 = vadd.f32 %v3555_v29, %v3554_v27 }
0x104f   :  { %v3569_v7 = vrot.slane %v3568_v30, 1 }
0x1050   :  { %4970 = vpush %v3556_v56 }
0x1051   :  { %v3570_v6 = vadd.f32 %v3569_v7, %v3568_v30 }
0x1053   :  { %4972 = vpush %v3570_v6 }
0x1054   :  { %4974 = vpush %v5202_v31 }
0x1055   :  { %4976 = vpush %v5204_v35 }
0x1056   :  { %4978 = vpush %v5206_v36 }
0x1057   :  { %4980 = vpush %v5208_v12 }
0x1075   :  { %s4967_s2 = spop %4966 }
0x1076   :  { %p3530_p12 = scmp.lt.f32.partialorder %s4967_s2, %s8677_s16 }
0x1078   :  { %s4969_s17 = spop %4968  ;;  %s8693_s2 = smov (!%p3530_p12, %s4967_s2), %s8677_s16 }
0x1079   :  { %s8695_s23 = smov (!%p3530_p12, %s7351_s23), %s8679_s4  ;;  %s8697_s12 = smov (!%p3530_p12, %s7389_s12), %s8681_s18 }
0x107a   :  { %s8699_s22 = smov (!%p3530_p12, %s8685_s22), %s8683_s11  ;;  %p3544_p13 = scmp.lt.f32.partialorder %s4969_s17, %s8693_s2 }
0x107c   :  { %s8701_s17 = smov (!%p3544_p13, %s4969_s17), %s8693_s2  ;;  %s8703_s30 = smov (!%p3544_p13, %s7353_s30), %s8695_s23 }
0x107d   :  { %s8705_s13 = smov (!%p3544_p13, %s7393_s13), %s8697_s12  ;;  %s8707_s6 = smov (!%p3544_p13, %s8687_s6), %s8699_s22 }
0x1081   :  { %s4971_s19 = spop %4970 }
0x1082   :  { %p3558_p0 = scmp.lt.f32.partialorder %s4971_s19, %s8701_s17 }
0x1084   :  { %s4973_s25 = spop %4972  ;;  %s8709_s19 = smov (!%p3558_p0, %s4971_s19), %s8701_s17 }
0x1085   :  { %s8711_s7 = smov (!%p3558_p0, %s7355_s7), %s8703_s30  ;;  %s8713_s8 = smov (!%p3558_p0, %s7419_s8), %s8705_s13 }
0x1086   :  { %s8715_s24 = smov (!%p3558_p0, %s8689_s24), %s8707_s6  ;;  %p3572_p1 = scmp.lt.f32.partialorder %s4973_s25, %s8709_s19 }
0x1087   :  { %s7520_s4 = spop %4974 }
0x1088   :  { %s3587_s18 = smul.f32 %s7520_s4, %s8063_s29  ;;  %s7524_s11 = spop %4976  ;;  %v3599_v37 = vstv %s7520_s4 }
0x1089   :  { %s8717_s25 = smov (!%p3572_p1, %s4973_s25), %s8709_s19  ;;  %s8719_s15 = smov (!%p3572_p1, %s7357_s15), %s8711_s7  ;;  %v3677_v11 = vmul.f32 %v7271_v43, %v3599_v37  ;;  %v3709_v23 = vmul.f32 %v7277_v42, %v3599_v37  ;;  %v3624_v53 = vstv %s7524_s11 }
0x108a   :  { %s8721_s14 = smov (!%p3572_p1, %s7427_s14), %s8713_s8  ;;  %s8723_s26 = smov (!%p3572_p1, %s8691_s26), %s8715_s24  ;;  %v3685_v46 = vmul.f32 %v7271_v43, %v3624_v53  ;;  %v3717_v32 = vmul.f32 %v7277_v42, %v3624_v53 }
0x108b   :  { %s3588_s23 = scvt.f32.s32 %s3587_s18  ;;  %s3591_s30 = sand.u32 2147483648, %s3587_s18  ;;  %v4982_v47 = vround.rtne.f32 %v3677_v11  ;;  %v4986_v22 = vround.rtne.f32 %v3709_v23 }
0x108c   :  { %s3593_s16 = sand.u32 2147483647, %s3587_s18  ;;  %s3612_s12 = smul.f32 %s7524_s11, %s8063_s29  ;;  %v4983_v49 = vround.rtne.f32 %v3685_v46  ;;  %v4987_v50 = vround.rtne.f32 %v3717_v32 }
0x108d   :  { %s3589_s13 = scvt.s32.f32 %s3588_s23  ;;  %p3594_p2 = scmp.lt.f32.partialorder %s3593_s16, 2.1474836e+09 }
0x108e   :  { %s3613_s22 = scvt.f32.s32 %s3612_s12  ;;  %s3616_s6 = sand.u32 2147483648, %s3612_s12 }
0x108f   :  { %s3590_s3 = sand.u32 2147483647, %s3589_s13  ;;  %s3618_s9 = sand.u32 2147483647, %s3612_s12 }
0x1090   :  { %s3592_s28 = sor.u32 %s3591_s30, %s3590_s3  ;;  %s3614_s7 = scvt.s32.f32 %s3613_s22 }
0x1091   :  { %s8725_s28 = smov (!%p3594_p2, %s3592_s28), %s3587_s18  ;;  %p3619_p3 = scmp.lt.f32.partialorder %s3618_s9, 2.1474836e+09 }
0x1092   :  { %s3615_s8 = sand.u32 2147483647, %s3614_s7  ;;  %s3596_s24 = ssub.f32 0.0, %s8725_s28 }
0x1093   :  { %s3617_s27 = sor.u32 %s3616_s6, %s3615_s8  ;;  %s7550_s2 = spop %4978 }
0x1094   :  { %s8727_s27 = smov (!%p3619_p3, %s3617_s27), %s3612_s12  ;;  %v3600_v48 = vstv %s3596_s24  ;;  %s3597_s17 = ssub.f32 255.0, %s8725_s28  ;;  %v3649_v61 = vstv %s7550_s2 }
0x1095   :  { %v3679_v20 = vmax.f32 %v4982_v47, %v3600_v48  ;;  %v3711_v19 = vmax.f32 %v4986_v22, %v3600_v48  ;;  %s3621_s19 = ssub.f32 0.0, %s8727_s27  ;;  %s7556_s18 = smul.f32 %s7550_s2, %s8063_s29  ;;  %v3693_v63 = vmul.f32 %v7271_v43, %v3649_v61  ;;  %v3725_v2 = vmul.f32 %v7277_v42, %v3649_v61 }
0x1096   :  { %s7558_s23 = spop %4980  ;;  %s3622_s30 = ssub.f32 255.0, %s8727_s27  ;;  %v3601_v51 = vstv %s3597_s17 }
0x1097   :  { %v3625_v33 = vstv %s3621_s19  ;;  %s3638_s16 = scvt.f32.s32 %s7556_s18  ;;  %s3641_s12 = sand.u32 2147483648, %s7556_s18  ;;  %v3680_v25 = vmin.f32 %v3679_v20, %v3601_v51  ;;  %v3712_v52 = vmin.f32 %v3711_v19, %v3601_v51  ;;  %v3674_v4 = vstv %s7558_s23 }
0x1098   :  { %v3687_v59 = vmax.f32 %v4983_v49, %v3625_v33  ;;  %v3719_v60 = vmax.f32 %v4987_v50, %v3625_v33  ;;  %s3643_s13 = sand.u32 2147483647, %s7556_s18  ;;  %s7567_s22 = smul.f32 %s7558_s23, %s8063_s29  ;;  %v3626_v62 = vstv %s3622_s30  ;;  %v4984_v16 = vround.rtne.f32 %v3693_v63 }
0x1099   :  { %s3639_s6 = scvt.s32.f32 %s3638_s16  ;;  %p7569_p4 = scmp.lt.f32.partialorder %s3643_s13, 2.1474836e+09  ;;  %v3681_v41 = vmul.f32 %v3680_v25, %v7491_v58  ;;  %v3713_v10 = vmul.f32 %v3712_v52, %v7491_v58  ;;  %v3701_v8 = vmul.f32 %v7271_v43, %v3674_v4  ;;  %v3733_v55 = vmul.f32 %v7277_v42, %v3674_v4 }
0x109a   :  { %s3663_s9 = scvt.f32.s32 %s7567_s22  ;;  %s3666_s7 = sand.u32 2147483648, %s7567_s22  ;;  %v3688_v40 = vmin.f32 %v3687_v59, %v3626_v62  ;;  %v3720_v38 = vmin.f32 %v3719_v60, %v3626_v62  ;;  %v4988_v24 = vround.rtne.f32 %v3725_v2 }
0x109b   :  { %s3640_s8 = sand.u32 2147483647, %s3639_s6  ;;  %s3668_s24 = sand.u32 2147483647, %s7567_s22  ;;  %v3682_v3 = vsub.f32 %v3681_v41, %v7271_v43  ;;  %v3714_v5 = vsub.f32 %v3713_v10, %v7277_v42  ;;  %v4985_v57 = vround.rtne.f32 %v3701_v8  ;;  %v4989_v39 = vround.rtne.f32 %v3733_v55 }
0x109c   :  { %s3642_s17 = sor.u32 %s3641_s12, %s3640_s8  ;;  %s3664_s19 = scvt.s32.f32 %s3663_s9  ;;  %v3689_v45 = vmul.f32 %v3688_v40, %v7494_v1  ;;  %v3721_v44 = vmul.f32 %v3720_v38, %v7494_v1 }
0x109d   :  { %s8729_s17 = smov (!%p7569_p4, %s3642_s17), %s7556_s18  ;;  %v3683_v21 = vmul.f32 %v3682_v3, %v3682_v3  ;;  %p3669_p5 = scmp.lt.f32.partialorder %s3668_s24, 2.1474836e+09  ;;  %v3715_v15 = vmul.f32 %v3714_v5, %v3714_v5 }
0x109e   :  { %s3665_s30 = sand.u32 2147483647, %s3664_s19  ;;  %v3690_v13 = vsub.f32 %v3689_v45, %v7271_v43  ;;  %v3722_v14 = vsub.f32 %v3721_v44, %v7277_v42  ;;  %s3646_s16 = ssub.f32 0.0, %s8729_s17 }
0x109f   :  { %s3667_s12 = sor.u32 %s3666_s7, %s3665_s30  ;;  %v3716_v18 = vadd.f32 %v3715_v15, %v3683_v21  ;;  %s3647_s18 = ssub.f32 255.0, %s8729_s17 }
0x10a0   :  { %s8731_s12 = smov (!%p3669_p5, %s3667_s12), %s7567_s22  ;;  %v3691_v54 = vmul.f32 %v3690_v13, %v3690_v13  ;;  %v3723_v17 = vmul.f32 %v3722_v14, %v3722_v14  ;;  %v3650_v0 = vstv %s3646_s16  ;;  %s4568_s22 = sadd.f32 -0.68, %s5294_s21 }
0x10a1   :  { %v3695_v58 = vmax.f32 %v4984_v16, %v3650_v0  ;;  %v3727_v34 = vmax.f32 %v4988_v24, %v3650_v0  ;;  %s3671_s13 = ssub.f32 0.0, %s8731_s12  ;;  %3741 = vadd.xlane.f32.xlu0 %v3716_v18  ;;  %v3651_v27 = vstv %s3647_s18 }
0x10a2   :  { %v3724_v1 = vadd.f32 %v3723_v17, %v3691_v54  ;;  %s3672_s6 = ssub.f32 255.0, %s8731_s12  ;;  %s7613_s8 = smul.f32 0.003921569, %s4568_s22 }
0x10a3   :  { %v3675_v28 = vstv %s3671_s13  ;;  %v3696_v29 = vmin.f32 %v3695_v58, %v3651_v27  ;;  %v3728_v30 = vmin.f32 %v3727_v34, %v3651_v27  ;;  %s4569_s3 = sadd.f32 -0.69, %s5294_s21  ;;  %v7674_v34 = vld [vmem:[%s8048_s0] sm:$0xff] }
0x10a4   :  { %3755 = vadd.xlane.f32.xlu1 %v3724_v1  ;;  %v3703_v56 = vmax.f32 %v4985_v57, %v3675_v28  ;;  %v3735_v7 = vmax.f32 %v4989_v39, %v3675_v28  ;;  %v3676_v6 = vstv %s3672_s6  ;;  %s4570_s9 = sadd.f32 -0.7, %s5294_s21  ;;  %v7622_v2 = vstv %s7613_s8  ;;  %v7680_v57 = vld [vmem:[%s8048_s0 + $0x8] sm:$0xff] }
0x10a5   :  { %v3697_v31 = vmul.f32 %v3696_v29, %v7497_v9  ;;  %v3729_v35 = vmul.f32 %v3728_v30, %v7497_v9  ;;  %s4571_s7 = sadd.f32 -0.71, %s5294_s21  ;;  %s7615_s24 = smul.f32 0.003921569, %s4569_s3  ;;  %5209 = vrcp.f32 %v7622_v2 }
0x10a6   :  { %v3704_v36 = vmin.f32 %v3703_v56, %v3676_v6  ;;  %v3736_v12 = vmin.f32 %v3735_v7, %v3676_v6  ;;  %s7617_s19 = smul.f32 0.003921569, %s4570_s9 }
0x10a7   :  { %v3698_v37 = vsub.f32 %v3697_v31, %v7271_v43  ;;  %v3730_v11 = vsub.f32 %v3729_v35, %v7277_v42  ;;  %s7619_s30 = smul.f32 0.003921569, %s4571_s7  ;;  %v7625_v4 = vstv %s7615_s24 }
0x10a8   :  { %v3705_v23 = vmul.f32 %v3704_v36, %v7501_v26  ;;  %v3737_v53 = vmul.f32 %v3736_v12, %v7501_v26  ;;  %v7628_v44 = vstv %s7617_s19  ;;  %5211 = vrcp.f32 %v7625_v4 }
0x10a9   :  { %v3699_v46 = vmul.f32 %v3698_v37, %v3698_v37  ;;  %v3731_v32 = vmul.f32 %v3730_v11, %v3730_v11  ;;  %v7632_v21 = vstv %s7619_s30  ;;  %5213 = vrcp.f32 %v7628_v44 }
0x10aa   :  { %v3706_v47 = vsub.f32 %v3705_v23, %v7271_v43  ;;  %v3738_v22 = vsub.f32 %v3737_v53, %v7277_v42  ;;  %5215 = vrcp.f32 %v7632_v21 }
0x10ab   :  { %v3732_v48 = vadd.f32 %v3731_v32, %v3699_v46 }
0x10ac   :  { %v3707_v9 = vmul.f32 %v3706_v47, %v3706_v47  ;;  %v3739_v20 = vmul.f32 %v3738_v22, %v3738_v22 }
0x10ad   :  { %3769 = vadd.xlane.f32.xlu0 %v3732_v48 }
0x10ae   :  { %v3740_v19 = vadd.f32 %v3739_v20, %v3707_v9 }
0x10af   :  { %v5210_v54 = vpop.eup %5209 }
0x10b0   :  { %3783 = vadd.xlane.f32.xlu1 %v3740_v19 }
0x10b2   :  { %v5212_v17 = vpop.eup %5211 }
0x10b3   :  { %v5214_v18 = vpop.eup %5213 }
0x10b4   :  { %v5216_v0 = vpop.eup %5215 }
0x112e   :  { %v3742_v49 = vpop.xlane.xlu0 %3741 }
0x112f   :  { %v3743_v50 = vrot.slane %v3742_v49, 4 }
0x1131   :  { %v3756_v51 = vpop.xlane.xlu1 %3755  ;;  %v3744_v33 = vadd.f32 %v3743_v50, %v3742_v49 }
0x1132   :  { %v3757_v26 = vrot.slane %v3756_v51, 4 }
0x1133   :  { %v3745_v52 = vrot.slane %v3744_v33, 2 }
0x1134   :  { %v3758_v25 = vadd.f32 %v3757_v26, %v3756_v51 }
0x1135   :  { %v3746_v59 = vadd.f32 %v3745_v52, %v3744_v33 }
0x1136   :  { %v3759_v43 = vrot.slane %v3758_v25, 2 }
0x1137   :  { %v3747_v60 = vrot.slane %v3746_v59, 1 }
0x1138   :  { %v3760_v42 = vadd.f32 %v3759_v43, %v3758_v25 }
0x1139   :  { %v3748_v62 = vadd.f32 %v3747_v60, %v3746_v59 }
0x113a   :  { %v3761_v61 = vrot.slane %v3760_v42, 1  ;;  %v3770_v41 = vpop.xlane.xlu0 %3769 }
0x113b   :  { %v3771_v40 = vrot.slane %v3770_v41, 4  ;;  %4990 = vpush %v3748_v62 }
0x113c   :  { %v3762_v38 = vadd.f32 %v3761_v61, %v3760_v42 }
0x113d   :  { %v3784_v10 = vpop.xlane.xlu1 %3783  ;;  %v3772_v63 = vadd.f32 %v3771_v40, %v3770_v41 }
0x113e   :  { %4992 = vpush %v3762_v38  ;;  %v3785_v3 = vrot.slane %v3784_v10, 4 }
0x113f   :  { %v3773_v45 = vrot.slane %v3772_v63, 2 }
0x1140   :  { %v3786_v5 = vadd.f32 %v3785_v3, %v3784_v10 }
0x1141   :  { %v3774_v13 = vadd.f32 %v3773_v45, %v3772_v63 }
0x1142   :  { %v3787_v14 = vrot.slane %v3786_v5, 2 }
0x1143   :  { %v3775_v15 = vrot.slane %v3774_v13, 1 }
0x1144   :  { %v3788_v16 = vadd.f32 %v3787_v14, %v3786_v5 }
0x1145   :  { %v3776_v8 = vadd.f32 %v3775_v15, %v3774_v13 }
0x1146   :  { %v3789_v55 = vrot.slane %v3788_v16, 1 }
0x1147   :  { %4994 = vpush %v3776_v8 }
0x1148   :  { %v3790_v24 = vadd.f32 %v3789_v55, %v3788_v16 }
0x114a   :  { %4996 = vpush %v3790_v24 }
0x114b   :  { %4998 = vpush %v5210_v54 }
0x114c   :  { %5000 = vpush %v5212_v17 }
0x114d   :  { %5002 = vpush %v5214_v18 }
0x114e   :  { %5004 = vpush %v5216_v0 }
0x116c   :  { %s4991_s16 = spop %4990 }
0x116d   :  { %p3750_p6 = scmp.lt.f32.partialorder %s4991_s16, %s8717_s25 }
0x116f   :  { %s4993_s18 = spop %4992  ;;  %s8733_s16 = smov (!%p3750_p6, %s4991_s16), %s8717_s25 }
0x1170   :  { %s8735_s1 = smov (!%p3750_p6, %s7482_s1), %s8719_s15  ;;  %s8737_s4 = smov (!%p3750_p6, %s7520_s4), %s8721_s14 }
0x1171   :  { %s8739_s28 = smov (!%p3750_p6, %s8725_s28), %s8723_s26  ;;  %p3764_p7 = scmp.lt.f32.partialorder %s4993_s18, %s8733_s16 }
0x1173   :  { %s8741_s18 = smov (!%p3764_p7, %s4993_s18), %s8733_s16  ;;  %s8743_s5 = smov (!%p3764_p7, %s7484_s5), %s8735_s1 }
0x1174   :  { %s8745_s11 = smov (!%p3764_p7, %s7524_s11), %s8737_s4  ;;  %s8747_s27 = smov (!%p3764_p7, %s8727_s27), %s8739_s28 }
0x1178   :  { %s4995_s13 = spop %4994 }
0x1179   :  { %p3778_p8 = scmp.lt.f32.partialorder %s4995_s13, %s8741_s18 }
0x117b   :  { %s4997_s6 = spop %4996  ;;  %s8749_s13 = smov (!%p3778_p8, %s4995_s13), %s8741_s18 }
0x117c   :  { %s8751_s10 = smov (!%p3778_p8, %s7486_s10), %s8743_s5  ;;  %s8753_s2 = smov (!%p3778_p8, %s7550_s2), %s8745_s11 }
0x117d   :  { %s8755_s17 = smov (!%p3778_p8, %s8729_s17), %s8747_s27  ;;  %p3792_p9 = scmp.lt.f32.partialorder %s4997_s6, %s8749_s13 }
0x117e   :  { %s7651_s15 = spop %4998 }
0x117f   :  { %s3807_s14 = smul.f32 %s7651_s15, %s8063_s29  ;;  %s7655_s26 = spop %5000  ;;  %v3819_v58 = vstv %s7651_s15 }
0x1180   :  { %s8757_s6 = smov (!%p3792_p9, %s4997_s6), %s8749_s13  ;;  %s8759_s20 = smov (!%p3792_p9, %s7488_s20), %s8751_s10  ;;  %v3897_v1 = vmul.f32 %v7674_v34, %v3819_v58  ;;  %v3929_v39 = vmul.f32 %v7680_v57, %v3819_v58  ;;  %v3844_v27 = vstv %s7655_s26 }
0x1181   :  { %s8761_s23 = smov (!%p3792_p9, %s7558_s23), %s8753_s2  ;;  %s8763_s12 = smov (!%p3792_p9, %s8731_s12), %s8755_s17  ;;  %v3905_v28 = vmul.f32 %v7674_v34, %v3844_v27  ;;  %v3937_v29 = vmul.f32 %v7680_v57, %v3844_v27 }
0x1182   :  { %s3808_s1 = scvt.f32.s32 %s3807_s14  ;;  %s3811_s5 = sand.u32 2147483648, %s3807_s14  ;;  %v5006_v30 = vround.rtne.f32 %v3897_v1  ;;  %v5010_v56 = vround.rtne.f32 %v3929_v39 }
0x1183   :  { %s3813_s25 = sand.u32 2147483647, %s3807_s14  ;;  %s3832_s4 = smul.f32 %s7655_s26, %s8063_s29  ;;  %v5007_v35 = vround.rtne.f32 %v3905_v28  ;;  %v5011_v36 = vround.rtne.f32 %v3937_v29 }
0x1184   :  { %s3809_s11 = scvt.s32.f32 %s3808_s1  ;;  %p3814_p10 = scmp.lt.f32.partialorder %s3813_s25, 2.1474836e+09 }
0x1185   :  { %s3833_s28 = scvt.f32.s32 %s3832_s4  ;;  %s3836_s27 = sand.u32 2147483648, %s3832_s4 }
0x1186   :  { %s3810_s22 = sand.u32 2147483647, %s3809_s11  ;;  %s3838_s3 = sand.u32 2147483647, %s3832_s4 }
0x1187   :  { %s3812_s9 = sor.u32 %s3811_s5, %s3810_s22  ;;  %s3834_s16 = scvt.s32.f32 %s3833_s28 }
0x1188   :  { %s8765_s9 = smov (!%p3814_p10, %s3812_s9), %s3807_s14  ;;  %p3839_p11 = scmp.lt.f32.partialorder %s3838_s3, 2.1474836e+09 }
0x1189   :  { %s3835_s18 = sand.u32 2147483647, %s3834_s16  ;;  %s3816_s13 = ssub.f32 0.0, %s8765_s9 }
0x118a   :  { %s3837_s1 = sor.u32 %s3836_s27, %s3835_s18  ;;  %s7691_s14 = spop %5002 }
0x118b   :  { %s8767_s1 = smov (!%p3839_p11, %s3837_s1), %s3832_s4  ;;  %v3820_v7 = vstv %s3816_s13  ;;  %s3817_s5 = ssub.f32 255.0, %s8765_s9  ;;  %v3869_v32 = vstv %s7691_s14 }
0x118c   :  { %v3899_v6 = vmax.f32 %v5006_v30, %v3820_v7  ;;  %v3931_v31 = vmax.f32 %v5010_v56, %v3820_v7  ;;  %s3841_s25 = ssub.f32 0.0, %s8767_s1  ;;  %s7697_s11 = smul.f32 %s7691_s14, %s8063_s29  ;;  %v3913_v19 = vmul.f32 %v7674_v34, %v3869_v32  ;;  %v3945_v49 = vmul.f32 %v7680_v57, %v3869_v32 }
0x118d   :  { %s7699_s4 = spop %5004  ;;  %s3842_s28 = ssub.f32 255.0, %s8767_s1  ;;  %v3821_v12 = vstv %s3817_s5 }
0x118e   :  { %v3845_v37 = vstv %s3841_s25  ;;  %s3858_s27 = scvt.f32.s32 %s7697_s11  ;;  %s3861_s22 = sand.u32 2147483648, %s7697_s11  ;;  %v3900_v11 = vmin.f32 %v3899_v6, %v3821_v12  ;;  %v3932_v23 = vmin.f32 %v3931_v31, %v3821_v12  ;;  %v3894_v51 = vstv %s7699_s4 }
0x118f   :  { %v3907_v53 = vmax.f32 %v5007_v35, %v3845_v37  ;;  %v3939_v46 = vmax.f32 %v5011_v36, %v3845_v37  ;;  %s3863_s3 = sand.u32 2147483647, %s7697_s11  ;;  %s7708_s7 = smul.f32 %s7699_s4, %s8063_s29  ;;  %v3846_v47 = vstv %s3842_s28  ;;  %v5008_v60 = vround.rtne.f32 %v3913_v19 }
0x1190   :  { %s3859_s10 = scvt.s32.f32 %s3858_s27  ;;  %p7710_p12 = scmp.lt.f32.partialorder %s3863_s3, 2.1474836e+09  ;;  %v3901_v22 = vmul.f32 %v3900_v11, %v7622_v2  ;;  %v3933_v20 = vmul.f32 %v3932_v23, %v7622_v2  ;;  %v3921_v61 = vmul.f32 %v7674_v34, %v3894_v51  ;;  %v3953_v62 = vmul.f32 %v7680_v57, %v3894_v51 }
0x1191   :  { %s3883_s17 = scvt.f32.s32 %s7708_s7  ;;  %s3886_s16 = sand.u32 2147483648, %s7708_s7  ;;  %v3908_v48 = vmin.f32 %v3907_v53, %v3846_v47  ;;  %v3940_v9 = vmin.f32 %v3939_v46, %v3846_v47  ;;  %v5012_v41 = vround.rtne.f32 %v3945_v49 }
0x1192   :  { %s3860_s18 = sand.u32 2147483647, %s3859_s10  ;;  %s3888_s13 = sand.u32 2147483647, %s7708_s7  ;;  %v3902_v50 = vsub.f32 %v3901_v22, %v7674_v34  ;;  %v3934_v25 = vsub.f32 %v3933_v20, %v7680_v57  ;;  %v5009_v45 = vround.rtne.f32 %v3921_v61  ;;  %v5013_v5 = vround.rtne.f32 %v3953_v62 }
0x1193   :  { %s3862_s5 = sor.u32 %s3861_s22, %s3860_s18  ;;  %s3884_s25 = scvt.s32.f32 %s3883_s17  ;;  %v3909_v26 = vmul.f32 %v3908_v48, %v7625_v4  ;;  %v3941_v33 = vmul.f32 %v3940_v9, %v7625_v4 }
0x1194   :  { %s8769_s5 = smov (!%p7710_p12, %s3862_s5), %s7697_s11  ;;  %v3903_v52 = vmul.f32 %v3902_v50, %v3902_v50  ;;  %p3889_p13 = scmp.lt.f32.partialorder %s3888_s13, 2.1474836e+09  ;;  %v3935_v42 = vmul.f32 %v3934_v25, %v3934_v25 }
0x1195   :  { %s3885_s28 = sand.u32 2147483647, %s3884_s25  ;;  %v3910_v43 = vsub.f32 %v3909_v26, %v7674_v34  ;;  %v3942_v59 = vsub.f32 %v3941_v33, %v7680_v57  ;;  %s3866_s27 = ssub.f32 0.0, %s8769_s5 }
0x1196   :  { %s3887_s22 = sor.u32 %s3886_s16, %s3885_s28  ;;  %v3936_v10 = vadd.f32 %v3935_v42, %v3903_v52  ;;  %s3867_s11 = ssub.f32 255.0, %s8769_s5 }
0x1197   :  { %s8771_s22 = smov (!%p3889_p13, %s3887_s22), %s7708_s7  ;;  %v3911_v40 = vmul.f32 %v3910_v43, %v3910_v43  ;;  %v3943_v38 = vmul.f32 %v3942_v59, %v3942_v59  ;;  %v3870_v63 = vstv %s3866_s27  ;;  %s4572_s7 = sadd.f32 -0.71999997, %s5294_s21 }
0x1198   :  { %v3915_v2 = vmax.f32 %v5008_v60, %v3870_v63  ;;  %v3947_v3 = vmax.f32 %v5012_v41, %v3870_v63  ;;  %s3891_s3 = ssub.f32 0.0, %s8771_s22  ;;  %3961 = vadd.xlane.f32.xlu0 %v3936_v10  ;;  %v3871_v13 = vstv %s3867_s11 }
0x1199   :  { %v3944_v4 = vadd.f32 %v3943_v38, %v3911_v40  ;;  %s3892_s10 = ssub.f32 255.0, %s8771_s22  ;;  %s7754_s18 = smul.f32 0.003921569, %s4572_s7 }
0x119a   :  { %v3895_v14 = vstv %s3891_s3  ;;  %v3916_v15 = vmin.f32 %v3915_v2, %v3871_v13  ;;  %v3948_v16 = vmin.f32 %v3947_v3, %v3871_v13  ;;  %s4573_s2 = sadd.f32 -0.72999996, %s5294_s21 }
0x119b   :  { %3975 = vadd.xlane.f32.xlu1 %v3944_v4  ;;  %v3923_v8 = vmax.f32 %v5009_v45, %v3895_v14  ;;  %v3955_v55 = vmax.f32 %v5013_v5, %v3895_v14  ;;  %v3896_v24 = vstv %s3892_s10  ;;  %s4574_s17 = sadd.f32 -0.74, %s5294_s21  ;;  %v7763_v51 = vstv %s7754_s18 }
0x119c   :  { %v3917_v54 = vmul.f32 %v3916_v15, %v7628_v44  ;;  %v3949_v17 = vmul.f32 %v3948_v16, %v7628_v44  ;;  %s4575_s16 = sadd.f32 -0.75, %s5294_s21  ;;  %s7756_s13 = smul.f32 0.003921569, %s4573_s2  ;;  %5217 = vrcp.f32 %v7763_v51 }
0x119d   :  { %v3924_v18 = vmin.f32 %v3923_v8, %v3896_v24  ;;  %v3956_v0 = vmin.f32 %v3955_v55, %v3896_v24  ;;  %s7758_s25 = smul.f32 0.003921569, %s4574_s17 }
0x119e   :  { %v3918_v58 = vsub.f32 %v3917_v54, %v7674_v34  ;;  %v3950_v1 = vsub.f32 %v3949_v17, %v7680_v57  ;;  %s7760_s28 = smul.f32 0.003921569, %s4575_s16  ;;  %v7766_v33 = vstv %s7756_s13 }
0x119f   :  { %v3925_v39 = vmul.f32 %v3924_v18, %v7632_v21  ;;  %v3957_v27 = vmul.f32 %v3956_v0, %v7632_v21  ;;  %v7769_v52 = vstv %s7758_s25  ;;  %5219 = vrcp.f32 %v7766_v33 }
0x11a0   :  { %v3919_v28 = vmul.f32 %v3918_v58, %v3918_v58  ;;  %v3951_v29 = vmul.f32 %v3950_v1, %v3950_v1  ;;  %v7773_v59 = vstv %s7760_s28  ;;  %5221 = vrcp.f32 %v7769_v52 }
0x11a1   :  { %v3926_v30 = vsub.f32 %v3925_v39, %v7674_v34  ;;  %v3958_v56 = vsub.f32 %v3957_v27, %v7680_v57  ;;  %5223 = vrcp.f32 %v7773_v59 }
0x11a2   :  { %v3952_v7 = vadd.f32 %v3951_v29, %v3919_v28 }
0x11a3   :  { %v3927_v44 = vmul.f32 %v3926_v30, %v3926_v30  ;;  %v3959_v6 = vmul.f32 %v3958_v56, %v3958_v56 }
0x11a4   :  { %3989 = vadd.xlane.f32.xlu0 %v3952_v7 }
0x11a5   :  { %v3960_v31 = vadd.f32 %v3959_v6, %v3927_v44 }
0x11a6   :  { %v5218_v10 = vpop.eup %5217 }
0x11a7   :  { %4003 = vadd.xlane.f32.xlu1 %v3960_v31 }
0x11a9   :  { %v5220_v63 = vpop.eup %5219 }
0x11aa   :  { %v5222_v2 = vpop.eup %5221 }
0x11ab   :  { %v5224_v3 = vpop.eup %5223 }
0x1225   :  { %v3962_v35 = vpop.xlane.xlu0 %3961 }
0x1226   :  { %v3963_v36 = vrot.slane %v3962_v35, 4 }
0x1228   :  { %v3976_v12 = vpop.xlane.xlu1 %3975  ;;  %v3964_v37 = vadd.f32 %v3963_v36, %v3962_v35 }
0x1229   :  { %v3977_v21 = vrot.slane %v3976_v12, 4 }
0x122a   :  { %v3965_v23 = vrot.slane %v3964_v37, 2 }
0x122b   :  { %v3978_v11 = vadd.f32 %v3977_v21, %v3976_v12 }
0x122c   :  { %v3966_v46 = vadd.f32 %v3965_v23, %v3964_v37 }
0x122d   :  { %v3979_v53 = vrot.slane %v3978_v11, 2 }
0x122e   :  { %v3967_v47 = vrot.slane %v3966_v46, 1 }
0x122f   :  { %v3980_v32 = vadd.f32 %v3979_v53, %v3978_v11 }
0x1230   :  { %v3968_v48 = vadd.f32 %v3967_v47, %v3966_v46 }
0x1231   :  { %v3981_v22 = vrot.slane %v3980_v32, 1  ;;  %v3990_v9 = vpop.xlane.xlu0 %3989 }
0x1232   :  { %v3991_v20 = vrot.slane %v3990_v9, 4  ;;  %5014 = vpush %v3968_v48 }
0x1233   :  { %v3982_v19 = vadd.f32 %v3981_v22, %v3980_v32 }
0x1234   :  { %v4004_v49 = vpop.xlane.xlu1 %4003  ;;  %v3992_v50 = vadd.f32 %v3991_v20, %v3990_v9 }
0x1235   :  { %5016 = vpush %v3982_v19  ;;  %v4005_v26 = vrot.slane %v4004_v49, 4 }
0x1236   :  { %v3993_v25 = vrot.slane %v3992_v50, 2 }
0x1237   :  { %v4006_v43 = vadd.f32 %v4005_v26, %v4004_v49 }
0x1238   :  { %v3994_v42 = vadd.f32 %v3993_v25, %v3992_v50 }
0x1239   :  { %v4007_v60 = vrot.slane %v4006_v43, 2 }
0x123a   :  { %v3995_v61 = vrot.slane %v3994_v42, 1 }
0x123b   :  { %v4008_v62 = vadd.f32 %v4007_v60, %v4006_v43 }
0x123c   :  { %v3996_v41 = vadd.f32 %v3995_v61, %v3994_v42 }
0x123d   :  { %v4009_v40 = vrot.slane %v4008_v62, 1 }
0x123e   :  { %5018 = vpush %v3996_v41 }
0x123f   :  { %v4010_v38 = vadd.f32 %v4009_v40, %v4008_v62 }
0x1241   :  { %5020 = vpush %v4010_v38 }
0x1242   :  { %5022 = vpush %v5218_v10 }
0x1243   :  { %5024 = vpush %v5220_v63 }
0x1244   :  { %5026 = vpush %v5222_v2 }
0x1245   :  { %5028 = vpush %v5224_v3 }
0x1263   :  { %s5015_s27 = spop %5014 }
0x1264   :  { %p3970_p0 = scmp.lt.f32.partialorder %s5015_s27, %s8757_s6 }
0x1266   :  { %s5017_s11 = spop %5016  ;;  %s8773_s27 = smov (!%p3970_p0, %s5015_s27), %s8757_s6 }
0x1267   :  { %s8775_s8 = smov (!%p3970_p0, %s7613_s8), %s8759_s20  ;;  %s8777_s15 = smov (!%p3970_p0, %s7651_s15), %s8761_s23 }
0x1268   :  { %s8779_s9 = smov (!%p3970_p0, %s8765_s9), %s8763_s12  ;;  %p3984_p1 = scmp.lt.f32.partialorder %s5017_s11, %s8773_s27 }
0x126a   :  { %s8781_s11 = smov (!%p3984_p1, %s5017_s11), %s8773_s27  ;;  %s8783_s24 = smov (!%p3984_p1, %s7615_s24), %s8775_s8 }
0x126b   :  { %s8785_s26 = smov (!%p3984_p1, %s7655_s26), %s8777_s15  ;;  %s8787_s1 = smov (!%p3984_p1, %s8767_s1), %s8779_s9 }
0x126f   :  { %s5019_s3 = spop %5018 }
0x1270   :  { %p3998_p2 = scmp.lt.f32.partialorder %s5019_s3, %s8781_s11 }
0x1272   :  { %s5021_s10 = spop %5020  ;;  %s8789_s3 = smov (!%p3998_p2, %s5019_s3), %s8781_s11 }
0x1273   :  { %s8791_s19 = smov (!%p3998_p2, %s7617_s19), %s8783_s24  ;;  %s8793_s14 = smov (!%p3998_p2, %s7691_s14), %s8785_s26 }
0x1274   :  { %s8795_s5 = smov (!%p3998_p2, %s8769_s5), %s8787_s1  ;;  %p4012_p3 = scmp.lt.f32.partialorder %s5021_s10, %s8789_s3 }
0x1275   :  { %s7792_s20 = spop %5022 }
0x1276   :  { %s4027_s23 = smul.f32 %s7792_s20, %s8063_s29  ;;  %s7796_s12 = spop %5024  ;;  %v4039_v4 = vstv %s7792_s20 }
0x1277   :  { %s8797_s10 = smov (!%p4012_p3, %s5021_s10), %s8789_s3  ;;  %s8799_s30 = smov (!%p4012_p3, %s7619_s30), %s8791_s19  ;;  %v4117_v45 = vmul.f32 %v7674_v34, %v4039_v4  ;;  %v4149_v5 = vmul.f32 %v7680_v57, %v4039_v4  ;;  %v4064_v13 = vstv %s7796_s12 }
0x1278   :  { %s8801_s4 = smov (!%p4012_p3, %s7699_s4), %s8793_s14  ;;  %s8803_s22 = smov (!%p4012_p3, %s8771_s22), %s8795_s5  ;;  %v4125_v14 = vmul.f32 %v7674_v34, %v4064_v13  ;;  %v4157_v15 = vmul.f32 %v7680_v57, %v4064_v13 }
0x1279   :  { %s4028_s8 = scvt.f32.s32 %s4027_s23  ;;  %s4031_s24 = sand.u32 2147483648, %s4027_s23  ;;  %v5030_v16 = vround.rtne.f32 %v4117_v45  ;;  %v5034_v8 = vround.rtne.f32 %v4149_v5 }
0x127a   :  { %s4033_s6 = sand.u32 2147483647, %s4027_s23  ;;  %s4052_s15 = smul.f32 %s7796_s12, %s8063_s29  ;;  %v5031_v17 = vround.rtne.f32 %v4125_v14  ;;  %v5035_v18 = vround.rtne.f32 %v4157_v15 }
0x127b   :  { %s4029_s26 = scvt.s32.f32 %s4028_s8  ;;  %p4034_p4 = scmp.lt.f32.partialorder %s4033_s6, 2.1474836e+09 }
0x127c   :  { %s4053_s9 = scvt.f32.s32 %s4052_s15  ;;  %s4056_s1 = sand.u32 2147483648, %s4052_s15 }
0x127d   :  { %s4030_s7 = sand.u32 2147483647, %s4029_s26  ;;  %s4058_s2 = sand.u32 2147483647, %s4052_s15 }
0x127e   :  { %s4032_s17 = sor.u32 %s4031_s24, %s4030_s7  ;;  %s4054_s19 = scvt.s32.f32 %s4053_s9 }
0x127f   :  { %s8805_s17 = smov (!%p4034_p4, %s4032_s17), %s4027_s23  ;;  %p4059_p5 = scmp.lt.f32.partialorder %s4058_s2, 2.1474836e+09 }
0x1280   :  { %s4055_s14 = sand.u32 2147483647, %s4054_s19  ;;  %s4036_s5 = ssub.f32 0.0, %s8805_s17 }
0x1281   :  { %s4057_s16 = sor.u32 %s4056_s1, %s4055_s14  ;;  %s7822_s27 = spop %5026 }
0x1282   :  { %s8807_s16 = smov (!%p4059_p5, %s4057_s16), %s4052_s15  ;;  %v4040_v55 = vstv %s4036_s5  ;;  %s4037_s11 = ssub.f32 255.0, %s8805_s17  ;;  %v4089_v29 = vstv %s7822_s27 }
0x1283   :  { %v4119_v24 = vmax.f32 %v5030_v16, %v4040_v55  ;;  %v4151_v54 = vmax.f32 %v5034_v8, %v4040_v55  ;;  %s4061_s3 = ssub.f32 0.0, %s8807_s16  ;;  %s7828_s23 = smul.f32 %s7822_s27, %s8063_s29  ;;  %v4133_v31 = vmul.f32 %v7674_v34, %v4089_v29  ;;  %v4165_v35 = vmul.f32 %v7680_v57, %v4089_v29 }
0x1284   :  { %s7830_s8 = spop %5028  ;;  %s4062_s24 = ssub.f32 255.0, %s8807_s16  ;;  %v4041_v0 = vstv %s4037_s11 }
0x1285   :  { %v4065_v58 = vstv %s4061_s3  ;;  %s4078_s6 = scvt.f32.s32 %s7828_s23  ;;  %s4081_s15 = sand.u32 2147483648, %s7828_s23  ;;  %v4120_v1 = vmin.f32 %v4119_v24, %v4041_v0  ;;  %v4152_v39 = vmin.f32 %v4151_v54, %v4041_v0  ;;  %v4114_v12 = vstv %s7830_s8 }
0x1286   :  { %v4127_v27 = vmax.f32 %v5031_v17, %v4065_v58  ;;  %v4159_v28 = vmax.f32 %v5035_v18, %v4065_v58  ;;  %s4083_s26 = sand.u32 2147483647, %s7828_s23  ;;  %s7839_s9 = smul.f32 %s7830_s8, %s8063_s29  ;;  %v4066_v30 = vstv %s4062_s24  ;;  %v5032_v47 = vround.rtne.f32 %v4133_v31 }
0x1287   :  { %s4079_s1 = scvt.s32.f32 %s4078_s6  ;;  %p7841_p6 = scmp.lt.f32.partialorder %s4083_s26, 2.1474836e+09  ;;  %v4121_v56 = vmul.f32 %v4120_v1, %v7763_v51  ;;  %v4153_v6 = vmul.f32 %v4152_v39, %v7763_v51  ;;  %v4141_v22 = vmul.f32 %v7674_v34, %v4114_v12  ;;  %v4173_v48 = vmul.f32 %v7680_v57, %v4114_v12 }
0x1288   :  { %s4103_s2 = scvt.f32.s32 %s7839_s9  ;;  %s4106_s19 = sand.u32 2147483648, %s7839_s9  ;;  %v4128_v7 = vmin.f32 %v4127_v27, %v4066_v30  ;;  %v4160_v44 = vmin.f32 %v4159_v28, %v4066_v30  ;;  %v5036_v9 = vround.rtne.f32 %v4165_v35 }
0x1289   :  { %s4080_s14 = sand.u32 2147483647, %s4079_s1  ;;  %s4108_s5 = sand.u32 2147483647, %s7839_s9  ;;  %v4122_v36 = vsub.f32 %v4121_v56, %v7674_v34  ;;  %v4154_v11 = vsub.f32 %v4153_v6, %v7680_v57  ;;  %v5033_v25 = vround.rtne.f32 %v4141_v22  ;;  %v5037_v43 = vround.rtne.f32 %v4173_v48 }
0x128a   :  { %s4082_s11 = sor.u32 %s4081_s15, %s4080_s14  ;;  %s4104_s3 = scvt.s32.f32 %s4103_s2  ;;  %v4129_v21 = vmul.f32 %v4128_v7, %v7766_v33  ;;  %v4161_v37 = vmul.f32 %v4160_v44, %v7766_v33 }
0x128b   :  { %s8809_s11 = smov (!%p7841_p6, %s4082_s11), %s7828_s23  ;;  %v4123_v23 = vmul.f32 %v4122_v36, %v4122_v36  ;;  %p4109_p7 = scmp.lt.f32.partialorder %s4108_s5, 2.1474836e+09  ;;  %v4155_v32 = vmul.f32 %v4154_v11, %v4154_v11 }
0x128c   :  { %s4105_s24 = sand.u32 2147483647, %s4104_s3  ;;  %v4130_v53 = vsub.f32 %v4129_v21, %v7674_v34  ;;  %v4162_v46 = vsub.f32 %v4161_v37, %v7680_v57  ;;  %s4086_s6 = ssub.f32 0.0, %s8809_s11 }
0x128d   :  { %s4107_s15 = sor.u32 %s4106_s19, %s4105_s24  ;;  %v4156_v49 = vadd.f32 %v4155_v32, %v4123_v23  ;;  %s4087_s23 = ssub.f32 255.0, %s8809_s11 }
0x128e   :  { %s8811_s15 = smov (!%p4109_p7, %s4107_s15), %s7839_s9  ;;  %v4131_v20 = vmul.f32 %v4130_v53, %v4130_v53  ;;  %v4163_v19 = vmul.f32 %v4162_v46, %v4162_v46  ;;  %v4090_v50 = vstv %s4086_s6  ;;  %s4576_s9 = sadd.f32 -0.76, %s5294_s21 }
0x128f   :  { %v4135_v51 = vmax.f32 %v5032_v47, %v4090_v50  ;;  %v4167_v26 = vmax.f32 %v5036_v9, %v4090_v50  ;;  %s4111_s26 = ssub.f32 0.0, %s8811_s15  ;;  %4181 = vadd.xlane.f32.xlu0 %v4156_v49  ;;  %v4091_v42 = vstv %s4087_s23 }
0x1290   :  { %v4164_v33 = vadd.f32 %v4163_v19, %v4131_v20  ;;  %s4112_s1 = ssub.f32 255.0, %s8811_s15  ;;  %s7885_s14 = smul.f32 0.003921569, %s4576_s9 }
0x1291   :  { %v4115_v60 = vstv %s4111_s26  ;;  %v4136_v61 = vmin.f32 %v4135_v51, %v4091_v42  ;;  %v4168_v62 = vmin.f32 %v4167_v26, %v4091_v42  ;;  %s4577_s7 = sadd.f32 -0.77, %s5294_s21 }
0x1292   :  { %4195 = vadd.xlane.f32.xlu1 %v4164_v33  ;;  %v4143_v41 = vmax.f32 %v5033_v25, %v4115_v60  ;;  %v4175_v40 = vmax.f32 %v5037_v43, %v4115_v60  ;;  %v4116_v38 = vstv %s4112_s1  ;;  %s4578_s2 = sadd.f32 -0.78, %s5294_s21  ;;  %v7894_v12 = vstv %s7885_s14 }
0x1293   :  { %v4137_v10 = vmul.f32 %v4136_v61, %v7769_v52  ;;  %v4169_v63 = vmul.f32 %v4168_v62, %v7769_v52  ;;  %s4579_s19 = sadd.f32 -0.78999996, %s5294_s21  ;;  %s7887_s5 = smul.f32 0.003921569, %s4577_s7  ;;  %5225 = vrcp.f32 %v7894_v12 }
0x1294   :  { %v4144_v2 = vmin.f32 %v4143_v41, %v4116_v38  ;;  %v4176_v3 = vmin.f32 %v4175_v40, %v4116_v38  ;;  %s7889_s3 = smul.f32 0.003921569, %s4578_s2 }
0x1295   :  { %v4138_v4 = vsub.f32 %v4137_v10, %v7674_v34  ;;  %v4170_v45 = vsub.f32 %v4169_v63, %v7680_v57  ;;  %s7891_s24 = smul.f32 0.003921569, %s4579_s19  ;;  %v7897_v37 = vstv %s7887_s5 }
0x1296   :  { %v4145_v5 = vmul.f32 %v4144_v2, %v7773_v59  ;;  %v4177_v13 = vmul.f32 %v4176_v3, %v7773_v59  ;;  %v7900_v23 = vstv %s7889_s3  ;;  %5227 = vrcp.f32 %v7897_v37 }
0x1297   :  { %v4139_v14 = vmul.f32 %v4138_v4, %v4138_v4  ;;  %v4171_v15 = vmul.f32 %v4170_v45, %v4170_v45  ;;  %v7904_v46 = vstv %s7891_s24  ;;  %5229 = vrcp.f32 %v7900_v23 }
0x1298   :  { %v4146_v16 = vsub.f32 %v4145_v5, %v7674_v34  ;;  %v4178_v8 = vsub.f32 %v4177_v13, %v7680_v57  ;;  %5231 = vrcp.f32 %v7904_v46 }
0x1299   :  { %v4172_v55 = vadd.f32 %v4171_v15, %v4139_v14 }
0x129a   :  { %v4147_v52 = vmul.f32 %v4146_v16, %v4146_v16  ;;  %v4179_v24 = vmul.f32 %v4178_v8, %v4178_v8 }
0x129b   :  { %4209 = vadd.xlane.f32.xlu0 %v4172_v55 }
0x129c   :  { %v4180_v54 = vadd.f32 %v4179_v24, %v4147_v52 }
0x129d   :  { %v5226_v49 = vpop.eup %5225 }
0x129e   :  { %4223 = vadd.xlane.f32.xlu1 %v4180_v54 }
0x12a0   :  { %v5228_v50 = vpop.eup %5227 }
0x12a1   :  { %v5230_v51 = vpop.eup %5229 }
0x12a2   :  { %v5232_v26 = vpop.eup %5231 }
0x131c   :  { %v4182_v17 = vpop.xlane.xlu0 %4181 }
0x131d   :  { %v4183_v18 = vrot.slane %v4182_v17, 4 }
0x131f   :  { %v4196_v0 = vpop.xlane.xlu1 %4195  ;;  %v4184_v58 = vadd.f32 %v4183_v18, %v4182_v17 }
0x1320   :  { %v4197_v59 = vrot.slane %v4196_v0, 4 }
0x1321   :  { %v4185_v39 = vrot.slane %v4184_v58, 2 }
0x1322   :  { %v4198_v1 = vadd.f32 %v4197_v59, %v4196_v0 }
0x1323   :  { %v4186_v28 = vadd.f32 %v4185_v39, %v4184_v58 }
0x1324   :  { %v4199_v27 = vrot.slane %v4198_v1, 2 }
0x1325   :  { %v4187_v30 = vrot.slane %v4186_v28, 1 }
0x1326   :  { %v4200_v29 = vadd.f32 %v4199_v27, %v4198_v1 }
0x1327   :  { %v4188_v7 = vadd.f32 %v4187_v30, %v4186_v28 }
0x1328   :  { %v4201_v56 = vrot.slane %v4200_v29, 1  ;;  %v4210_v44 = vpop.xlane.xlu0 %4209 }
0x1329   :  { %v4211_v6 = vrot.slane %v4210_v44, 4  ;;  %5038 = vpush %v4188_v7 }
0x132a   :  { %v4202_v31 = vadd.f32 %v4201_v56, %v4200_v29 }
0x132b   :  { %v4224_v35 = vpop.xlane.xlu1 %4223  ;;  %v4212_v36 = vadd.f32 %v4211_v6, %v4210_v44 }
0x132c   :  { %5040 = vpush %v4202_v31  ;;  %v4225_v21 = vrot.slane %v4224_v35, 4 }
0x132d   :  { %v4213_v11 = vrot.slane %v4212_v36, 2 }
0x132e   :  { %v4226_v53 = vadd.f32 %v4225_v21, %v4224_v35 }
0x132f   :  { %v4214_v32 = vadd.f32 %v4213_v11, %v4212_v36 }
0x1330   :  { %v4227_v47 = vrot.slane %v4226_v53, 2 }
0x1331   :  { %v4215_v22 = vrot.slane %v4214_v32, 1 }
0x1332   :  { %v4228_v48 = vadd.f32 %v4227_v47, %v4226_v53 }
0x1333   :  { %v4216_v9 = vadd.f32 %v4215_v22, %v4214_v32 }
0x1334   :  { %v4229_v20 = vrot.slane %v4228_v48, 1 }
0x1335   :  { %5042 = vpush %v4216_v9 }
0x1336   :  { %v4230_v19 = vadd.f32 %v4229_v20, %v4228_v48 }
0x1338   :  { %5044 = vpush %v4230_v19 }
0x1339   :  { %5046 = vpush %v5226_v49 }
0x133a   :  { %5048 = vpush %v5228_v50 }
0x133b   :  { %5050 = vpush %v5230_v51 }
0x133c   :  { %5052 = vpush %v5232_v26 }
0x135a   :  { %s5039_s21 = spop %5038 }
0x135b   :  { %p4190_p8 = scmp.lt.f32.partialorder %s5039_s21, %s8797_s10 }
0x135d   :  { %s5041_s6 = spop %5040  ;;  %s8813_s21 = smov (!%p4190_p8, %s5039_s21), %s8797_s10 }
0x135e   :  { %s8815_s18 = smov (!%p4190_p8, %s7754_s18), %s8799_s30  ;;  %s8817_s20 = smov (!%p4190_p8, %s7792_s20), %s8801_s4 }
0x135f   :  { %s8819_s17 = smov (!%p4190_p8, %s8805_s17), %s8803_s22  ;;  %p4204_p9 = scmp.lt.f32.partialorder %s5041_s6, %s8813_s21 }
0x1361   :  { %s8821_s6 = smov (!%p4204_p9, %s5041_s6), %s8813_s21  ;;  %s8823_s13 = smov (!%p4204_p9, %s7756_s13), %s8815_s18 }
0x1362   :  { %s8825_s12 = smov (!%p4204_p9, %s7796_s12), %s8817_s20  ;;  %s8827_s16 = smov (!%p4204_p9, %s8807_s16), %s8819_s17 }
0x1366   :  { %s5043_s23 = spop %5042 }
0x1367   :  { %p4218_p10 = scmp.lt.f32.partialorder %s5043_s23, %s8821_s6 }
0x1369   :  { %s5045_s26 = spop %5044  ;;  %s8829_s23 = smov (!%p4218_p10, %s5043_s23), %s8821_s6 }
0x136a   :  { %s8831_s25 = smov (!%p4218_p10, %s7758_s25), %s8823_s13  ;;  %s8833_s27 = smov (!%p4218_p10, %s7822_s27), %s8825_s12 }
0x136b   :  { %s8835_s11 = smov (!%p4218_p10, %s8809_s11), %s8827_s16  ;;  %p4232_p11 = scmp.lt.f32.partialorder %s5045_s26, %s8829_s23 }
0x136c   :  { %s7923_s30 = spop %5046 }
0x136d   :  { %s4247_s4 = smul.f32 %s7923_s30, %s8063_s29  ;;  %s7927_s22 = spop %5048  ;;  %v4259_v33 = vstv %s7923_s30 }
0x136e   :  { %s8837_s26 = smov (!%p4232_p11, %s5045_s26), %s8829_s23  ;;  %s8839_s28 = smov (!%p4232_p11, %s7760_s28), %s8831_s25  ;;  %v4337_v25 = vmul.f32 %v7674_v34, %v4259_v33  ;;  %v4369_v43 = vmul.f32 %v7680_v57, %v4259_v33  ;;  %v4284_v42 = vstv %s7927_s22 }
0x136f   :  { %s8841_s8 = smov (!%p4232_p11, %s7830_s8), %s8833_s27  ;;  %s8843_s15 = smov (!%p4232_p11, %s8811_s15), %s8835_s11  ;;  %v4345_v60 = vmul.f32 %v7674_v34, %v4284_v42  ;;  %v4377_v61 = vmul.f32 %v7680_v57, %v4284_v42 }
0x1370   :  { %s4248_s18 = scvt.f32.s32 %s4247_s4  ;;  %s4251_s13 = sand.u32 2147483648, %s4247_s4  ;;  %v5054_v62 = vround.rtne.f32 %v4337_v25  ;;  %v5058_v41 = vround.rtne.f32 %v4369_v43 }
0x1371   :  { %s4253_s10 = sand.u32 2147483647, %s4247_s4  ;;  %s4272_s20 = smul.f32 %s7927_s22, %s8063_s29  ;;  %v5055_v63 = vround.rtne.f32 %v4345_v60  ;;  %v5059_v2 = vround.rtne.f32 %v4377_v61 }
0x1372   :  { %s4249_s12 = scvt.s32.f32 %s4248_s18  ;;  %p4254_p12 = scmp.lt.f32.partialorder %s4253_s10, 2.1474836e+09 }
0x1373   :  { %s4273_s17 = scvt.f32.s32 %s4272_s20  ;;  %s4276_s16 = sand.u32 2147483648, %s4272_s20 }
0x1374   :  { %s4250_s1 = sand.u32 2147483647, %s4249_s12  ;;  %s4278_s9 = sand.u32 2147483647, %s4272_s20 }
0x1375   :  { %s4252_s7 = sor.u32 %s4251_s13, %s4250_s1  ;;  %s4274_s25 = scvt.s32.f32 %s4273_s17 }
0x1376   :  { %s8845_s7 = smov (!%p4254_p12, %s4252_s7), %s4247_s4  ;;  %p4279_p13 = scmp.lt.f32.partialorder %s4278_s9, 2.1474836e+09 }
0x1377   :  { %s4275_s27 = sand.u32 2147483647, %s4274_s25  ;;  %s4256_s11 = ssub.f32 0.0, %s8845_s7 }
0x1378   :  { %s4277_s2 = sor.u32 %s4276_s16, %s4275_s27  ;;  %s7953_s19 = spop %5050 }
0x1379   :  { %s8847_s2 = smov (!%p4279_p13, %s4277_s2), %s4272_s20  ;;  %v4260_v40 = vstv %s4256_s11  ;;  %s4257_s21 = ssub.f32 255.0, %s8845_s7  ;;  %v4309_v15 = vstv %s7953_s19 }
0x137a   :  { %v4339_v38 = vmax.f32 %v5054_v62, %v4260_v40  ;;  %v4371_v10 = vmax.f32 %v5058_v41, %v4260_v40  ;;  %s4281_s6 = ssub.f32 0.0, %s8847_s2  ;;  %s7959_s23 = smul.f32 %s7953_s19, %s8063_s29  ;;  %v4353_v54 = vmul.f32 %v7674_v34, %v4309_v15  ;;  %v4385_v17 = vmul.f32 %v7680_v57, %v4309_v15 }
0x137b   :  { %s7961_s4 = spop %5052  ;;  %s4282_s18 = ssub.f32 255.0, %s8847_s2  ;;  %v4261_v3 = vstv %s4257_s21 }
0x137c   :  { %v4285_v4 = vstv %s4281_s6  ;;  %s4298_s13 = scvt.f32.s32 %s7959_s23  ;;  %s4301_s10 = sand.u32 2147483648, %s7959_s23  ;;  %v4340_v45 = vmin.f32 %v4339_v38, %v4261_v3  ;;  %v4372_v5 = vmin.f32 %v4371_v10, %v4261_v3  ;;  %v4334_v0 = vstv %s7961_s4 }
0x137d   :  { %v4347_v13 = vmax.f32 %v5055_v63, %v4285_v4  ;;  %v4379_v14 = vmax.f32 %v5059_v2, %v4285_v4  ;;  %s4303_s20 = sand.u32 2147483647, %s7959_s23  ;;  %s7970_s12 = smul.f32 %s7961_s4, %s8063_s29  ;;  %v4286_v16 = vstv %s4282_s18  ;;  %v5056_v30 = vround.rtne.f32 %v4353_v54 }
0x137e   :  { %s4299_s17 = scvt.s32.f32 %s4298_s13  ;;  %p7972_p0 = scmp.lt.f32.partialorder %s4303_s20, 2.1474836e+09  ;;  %v4341_v8 = vmul.f32 %v4340_v45, %v7894_v12  ;;  %v4373_v24 = vmul.f32 %v4372_v5, %v7894_v12  ;;  %v4361_v56 = vmul.f32 %v7674_v34, %v4334_v0  ;;  %v4393_v7 = vmul.f32 %v7680_v57, %v4334_v0 }
0x137f   :  { %s4323_s1 = scvt.f32.s32 %s7970_s12  ;;  %s4326_s9 = sand.u32 2147483648, %s7970_s12  ;;  %v4348_v55 = vmin.f32 %v4347_v13, %v4286_v16  ;;  %v4380_v52 = vmin.f32 %v4379_v14, %v4286_v16  ;;  %v5060_v44 = vround.rtne.f32 %v4385_v17 }
0x1380   :  { %s4300_s29 = sand.u32 2147483647, %s4299_s17  ;;  %s4328_s25 = sand.u32 2147483647, %s7970_s12  ;;  %v4342_v18 = vsub.f32 %v4341_v8, %v7674_v34  ;;  %v4374_v1 = vsub.f32 %v4373_v24, %v7680_v57  ;;  %v5057_v11 = vround.rtne.f32 %v4361_v56  ;;  %v5061_v53 = vround.rtne.f32 %v4393_v7  ;;  %v4580_v56 = vld [vmem:[%s8048_s0 + $0x8] sm:$0xff] }
0x1381   :  { %s4302_s27 = sor.u32 %s4301_s10, %s4300_s29  ;;  %s4324_s11 = scvt.s32.f32 %s4323_s1  ;;  %v4349_v59 = vmul.f32 %v4348_v55, %v7897_v37  ;;  %v4381_v58 = vmul.f32 %v4380_v52, %v7897_v37 }
0x1382   :  { %s8849_s27 = smov (!%p7972_p0, %s4302_s27), %s7959_s23  ;;  %v4343_v39 = vmul.f32 %v4342_v18, %v4342_v18  ;;  %p4329_p1 = scmp.lt.f32.partialorder %s4328_s25, 2.1474836e+09  ;;  %v4375_v29 = vmul.f32 %v4374_v1, %v4374_v1 }
0x1383   :  { %s4325_s21 = sand.u32 2147483647, %s4324_s11  ;;  %v4350_v27 = vsub.f32 %v4349_v59, %v7674_v34  ;;  %v4382_v28 = vsub.f32 %v4381_v58, %v7680_v57  ;;  %s4306_s6 = ssub.f32 0.0, %s8849_s27 }
0x1384   :  { %s4327_s18 = sor.u32 %s4326_s9, %s4325_s21  ;;  %v4376_v35 = vadd.f32 %v4375_v29, %v4343_v39  ;;  %s4307_s23 = ssub.f32 255.0, %s8849_s27 }
0x1385   :  { %s8851_s18 = smov (!%p4329_p1, %s4327_s18), %s7970_s12  ;;  %v4351_v6 = vmul.f32 %v4350_v27, %v4350_v27  ;;  %v4383_v31 = vmul.f32 %v4382_v28, %v4382_v28  ;;  %v4310_v36 = vstv %s4306_s6 }
0x1386   :  { %v4355_v12 = vmax.f32 %v5056_v30, %v4310_v36  ;;  %v4387_v21 = vmax.f32 %v5060_v44, %v4310_v36  ;;  %s4331_s13 = ssub.f32 0.0, %s8851_s18  ;;  %4401 = vadd.xlane.f32.xlu0 %v4376_v35  ;;  %v4311_v32 = vstv %s4307_s23  ;;  %v4466_v30 = vld [vmem:[%s8048_s0] sm:$0xff] }
0x1387   :  { %v4384_v37 = vadd.f32 %v4383_v31, %v4351_v6  ;;  %s4332_s10 = ssub.f32 255.0, %s8851_s18 }
0x1388   :  { %v4335_v47 = vstv %s4331_s13  ;;  %v4356_v22 = vmin.f32 %v4355_v12, %v4311_v32  ;;  %v4388_v48 = vmin.f32 %v4387_v21, %v4311_v32 }
0x1389   :  { %4415 = vadd.xlane.f32.xlu1 %v4384_v37  ;;  %v4363_v9 = vmax.f32 %v5057_v11, %v4335_v47  ;;  %v4395_v20 = vmax.f32 %v5061_v53, %v4335_v47  ;;  %v4336_v19 = vstv %s4332_s10 }
0x138a   :  { %v4357_v49 = vmul.f32 %v4356_v22, %v7900_v23  ;;  %v4389_v50 = vmul.f32 %v4388_v48, %v7900_v23 }
0x138b   :  { %v4364_v51 = vmin.f32 %v4363_v9, %v4336_v19  ;;  %v4396_v26 = vmin.f32 %v4395_v20, %v4336_v19 }
0x138c   :  { %v4358_v33 = vsub.f32 %v4357_v49, %v7674_v34  ;;  %v4390_v25 = vsub.f32 %v4389_v50, %v7680_v57 }
0x138d   :  { %v4365_v43 = vmul.f32 %v4364_v51, %v7904_v46  ;;  %v4397_v42 = vmul.f32 %v4396_v26, %v7904_v46 }
0x138e   :  { %v4359_v60 = vmul.f32 %v4358_v33, %v4358_v33  ;;  %v4391_v61 = vmul.f32 %v4390_v25, %v4390_v25 }
0x138f   :  { %v4366_v62 = vsub.f32 %v4365_v43, %v7674_v34  ;;  %v4398_v41 = vsub.f32 %v4397_v42, %v7680_v57 }
0x1390   :  { %v4392_v40 = vadd.f32 %v4391_v61, %v4359_v60 }
0x1391   :  { %v4367_v38 = vmul.f32 %v4366_v62, %v4366_v62  ;;  %v4399_v10 = vmul.f32 %v4398_v41, %v4398_v41 }
0x1392   :  { %4429 = vadd.xlane.f32.xlu0 %v4392_v40 }
0x1393   :  { %v4400_v23 = vadd.f32 %v4399_v10, %v4367_v38 }
0x1395   :  { %4443 = vadd.xlane.f32.xlu1 %v4400_v23 }
0x1413   :  { %v4402_v63 = vpop.xlane.xlu0 %4401 }
0x1414   :  { %v4403_v2 = vrot.slane %v4402_v63, 4 }
0x1416   :  { %v4416_v3 = vpop.xlane.xlu1 %4415  ;;  %v4404_v45 = vadd.f32 %v4403_v2, %v4402_v63 }
0x1417   :  { %v4417_v4 = vrot.slane %v4416_v3, 4 }
0x1418   :  { %v4405_v13 = vrot.slane %v4404_v45, 2 }
0x1419   :  { %v4418_v5 = vadd.f32 %v4417_v4, %v4416_v3 }
0x141a   :  { %v4406_v14 = vadd.f32 %v4405_v13, %v4404_v45 }
0x141b   :  { %v4419_v46 = vrot.slane %v4418_v5, 2 }
0x141c   :  { %v4407_v16 = vrot.slane %v4406_v14, 1 }
0x141d   :  { %v4420_v15 = vadd.f32 %v4419_v46, %v4418_v5 }
0x141e   :  { %v4408_v8 = vadd.f32 %v4407_v16, %v4406_v14 }
0x141f   :  { %v4421_v34 = vrot.slane %v4420_v15, 1  ;;  %v4430_v57 = vpop.xlane.xlu0 %4429 }
0x1420   :  { %v4431_v55 = vrot.slane %v4430_v57, 4  ;;  %5062 = vpush %v4408_v8 }
0x1421   :  { %v4422_v52 = vadd.f32 %v4421_v34, %v4420_v15 }
0x1422   :  { %v4444_v24 = vpop.xlane.xlu1 %4443  ;;  %v4432_v54 = vadd.f32 %v4431_v55, %v4430_v57 }
0x1423   :  { %5064 = vpush %v4422_v52  ;;  %v4445_v17 = vrot.slane %v4444_v24, 4 }
0x1424   :  { %v4433_v18 = vrot.slane %v4432_v54, 2 }
0x1425   :  { %v4446_v0 = vadd.f32 %v4445_v17, %v4444_v24 }
0x1426   :  { %v4434_v59 = vadd.f32 %v4433_v18, %v4432_v54 }
0x1427   :  { %v4447_v58 = vrot.slane %v4446_v0, 2 }
0x1428   :  { %v4435_v1 = vrot.slane %v4434_v59, 1 }
0x1429   :  { %v4448_v39 = vadd.f32 %v4447_v58, %v4446_v0 }
0x142a   :  { %v4436_v27 = vadd.f32 %v4435_v1, %v4434_v59 }
0x142b   :  { %v4449_v28 = vrot.slane %v4448_v39, 1 }
0x142c   :  { %5066 = vpush %v4436_v27 }
0x142d   :  { %v4450_v29 = vadd.f32 %v4449_v28, %v4448_v39 }
0x142f   :  { %5068 = vpush %v4450_v29 }
0x1451   :  { %s5063_s20 = spop %5062 }
0x1452   :  { %p4410_p2 = scmp.lt.f32.partialorder %s5063_s20, %s8837_s26 }
0x1454   :  { %s5065_s12 = spop %5064  ;;  %s8853_s20 = smov (!%p4410_p2, %s5063_s20), %s8837_s26 }
0x1455   :  { %s8855_s14 = smov (!%p4410_p2, %s7885_s14), %s8839_s28  ;;  %s8857_s30 = smov (!%p4410_p2, %s7923_s30), %s8841_s8 }
0x1456   :  { %s8859_s7 = smov (!%p4410_p2, %s8845_s7), %s8843_s15  ;;  %p4424_p3 = scmp.lt.f32.partialorder %s5065_s12, %s8853_s20 }
0x1457   :  { %s8082_s8 = sld [smem:[#allocation9_spill]] }
0x1458   :  { %s8861_s12 = smov (!%p4424_p3, %s5065_s12), %s8853_s20  ;;  %s8863_s5 = smov (!%p4424_p3, %s7887_s5), %s8855_s14 }
0x1459   :  { %s8865_s22 = smov (!%p4424_p3, %s7927_s22), %s8857_s30  ;;  %s8867_s2 = smov (!%p4424_p3, %s8847_s2), %s8859_s7 }
0x145d   :  { %s5067_s17 = spop %5066  ;;  %s4489_s1 = sshll.u32 %s8082_s8, 4  ;;  %s4490_s1 = int_to_ptr.vmem [resolvable:$true] %s4489_s1 }
0x145e   :  { %p4438_p4 = scmp.lt.f32.partialorder %s5067_s17, %s8861_s12  ;;  %p5250_p7 = scmp.lt.s32.totalorder %s4490_s1, %s4490_s1 }
0x1460   :  { %s5069_s16 = spop %5068  ;;  %s8869_s17 = smov (!%p4438_p4, %s5067_s17), %s8861_s12 }
0x1461   :  { %s8871_s3 = smov (!%p4438_p4, %s7889_s3), %s8863_s5  ;;  %s8873_s19 = smov (!%p4438_p4, %s7953_s19), %s8865_s22 }
0x1462   :  { %s8875_s27 = smov (!%p4438_p4, %s8849_s27), %s8867_s2  ;;  %p4452_p5 = scmp.lt.f32.partialorder %s5069_s16, %s8869_s17 }
0x1464   :  { %s8877_s24 = smov (!%p4452_p5, %s7891_s24), %s8871_s3  ;;  %s8879_s4 = smov (!%p4452_p5, %s7961_s4), %s8873_s19 }
0x1465   :  { %s8881_s18 = smov (!%p4452_p5, %s8851_s18), %s8875_s27  ;;  %v4461_v7 = vstv %s8879_s4  ;;  %4457 = sst [smem:[#allocation3]] %s8877_s24 }
0x1466   :  { %s4462_s5 = ssub.f32 0.0, %s8881_s18  ;;  %v4467_v44 = vmul.f32 %v4466_v30, %v4461_v7  ;;  %v4474_v6 = vmul.f32 %v4580_v56, %v4461_v7  ;;  %s5245_s3 = scalar_lea.vmem %s4490_s1, 16 }
0x1467   :  { %s4464_s22 = ssub.f32 255.0, %s8881_s18  ;;  %p5246_p6 = scmp.ne.s32.totalorder %s4490_s1, %s5245_s3 }
0x1468   :  { %v5070_v31 = vround.rtne.f32 %v4467_v44  ;;  %v5071_v35 = vround.rtne.f32 %v4474_v6  ;;  %4459 = sst [smem:[#allocation3 + $0x1]] %s8881_s18  ;;  %v4463_v36 = vstv %s4462_s5  ;;  %p5251_p8 = scmp.lt.s32.totalorder %s5245_s3, %s5245_s3 }
0x146a   :  { %p5252_p9 = por %p5251_p8, %p5250_p7 }
0x146c   :  { %p5253_p10 = pnand %p5252_p9, %p5246_p6 }
0x146e   :  { %5256 = shalt.err (!%p5253_p10)
}
0x146f   :  { %s5259_s0 = smov [#allocation3]   ;;  %v4469_v12 = vmax.f32 %v5070_v31, %v4463_v36  ;;  %v4476_v21 = vmax.f32 %v5071_v35, %v4463_v36  ;;  %v4465_v37 = vstv %s4464_s22  ;;  %v4460_v32 = vstv %s8877_s24  ;;  %s8083_s4 = sld [smem:[#allocation8_spill]] }
0x1470   :  { %4492 = dma.smem_to_vmem %s5259_s0, 16, %s4490_s1, [#allocation4]  }
0x1471   :  { %v4470_v11 = vmin.f32 %v4469_v12, %v4465_v37  ;;  %v4477_v53 = vmin.f32 %v4476_v21, %v4465_v37 }
0x1473   :  { %v4471_v47 = vmul.f32 %v4470_v11, %v4460_v32  ;;  %v4478_v22 = vmul.f32 %v4477_v53, %v4460_v32 }
0x1475   :  { %4472 = vst [vmem:[%s8083_s4] sm:$0xff] %v4471_v47  ;;  %4581 = vst [vmem:[%s8083_s4 + $0x8] sm:$0xff] %v4478_v22 }
0x1476   :  { %5257 = dma.done.wait [#allocation4], 16  }
0x1477   :  { %5258 = vsyncadd [#allocation4], 4294967280 }
0x1478   :  { %4498 = sfence }
0x1479   :  { %4499 = vsyncpa [#allocation4], 1 }

</bundles_post_ra>
